<compile_context>
chip_gen: v5e
topology: v5e:2x2
jax: 0.10.0
libtpu: 0.0.40
codegen_flags: <defaults>
</compile_context>

<pallas_src>
import functools
import math

import jax
import jax.numpy as jnp
from jax import lax
from jax.experimental import pallas as pl
from jax.experimental.pallas import tpu as pltpu

NEG_INF = -1e30    # finite stand-in for -inf (inf-inf NaN avoided; masks may stack to -2e30, fine in f32)
LN_EPS = 1e-5      # torch.nn.LayerNorm default
BF16 = jnp.bfloat16


# ----------------------------------------------------------------------------------
# In-kernel helpers (operate on VALUES already loaded from refs; traced inline)
# ----------------------------------------------------------------------------------
def _layer_norm(y, g, b):
    mu = jnp.mean(y, axis=-1, keepdims=True)
    var = jnp.mean((y - mu) ** 2, axis=-1, keepdims=True)
    return (y - mu) * lax.rsqrt(var + LN_EPS) * g + b


def _softmax_last(s):
    m = jnp.max(s, axis=-1, keepdims=True)
    e = jnp.exp(s - m)
    return e * pl.reciprocal(jnp.sum(e, axis=-1, keepdims=True), approx=True)


def _attn_core(q2d, k2d, v2d, bias, wo, bo, num_heads):
    """out_proj(softmax(q k^T / sqrt(d) + bias) v); q2d:(Sq,H) k2d/v2d:(Skv,H) f32; wo bf16."""
    sq, h = q2d.shape
    skv = k2d.shape[0]
    d = h // num_heads
    scale = 1.0 / math.sqrt(d)
    qh = q2d.reshape(sq, num_heads, d).transpose(1, 0, 2).astype(BF16)     # (nh, Sq, d)
    kh = k2d.reshape(skv, num_heads, d).transpose(1, 0, 2).astype(BF16)    # (nh, Skv, d)
    vh = v2d.reshape(skv, num_heads, d).transpose(1, 0, 2).astype(BF16)    # (nh, Skv, d)
    s = jnp.einsum("nqd,nkd->nqk", qh, kh, preferred_element_type=jnp.float32) * scale
    s = s + bias[None]                                                     # (nh, Sq, Skv)
    p = _softmax_last(s)
    ctx = jnp.einsum("nqk,nkd->nqd", p.astype(BF16), vh,
                     preferred_element_type=jnp.float32)                   # (nh, Sq, d)
    ctx2d = ctx.transpose(1, 0, 2).reshape(sq, h)                          # (Sq, H) lane-dense
    return jnp.dot(ctx2d.astype(BF16), wo, preferred_element_type=jnp.float32) + bo


def _self_attn_ln(x, bias, wqkv, bqkv, wo, bo, g, b, num_heads):
    h = x.shape[-1]
    qkv = jnp.dot(x.astype(BF16), wqkv, preferred_element_type=jnp.float32) + bqkv   # (S, 3H)
    attn = _attn_core(qkv[:, :h], qkv[:, h:2 * h], qkv[:, 2 * h:], bias, wo, bo, num_heads)
    return _layer_norm(attn + x, g, b)


def _cross_attn_ln(x, enc, bias, wq, bq, wkv, bkv, wo, bo, g, b, num_heads):
    h = x.shape[-1]
    q = jnp.dot(x.astype(BF16), wq, preferred_element_type=jnp.float32) + bq         # (S_q, H)
    kv = jnp.dot(enc.astype(BF16), wkv, preferred_element_type=jnp.float32) + bkv    # (S_kv, 2H)
    attn = _attn_core(q, kv[:, :h], kv[:, h:], bias, wo, bo, num_heads)
    return _layer_norm(attn + x, g, b)


def _mlp_ln(x, w1, b1, w2, b2, g, b):
    hmid = jnp.dot(x.astype(BF16), w1, preferred_element_type=jnp.float32) + b1
    hmid = jnp.maximum(hmid, 0.0)
    y = jnp.dot(hmid.astype(BF16), w2, preferred_element_type=jnp.float32) + b2 + x
    return _layer_norm(y, g, b)


def _musical_embed(seq2d, emb, wf, be, pos):
    """(S,7) raw rows -> (S,H).  Concat layer folded at prep time; one-hot built in-kernel."""
    vocab, _ = emb.shape
    s = seq2d.shape[0]
    tok = seq2d[:, 0:1].astype(jnp.int32)                   # .int() of channel 0
    feats = seq2d[:, 1:7].astype(BF16)                      # channels 1:7 -> 6 features
    onehot = (lax.broadcasted_iota(jnp.int32, (s, vocab), 1) == tok).astype(BF16)
    x = jnp.dot(onehot, emb, preferred_element_type=jnp.float32)
    x = x + jnp.dot(feats, wf, preferred_element_type=jnp.float32)
    return x + be + pos


# ----------------------------------------------------------------------------------
# Megakernels (grid = (batch,), everything else VMEM-resident, layer loop unrolled)
# ----------------------------------------------------------------------------------
def encoder_kernel(src_ref, bias_ref, pos_ref,
                   emb_ref, wf_ref, be_ref,
                   wqkv_ref, bqkv_ref, wo_ref, bo_ref, g1_ref, b1_ref,
                   w1_ref, bm1_ref, w2_ref, bm2_ref, gm_ref, bm_ref,
                   out_ref, *, num_heads, num_layers):
    x = _musical_embed(src_ref[0], emb_ref[...], wf_ref[...], be_ref[...], pos_ref[...])
    bias = bias_ref[0]                                       # (S, S) combined additive bias
    for l in range(num_layers):                              # static unroll
        x = _self_attn_ln(x, bias, wqkv_ref[l], bqkv_ref[l], wo_ref[l], bo_ref[l],
                          g1_ref[l], b1_ref[l], num_heads)
        x = _mlp_ln(x, w1_ref[l], bm1_ref[l], w2_ref[l], bm2_ref[l], gm_ref[l], bm_ref[l])
    out_ref[0, :, :] = x.astype(out_ref.dtype)


def decoder_kernel(tgt_ref, enc_ref, sbias_ref, cbias_ref, pos_ref,
                   emb_ref, wf_ref, be_ref,
                   wqkv_ref, bqkv_ref, wo_ref, bo_ref, g1_ref, b1_ref,
                   wqc_ref, bqc_ref, wkvc_ref, bkvc_ref, woc_ref, boc_ref, g2_ref, b2_ref,
                   w1_ref, bm1_ref, w2_ref, bm2_ref, gm_ref, bm_ref,
                   wfc_ref, bfc_ref,
                   out_ref, *, num_heads, num_layers):
    x = _musical_embed(tgt_ref[0], emb_ref[...], wf_ref[...], be_ref[...], pos_ref[...])
    enc = enc_ref[0]                                         # (S_src, H)
    sbias = sbias_ref[0]                                     # (S_tgt, S_tgt)  causal + key-pad
    cbias = cbias_ref[0]                                     # (S_tgt, S_src)  encoder key-pad
    for l in range(num_layers):                              # static unroll
        x = _self_attn_ln(x, sbias, wqkv_ref[l], bqkv_ref[l], wo_ref[l], bo_ref[l],
                          g1_ref[l], b1_ref[l], num_heads)
        x = _cross_attn_ln(x, enc, cbias, wqc_ref[l], bqc_ref[l], wkvc_ref[l], bkvc_ref[l],
                           woc_ref[l], boc_ref[l], g2_ref[l], b2_ref[l], num_heads)
        x = _mlp_ln(x, w1_ref[l], bm1_ref[l], w2_ref[l], bm2_ref[l], gm_ref[l], bm_ref[l])
    logits = jnp.dot(x.astype(BF16), wfc_ref[...], preferred_element_type=jnp.float32) + bfc_ref[...]
    out_ref[0, :, :] = logits.astype(out_ref.dtype)          # final op: unpadded masked store


# ----------------------------------------------------------------------------------
# Wrappers
# ----------------------------------------------------------------------------------
def _rep(shape):
    """Full-array block replicated across all grid steps."""
    n = len(shape)
    return pl.BlockSpec(tuple(int(d) for d in shape), lambda *_: (0,) * n)


def sinusoidal_pos_emb(seq_len, dim):
    # Matches SinusoidalPosEmbedding: freqs = exp(arange(half) * -log(1e4)/(half-1)), cat(sin,cos)
    half = dim // 2
    scale = math.log(10000.0) / (half - 1)
    freqs = jnp.exp(jnp.arange(half, dtype=jnp.float32) * -scale)
    ang = jnp.arange(seq_len, dtype=jnp.float32)[:, None] * freqs[None, :]
    return jnp.concatenate([jnp.sin(ang), jnp.cos(ang)], axis=-1)          # (S, dim)


def encoder_forward(src, self_bias, ep, num_heads):
    b, s, c = src.shape
    h = ep["emb"].shape[1]
    num_layers = int(ep["wqkv"].shape[0])
    pos = sinusoidal_pos_emb(s, h)
    args = [src, self_bias, pos,
            ep["emb"], ep["wf"], ep["be"],
            ep["wqkv"], ep["bqkv"], ep["wo"], ep["bo"], ep["g1"], ep["b1"],
            ep["w1"], ep["bm1"], ep["w2"], ep["bm2"], ep["gm"], ep["bm"]]
    in_specs = ([pl.BlockSpec((1, s, c), lambda i: (i, 0, 0)),
                 pl.BlockSpec((1, s, s), lambda i: (i, 0, 0))]
                + [_rep(a.shape) for a in args[2:]])
    return pl.pallas_call(
        functools.partial(encoder_kernel, num_heads=num_heads, num_layers=num_layers),
        out_shape=jax.ShapeDtypeStruct((b, s, h), jnp.float32),
        grid=(b,),
        in_specs=in_specs,
        out_specs=pl.BlockSpec((1, s, h), lambda i: (i, 0, 0)),
        compiler_params=pltpu.CompilerParams(dimension_semantics=("parallel",)),
    )(*args)


def decoder_forward(tgt, enc_out, self_bias, cross_bias, dp, num_heads):
    b, s_tgt, c = tgt.shape
    _, s_src, h = enc_out.shape
    v_out = int(dp["wfc"].shape[1])
    num_layers = int(dp["wqkv"].shape[0])
    pos = sinusoidal_pos_emb(s_tgt, h)
    args = [tgt, enc_out, self_bias, cross_bias, pos,
            dp["emb"], dp["wf"], dp["be"],
            dp["wqkv"], dp["bqkv"], dp["wo"], dp["bo"], dp["g1"], dp["b1"],
            dp["wqc"], dp["bqc"], dp["wkvc"], dp["bkvc"], dp["woc"], dp["boc"], dp["g2"], dp["b2"],
            dp["w1"], dp["bm1"], dp["w2"], dp["bm2"], dp["gm"], dp["bm"],
            dp["wfc"], dp["bfc"]]
    in_specs = ([pl.BlockSpec((1, s_tgt, c), lambda i: (i, 0, 0)),
                 pl.BlockSpec((1, s_src, h), lambda i: (i, 0, 0)),
                 pl.BlockSpec((1, s_tgt, s_tgt), lambda i: (i, 0, 0)),
                 pl.BlockSpec((1, s_tgt, s_src), lambda i: (i, 0, 0))]
                + [_rep(a.shape) for a in args[4:]])
    return pl.pallas_call(
        functools.partial(decoder_kernel, num_heads=num_heads, num_layers=num_layers),
        out_shape=jax.ShapeDtypeStruct((b, s_tgt, v_out), jnp.float32),
        grid=(b,),
        in_specs=in_specs,
        out_specs=pl.BlockSpec((1, s_tgt, v_out), lambda i: (i, 0, 0)),
        compiler_params=pltpu.CompilerParams(dimension_semantics=("parallel",)),
    )(*args)


def encoder_decoder_v1(src, tgt, params, num_heads=4):
    b, s_src, _ = src.shape
    s_tgt = tgt.shape[1]
    # Key-padding (token == 6) and causal masks combined into single additive biases here,
    # once per call, instead of iota/compare/select inside the kernel every layer.
    src_keypad = jnp.where(src[:, :, 0] == 6.0, jnp.float32(NEG_INF), jnp.float32(0.0))   # (B,Ss)
    tgt_keypad = jnp.where(tgt[:, :, 0] == 6.0, jnp.float32(NEG_INF), jnp.float32(0.0))   # (B,St)
    enc_self_bias = jnp.broadcast_to(src_keypad[:, None, :], (b, s_src, s_src))
    row = lax.broadcasted_iota(jnp.int32, (s_tgt, s_tgt), 0)
    col = lax.broadcasted_iota(jnp.int32, (s_tgt, s_tgt), 1)
    causal = jnp.where(col > row, jnp.float32(NEG_INF), jnp.float32(0.0))
    dec_self_bias = causal[None, :, :] + tgt_keypad[:, None, :]                           # (B,St,St)
    cross_bias = jnp.broadcast_to(src_keypad[:, None, :], (b, s_tgt, s_src))              # (B,St,Ss)

    enc_out = encoder_forward(src, enc_self_bias, params["encoder"], num_heads)
    return decoder_forward(tgt, enc_out, dec_self_bias, cross_bias, params["decoder"], num_heads)


# ----------------------------------------------------------------------------------
# Deterministic parameter init (PyTorch-shaped) + one-time kernel-layout prep
# ----------------------------------------------------------------------------------
def dense_init(key, out_f, in_f, scale=0.05):
    kw, kb = jax.random.split(key)
    return {"w": scale * jax.random.normal(kw, (out_f, in_f), jnp.float32),
            "b": scale * jax.random.normal(kb, (out_f,), jnp.float32)}


def mha_init(key, h):
    k1, k2 = jax.random.split(key)
    ip = dense_init(k1, 3 * h, h)
    op = dense_init(k2, h, h)
    return {"in_w": ip["w"], "in_b": ip["b"], "out_w": op["w"], "out_b": op["b"]}


def ln_init(h):
    return {"g": jnp.ones((h,), jnp.float32), "b": jnp.zeros((h,), jnp.float32)}


def block_init(key, h, is_decoder):
    keys = jax.random.split(key, 4)
    p = {"attn1": mha_init(keys[0], h), "ln1": ln_init(h),
         "mlp1": dense_init(keys[1], 4 * h, h), "mlp2": dense_init(keys[2], h, 4 * h),
         "ln_mlp": ln_init(h)}
    if is_decoder:
        p["cross"] = mha_init(keys[3], h)
        p["ln2"] = ln_init(h)
    return p


def musical_init(key, vocab, feat, h):
    k1, k2, k3 = jax.random.split(key, 3)
    return {"emb": 0.05 * jax.random.normal(k1, (vocab, h), jnp.float32),
            "lin": dense_init(k2, h, feat),
            "cat": dense_init(k3, h, 2 * h)}


def init_model_params(key, v_in, v_out, feat, h, num_layers):
    k_enc, k_dec = jax.random.split(key)
    ke = jax.random.split(k_enc, num_layers[0] + 1)
    kd = jax.random.split(k_dec, num_layers[1] + 2)
    encoder = {"musical": musical_init(ke[0], v_in, feat, h),
               "blocks": [block_init(ke[1 + i], h, False) for i in range(num_layers[0])]}
    decoder = {"musical": musical_init(kd[0], v_out, feat, h),
               "blocks": [block_init(kd[1 + i], h, True) for i in range(num_layers[1])],
               "fc_out": dense_init(kd[-1], v_out, h)}
    return {"encoder": encoder, "decoder": decoder}


# --- one-time prep: pre-transposed, stacked, bf16, per-layer-batched weights -------------------
def prep_ln(p, h):
    return {"g": p["g"].reshape(1, h), "b": p["b"].reshape(1, h)}


def prep_self_attn(p, h):
    # single (H, 3H) [Wq|Wk|Wv] for one lane-dense QKV matmul, single (H, H) out-proj
    return {"wqkv": p["in_w"].T.astype(BF16), "bqkv": p["in_b"].reshape(1, 3 * h),
            "wo": p["out_w"].T.astype(BF16), "bo": p["out_b"].reshape(1, h)}


def prep_cross_attn(p, h):
    w, bias = p["in_w"], p["in_b"]
    return {"wq": w[:h].T.astype(BF16), "bq": bias[:h].reshape(1, h),
            "wkv": w[h:].T.astype(BF16), "bkv": bias[h:].reshape(1, 2 * h),
            "wo": p["out_w"].T.astype(BF16), "bo": p["out_b"].reshape(1, h)}


def prep_mlp(p1, p2):
    return {"w1": p1["w"].T.astype(BF16), "b1": p1["b"].reshape(1, -1),
            "w2": p2["w"].T.astype(BF16), "b2": p2["b"].reshape(1, -1)}


def prep_musical(p, h):
    # Fold the concat projection: cat([f, t]) @ Wc^T + bc
    #   == f @ (WcL Wlin)^T + (emb WcR^T)[tok] + (WcL blin + bc)
    wcat, bcat = p["cat"]["w"], p["cat"]["b"]               # (H, 2H), (H,)
    wcl, wcr = wcat[:, :h], wcat[:, h:]
    wlin, blin = p["lin"]["w"], p["lin"]["b"]               # (H, feat), (H,)
    return {"wf": (wcl @ wlin).T.astype(BF16),              # (feat, H)
            "emb": (p["emb"] @ wcr.T).astype(BF16),         # (vocab, H)
            "be": (wcl @ blin + bcat).reshape(1, h)}


def _stack(dicts, key):
    return jnp.stack([d[key] for d in dicts], axis=0)       # leading layer dim


def prep_encoder_params(enc, h):
    blocks = enc["blocks"]
    A = [prep_self_attn(bp["attn1"], h) for bp in blocks]
    M = [prep_mlp(bp["mlp1"], bp["mlp2"]) for bp in blocks]
    L1 = [prep_ln(bp["ln1"], h) for bp in blocks]
    LM = [prep_ln(bp["ln_mlp"], h) for bp in blocks]
    return {**prep_musical(enc["musical"], h),
            "wqkv": _stack(A, "wqkv"), "bqkv": _stack(A, "bqkv"),
            "wo": _stack(A, "wo"), "bo": _stack(A, "bo"),
            "g1": _stack(L1, "g"), "b1": _stack(L1, "b"),
            "w1": _stack(M, "w1"), "bm1": _stack(M, "b1"),
            "w2": _stack(M, "w2"), "bm2": _stack(M, "b2"),
            "gm": _stack(LM, "g"), "bm": _stack(LM, "b")}


def prep_decoder_params(dec, h):
    blocks = dec["blocks"]
    A = [prep_self_attn(bp["attn1"], h) for bp in blocks]
    C = [prep_cross_attn(bp["cross"], h) for bp in blocks]
    M = [prep_mlp(bp["mlp1"], bp["mlp2"]) for bp in blocks]
    L1 = [prep_ln(bp["ln1"], h) for bp in blocks]
    L2 = [prep_ln(bp["ln2"], h) for bp in blocks]
    LM = [prep_ln(bp["ln_mlp"], h) for bp in blocks]
    fc = dec["fc_out"]
    return {**prep_musical(dec["musical"], h),
            "wqkv": _stack(A, "wqkv"), "bqkv": _stack(A, "bqkv"),
            "wo": _stack(A, "wo"), "bo": _stack(A, "bo"),
            "g1": _stack(L1, "g"), "b1": _stack(L1, "b"),
            "wqc": _stack(C, "wq"), "bqc": _stack(C, "bq"),
            "wkvc": _stack(C, "wkv"), "bkvc": _stack(C, "bkv"),
            "woc": _stack(C, "wo"), "boc": _stack(C, "bo"),
            "g2": _stack(L2, "g"), "b2": _stack(L2, "b"),
            "w1": _stack(M, "w1"), "bm1": _stack(M, "b1"),
            "w2": _stack(M, "w2"), "bm2": _stack(M, "b2"),
            "gm": _stack(LM, "g"), "bm": _stack(LM, "b"),
            "wfc": fc["w"].T.astype(BF16), "bfc": fc["b"].reshape(1, -1)}


def prep_model_params(params, h):
    return {"encoder": prep_encoder_params(params["encoder"], h),
            "decoder": prep_decoder_params(params["decoder"], h)}


# ----------------------------------------------------------------------------------
if __name__ == "__main__":
    B, S_SRC, S_TGT = 2, 8, 8
    HIDDEN, HEADS = 32, 4
    FEAT = 6                      # MusicalEmbeddings slices [:, :, 1:7] -> 6 features
    V_IN, V_OUT = 40, 48
    NUM_LAYERS = (2, 2)

    root = jax.random.PRNGKey(0)
    kp, ks1, ks2, kt1, kt2 = jax.random.split(root, 5)

    raw_params = init_model_params(kp, V_IN, V_OUT, FEAT, HIDDEN, NUM_LAYERS)
    params = prep_model_params(raw_params, HIDDEN)          # one-time kernel-layout prep

    src_tok = jax.random.randint(ks1, (B, S_SRC), 7, V_IN).astype(jnp.float32)
    src_feat = jax.random.normal(ks2, (B, S_SRC, FEAT), jnp.float32)
    src = jnp.concatenate([src_tok[..., None], src_feat], axis=-1)        # (B, S_src, 7)
    src = src.at[0, -1, 0].set(6.0)   # padding token -> exercises key_padding_mask

    tgt_tok = jax.random.randint(kt1, (B, S_TGT), 7, V_OUT).astype(jnp.float32)
    tgt_feat = jax.random.normal(kt2, (B, S_TGT, FEAT), jnp.float32)
    tgt = jnp.concatenate([tgt_tok[..., None], tgt_feat], axis=-1)        # (B, S_tgt, 7)
    tgt = tgt.at[1, -1, 0].set(6.0)

    fwd = jax.jit(lambda s, t: encoder_decoder_v1(s, t, params, num_heads=HEADS))
    out = jax.block_until_ready(fwd(src, tgt))

    assert out.shape == (B, S_TGT, V_OUT), out.shape
    assert bool(jnp.all(jnp.isfinite(out)))
    print("KERNEL_OK")
</pallas_src>

<mosaic_0001>
module attributes {stable_mosaic.version = 11 : i64} {
  func.func @encoder_kernel(%arg0: i32, %arg1: memref<1x8x7xf32, #tpu.memory_space<vmem>>, %arg2: memref<1x8x8xf32, #tpu.memory_space<vmem>>, %arg3: memref<8x32xf32, #tpu.memory_space<vmem>>, %arg4: memref<40x32xbf16, #tpu.memory_space<vmem>>, %arg5: memref<6x32xbf16, #tpu.memory_space<vmem>>, %arg6: memref<1x32xf32, #tpu.memory_space<vmem>>, %arg7: memref<2x32x96xbf16, #tpu.memory_space<vmem>>, %arg8: memref<2x1x96xf32, #tpu.memory_space<vmem>>, %arg9: memref<2x32x32xbf16, #tpu.memory_space<vmem>>, %arg10: memref<2x1x32xf32, #tpu.memory_space<vmem>>, %arg11: memref<2x1x32xf32, #tpu.memory_space<vmem>>, %arg12: memref<2x1x32xf32, #tpu.memory_space<vmem>>, %arg13: memref<2x32x128xbf16, #tpu.memory_space<vmem>>, %arg14: memref<2x1x128xf32, #tpu.memory_space<vmem>>, %arg15: memref<2x128x32xbf16, #tpu.memory_space<vmem>>, %arg16: memref<2x1x32xf32, #tpu.memory_space<vmem>>, %arg17: memref<2x1x32xf32, #tpu.memory_space<vmem>>, %arg18: memref<2x1x32xf32, #tpu.memory_space<vmem>>, %arg19: memref<1x8x32xf32, #tpu.memory_space<vmem>>) attributes {dimension_semantics = [#tpu.dimension_semantics<parallel>], iteration_bounds = array<i64: 2>, scalar_prefetch = 0 : i64, scratch_operands = 0 : i64, tpu.core_type = #tpu.core_type<tc>, window_params = [{transform_indices = @transform_0, window_bounds = array<i64: 1, 8, 7>}, {transform_indices = @transform_1, window_bounds = array<i64: 1, 8, 8>}, {pipeline_mode = #tpu.pipeline_mode<synchronous>, transform_indices = @transform_2, window_bounds = array<i64: 8, 32>}, {pipeline_mode = #tpu.pipeline_mode<synchronous>, transform_indices = @transform_3, window_bounds = array<i64: 40, 32>}, {pipeline_mode = #tpu.pipeline_mode<synchronous>, transform_indices = @transform_4, window_bounds = array<i64: 6, 32>}, {pipeline_mode = #tpu.pipeline_mode<synchronous>, transform_indices = @transform_5, window_bounds = array<i64: 1, 32>}, {pipeline_mode = #tpu.pipeline_mode<synchronous>, transform_indices = @transform_6, window_bounds = array<i64: 2, 32, 96>}, {pipeline_mode = #tpu.pipeline_mode<synchronous>, transform_indices = @transform_7, window_bounds = array<i64: 2, 1, 96>}, {pipeline_mode = #tpu.pipeline_mode<synchronous>, transform_indices = @transform_8, window_bounds = array<i64: 2, 32, 32>}, {pipeline_mode = #tpu.pipeline_mode<synchronous>, transform_indices = @transform_9, window_bounds = array<i64: 2, 1, 32>}, {pipeline_mode = #tpu.pipeline_mode<synchronous>, transform_indices = @transform_10, window_bounds = array<i64: 2, 1, 32>}, {pipeline_mode = #tpu.pipeline_mode<synchronous>, transform_indices = @transform_11, window_bounds = array<i64: 2, 1, 32>}, {pipeline_mode = #tpu.pipeline_mode<synchronous>, transform_indices = @transform_12, window_bounds = array<i64: 2, 32, 128>}, {pipeline_mode = #tpu.pipeline_mode<synchronous>, transform_indices = @transform_13, window_bounds = array<i64: 2, 1, 128>}, {pipeline_mode = #tpu.pipeline_mode<synchronous>, transform_indices = @transform_14, window_bounds = array<i64: 2, 128, 32>}, {pipeline_mode = #tpu.pipeline_mode<synchronous>, transform_indices = @transform_15, window_bounds = array<i64: 2, 1, 32>}, {pipeline_mode = #tpu.pipeline_mode<synchronous>, transform_indices = @transform_16, window_bounds = array<i64: 2, 1, 32>}, {pipeline_mode = #tpu.pipeline_mode<synchronous>, transform_indices = @transform_17, window_bounds = array<i64: 2, 1, 32>}, {transform_indices = @transform_18, window_bounds = array<i64: 1, 8, 32>}]} {
    %c0 = arith.constant 0 : index
    %c0_0 = arith.constant 0 : index
    %c0_1 = arith.constant 0 : index
    %0 = vector.load %arg1[%c0, %c0_0, %c0_1] : memref<1x8x7xf32, #tpu.memory_space<vmem>>, vector<1x8x7xf32>
    %1 = vector.shape_cast %0 : vector<1x8x7xf32> to vector<8x7xf32>
    %c0_2 = arith.constant 0 : index
    %c0_3 = arith.constant 0 : index
    %2 = vector.load %arg4[%c0_2, %c0_3] : memref<40x32xbf16, #tpu.memory_space<vmem>>, vector<40x32xbf16>
    %c0_4 = arith.constant 0 : index
    %c0_5 = arith.constant 0 : index
    %3 = vector.load %arg5[%c0_4, %c0_5] : memref<6x32xbf16, #tpu.memory_space<vmem>>, vector<6x32xbf16>
    %c0_6 = arith.constant 0 : index
    %c0_7 = arith.constant 0 : index
    %4 = vector.load %arg6[%c0_6, %c0_7] : memref<1x32xf32, #tpu.memory_space<vmem>>, vector<1x32xf32>
    %c0_8 = arith.constant 0 : index
    %c0_9 = arith.constant 0 : index
    %5 = vector.load %arg3[%c0_8, %c0_9] : memref<8x32xf32, #tpu.memory_space<vmem>>, vector<8x32xf32>
    %6 = vector.extract_strided_slice %1 {offsets = [0, 0], sizes = [8, 1], strides = [1, 1]} : vector<8x7xf32> to vector<8x1xf32>
    %7 = arith.fptosi %6 : vector<8x1xf32> to vector<8x1xi32>
    %8 = vector.extract_strided_slice %1 {offsets = [0, 1], sizes = [8, 6], strides = [1, 1]} : vector<8x7xf32> to vector<8x6xf32>
    %9 = arith.truncf %8 : vector<8x6xf32> to vector<8x6xbf16>
    %10 = tpu.iota {dimensions = array<i32: 1>} : vector<8x40xi32>
    %11 = vector.broadcast %7 : vector<8x1xi32> to vector<8x40xi32>
    %12 = arith.cmpi eq, %10, %11 : vector<8x40xi32>
    %13 = arith.extui %12 : vector<8x40xi1> to vector<8x40xi32>
    %14 = arith.sitofp %13 : vector<8x40xi32> to vector<8x40xf32>
    %15 = arith.truncf %14 : vector<8x40xf32> to vector<8x40xbf16>
    %cst = arith.constant dense<0.000000e+00> : vector<8x32xf32>
    %16 = tpu.matmul %15, %2, %cst {dimension_numbers = #tpu.dot_dimension_numbers<[1], [0], [0], [1], [0, 0, 1, 1], [], []>} : vector<8x40xbf16>, vector<40x32xbf16>, vector<8x32xf32> -> vector<8x32xf32>
    %cst_10 = arith.constant dense<0.000000e+00> : vector<8x32xf32>
    %17 = tpu.matmul %9, %3, %cst_10 {dimension_numbers = #tpu.dot_dimension_numbers<[1], [0], [0], [1], [0, 0, 1, 1], [], []>} : vector<8x6xbf16>, vector<6x32xbf16>, vector<8x32xf32> -> vector<8x32xf32>
    %18 = arith.addf %16, %17 : vector<8x32xf32>
    %19 = vector.broadcast %4 : vector<1x32xf32> to vector<8x32xf32>
    %20 = arith.addf %18, %19 : vector<8x32xf32>
    %21 = arith.addf %20, %5 : vector<8x32xf32>
    %c0_11 = arith.constant 0 : index
    %c0_12 = arith.constant 0 : index
    %c0_13 = arith.constant 0 : index
    %22 = vector.load %arg2[%c0_11, %c0_12, %c0_13] : memref<1x8x8xf32, #tpu.memory_space<vmem>>, vector<1x8x8xf32>
    %23 = vector.shape_cast %22 : vector<1x8x8xf32> to vector<8x8xf32>
    %c0_14 = arith.constant 0 : index
    %c0_15 = arith.constant 0 : index
    %c0_16 = arith.constant 0 : index
    %24 = vector.load %arg7[%c0_14, %c0_15, %c0_16] : memref<2x32x96xbf16, #tpu.memory_space<vmem>>, vector<1x32x96xbf16>
    %25 = vector.shape_cast %24 : vector<1x32x96xbf16> to vector<32x96xbf16>
    %c0_17 = arith.constant 0 : index
    %c0_18 = arith.constant 0 : index
    %c0_19 = arith.constant 0 : index
    %26 = vector.load %arg8[%c0_17, %c0_18, %c0_19] : memref<2x1x96xf32, #tpu.memory_space<vmem>>, vector<1x1x96xf32>
    %27 = vector.shape_cast %26 : vector<1x1x96xf32> to vector<1x96xf32>
    %c0_20 = arith.constant 0 : index
    %c0_21 = arith.constant 0 : index
    %c0_22 = arith.constant 0 : index
    %28 = vector.load %arg9[%c0_20, %c0_21, %c0_22] : memref<2x32x32xbf16, #tpu.memory_space<vmem>>, vector<1x32x32xbf16>
    %29 = vector.shape_cast %28 : vector<1x32x32xbf16> to vector<32x32xbf16>
    %c0_23 = arith.constant 0 : index
    %c0_24 = arith.constant 0 : index
    %c0_25 = arith.constant 0 : index
    %30 = vector.load %arg10[%c0_23, %c0_24, %c0_25] : memref<2x1x32xf32, #tpu.memory_space<vmem>>, vector<1x1x32xf32>
    %31 = vector.shape_cast %30 : vector<1x1x32xf32> to vector<1x32xf32>
    %c0_26 = arith.constant 0 : index
    %c0_27 = arith.constant 0 : index
    %c0_28 = arith.constant 0 : index
    %32 = vector.load %arg11[%c0_26, %c0_27, %c0_28] : memref<2x1x32xf32, #tpu.memory_space<vmem>>, vector<1x1x32xf32>
    %33 = vector.shape_cast %32 : vector<1x1x32xf32> to vector<1x32xf32>
    %c0_29 = arith.constant 0 : index
    %c0_30 = arith.constant 0 : index
    %c0_31 = arith.constant 0 : index
    %34 = vector.load %arg12[%c0_29, %c0_30, %c0_31] : memref<2x1x32xf32, #tpu.memory_space<vmem>>, vector<1x1x32xf32>
    %35 = vector.shape_cast %34 : vector<1x1x32xf32> to vector<1x32xf32>
    %36 = arith.truncf %21 : vector<8x32xf32> to vector<8x32xbf16>
    %cst_32 = arith.constant dense<0.000000e+00> : vector<8x96xf32>
    %37 = tpu.matmul %36, %25, %cst_32 {dimension_numbers = #tpu.dot_dimension_numbers<[1], [0], [0], [1], [0, 0, 1, 1], [], []>} : vector<8x32xbf16>, vector<32x96xbf16>, vector<8x96xf32> -> vector<8x96xf32>
    %38 = vector.broadcast %27 : vector<1x96xf32> to vector<8x96xf32>
    %39 = arith.addf %37, %38 : vector<8x96xf32>
    %40 = vector.extract_strided_slice %39 {offsets = [0, 0], sizes = [8, 32], strides = [1, 1]} : vector<8x96xf32> to vector<8x32xf32>
    %41 = vector.extract_strided_slice %39 {offsets = [0, 32], sizes = [8, 32], strides = [1, 1]} : vector<8x96xf32> to vector<8x32xf32>
    %42 = vector.extract_strided_slice %39 {offsets = [0, 64], sizes = [8, 32], strides = [1, 1]} : vector<8x96xf32> to vector<8x32xf32>
    %43 = vector.shape_cast %40 : vector<8x32xf32> to vector<8x4x8xf32>
    %44 = tpu.transpose %43, [1, 0, 2] : vector<8x4x8xf32> -> vector<4x8x8xf32>
    %45 = arith.truncf %44 : vector<4x8x8xf32> to vector<4x8x8xbf16>
    %46 = vector.shape_cast %41 : vector<8x32xf32> to vector<8x4x8xf32>
    %47 = tpu.transpose %46, [1, 0, 2] : vector<8x4x8xf32> -> vector<4x8x8xf32>
    %48 = arith.truncf %47 : vector<4x8x8xf32> to vector<4x8x8xbf16>
    %49 = vector.shape_cast %42 : vector<8x32xf32> to vector<8x4x8xf32>
    %50 = tpu.transpose %49, [1, 0, 2] : vector<8x4x8xf32> -> vector<4x8x8xf32>
    %51 = arith.truncf %50 : vector<4x8x8xf32> to vector<4x8x8xbf16>
    "tpu.trace_start"() <{level = 10 : i32, message = "nqd,nkd->nqk"}> : () -> ()
    %cst_33 = arith.constant dense<0.000000e+00> : vector<4x8x8xf32>
    %52 = tpu.matmul %45, %48, %cst_33 {dimension_numbers = #tpu.dot_dimension_numbers<[2], [2], [1], [1], [0, 0, 0, 1, 1, 1], [0], [0]>} : vector<4x8x8xbf16>, vector<4x8x8xbf16>, vector<4x8x8xf32> -> vector<4x8x8xf32>
    "tpu.trace_stop"() : () -> ()
    %cst_34 = arith.constant 0.353553385 : f32
    %53 = vector.broadcast %cst_34 : f32 to vector<4x8x8xf32>
    %54 = arith.mulf %52, %53 : vector<4x8x8xf32>
    %55 = vector.shape_cast %23 : vector<8x8xf32> to vector<1x8x8xf32>
    %56 = vector.broadcast %55 : vector<1x8x8xf32> to vector<4x8x8xf32>
    %57 = arith.addf %54, %56 : vector<4x8x8xf32>
    %cst_35 = arith.constant dense<0xFF800000> : vector<4x8xf32>
    %58 = vector.multi_reduction <maximumf>, %57, %cst_35 [2] : vector<4x8x8xf32> to vector<4x8xf32>
    %59 = vector.shape_cast %58 : vector<4x8xf32> to vector<4x8x1xf32>
    %60 = vector.broadcast %59 : vector<4x8x1xf32> to vector<4x8x8xf32>
    %61 = arith.subf %57, %60 : vector<4x8x8xf32>
    %62 = math.exp %61 : vector<4x8x8xf32>
    %cst_36 = arith.constant dense<0.000000e+00> : vector<4x8xf32>
    %63 = vector.multi_reduction <add>, %62, %cst_36 [2] : vector<4x8x8xf32> to vector<4x8xf32>
    %64 = vector.shape_cast %63 : vector<4x8xf32> to vector<4x8x1xf32>
    %65 = tpu.reciprocal %64 {approx = true} : vector<4x8x1xf32> -> vector<4x8x1xf32>
    %66 = vector.broadcast %65 : vector<4x8x1xf32> to vector<4x8x8xf32>
    %67 = arith.mulf %62, %66 : vector<4x8x8xf32>
    %68 = arith.truncf %67 : vector<4x8x8xf32> to vector<4x8x8xbf16>
    "tpu.trace_start"() <{level = 10 : i32, message = "nqk,nkd->nqd"}> : () -> ()
    %cst_37 = arith.constant dense<0.000000e+00> : vector<4x8x8xf32>
    %69 = tpu.matmul %68, %51, %cst_37 {dimension_numbers = #tpu.dot_dimension_numbers<[2], [1], [1], [2], [0, 0, 0, 1, 1, 2], [0], [0]>} : vector<4x8x8xbf16>, vector<4x8x8xbf16>, vector<4x8x8xf32> -> vector<4x8x8xf32>
    "tpu.trace_stop"() : () -> ()
    %70 = tpu.transpose %69, [1, 0, 2] : vector<4x8x8xf32> -> vector<8x4x8xf32>
    %71 = vector.shape_cast %70 : vector<8x4x8xf32> to vector<8x32xf32>
    %72 = arith.truncf %71 : vector<8x32xf32> to vector<8x32xbf16>
    %cst_38 = arith.constant dense<0.000000e+00> : vector<8x32xf32>
    %73 = tpu.matmul %72, %29, %cst_38 {dimension_numbers = #tpu.dot_dimension_numbers<[1], [0], [0], [1], [0, 0, 1, 1], [], []>} : vector<8x32xbf16>, vector<32x32xbf16>, vector<8x32xf32> -> vector<8x32xf32>
    %74 = vector.broadcast %31 : vector<1x32xf32> to vector<8x32xf32>
    %75 = arith.addf %73, %74 : vector<8x32xf32>
    %76 = arith.addf %75, %21 : vector<8x32xf32>
    %cst_39 = arith.constant dense<0.000000e+00> : vector<8xf32>
    %77 = vector.multi_reduction <add>, %76, %cst_39 [1] : vector<8x32xf32> to vector<8xf32>
    %78 = vector.shape_cast %77 : vector<8xf32> to vector<8x1xf32>
    %cst_40 = arith.constant 3.200000e+01 : f32
    %79 = vector.broadcast %cst_40 : f32 to vector<8x1xf32>
    %80 = arith.divf %78, %79 : vector<8x1xf32>
    %81 = vector.broadcast %80 : vector<8x1xf32> to vector<8x32xf32>
    %82 = arith.subf %76, %81 : vector<8x32xf32>
    %83 = arith.mulf %82, %82 : vector<8x32xf32>
    %cst_41 = arith.constant dense<0.000000e+00> : vector<8xf32>
    %84 = vector.multi_reduction <add>, %83, %cst_41 [1] : vector<8x32xf32> to vector<8xf32>
    %85 = vector.shape_cast %84 : vector<8xf32> to vector<8x1xf32>
    %cst_42 = arith.constant 3.200000e+01 : f32
    %86 = vector.broadcast %cst_42 : f32 to vector<8x1xf32>
    %87 = arith.divf %85, %86 : vector<8x1xf32>
    %88 = vector.broadcast %80 : vector<8x1xf32> to vector<8x32xf32>
    %89 = arith.subf %76, %88 : vector<8x32xf32>
    %cst_43 = arith.constant 9.99999974E-6 : f32
    %90 = vector.broadcast %cst_43 : f32 to vector<8x1xf32>
    %91 = arith.addf %87, %90 : vector<8x1xf32>
    %92 = math.rsqrt %91 : vector<8x1xf32>
    %93 = vector.broadcast %92 : vector<8x1xf32> to vector<8x32xf32>
    %94 = arith.mulf %89, %93 : vector<8x32xf32>
    %95 = vector.broadcast %33 : vector<1x32xf32> to vector<8x32xf32>
    %96 = arith.mulf %94, %95 : vector<8x32xf32>
    %97 = vector.broadcast %35 : vector<1x32xf32> to vector<8x32xf32>
    %98 = arith.addf %96, %97 : vector<8x32xf32>
    %c0_44 = arith.constant 0 : index
    %c0_45 = arith.constant 0 : index
    %c0_46 = arith.constant 0 : index
    %99 = vector.load %arg13[%c0_44, %c0_45, %c0_46] : memref<2x32x128xbf16, #tpu.memory_space<vmem>>, vector<1x32x128xbf16>
    %100 = vector.shape_cast %99 : vector<1x32x128xbf16> to vector<32x128xbf16>
    %c0_47 = arith.constant 0 : index
    %c0_48 = arith.constant 0 : index
    %c0_49 = arith.constant 0 : index
    %101 = vector.load %arg14[%c0_47, %c0_48, %c0_49] : memref<2x1x128xf32, #tpu.memory_space<vmem>>, vector<1x1x128xf32>
    %102 = vector.shape_cast %101 : vector<1x1x128xf32> to vector<1x128xf32>
    %c0_50 = arith.constant 0 : index
    %c0_51 = arith.constant 0 : index
    %c0_52 = arith.constant 0 : index
    %103 = vector.load %arg15[%c0_50, %c0_51, %c0_52] : memref<2x128x32xbf16, #tpu.memory_space<vmem>>, vector<1x128x32xbf16>
    %104 = vector.shape_cast %103 : vector<1x128x32xbf16> to vector<128x32xbf16>
    %c0_53 = arith.constant 0 : index
    %c0_54 = arith.constant 0 : index
    %c0_55 = arith.constant 0 : index
    %105 = vector.load %arg16[%c0_53, %c0_54, %c0_55] : memref<2x1x32xf32, #tpu.memory_space<vmem>>, vector<1x1x32xf32>
    %106 = vector.shape_cast %105 : vector<1x1x32xf32> to vector<1x32xf32>
    %c0_56 = arith.constant 0 : index
    %c0_57 = arith.constant 0 : index
    %c0_58 = arith.constant 0 : index
    %107 = vector.load %arg17[%c0_56, %c0_57, %c0_58] : memref<2x1x32xf32, #tpu.memory_space<vmem>>, vector<1x1x32xf32>
    %108 = vector.shape_cast %107 : vector<1x1x32xf32> to vector<1x32xf32>
    %c0_59 = arith.constant 0 : index
    %c0_60 = arith.constant 0 : index
    %c0_61 = arith.constant 0 : index
    %109 = vector.load %arg18[%c0_59, %c0_60, %c0_61] : memref<2x1x32xf32, #tpu.memory_space<vmem>>, vector<1x1x32xf32>
    %110 = vector.shape_cast %109 : vector<1x1x32xf32> to vector<1x32xf32>
    %111 = arith.truncf %98 : vector<8x32xf32> to vector<8x32xbf16>
    %cst_62 = arith.constant dense<0.000000e+00> : vector<8x128xf32>
    %112 = tpu.matmul %111, %100, %cst_62 {dimension_numbers = #tpu.dot_dimension_numbers<[1], [0], [0], [1], [0, 0, 1, 1], [], []>} : vector<8x32xbf16>, vector<32x128xbf16>, vector<8x128xf32> -> vector<8x128xf32>
    %113 = vector.broadcast %102 : vector<1x128xf32> to vector<8x128xf32>
    %114 = arith.addf %112, %113 : vector<8x128xf32>
    %cst_63 = arith.constant 0.000000e+00 : f32
    %115 = vector.broadcast %cst_63 : f32 to vector<8x128xf32>
    %116 = arith.maximumf %114, %115 : vector<8x128xf32>
    %117 = arith.truncf %116 : vector<8x128xf32> to vector<8x128xbf16>
    %cst_64 = arith.constant dense<0.000000e+00> : vector<8x32xf32>
    %118 = tpu.matmul %117, %104, %cst_64 {dimension_numbers = #tpu.dot_dimension_numbers<[1], [0], [0], [1], [0, 0, 1, 1], [], []>} : vector<8x128xbf16>, vector<128x32xbf16>, vector<8x32xf32> -> vector<8x32xf32>
    %119 = vector.broadcast %106 : vector<1x32xf32> to vector<8x32xf32>
    %120 = arith.addf %118, %119 : vector<8x32xf32>
    %121 = arith.addf %120, %98 : vector<8x32xf32>
    %cst_65 = arith.constant dense<0.000000e+00> : vector<8xf32>
    %122 = vector.multi_reduction <add>, %121, %cst_65 [1] : vector<8x32xf32> to vector<8xf32>
    %123 = vector.shape_cast %122 : vector<8xf32> to vector<8x1xf32>
    %cst_66 = arith.constant 3.200000e+01 : f32
    %124 = vector.broadcast %cst_66 : f32 to vector<8x1xf32>
    %125 = arith.divf %123, %124 : vector<8x1xf32>
    %126 = vector.broadcast %125 : vector<8x1xf32> to vector<8x32xf32>
    %127 = arith.subf %121, %126 : vector<8x32xf32>
    %128 = arith.mulf %127, %127 : vector<8x32xf32>
    %cst_67 = arith.constant dense<0.000000e+00> : vector<8xf32>
    %129 = vector.multi_reduction <add>, %128, %cst_67 [1] : vector<8x32xf32> to vector<8xf32>
    %130 = vector.shape_cast %129 : vector<8xf32> to vector<8x1xf32>
    %cst_68 = arith.constant 3.200000e+01 : f32
    %131 = vector.broadcast %cst_68 : f32 to vector<8x1xf32>
    %132 = arith.divf %130, %131 : vector<8x1xf32>
    %133 = vector.broadcast %125 : vector<8x1xf32> to vector<8x32xf32>
    %134 = arith.subf %121, %133 : vector<8x32xf32>
    %cst_69 = arith.constant 9.99999974E-6 : f32
    %135 = vector.broadcast %cst_69 : f32 to vector<8x1xf32>
    %136 = arith.addf %132, %135 : vector<8x1xf32>
    %137 = math.rsqrt %136 : vector<8x1xf32>
    %138 = vector.broadcast %137 : vector<8x1xf32> to vector<8x32xf32>
    %139 = arith.mulf %134, %138 : vector<8x32xf32>
    %140 = vector.broadcast %108 : vector<1x32xf32> to vector<8x32xf32>
    %141 = arith.mulf %139, %140 : vector<8x32xf32>
    %142 = vector.broadcast %110 : vector<1x32xf32> to vector<8x32xf32>
    %143 = arith.addf %141, %142 : vector<8x32xf32>
    %c1 = arith.constant 1 : index
    %c0_70 = arith.constant 0 : index
    %c0_71 = arith.constant 0 : index
    %144 = vector.load %arg7[%c1, %c0_70, %c0_71] : memref<2x32x96xbf16, #tpu.memory_space<vmem>>, vector<1x32x96xbf16>
    %145 = vector.shape_cast %144 : vector<1x32x96xbf16> to vector<32x96xbf16>
    %c1_72 = arith.constant 1 : index
    %c0_73 = arith.constant 0 : index
    %c0_74 = arith.constant 0 : index
    %146 = vector.load %arg8[%c1_72, %c0_73, %c0_74] : memref<2x1x96xf32, #tpu.memory_space<vmem>>, vector<1x1x96xf32>
    %147 = vector.shape_cast %146 : vector<1x1x96xf32> to vector<1x96xf32>
    %c1_75 = arith.constant 1 : index
    %c0_76 = arith.constant 0 : index
    %c0_77 = arith.constant 0 : index
    %148 = vector.load %arg9[%c1_75, %c0_76, %c0_77] : memref<2x32x32xbf16, #tpu.memory_space<vmem>>, vector<1x32x32xbf16>
    %149 = vector.shape_cast %148 : vector<1x32x32xbf16> to vector<32x32xbf16>
    %c1_78 = arith.constant 1 : index
    %c0_79 = arith.constant 0 : index
    %c0_80 = arith.constant 0 : index
    %150 = vector.load %arg10[%c1_78, %c0_79, %c0_80] : memref<2x1x32xf32, #tpu.memory_space<vmem>>, vector<1x1x32xf32>
    %151 = vector.shape_cast %150 : vector<1x1x32xf32> to vector<1x32xf32>
    %c1_81 = arith.constant 1 : index
    %c0_82 = arith.constant 0 : index
    %c0_83 = arith.constant 0 : index
    %152 = vector.load %arg11[%c1_81, %c0_82, %c0_83] : memref<2x1x32xf32, #tpu.memory_space<vmem>>, vector<1x1x32xf32>
    %153 = vector.shape_cast %152 : vector<1x1x32xf32> to vector<1x32xf32>
    %c1_84 = arith.constant 1 : index
    %c0_85 = arith.constant 0 : index
    %c0_86 = arith.constant 0 : index
    %154 = vector.load %arg12[%c1_84, %c0_85, %c0_86] : memref<2x1x32xf32, #tpu.memory_space<vmem>>, vector<1x1x32xf32>
    %155 = vector.shape_cast %154 : vector<1x1x32xf32> to vector<1x32xf32>
    %156 = arith.truncf %143 : vector<8x32xf32> to vector<8x32xbf16>
    %cst_87 = arith.constant dense<0.000000e+00> : vector<8x96xf32>
    %157 = tpu.matmul %156, %145, %cst_87 {dimension_numbers = #tpu.dot_dimension_numbers<[1], [0], [0], [1], [0, 0, 1, 1], [], []>} : vector<8x32xbf16>, vector<32x96xbf16>, vector<8x96xf32> -> vector<8x96xf32>
    %158 = vector.broadcast %147 : vector<1x96xf32> to vector<8x96xf32>
    %159 = arith.addf %157, %158 : vector<8x96xf32>
    %160 = vector.extract_strided_slice %159 {offsets = [0, 0], sizes = [8, 32], strides = [1, 1]} : vector<8x96xf32> to vector<8x32xf32>
    %161 = vector.extract_strided_slice %159 {offsets = [0, 32], sizes = [8, 32], strides = [1, 1]} : vector<8x96xf32> to vector<8x32xf32>
    %162 = vector.extract_strided_slice %159 {offsets = [0, 64], sizes = [8, 32], strides = [1, 1]} : vector<8x96xf32> to vector<8x32xf32>
    %163 = vector.shape_cast %160 : vector<8x32xf32> to vector<8x4x8xf32>
    %164 = tpu.transpose %163, [1, 0, 2] : vector<8x4x8xf32> -> vector<4x8x8xf32>
    %165 = arith.truncf %164 : vector<4x8x8xf32> to vector<4x8x8xbf16>
    %166 = vector.shape_cast %161 : vector<8x32xf32> to vector<8x4x8xf32>
    %167 = tpu.transpose %166, [1, 0, 2] : vector<8x4x8xf32> -> vector<4x8x8xf32>
    %168 = arith.truncf %167 : vector<4x8x8xf32> to vector<4x8x8xbf16>
    %169 = vector.shape_cast %162 : vector<8x32xf32> to vector<8x4x8xf32>
    %170 = tpu.transpose %169, [1, 0, 2] : vector<8x4x8xf32> -> vector<4x8x8xf32>
    %171 = arith.truncf %170 : vector<4x8x8xf32> to vector<4x8x8xbf16>
    "tpu.trace_start"() <{level = 10 : i32, message = "nqd,nkd->nqk"}> : () -> ()
    %cst_88 = arith.constant dense<0.000000e+00> : vector<4x8x8xf32>
    %172 = tpu.matmul %165, %168, %cst_88 {dimension_numbers = #tpu.dot_dimension_numbers<[2], [2], [1], [1], [0, 0, 0, 1, 1, 1], [0], [0]>} : vector<4x8x8xbf16>, vector<4x8x8xbf16>, vector<4x8x8xf32> -> vector<4x8x8xf32>
    "tpu.trace_stop"() : () -> ()
    %cst_89 = arith.constant 0.353553385 : f32
    %173 = vector.broadcast %cst_89 : f32 to vector<4x8x8xf32>
    %174 = arith.mulf %172, %173 : vector<4x8x8xf32>
    %175 = vector.shape_cast %23 : vector<8x8xf32> to vector<1x8x8xf32>
    %176 = vector.broadcast %175 : vector<1x8x8xf32> to vector<4x8x8xf32>
    %177 = arith.addf %174, %176 : vector<4x8x8xf32>
    %cst_90 = arith.constant dense<0xFF800000> : vector<4x8xf32>
    %178 = vector.multi_reduction <maximumf>, %177, %cst_90 [2] : vector<4x8x8xf32> to vector<4x8xf32>
    %179 = vector.shape_cast %178 : vector<4x8xf32> to vector<4x8x1xf32>
    %180 = vector.broadcast %179 : vector<4x8x1xf32> to vector<4x8x8xf32>
    %181 = arith.subf %177, %180 : vector<4x8x8xf32>
    %182 = math.exp %181 : vector<4x8x8xf32>
    %cst_91 = arith.constant dense<0.000000e+00> : vector<4x8xf32>
    %183 = vector.multi_reduction <add>, %182, %cst_91 [2] : vector<4x8x8xf32> to vector<4x8xf32>
    %184 = vector.shape_cast %183 : vector<4x8xf32> to vector<4x8x1xf32>
    %185 = tpu.reciprocal %184 {approx = true} : vector<4x8x1xf32> -> vector<4x8x1xf32>
    %186 = vector.broadcast %185 : vector<4x8x1xf32> to vector<4x8x8xf32>
    %187 = arith.mulf %182, %186 : vector<4x8x8xf32>
    %188 = arith.truncf %187 : vector<4x8x8xf32> to vector<4x8x8xbf16>
    "tpu.trace_start"() <{level = 10 : i32, message = "nqk,nkd->nqd"}> : () -> ()
    %cst_92 = arith.constant dense<0.000000e+00> : vector<4x8x8xf32>
    %189 = tpu.matmul %188, %171, %cst_92 {dimension_numbers = #tpu.dot_dimension_numbers<[2], [1], [1], [2], [0, 0, 0, 1, 1, 2], [0], [0]>} : vector<4x8x8xbf16>, vector<4x8x8xbf16>, vector<4x8x8xf32> -> vector<4x8x8xf32>
    "tpu.trace_stop"() : () -> ()
    %190 = tpu.transpose %189, [1, 0, 2] : vector<4x8x8xf32> -> vector<8x4x8xf32>
    %191 = vector.shape_cast %190 : vector<8x4x8xf32> to vector<8x32xf32>
    %192 = arith.truncf %191 : vector<8x32xf32> to vector<8x32xbf16>
    %cst_93 = arith.constant dense<0.000000e+00> : vector<8x32xf32>
    %193 = tpu.matmul %192, %149, %cst_93 {dimension_numbers = #tpu.dot_dimension_numbers<[1], [0], [0], [1], [0, 0, 1, 1], [], []>} : vector<8x32xbf16>, vector<32x32xbf16>, vector<8x32xf32> -> vector<8x32xf32>
    %194 = vector.broadcast %151 : vector<1x32xf32> to vector<8x32xf32>
    %195 = arith.addf %193, %194 : vector<8x32xf32>
    %196 = arith.addf %195, %143 : vector<8x32xf32>
    %cst_94 = arith.constant dense<0.000000e+00> : vector<8xf32>
    %197 = vector.multi_reduction <add>, %196, %cst_94 [1] : vector<8x32xf32> to vector<8xf32>
    %198 = vector.shape_cast %197 : vector<8xf32> to vector<8x1xf32>
    %cst_95 = arith.constant 3.200000e+01 : f32
    %199 = vector.broadcast %cst_95 : f32 to vector<8x1xf32>
    %200 = arith.divf %198, %199 : vector<8x1xf32>
    %201 = vector.broadcast %200 : vector<8x1xf32> to vector<8x32xf32>
    %202 = arith.subf %196, %201 : vector<8x32xf32>
    %203 = arith.mulf %202, %202 : vector<8x32xf32>
    %cst_96 = arith.constant dense<0.000000e+00> : vector<8xf32>
    %204 = vector.multi_reduction <add>, %203, %cst_96 [1] : vector<8x32xf32> to vector<8xf32>
    %205 = vector.shape_cast %204 : vector<8xf32> to vector<8x1xf32>
    %cst_97 = arith.constant 3.200000e+01 : f32
    %206 = vector.broadcast %cst_97 : f32 to vector<8x1xf32>
    %207 = arith.divf %205, %206 : vector<8x1xf32>
    %208 = vector.broadcast %200 : vector<8x1xf32> to vector<8x32xf32>
    %209 = arith.subf %196, %208 : vector<8x32xf32>
    %cst_98 = arith.constant 9.99999974E-6 : f32
    %210 = vector.broadcast %cst_98 : f32 to vector<8x1xf32>
    %211 = arith.addf %207, %210 : vector<8x1xf32>
    %212 = math.rsqrt %211 : vector<8x1xf32>
    %213 = vector.broadcast %212 : vector<8x1xf32> to vector<8x32xf32>
    %214 = arith.mulf %209, %213 : vector<8x32xf32>
    %215 = vector.broadcast %153 : vector<1x32xf32> to vector<8x32xf32>
    %216 = arith.mulf %214, %215 : vector<8x32xf32>
    %217 = vector.broadcast %155 : vector<1x32xf32> to vector<8x32xf32>
    %218 = arith.addf %216, %217 : vector<8x32xf32>
    %c1_99 = arith.constant 1 : index
    %c0_100 = arith.constant 0 : index
    %c0_101 = arith.constant 0 : index
    %219 = vector.load %arg13[%c1_99, %c0_100, %c0_101] : memref<2x32x128xbf16, #tpu.memory_space<vmem>>, vector<1x32x128xbf16>
    %220 = vector.shape_cast %219 : vector<1x32x128xbf16> to vector<32x128xbf16>
    %c1_102 = arith.constant 1 : index
    %c0_103 = arith.constant 0 : index
    %c0_104 = arith.constant 0 : index
    %221 = vector.load %arg14[%c1_102, %c0_103, %c0_104] : memref<2x1x128xf32, #tpu.memory_space<vmem>>, vector<1x1x128xf32>
    %222 = vector.shape_cast %221 : vector<1x1x128xf32> to vector<1x128xf32>
    %c1_105 = arith.constant 1 : index
    %c0_106 = arith.constant 0 : index
    %c0_107 = arith.constant 0 : index
    %223 = vector.load %arg15[%c1_105, %c0_106, %c0_107] : memref<2x128x32xbf16, #tpu.memory_space<vmem>>, vector<1x128x32xbf16>
    %224 = vector.shape_cast %223 : vector<1x128x32xbf16> to vector<128x32xbf16>
    %c1_108 = arith.constant 1 : index
    %c0_109 = arith.constant 0 : index
    %c0_110 = arith.constant 0 : index
    %225 = vector.load %arg16[%c1_108, %c0_109, %c0_110] : memref<2x1x32xf32, #tpu.memory_space<vmem>>, vector<1x1x32xf32>
    %226 = vector.shape_cast %225 : vector<1x1x32xf32> to vector<1x32xf32>
    %c1_111 = arith.constant 1 : index
    %c0_112 = arith.constant 0 : index
    %c0_113 = arith.constant 0 : index
    %227 = vector.load %arg17[%c1_111, %c0_112, %c0_113] : memref<2x1x32xf32, #tpu.memory_space<vmem>>, vector<1x1x32xf32>
    %228 = vector.shape_cast %227 : vector<1x1x32xf32> to vector<1x32xf32>
    %c1_114 = arith.constant 1 : index
    %c0_115 = arith.constant 0 : index
    %c0_116 = arith.constant 0 : index
    %229 = vector.load %arg18[%c1_114, %c0_115, %c0_116] : memref<2x1x32xf32, #tpu.memory_space<vmem>>, vector<1x1x32xf32>
    %230 = vector.shape_cast %229 : vector<1x1x32xf32> to vector<1x32xf32>
    %231 = arith.truncf %218 : vector<8x32xf32> to vector<8x32xbf16>
    %cst_117 = arith.constant dense<0.000000e+00> : vector<8x128xf32>
    %232 = tpu.matmul %231, %220, %cst_117 {dimension_numbers = #tpu.dot_dimension_numbers<[1], [0], [0], [1], [0, 0, 1, 1], [], []>} : vector<8x32xbf16>, vector<32x128xbf16>, vector<8x128xf32> -> vector<8x128xf32>
    %233 = vector.broadcast %222 : vector<1x128xf32> to vector<8x128xf32>
    %234 = arith.addf %232, %233 : vector<8x128xf32>
    %cst_118 = arith.constant 0.000000e+00 : f32
    %235 = vector.broadcast %cst_118 : f32 to vector<8x128xf32>
    %236 = arith.maximumf %234, %235 : vector<8x128xf32>
    %237 = arith.truncf %236 : vector<8x128xf32> to vector<8x128xbf16>
    %cst_119 = arith.constant dense<0.000000e+00> : vector<8x32xf32>
    %238 = tpu.matmul %237, %224, %cst_119 {dimension_numbers = #tpu.dot_dimension_numbers<[1], [0], [0], [1], [0, 0, 1, 1], [], []>} : vector<8x128xbf16>, vector<128x32xbf16>, vector<8x32xf32> -> vector<8x32xf32>
    %239 = vector.broadcast %226 : vector<1x32xf32> to vector<8x32xf32>
    %240 = arith.addf %238, %239 : vector<8x32xf32>
    %241 = arith.addf %240, %218 : vector<8x32xf32>
    %cst_120 = arith.constant dense<0.000000e+00> : vector<8xf32>
    %242 = vector.multi_reduction <add>, %241, %cst_120 [1] : vector<8x32xf32> to vector<8xf32>
    %243 = vector.shape_cast %242 : vector<8xf32> to vector<8x1xf32>
    %cst_121 = arith.constant 3.200000e+01 : f32
    %244 = vector.broadcast %cst_121 : f32 to vector<8x1xf32>
    %245 = arith.divf %243, %244 : vector<8x1xf32>
    %246 = vector.broadcast %245 : vector<8x1xf32> to vector<8x32xf32>
    %247 = arith.subf %241, %246 : vector<8x32xf32>
    %248 = arith.mulf %247, %247 : vector<8x32xf32>
    %cst_122 = arith.constant dense<0.000000e+00> : vector<8xf32>
    %249 = vector.multi_reduction <add>, %248, %cst_122 [1] : vector<8x32xf32> to vector<8xf32>
    %250 = vector.shape_cast %249 : vector<8xf32> to vector<8x1xf32>
    %cst_123 = arith.constant 3.200000e+01 : f32
    %251 = vector.broadcast %cst_123 : f32 to vector<8x1xf32>
    %252 = arith.divf %250, %251 : vector<8x1xf32>
    %253 = vector.broadcast %245 : vector<8x1xf32> to vector<8x32xf32>
    %254 = arith.subf %241, %253 : vector<8x32xf32>
    %cst_124 = arith.constant 9.99999974E-6 : f32
    %255 = vector.broadcast %cst_124 : f32 to vector<8x1xf32>
    %256 = arith.addf %252, %255 : vector<8x1xf32>
    %257 = math.rsqrt %256 : vector<8x1xf32>
    %258 = vector.broadcast %257 : vector<8x1xf32> to vector<8x32xf32>
    %259 = arith.mulf %254, %258 : vector<8x32xf32>
    %260 = vector.broadcast %228 : vector<1x32xf32> to vector<8x32xf32>
    %261 = arith.mulf %259, %260 : vector<8x32xf32>
    %262 = vector.broadcast %230 : vector<1x32xf32> to vector<8x32xf32>
    %263 = arith.addf %261, %262 : vector<8x32xf32>
    %c0_125 = arith.constant 0 : index
    %c0_126 = arith.constant 0 : index
    %c0_127 = arith.constant 0 : index
    %264 = vector.load %arg19[%c0_125, %c0_126, %c0_127] : memref<1x8x32xf32, #tpu.memory_space<vmem>>, vector<1x8x32xf32>
    %265 = vector.shape_cast %264 : vector<1x8x32xf32> to vector<8x32xf32>
    %266 = vector.shape_cast %263 : vector<8x32xf32> to vector<1x8x32xf32>
    tpu.vector_store %arg19[%c0_125, %c0_126, %c0_127], %266 {strides = array<i32>} : memref<1x8x32xf32, #tpu.memory_space<vmem>>, vector<1x8x32xf32>,
    return
  }
  func.func @transform_0(%arg0: i32) -> (i32, i32, i32) {
    %c0_i32 = arith.constant 0 : i32
    %c0_i32_0 = arith.constant 0 : i32
    %c0_i32_1 = arith.constant 0 : i32
    return %arg0, %c0_i32, %c0_i32_0 : i32, i32, i32
  }
  func.func @transform_1(%arg0: i32) -> (i32, i32, i32) {
    %c0_i32 = arith.constant 0 : i32
    %c0_i32_0 = arith.constant 0 : i32
    %c0_i32_1 = arith.constant 0 : i32
    return %arg0, %c0_i32, %c0_i32_0 : i32, i32, i32
  }
  func.func @transform_2(%arg0: i32) -> (i32, i32) {
    %c0_i32 = arith.constant 0 : i32
    %c0_i32_0 = arith.constant 0 : i32
    %c0_i32_1 = arith.constant 0 : i32
    return %c0_i32, %c0_i32_0 : i32, i32
  }
  func.func @transform_3(%arg0: i32) -> (i32, i32) {
    %c0_i32 = arith.constant 0 : i32
    %c0_i32_0 = arith.constant 0 : i32
    %c0_i32_1 = arith.constant 0 : i32
    return %c0_i32, %c0_i32_0 : i32, i32
  }
  func.func @transform_4(%arg0: i32) -> (i32, i32) {
    %c0_i32 = arith.constant 0 : i32
    %c0_i32_0 = arith.constant 0 : i32
    %c0_i32_1 = arith.constant 0 : i32
    return %c0_i32, %c0_i32_0 : i32, i32
  }
  func.func @transform_5(%arg0: i32) -> (i32, i32) {
    %c0_i32 = arith.constant 0 : i32
    %c0_i32_0 = arith.constant 0 : i32
    %c0_i32_1 = arith.constant 0 : i32
    return %c0_i32, %c0_i32_0 : i32, i32
  }
  func.func @transform_6(%arg0: i32) -> (i32, i32, i32) {
    %c0_i32 = arith.constant 0 : i32
    %c0_i32_0 = arith.constant 0 : i32
    %c0_i32_1 = arith.constant 0 : i32
    %c0_i32_2 = arith.constant 0 : i32
    return %c0_i32, %c0_i32_0, %c0_i32_1 : i32, i32, i32
  }
  func.func @transform_7(%arg0: i32) -> (i32, i32, i32) {
    %c0_i32 = arith.constant 0 : i32
    %c0_i32_0 = arith.constant 0 : i32
    %c0_i32_1 = arith.constant 0 : i32
    %c0_i32_2 = arith.constant 0 : i32
    return %c0_i32, %c0_i32_0, %c0_i32_1 : i32, i32, i32
  }
  func.func @transform_8(%arg0: i32) -> (i32, i32, i32) {
    %c0_i32 = arith.constant 0 : i32
    %c0_i32_0 = arith.constant 0 : i32
    %c0_i32_1 = arith.constant 0 : i32
    %c0_i32_2 = arith.constant 0 : i32
    return %c0_i32, %c0_i32_0, %c0_i32_1 : i32, i32, i32
  }
  func.func @transform_9(%arg0: i32) -> (i32, i32, i32) {
    %c0_i32 = arith.constant 0 : i32
    %c0_i32_0 = arith.constant 0 : i32
    %c0_i32_1 = arith.constant 0 : i32
    %c0_i32_2 = arith.constant 0 : i32
    return %c0_i32, %c0_i32_0, %c0_i32_1 : i32, i32, i32
  }
  func.func @transform_10(%arg0: i32) -> (i32, i32, i32) {
    %c0_i32 = arith.constant 0 : i32
    %c0_i32_0 = arith.constant 0 : i32
    %c0_i32_1 = arith.constant 0 : i32
    %c0_i32_2 = arith.constant 0 : i32
    return %c0_i32, %c0_i32_0, %c0_i32_1 : i32, i32, i32
  }
  func.func @transform_11(%arg0: i32) -> (i32, i32, i32) {
    %c0_i32 = arith.constant 0 : i32
    %c0_i32_0 = arith.constant 0 : i32
    %c0_i32_1 = arith.constant 0 : i32
    %c0_i32_2 = arith.constant 0 : i32
    return %c0_i32, %c0_i32_0, %c0_i32_1 : i32, i32, i32
  }
  func.func @transform_12(%arg0: i32) -> (i32, i32, i32) {
    %c0_i32 = arith.constant 0 : i32
    %c0_i32_0 = arith.constant 0 : i32
    %c0_i32_1 = arith.constant 0 : i32
    %c0_i32_2 = arith.constant 0 : i32
    return %c0_i32, %c0_i32_0, %c0_i32_1 : i32, i32, i32
  }
  func.func @transform_13(%arg0: i32) -> (i32, i32, i32) {
    %c0_i32 = arith.constant 0 : i32
    %c0_i32_0 = arith.constant 0 : i32
    %c0_i32_1 = arith.constant 0 : i32
    %c0_i32_2 = arith.constant 0 : i32
    return %c0_i32, %c0_i32_0, %c0_i32_1 : i32, i32, i32
  }
  func.func @transform_14(%arg0: i32) -> (i32, i32, i32) {
    %c0_i32 = arith.constant 0 : i32
    %c0_i32_0 = arith.constant 0 : i32
    %c0_i32_1 = arith.constant 0 : i32
    %c0_i32_2 = arith.constant 0 : i32
    return %c0_i32, %c0_i32_0, %c0_i32_1 : i32, i32, i32
  }
  func.func @transform_15(%arg0: i32) -> (i32, i32, i32) {
    %c0_i32 = arith.constant 0 : i32
    %c0_i32_0 = arith.constant 0 : i32
    %c0_i32_1 = arith.constant 0 : i32
    %c0_i32_2 = arith.constant 0 : i32
    return %c0_i32, %c0_i32_0, %c0_i32_1 : i32, i32, i32
  }
  func.func @transform_16(%arg0: i32) -> (i32, i32, i32) {
    %c0_i32 = arith.constant 0 : i32
    %c0_i32_0 = arith.constant 0 : i32
    %c0_i32_1 = arith.constant 0 : i32
    %c0_i32_2 = arith.constant 0 : i32
    return %c0_i32, %c0_i32_0, %c0_i32_1 : i32, i32, i32
  }
  func.func @transform_17(%arg0: i32) -> (i32, i32, i32) {
    %c0_i32 = arith.constant 0 : i32
    %c0_i32_0 = arith.constant 0 : i32
    %c0_i32_1 = arith.constant 0 : i32
    %c0_i32_2 = arith.constant 0 : i32
    return %c0_i32, %c0_i32_0, %c0_i32_1 : i32, i32, i32
  }
  func.func @transform_18(%arg0: i32) -> (i32, i32, i32) {
    %c0_i32 = arith.constant 0 : i32
    %c0_i32_0 = arith.constant 0 : i32
    %c0_i32_1 = arith.constant 0 : i32
    return %arg0, %c0_i32, %c0_i32_0 : i32, i32, i32
  }
}

module attributes {stable_mosaic.version = 11 : i64} {
  func.func @decoder_kernel(%arg0: i32, %arg1: memref<1x8x7xf32, #tpu.memory_space<vmem>>, %arg2: memref<1x8x32xf32, #tpu.memory_space<vmem>>, %arg3: memref<1x8x8xf32, #tpu.memory_space<vmem>>, %arg4: memref<1x8x8xf32, #tpu.memory_space<vmem>>, %arg5: memref<8x32xf32, #tpu.memory_space<vmem>>, %arg6: memref<48x32xbf16, #tpu.memory_space<vmem>>, %arg7: memref<6x32xbf16, #tpu.memory_space<vmem>>, %arg8: memref<1x32xf32, #tpu.memory_space<vmem>>, %arg9: memref<2x32x96xbf16, #tpu.memory_space<vmem>>, %arg10: memref<2x1x96xf32, #tpu.memory_space<vmem>>, %arg11: memref<2x32x32xbf16, #tpu.memory_space<vmem>>, %arg12: memref<2x1x32xf32, #tpu.memory_space<vmem>>, %arg13: memref<2x1x32xf32, #tpu.memory_space<vmem>>, %arg14: memref<2x1x32xf32, #tpu.memory_space<vmem>>, %arg15: memref<2x32x32xbf16, #tpu.memory_space<vmem>>, %arg16: memref<2x1x32xf32, #tpu.memory_space<vmem>>, %arg17: memref<2x32x64xbf16, #tpu.memory_space<vmem>>, %arg18: memref<2x1x64xf32, #tpu.memory_space<vmem>>, %arg19: memref<2x32x32xbf16, #tpu.memory_space<vmem>>, %arg20: memref<2x1x32xf32, #tpu.memory_space<vmem>>, %arg21: memref<2x1x32xf32, #tpu.memory_space<vmem>>, %arg22: memref<2x1x32xf32, #tpu.memory_space<vmem>>, %arg23: memref<2x32x128xbf16, #tpu.memory_space<vmem>>, %arg24: memref<2x1x128xf32, #tpu.memory_space<vmem>>, %arg25: memref<2x128x32xbf16, #tpu.memory_space<vmem>>, %arg26: memref<2x1x32xf32, #tpu.memory_space<vmem>>, %arg27: memref<2x1x32xf32, #tpu.memory_space<vmem>>, %arg28: memref<2x1x32xf32, #tpu.memory_space<vmem>>, %arg29: memref<32x48xbf16, #tpu.memory_space<vmem>>, %arg30: memref<1x48xf32, #tpu.memory_space<vmem>>, %arg31: memref<1x8x48xf32, #tpu.memory_space<vmem>>) attributes {dimension_semantics = [#tpu.dimension_semantics<parallel>], iteration_bounds = array<i64: 2>, scalar_prefetch = 0 : i64, scratch_operands = 0 : i64, tpu.core_type = #tpu.core_type<tc>, window_params = [{transform_indices = @transform_0, window_bounds = array<i64: 1, 8, 7>}, {transform_indices = @transform_1, window_bounds = array<i64: 1, 8, 32>}, {transform_indices = @transform_2, window_bounds = array<i64: 1, 8, 8>}, {transform_indices = @transform_3, window_bounds = array<i64: 1, 8, 8>}, {pipeline_mode = #tpu.pipeline_mode<synchronous>, transform_indices = @transform_4, window_bounds = array<i64: 8, 32>}, {pipeline_mode = #tpu.pipeline_mode<synchronous>, transform_indices = @transform_5, window_bounds = array<i64: 48, 32>}, {pipeline_mode = #tpu.pipeline_mode<synchronous>, transform_indices = @transform_6, window_bounds = array<i64: 6, 32>}, {pipeline_mode = #tpu.pipeline_mode<synchronous>, transform_indices = @transform_7, window_bounds = array<i64: 1, 32>}, {pipeline_mode = #tpu.pipeline_mode<synchronous>, transform_indices = @transform_8, window_bounds = array<i64: 2, 32, 96>}, {pipeline_mode = #tpu.pipeline_mode<synchronous>, transform_indices = @transform_9, window_bounds = array<i64: 2, 1, 96>}, {pipeline_mode = #tpu.pipeline_mode<synchronous>, transform_indices = @transform_10, window_bounds = array<i64: 2, 32, 32>}, {pipeline_mode = #tpu.pipeline_mode<synchronous>, transform_indices = @transform_11, window_bounds = array<i64: 2, 1, 32>}, {pipeline_mode = #tpu.pipeline_mode<synchronous>, transform_indices = @transform_12, window_bounds = array<i64: 2, 1, 32>}, {pipeline_mode = #tpu.pipeline_mode<synchronous>, transform_indices = @transform_13, window_bounds = array<i64: 2, 1, 32>}, {pipeline_mode = #tpu.pipeline_mode<synchronous>, transform_indices = @transform_14, window_bounds = array<i64: 2, 32, 32>}, {pipeline_mode = #tpu.pipeline_mode<synchronous>, transform_indices = @transform_15, window_bounds = array<i64: 2, 1, 32>}, {pipeline_mode = #tpu.pipeline_mode<synchronous>, transform_indices = @transform_16, window_bounds = array<i64: 2, 32, 64>}, {pipeline_mode = #tpu.pipeline_mode<synchronous>, transform_indices = @transform_17, window_bounds = array<i64: 2, 1, 64>}, {pipeline_mode = #tpu.pipeline_mode<synchronous>, transform_indices = @transform_18, window_bounds = array<i64: 2, 32, 32>}, {pipeline_mode = #tpu.pipeline_mode<synchronous>, transform_indices = @transform_19, window_bounds = array<i64: 2, 1, 32>}, {pipeline_mode = #tpu.pipeline_mode<synchronous>, transform_indices = @transform_20, window_bounds = array<i64: 2, 1, 32>}, {pipeline_mode = #tpu.pipeline_mode<synchronous>, transform_indices = @transform_21, window_bounds = array<i64: 2, 1, 32>}, {pipeline_mode = #tpu.pipeline_mode<synchronous>, transform_indices = @transform_22, window_bounds = array<i64: 2, 32, 128>}, {pipeline_mode = #tpu.pipeline_mode<synchronous>, transform_indices = @transform_23, window_bounds = array<i64: 2, 1, 128>}, {pipeline_mode = #tpu.pipeline_mode<synchronous>, transform_indices = @transform_24, window_bounds = array<i64: 2, 128, 32>}, {pipeline_mode = #tpu.pipeline_mode<synchronous>, transform_indices = @transform_25, window_bounds = array<i64: 2, 1, 32>}, {pipeline_mode = #tpu.pipeline_mode<synchronous>, transform_indices = @transform_26, window_bounds = array<i64: 2, 1, 32>}, {pipeline_mode = #tpu.pipeline_mode<synchronous>, transform_indices = @transform_27, window_bounds = array<i64: 2, 1, 32>}, {pipeline_mode = #tpu.pipeline_mode<synchronous>, transform_indices = @transform_28, window_bounds = array<i64: 32, 48>}, {pipeline_mode = #tpu.pipeline_mode<synchronous>, transform_indices = @transform_29, window_bounds = array<i64: 1, 48>}, {transform_indices = @transform_30, window_bounds = array<i64: 1, 8, 48>}]} {
    %c0 = arith.constant 0 : index
    %c0_0 = arith.constant 0 : index
    %c0_1 = arith.constant 0 : index
    %0 = vector.load %arg1[%c0, %c0_0, %c0_1] : memref<1x8x7xf32, #tpu.memory_space<vmem>>, vector<1x8x7xf32>
    %1 = vector.shape_cast %0 : vector<1x8x7xf32> to vector<8x7xf32>
    %c0_2 = arith.constant 0 : index
    %c0_3 = arith.constant 0 : index
    %2 = vector.load %arg6[%c0_2, %c0_3] : memref<48x32xbf16, #tpu.memory_space<vmem>>, vector<48x32xbf16>
    %c0_4 = arith.constant 0 : index
    %c0_5 = arith.constant 0 : index
    %3 = vector.load %arg7[%c0_4, %c0_5] : memref<6x32xbf16, #tpu.memory_space<vmem>>, vector<6x32xbf16>
    %c0_6 = arith.constant 0 : index
    %c0_7 = arith.constant 0 : index
    %4 = vector.load %arg8[%c0_6, %c0_7] : memref<1x32xf32, #tpu.memory_space<vmem>>, vector<1x32xf32>
    %c0_8 = arith.constant 0 : index
    %c0_9 = arith.constant 0 : index
    %5 = vector.load %arg5[%c0_8, %c0_9] : memref<8x32xf32, #tpu.memory_space<vmem>>, vector<8x32xf32>
    %6 = vector.extract_strided_slice %1 {offsets = [0, 0], sizes = [8, 1], strides = [1, 1]} : vector<8x7xf32> to vector<8x1xf32>
    %7 = arith.fptosi %6 : vector<8x1xf32> to vector<8x1xi32>
    %8 = vector.extract_strided_slice %1 {offsets = [0, 1], sizes = [8, 6], strides = [1, 1]} : vector<8x7xf32> to vector<8x6xf32>
    %9 = arith.truncf %8 : vector<8x6xf32> to vector<8x6xbf16>
    %10 = tpu.iota {dimensions = array<i32: 1>} : vector<8x48xi32>
    %11 = vector.broadcast %7 : vector<8x1xi32> to vector<8x48xi32>
    %12 = arith.cmpi eq, %10, %11 : vector<8x48xi32>
    %13 = arith.extui %12 : vector<8x48xi1> to vector<8x48xi32>
    %14 = arith.sitofp %13 : vector<8x48xi32> to vector<8x48xf32>
    %15 = arith.truncf %14 : vector<8x48xf32> to vector<8x48xbf16>
    %cst = arith.constant dense<0.000000e+00> : vector<8x32xf32>
    %16 = tpu.matmul %15, %2, %cst {dimension_numbers = #tpu.dot_dimension_numbers<[1], [0], [0], [1], [0, 0, 1, 1], [], []>} : vector<8x48xbf16>, vector<48x32xbf16>, vector<8x32xf32> -> vector<8x32xf32>
    %cst_10 = arith.constant dense<0.000000e+00> : vector<8x32xf32>
    %17 = tpu.matmul %9, %3, %cst_10 {dimension_numbers = #tpu.dot_dimension_numbers<[1], [0], [0], [1], [0, 0, 1, 1], [], []>} : vector<8x6xbf16>, vector<6x32xbf16>, vector<8x32xf32> -> vector<8x32xf32>
    %18 = arith.addf %16, %17 : vector<8x32xf32>
    %19 = vector.broadcast %4 : vector<1x32xf32> to vector<8x32xf32>
    %20 = arith.addf %18, %19 : vector<8x32xf32>
    %21 = arith.addf %20, %5 : vector<8x32xf32>
    %c0_11 = arith.constant 0 : index
    %c0_12 = arith.constant 0 : index
    %c0_13 = arith.constant 0 : index
    %22 = vector.load %arg2[%c0_11, %c0_12, %c0_13] : memref<1x8x32xf32, #tpu.memory_space<vmem>>, vector<1x8x32xf32>
    %23 = vector.shape_cast %22 : vector<1x8x32xf32> to vector<8x32xf32>
    %c0_14 = arith.constant 0 : index
    %c0_15 = arith.constant 0 : index
    %c0_16 = arith.constant 0 : index
    %24 = vector.load %arg3[%c0_14, %c0_15, %c0_16] : memref<1x8x8xf32, #tpu.memory_space<vmem>>, vector<1x8x8xf32>
    %25 = vector.shape_cast %24 : vector<1x8x8xf32> to vector<8x8xf32>
    %c0_17 = arith.constant 0 : index
    %c0_18 = arith.constant 0 : index
    %c0_19 = arith.constant 0 : index
    %26 = vector.load %arg4[%c0_17, %c0_18, %c0_19] : memref<1x8x8xf32, #tpu.memory_space<vmem>>, vector<1x8x8xf32>
    %27 = vector.shape_cast %26 : vector<1x8x8xf32> to vector<8x8xf32>
    %c0_20 = arith.constant 0 : index
    %c0_21 = arith.constant 0 : index
    %c0_22 = arith.constant 0 : index
    %28 = vector.load %arg9[%c0_20, %c0_21, %c0_22] : memref<2x32x96xbf16, #tpu.memory_space<vmem>>, vector<1x32x96xbf16>
    %29 = vector.shape_cast %28 : vector<1x32x96xbf16> to vector<32x96xbf16>
    %c0_23 = arith.constant 0 : index
    %c0_24 = arith.constant 0 : index
    %c0_25 = arith.constant 0 : index
    %30 = vector.load %arg10[%c0_23, %c0_24, %c0_25] : memref<2x1x96xf32, #tpu.memory_space<vmem>>, vector<1x1x96xf32>
    %31 = vector.shape_cast %30 : vector<1x1x96xf32> to vector<1x96xf32>
    %c0_26 = arith.constant 0 : index
    %c0_27 = arith.constant 0 : index
    %c0_28 = arith.constant 0 : index
    %32 = vector.load %arg11[%c0_26, %c0_27, %c0_28] : memref<2x32x32xbf16, #tpu.memory_space<vmem>>, vector<1x32x32xbf16>
    %33 = vector.shape_cast %32 : vector<1x32x32xbf16> to vector<32x32xbf16>
    %c0_29 = arith.constant 0 : index
    %c0_30 = arith.constant 0 : index
    %c0_31 = arith.constant 0 : index
    %34 = vector.load %arg12[%c0_29, %c0_30, %c0_31] : memref<2x1x32xf32, #tpu.memory_space<vmem>>, vector<1x1x32xf32>
    %35 = vector.shape_cast %34 : vector<1x1x32xf32> to vector<1x32xf32>
    %c0_32 = arith.constant 0 : index
    %c0_33 = arith.constant 0 : index
    %c0_34 = arith.constant 0 : index
    %36 = vector.load %arg13[%c0_32, %c0_33, %c0_34] : memref<2x1x32xf32, #tpu.memory_space<vmem>>, vector<1x1x32xf32>
    %37 = vector.shape_cast %36 : vector<1x1x32xf32> to vector<1x32xf32>
    %c0_35 = arith.constant 0 : index
    %c0_36 = arith.constant 0 : index
    %c0_37 = arith.constant 0 : index
    %38 = vector.load %arg14[%c0_35, %c0_36, %c0_37] : memref<2x1x32xf32, #tpu.memory_space<vmem>>, vector<1x1x32xf32>
    %39 = vector.shape_cast %38 : vector<1x1x32xf32> to vector<1x32xf32>
    %40 = arith.truncf %21 : vector<8x32xf32> to vector<8x32xbf16>
    %cst_38 = arith.constant dense<0.000000e+00> : vector<8x96xf32>
    %41 = tpu.matmul %40, %29, %cst_38 {dimension_numbers = #tpu.dot_dimension_numbers<[1], [0], [0], [1], [0, 0, 1, 1], [], []>} : vector<8x32xbf16>, vector<32x96xbf16>, vector<8x96xf32> -> vector<8x96xf32>
    %42 = vector.broadcast %31 : vector<1x96xf32> to vector<8x96xf32>
    %43 = arith.addf %41, %42 : vector<8x96xf32>
    %44 = vector.extract_strided_slice %43 {offsets = [0, 0], sizes = [8, 32], strides = [1, 1]} : vector<8x96xf32> to vector<8x32xf32>
    %45 = vector.extract_strided_slice %43 {offsets = [0, 32], sizes = [8, 32], strides = [1, 1]} : vector<8x96xf32> to vector<8x32xf32>
    %46 = vector.extract_strided_slice %43 {offsets = [0, 64], sizes = [8, 32], strides = [1, 1]} : vector<8x96xf32> to vector<8x32xf32>
    %47 = vector.shape_cast %44 : vector<8x32xf32> to vector<8x4x8xf32>
    %48 = tpu.transpose %47, [1, 0, 2] : vector<8x4x8xf32> -> vector<4x8x8xf32>
    %49 = arith.truncf %48 : vector<4x8x8xf32> to vector<4x8x8xbf16>
    %50 = vector.shape_cast %45 : vector<8x32xf32> to vector<8x4x8xf32>
    %51 = tpu.transpose %50, [1, 0, 2] : vector<8x4x8xf32> -> vector<4x8x8xf32>
    %52 = arith.truncf %51 : vector<4x8x8xf32> to vector<4x8x8xbf16>
    %53 = vector.shape_cast %46 : vector<8x32xf32> to vector<8x4x8xf32>
    %54 = tpu.transpose %53, [1, 0, 2] : vector<8x4x8xf32> -> vector<4x8x8xf32>
    %55 = arith.truncf %54 : vector<4x8x8xf32> to vector<4x8x8xbf16>
    "tpu.trace_start"() <{level = 10 : i32, message = "nqd,nkd->nqk"}> : () -> ()
    %cst_39 = arith.constant dense<0.000000e+00> : vector<4x8x8xf32>
    %56 = tpu.matmul %49, %52, %cst_39 {dimension_numbers = #tpu.dot_dimension_numbers<[2], [2], [1], [1], [0, 0, 0, 1, 1, 1], [0], [0]>} : vector<4x8x8xbf16>, vector<4x8x8xbf16>, vector<4x8x8xf32> -> vector<4x8x8xf32>
    "tpu.trace_stop"() : () -> ()
    %cst_40 = arith.constant 0.353553385 : f32
    %57 = vector.broadcast %cst_40 : f32 to vector<4x8x8xf32>
    %58 = arith.mulf %56, %57 : vector<4x8x8xf32>
    %59 = vector.shape_cast %25 : vector<8x8xf32> to vector<1x8x8xf32>
    %60 = vector.broadcast %59 : vector<1x8x8xf32> to vector<4x8x8xf32>
    %61 = arith.addf %58, %60 : vector<4x8x8xf32>
    %cst_41 = arith.constant dense<0xFF800000> : vector<4x8xf32>
    %62 = vector.multi_reduction <maximumf>, %61, %cst_41 [2] : vector<4x8x8xf32> to vector<4x8xf32>
    %63 = vector.shape_cast %62 : vector<4x8xf32> to vector<4x8x1xf32>
    %64 = vector.broadcast %63 : vector<4x8x1xf32> to vector<4x8x8xf32>
    %65 = arith.subf %61, %64 : vector<4x8x8xf32>
    %66 = math.exp %65 : vector<4x8x8xf32>
    %cst_42 = arith.constant dense<0.000000e+00> : vector<4x8xf32>
    %67 = vector.multi_reduction <add>, %66, %cst_42 [2] : vector<4x8x8xf32> to vector<4x8xf32>
    %68 = vector.shape_cast %67 : vector<4x8xf32> to vector<4x8x1xf32>
    %69 = tpu.reciprocal %68 {approx = true} : vector<4x8x1xf32> -> vector<4x8x1xf32>
    %70 = vector.broadcast %69 : vector<4x8x1xf32> to vector<4x8x8xf32>
    %71 = arith.mulf %66, %70 : vector<4x8x8xf32>
    %72 = arith.truncf %71 : vector<4x8x8xf32> to vector<4x8x8xbf16>
    "tpu.trace_start"() <{level = 10 : i32, message = "nqk,nkd->nqd"}> : () -> ()
    %cst_43 = arith.constant dense<0.000000e+00> : vector<4x8x8xf32>
    %73 = tpu.matmul %72, %55, %cst_43 {dimension_numbers = #tpu.dot_dimension_numbers<[2], [1], [1], [2], [0, 0, 0, 1, 1, 2], [0], [0]>} : vector<4x8x8xbf16>, vector<4x8x8xbf16>, vector<4x8x8xf32> -> vector<4x8x8xf32>
    "tpu.trace_stop"() : () -> ()
    %74 = tpu.transpose %73, [1, 0, 2] : vector<4x8x8xf32> -> vector<8x4x8xf32>
    %75 = vector.shape_cast %74 : vector<8x4x8xf32> to vector<8x32xf32>
    %76 = arith.truncf %75 : vector<8x32xf32> to vector<8x32xbf16>
    %cst_44 = arith.constant dense<0.000000e+00> : vector<8x32xf32>
    %77 = tpu.matmul %76, %33, %cst_44 {dimension_numbers = #tpu.dot_dimension_numbers<[1], [0], [0], [1], [0, 0, 1, 1], [], []>} : vector<8x32xbf16>, vector<32x32xbf16>, vector<8x32xf32> -> vector<8x32xf32>
    %78 = vector.broadcast %35 : vector<1x32xf32> to vector<8x32xf32>
    %79 = arith.addf %77, %78 : vector<8x32xf32>
    %80 = arith.addf %79, %21 : vector<8x32xf32>
    %cst_45 = arith.constant dense<0.000000e+00> : vector<8xf32>
    %81 = vector.multi_reduction <add>, %80, %cst_45 [1] : vector<8x32xf32> to vector<8xf32>
    %82 = vector.shape_cast %81 : vector<8xf32> to vector<8x1xf32>
    %cst_46 = arith.constant 3.200000e+01 : f32
    %83 = vector.broadcast %cst_46 : f32 to vector<8x1xf32>
    %84 = arith.divf %82, %83 : vector<8x1xf32>
    %85 = vector.broadcast %84 : vector<8x1xf32> to vector<8x32xf32>
    %86 = arith.subf %80, %85 : vector<8x32xf32>
    %87 = arith.mulf %86, %86 : vector<8x32xf32>
    %cst_47 = arith.constant dense<0.000000e+00> : vector<8xf32>
    %88 = vector.multi_reduction <add>, %87, %cst_47 [1] : vector<8x32xf32> to vector<8xf32>
    %89 = vector.shape_cast %88 : vector<8xf32> to vector<8x1xf32>
    %cst_48 = arith.constant 3.200000e+01 : f32
    %90 = vector.broadcast %cst_48 : f32 to vector<8x1xf32>
    %91 = arith.divf %89, %90 : vector<8x1xf32>
    %92 = vector.broadcast %84 : vector<8x1xf32> to vector<8x32xf32>
    %93 = arith.subf %80, %92 : vector<8x32xf32>
    %cst_49 = arith.constant 9.99999974E-6 : f32
    %94 = vector.broadcast %cst_49 : f32 to vector<8x1xf32>
    %95 = arith.addf %91, %94 : vector<8x1xf32>
    %96 = math.rsqrt %95 : vector<8x1xf32>
    %97 = vector.broadcast %96 : vector<8x1xf32> to vector<8x32xf32>
    %98 = arith.mulf %93, %97 : vector<8x32xf32>
    %99 = vector.broadcast %37 : vector<1x32xf32> to vector<8x32xf32>
    %100 = arith.mulf %98, %99 : vector<8x32xf32>
    %101 = vector.broadcast %39 : vector<1x32xf32> to vector<8x32xf32>
    %102 = arith.addf %100, %101 : vector<8x32xf32>
    %c0_50 = arith.constant 0 : index
    %c0_51 = arith.constant 0 : index
    %c0_52 = arith.constant 0 : index
    %103 = vector.load %arg15[%c0_50, %c0_51, %c0_52] : memref<2x32x32xbf16, #tpu.memory_space<vmem>>, vector<1x32x32xbf16>
    %104 = vector.shape_cast %103 : vector<1x32x32xbf16> to vector<32x32xbf16>
    %c0_53 = arith.constant 0 : index
    %c0_54 = arith.constant 0 : index
    %c0_55 = arith.constant 0 : index
    %105 = vector.load %arg16[%c0_53, %c0_54, %c0_55] : memref<2x1x32xf32, #tpu.memory_space<vmem>>, vector<1x1x32xf32>
    %106 = vector.shape_cast %105 : vector<1x1x32xf32> to vector<1x32xf32>
    %c0_56 = arith.constant 0 : index
    %c0_57 = arith.constant 0 : index
    %c0_58 = arith.constant 0 : index
    %107 = vector.load %arg17[%c0_56, %c0_57, %c0_58] : memref<2x32x64xbf16, #tpu.memory_space<vmem>>, vector<1x32x64xbf16>
    %108 = vector.shape_cast %107 : vector<1x32x64xbf16> to vector<32x64xbf16>
    %c0_59 = arith.constant 0 : index
    %c0_60 = arith.constant 0 : index
    %c0_61 = arith.constant 0 : index
    %109 = vector.load %arg18[%c0_59, %c0_60, %c0_61] : memref<2x1x64xf32, #tpu.memory_space<vmem>>, vector<1x1x64xf32>
    %110 = vector.shape_cast %109 : vector<1x1x64xf32> to vector<1x64xf32>
    %c0_62 = arith.constant 0 : index
    %c0_63 = arith.constant 0 : index
    %c0_64 = arith.constant 0 : index
    %111 = vector.load %arg19[%c0_62, %c0_63, %c0_64] : memref<2x32x32xbf16, #tpu.memory_space<vmem>>, vector<1x32x32xbf16>
    %112 = vector.shape_cast %111 : vector<1x32x32xbf16> to vector<32x32xbf16>
    %c0_65 = arith.constant 0 : index
    %c0_66 = arith.constant 0 : index
    %c0_67 = arith.constant 0 : index
    %113 = vector.load %arg20[%c0_65, %c0_66, %c0_67] : memref<2x1x32xf32, #tpu.memory_space<vmem>>, vector<1x1x32xf32>
    %114 = vector.shape_cast %113 : vector<1x1x32xf32> to vector<1x32xf32>
    %c0_68 = arith.constant 0 : index
    %c0_69 = arith.constant 0 : index
    %c0_70 = arith.constant 0 : index
    %115 = vector.load %arg21[%c0_68, %c0_69, %c0_70] : memref<2x1x32xf32, #tpu.memory_space<vmem>>, vector<1x1x32xf32>
    %116 = vector.shape_cast %115 : vector<1x1x32xf32> to vector<1x32xf32>
    %c0_71 = arith.constant 0 : index
    %c0_72 = arith.constant 0 : index
    %c0_73 = arith.constant 0 : index
    %117 = vector.load %arg22[%c0_71, %c0_72, %c0_73] : memref<2x1x32xf32, #tpu.memory_space<vmem>>, vector<1x1x32xf32>
    %118 = vector.shape_cast %117 : vector<1x1x32xf32> to vector<1x32xf32>
    %119 = arith.truncf %102 : vector<8x32xf32> to vector<8x32xbf16>
    %cst_74 = arith.constant dense<0.000000e+00> : vector<8x32xf32>
    %120 = tpu.matmul %119, %104, %cst_74 {dimension_numbers = #tpu.dot_dimension_numbers<[1], [0], [0], [1], [0, 0, 1, 1], [], []>} : vector<8x32xbf16>, vector<32x32xbf16>, vector<8x32xf32> -> vector<8x32xf32>
    %121 = vector.broadcast %106 : vector<1x32xf32> to vector<8x32xf32>
    %122 = arith.addf %120, %121 : vector<8x32xf32>
    %123 = arith.truncf %23 : vector<8x32xf32> to vector<8x32xbf16>
    %cst_75 = arith.constant dense<0.000000e+00> : vector<8x64xf32>
    %124 = tpu.matmul %123, %108, %cst_75 {dimension_numbers = #tpu.dot_dimension_numbers<[1], [0], [0], [1], [0, 0, 1, 1], [], []>} : vector<8x32xbf16>, vector<32x64xbf16>, vector<8x64xf32> -> vector<8x64xf32>
    %125 = vector.broadcast %110 : vector<1x64xf32> to vector<8x64xf32>
    %126 = arith.addf %124, %125 : vector<8x64xf32>
    %127 = vector.extract_strided_slice %126 {offsets = [0, 0], sizes = [8, 32], strides = [1, 1]} : vector<8x64xf32> to vector<8x32xf32>
    %128 = vector.extract_strided_slice %126 {offsets = [0, 32], sizes = [8, 32], strides = [1, 1]} : vector<8x64xf32> to vector<8x32xf32>
    %129 = vector.shape_cast %122 : vector<8x32xf32> to vector<8x4x8xf32>
    %130 = tpu.transpose %129, [1, 0, 2] : vector<8x4x8xf32> -> vector<4x8x8xf32>
    %131 = arith.truncf %130 : vector<4x8x8xf32> to vector<4x8x8xbf16>
    %132 = vector.shape_cast %127 : vector<8x32xf32> to vector<8x4x8xf32>
    %133 = tpu.transpose %132, [1, 0, 2] : vector<8x4x8xf32> -> vector<4x8x8xf32>
    %134 = arith.truncf %133 : vector<4x8x8xf32> to vector<4x8x8xbf16>
    %135 = vector.shape_cast %128 : vector<8x32xf32> to vector<8x4x8xf32>
    %136 = tpu.transpose %135, [1, 0, 2] : vector<8x4x8xf32> -> vector<4x8x8xf32>
    %137 = arith.truncf %136 : vector<4x8x8xf32> to vector<4x8x8xbf16>
    "tpu.trace_start"() <{level = 10 : i32, message = "nqd,nkd->nqk"}> : () -> ()
    %cst_76 = arith.constant dense<0.000000e+00> : vector<4x8x8xf32>
    %138 = tpu.matmul %131, %134, %cst_76 {dimension_numbers = #tpu.dot_dimension_numbers<[2], [2], [1], [1], [0, 0, 0, 1, 1, 1], [0], [0]>} : vector<4x8x8xbf16>, vector<4x8x8xbf16>, vector<4x8x8xf32> -> vector<4x8x8xf32>
    "tpu.trace_stop"() : () -> ()
    %cst_77 = arith.constant 0.353553385 : f32
    %139 = vector.broadcast %cst_77 : f32 to vector<4x8x8xf32>
    %140 = arith.mulf %138, %139 : vector<4x8x8xf32>
    %141 = vector.shape_cast %27 : vector<8x8xf32> to vector<1x8x8xf32>
    %142 = vector.broadcast %141 : vector<1x8x8xf32> to vector<4x8x8xf32>
    %143 = arith.addf %140, %142 : vector<4x8x8xf32>
    %cst_78 = arith.constant dense<0xFF800000> : vector<4x8xf32>
    %144 = vector.multi_reduction <maximumf>, %143, %cst_78 [2] : vector<4x8x8xf32> to vector<4x8xf32>
    %145 = vector.shape_cast %144 : vector<4x8xf32> to vector<4x8x1xf32>
    %146 = vector.broadcast %145 : vector<4x8x1xf32> to vector<4x8x8xf32>
    %147 = arith.subf %143, %146 : vector<4x8x8xf32>
    %148 = math.exp %147 : vector<4x8x8xf32>
    %cst_79 = arith.constant dense<0.000000e+00> : vector<4x8xf32>
    %149 = vector.multi_reduction <add>, %148, %cst_79 [2] : vector<4x8x8xf32> to vector<4x8xf32>
    %150 = vector.shape_cast %149 : vector<4x8xf32> to vector<4x8x1xf32>
    %151 = tpu.reciprocal %150 {approx = true} : vector<4x8x1xf32> -> vector<4x8x1xf32>
    %152 = vector.broadcast %151 : vector<4x8x1xf32> to vector<4x8x8xf32>
    %153 = arith.mulf %148, %152 : vector<4x8x8xf32>
    %154 = arith.truncf %153 : vector<4x8x8xf32> to vector<4x8x8xbf16>
    "tpu.trace_start"() <{level = 10 : i32, message = "nqk,nkd->nqd"}> : () -> ()
    %cst_80 = arith.constant dense<0.000000e+00> : vector<4x8x8xf32>
    %155 = tpu.matmul %154, %137, %cst_80 {dimension_numbers = #tpu.dot_dimension_numbers<[2], [1], [1], [2], [0, 0, 0, 1, 1, 2], [0], [0]>} : vector<4x8x8xbf16>, vector<4x8x8xbf16>, vector<4x8x8xf32> -> vector<4x8x8xf32>
    "tpu.trace_stop"() : () -> ()
    %156 = tpu.transpose %155, [1, 0, 2] : vector<4x8x8xf32> -> vector<8x4x8xf32>
    %157 = vector.shape_cast %156 : vector<8x4x8xf32> to vector<8x32xf32>
    %158 = arith.truncf %157 : vector<8x32xf32> to vector<8x32xbf16>
    %cst_81 = arith.constant dense<0.000000e+00> : vector<8x32xf32>
    %159 = tpu.matmul %158, %112, %cst_81 {dimension_numbers = #tpu.dot_dimension_numbers<[1], [0], [0], [1], [0, 0, 1, 1], [], []>} : vector<8x32xbf16>, vector<32x32xbf16>, vector<8x32xf32> -> vector<8x32xf32>
    %160 = vector.broadcast %114 : vector<1x32xf32> to vector<8x32xf32>
    %161 = arith.addf %159, %160 : vector<8x32xf32>
    %162 = arith.addf %161, %102 : vector<8x32xf32>
    %cst_82 = arith.constant dense<0.000000e+00> : vector<8xf32>
    %163 = vector.multi_reduction <add>, %162, %cst_82 [1] : vector<8x32xf32> to vector<8xf32>
    %164 = vector.shape_cast %163 : vector<8xf32> to vector<8x1xf32>
    %cst_83 = arith.constant 3.200000e+01 : f32
    %165 = vector.broadcast %cst_83 : f32 to vector<8x1xf32>
    %166 = arith.divf %164, %165 : vector<8x1xf32>
    %167 = vector.broadcast %166 : vector<8x1xf32> to vector<8x32xf32>
    %168 = arith.subf %162, %167 : vector<8x32xf32>
    %169 = arith.mulf %168, %168 : vector<8x32xf32>
    %cst_84 = arith.constant dense<0.000000e+00> : vector<8xf32>
    %170 = vector.multi_reduction <add>, %169, %cst_84 [1] : vector<8x32xf32> to vector<8xf32>
    %171 = vector.shape_cast %170 : vector<8xf32> to vector<8x1xf32>
    %cst_85 = arith.constant 3.200000e+01 : f32
    %172 = vector.broadcast %cst_85 : f32 to vector<8x1xf32>
    %173 = arith.divf %171, %172 : vector<8x1xf32>
    %174 = vector.broadcast %166 : vector<8x1xf32> to vector<8x32xf32>
    %175 = arith.subf %162, %174 : vector<8x32xf32>
    %cst_86 = arith.constant 9.99999974E-6 : f32
    %176 = vector.broadcast %cst_86 : f32 to vector<8x1xf32>
    %177 = arith.addf %173, %176 : vector<8x1xf32>
    %178 = math.rsqrt %177 : vector<8x1xf32>
    %179 = vector.broadcast %178 : vector<8x1xf32> to vector<8x32xf32>
    %180 = arith.mulf %175, %179 : vector<8x32xf32>
    %181 = vector.broadcast %116 : vector<1x32xf32> to vector<8x32xf32>
    %182 = arith.mulf %180, %181 : vector<8x32xf32>
    %183 = vector.broadcast %118 : vector<1x32xf32> to vector<8x32xf32>
    %184 = arith.addf %182, %183 : vector<8x32xf32>
    %c0_87 = arith.constant 0 : index
    %c0_88 = arith.constant 0 : index
    %c0_89 = arith.constant 0 : index
    %185 = vector.load %arg23[%c0_87, %c0_88, %c0_89] : memref<2x32x128xbf16, #tpu.memory_space<vmem>>, vector<1x32x128xbf16>
    %186 = vector.shape_cast %185 : vector<1x32x128xbf16> to vector<32x128xbf16>
    %c0_90 = arith.constant 0 : index
    %c0_91 = arith.constant 0 : index
    %c0_92 = arith.constant 0 : index
    %187 = vector.load %arg24[%c0_90, %c0_91, %c0_92] : memref<2x1x128xf32, #tpu.memory_space<vmem>>, vector<1x1x128xf32>
    %188 = vector.shape_cast %187 : vector<1x1x128xf32> to vector<1x128xf32>
    %c0_93 = arith.constant 0 : index
    %c0_94 = arith.constant 0 : index
    %c0_95 = arith.constant 0 : index
    %189 = vector.load %arg25[%c0_93, %c0_94, %c0_95] : memref<2x128x32xbf16, #tpu.memory_space<vmem>>, vector<1x128x32xbf16>
    %190 = vector.shape_cast %189 : vector<1x128x32xbf16> to vector<128x32xbf16>
    %c0_96 = arith.constant 0 : index
    %c0_97 = arith.constant 0 : index
    %c0_98 = arith.constant 0 : index
    %191 = vector.load %arg26[%c0_96, %c0_97, %c0_98] : memref<2x1x32xf32, #tpu.memory_space<vmem>>, vector<1x1x32xf32>
    %192 = vector.shape_cast %191 : vector<1x1x32xf32> to vector<1x32xf32>
    %c0_99 = arith.constant 0 : index
    %c0_100 = arith.constant 0 : index
    %c0_101 = arith.constant 0 : index
    %193 = vector.load %arg27[%c0_99, %c0_100, %c0_101] : memref<2x1x32xf32, #tpu.memory_space<vmem>>, vector<1x1x32xf32>
    %194 = vector.shape_cast %193 : vector<1x1x32xf32> to vector<1x32xf32>
    %c0_102 = arith.constant 0 : index
    %c0_103 = arith.constant 0 : index
    %c0_104 = arith.constant 0 : index
    %195 = vector.load %arg28[%c0_102, %c0_103, %c0_104] : memref<2x1x32xf32, #tpu.memory_space<vmem>>, vector<1x1x32xf32>
    %196 = vector.shape_cast %195 : vector<1x1x32xf32> to vector<1x32xf32>
    %197 = arith.truncf %184 : vector<8x32xf32> to vector<8x32xbf16>
    %cst_105 = arith.constant dense<0.000000e+00> : vector<8x128xf32>
    %198 = tpu.matmul %197, %186, %cst_105 {dimension_numbers = #tpu.dot_dimension_numbers<[1], [0], [0], [1], [0, 0, 1, 1], [], []>} : vector<8x32xbf16>, vector<32x128xbf16>, vector<8x128xf32> -> vector<8x128xf32>
    %199 = vector.broadcast %188 : vector<1x128xf32> to vector<8x128xf32>
    %200 = arith.addf %198, %199 : vector<8x128xf32>
    %cst_106 = arith.constant 0.000000e+00 : f32
    %201 = vector.broadcast %cst_106 : f32 to vector<8x128xf32>
    %202 = arith.maximumf %200, %201 : vector<8x128xf32>
    %203 = arith.truncf %202 : vector<8x128xf32> to vector<8x128xbf16>
    %cst_107 = arith.constant dense<0.000000e+00> : vector<8x32xf32>
    %204 = tpu.matmul %203, %190, %cst_107 {dimension_numbers = #tpu.dot_dimension_numbers<[1], [0], [0], [1], [0, 0, 1, 1], [], []>} : vector<8x128xbf16>, vector<128x32xbf16>, vector<8x32xf32> -> vector<8x32xf32>
    %205 = vector.broadcast %192 : vector<1x32xf32> to vector<8x32xf32>
    %206 = arith.addf %204, %205 : vector<8x32xf32>
    %207 = arith.addf %206, %184 : vector<8x32xf32>
    %cst_108 = arith.constant dense<0.000000e+00> : vector<8xf32>
    %208 = vector.multi_reduction <add>, %207, %cst_108 [1] : vector<8x32xf32> to vector<8xf32>
    %209 = vector.shape_cast %208 : vector<8xf32> to vector<8x1xf32>
    %cst_109 = arith.constant 3.200000e+01 : f32
    %210 = vector.broadcast %cst_109 : f32 to vector<8x1xf32>
    %211 = arith.divf %209, %210 : vector<8x1xf32>
    %212 = vector.broadcast %211 : vector<8x1xf32> to vector<8x32xf32>
    %213 = arith.subf %207, %212 : vector<8x32xf32>
    %214 = arith.mulf %213, %213 : vector<8x32xf32>
    %cst_110 = arith.constant dense<0.000000e+00> : vector<8xf32>
    %215 = vector.multi_reduction <add>, %214, %cst_110 [1] : vector<8x32xf32> to vector<8xf32>
    %216 = vector.shape_cast %215 : vector<8xf32> to vector<8x1xf32>
    %cst_111 = arith.constant 3.200000e+01 : f32
    %217 = vector.broadcast %cst_111 : f32 to vector<8x1xf32>
    %218 = arith.divf %216, %217 : vector<8x1xf32>
    %219 = vector.broadcast %211 : vector<8x1xf32> to vector<8x32xf32>
    %220 = arith.subf %207, %219 : vector<8x32xf32>
    %cst_112 = arith.constant 9.99999974E-6 : f32
    %221 = vector.broadcast %cst_112 : f32 to vector<8x1xf32>
    %222 = arith.addf %218, %221 : vector<8x1xf32>
    %223 = math.rsqrt %222 : vector<8x1xf32>
    %224 = vector.broadcast %223 : vector<8x1xf32> to vector<8x32xf32>
    %225 = arith.mulf %220, %224 : vector<8x32xf32>
    %226 = vector.broadcast %194 : vector<1x32xf32> to vector<8x32xf32>
    %227 = arith.mulf %225, %226 : vector<8x32xf32>
    %228 = vector.broadcast %196 : vector<1x32xf32> to vector<8x32xf32>
    %229 = arith.addf %227, %228 : vector<8x32xf32>
    %c1 = arith.constant 1 : index
    %c0_113 = arith.constant 0 : index
    %c0_114 = arith.constant 0 : index
    %230 = vector.load %arg9[%c1, %c0_113, %c0_114] : memref<2x32x96xbf16, #tpu.memory_space<vmem>>, vector<1x32x96xbf16>
    %231 = vector.shape_cast %230 : vector<1x32x96xbf16> to vector<32x96xbf16>
    %c1_115 = arith.constant 1 : index
    %c0_116 = arith.constant 0 : index
    %c0_117 = arith.constant 0 : index
    %232 = vector.load %arg10[%c1_115, %c0_116, %c0_117] : memref<2x1x96xf32, #tpu.memory_space<vmem>>, vector<1x1x96xf32>
    %233 = vector.shape_cast %232 : vector<1x1x96xf32> to vector<1x96xf32>
    %c1_118 = arith.constant 1 : index
    %c0_119 = arith.constant 0 : index
    %c0_120 = arith.constant 0 : index
    %234 = vector.load %arg11[%c1_118, %c0_119, %c0_120] : memref<2x32x32xbf16, #tpu.memory_space<vmem>>, vector<1x32x32xbf16>
    %235 = vector.shape_cast %234 : vector<1x32x32xbf16> to vector<32x32xbf16>
    %c1_121 = arith.constant 1 : index
    %c0_122 = arith.constant 0 : index
    %c0_123 = arith.constant 0 : index
    %236 = vector.load %arg12[%c1_121, %c0_122, %c0_123] : memref<2x1x32xf32, #tpu.memory_space<vmem>>, vector<1x1x32xf32>
    %237 = vector.shape_cast %236 : vector<1x1x32xf32> to vector<1x32xf32>
    %c1_124 = arith.constant 1 : index
    %c0_125 = arith.constant 0 : index
    %c0_126 = arith.constant 0 : index
    %238 = vector.load %arg13[%c1_124, %c0_125, %c0_126] : memref<2x1x32xf32, #tpu.memory_space<vmem>>, vector<1x1x32xf32>
    %239 = vector.shape_cast %238 : vector<1x1x32xf32> to vector<1x32xf32>
    %c1_127 = arith.constant 1 : index
    %c0_128 = arith.constant 0 : index
    %c0_129 = arith.constant 0 : index
    %240 = vector.load %arg14[%c1_127, %c0_128, %c0_129] : memref<2x1x32xf32, #tpu.memory_space<vmem>>, vector<1x1x32xf32>
    %241 = vector.shape_cast %240 : vector<1x1x32xf32> to vector<1x32xf32>
    %242 = arith.truncf %229 : vector<8x32xf32> to vector<8x32xbf16>
    %cst_130 = arith.constant dense<0.000000e+00> : vector<8x96xf32>
    %243 = tpu.matmul %242, %231, %cst_130 {dimension_numbers = #tpu.dot_dimension_numbers<[1], [0], [0], [1], [0, 0, 1, 1], [], []>} : vector<8x32xbf16>, vector<32x96xbf16>, vector<8x96xf32> -> vector<8x96xf32>
    %244 = vector.broadcast %233 : vector<1x96xf32> to vector<8x96xf32>
    %245 = arith.addf %243, %244 : vector<8x96xf32>
    %246 = vector.extract_strided_slice %245 {offsets = [0, 0], sizes = [8, 32], strides = [1, 1]} : vector<8x96xf32> to vector<8x32xf32>
    %247 = vector.extract_strided_slice %245 {offsets = [0, 32], sizes = [8, 32], strides = [1, 1]} : vector<8x96xf32> to vector<8x32xf32>
    %248 = vector.extract_strided_slice %245 {offsets = [0, 64], sizes = [8, 32], strides = [1, 1]} : vector<8x96xf32> to vector<8x32xf32>
    %249 = vector.shape_cast %246 : vector<8x32xf32> to vector<8x4x8xf32>
    %250 = tpu.transpose %249, [1, 0, 2] : vector<8x4x8xf32> -> vector<4x8x8xf32>
    %251 = arith.truncf %250 : vector<4x8x8xf32> to vector<4x8x8xbf16>
    %252 = vector.shape_cast %247 : vector<8x32xf32> to vector<8x4x8xf32>
    %253 = tpu.transpose %252, [1, 0, 2] : vector<8x4x8xf32> -> vector<4x8x8xf32>
    %254 = arith.truncf %253 : vector<4x8x8xf32> to vector<4x8x8xbf16>
    %255 = vector.shape_cast %248 : vector<8x32xf32> to vector<8x4x8xf32>
    %256 = tpu.transpose %255, [1, 0, 2] : vector<8x4x8xf32> -> vector<4x8x8xf32>
    %257 = arith.truncf %256 : vector<4x8x8xf32> to vector<4x8x8xbf16>
    "tpu.trace_start"() <{level = 10 : i32, message = "nqd,nkd->nqk"}> : () -> ()
    %cst_131 = arith.constant dense<0.000000e+00> : vector<4x8x8xf32>
    %258 = tpu.matmul %251, %254, %cst_131 {dimension_numbers = #tpu.dot_dimension_numbers<[2], [2], [1], [1], [0, 0, 0, 1, 1, 1], [0], [0]>} : vector<4x8x8xbf16>, vector<4x8x8xbf16>, vector<4x8x8xf32> -> vector<4x8x8xf32>
    "tpu.trace_stop"() : () -> ()
    %cst_132 = arith.constant 0.353553385 : f32
    %259 = vector.broadcast %cst_132 : f32 to vector<4x8x8xf32>
    %260 = arith.mulf %258, %259 : vector<4x8x8xf32>
    %261 = vector.shape_cast %25 : vector<8x8xf32> to vector<1x8x8xf32>
    %262 = vector.broadcast %261 : vector<1x8x8xf32> to vector<4x8x8xf32>
    %263 = arith.addf %260, %262 : vector<4x8x8xf32>
    %cst_133 = arith.constant dense<0xFF800000> : vector<4x8xf32>
    %264 = vector.multi_reduction <maximumf>, %263, %cst_133 [2] : vector<4x8x8xf32> to vector<4x8xf32>
    %265 = vector.shape_cast %264 : vector<4x8xf32> to vector<4x8x1xf32>
    %266 = vector.broadcast %265 : vector<4x8x1xf32> to vector<4x8x8xf32>
    %267 = arith.subf %263, %266 : vector<4x8x8xf32>
    %268 = math.exp %267 : vector<4x8x8xf32>
    %cst_134 = arith.constant dense<0.000000e+00> : vector<4x8xf32>
    %269 = vector.multi_reduction <add>, %268, %cst_134 [2] : vector<4x8x8xf32> to vector<4x8xf32>
    %270 = vector.shape_cast %269 : vector<4x8xf32> to vector<4x8x1xf32>
    %271 = tpu.reciprocal %270 {approx = true} : vector<4x8x1xf32> -> vector<4x8x1xf32>
    %272 = vector.broadcast %271 : vector<4x8x1xf32> to vector<4x8x8xf32>
    %273 = arith.mulf %268, %272 : vector<4x8x8xf32>
    %274 = arith.truncf %273 : vector<4x8x8xf32> to vector<4x8x8xbf16>
    "tpu.trace_start"() <{level = 10 : i32, message = "nqk,nkd->nqd"}> : () -> ()
    %cst_135 = arith.constant dense<0.000000e+00> : vector<4x8x8xf32>
    %275 = tpu.matmul %274, %257, %cst_135 {dimension_numbers = #tpu.dot_dimension_numbers<[2], [1], [1], [2], [0, 0, 0, 1, 1, 2], [0], [0]>} : vector<4x8x8xbf16>, vector<4x8x8xbf16>, vector<4x8x8xf32> -> vector<4x8x8xf32>
    "tpu.trace_stop"() : () -> ()
    %276 = tpu.transpose %275, [1, 0, 2] : vector<4x8x8xf32> -> vector<8x4x8xf32>
    %277 = vector.shape_cast %276 : vector<8x4x8xf32> to vector<8x32xf32>
    %278 = arith.truncf %277 : vector<8x32xf32> to vector<8x32xbf16>
    %cst_136 = arith.constant dense<0.000000e+00> : vector<8x32xf32>
    %279 = tpu.matmul %278, %235, %cst_136 {dimension_numbers = #tpu.dot_dimension_numbers<[1], [0], [0], [1], [0, 0, 1, 1], [], []>} : vector<8x32xbf16>, vector<32x32xbf16>, vector<8x32xf32> -> vector<8x32xf32>
    %280 = vector.broadcast %237 : vector<1x32xf32> to vector<8x32xf32>
    %281 = arith.addf %279, %280 : vector<8x32xf32>
    %282 = arith.addf %281, %229 : vector<8x32xf32>
    %cst_137 = arith.constant dense<0.000000e+00> : vector<8xf32>
    %283 = vector.multi_reduction <add>, %282, %cst_137 [1] : vector<8x32xf32> to vector<8xf32>
    %284 = vector.shape_cast %283 : vector<8xf32> to vector<8x1xf32>
    %cst_138 = arith.constant 3.200000e+01 : f32
    %285 = vector.broadcast %cst_138 : f32 to vector<8x1xf32>
    %286 = arith.divf %284, %285 : vector<8x1xf32>
    %287 = vector.broadcast %286 : vector<8x1xf32> to vector<8x32xf32>
    %288 = arith.subf %282, %287 : vector<8x32xf32>
    %289 = arith.mulf %288, %288 : vector<8x32xf32>
    %cst_139 = arith.constant dense<0.000000e+00> : vector<8xf32>
    %290 = vector.multi_reduction <add>, %289, %cst_139 [1] : vector<8x32xf32> to vector<8xf32>
    %291 = vector.shape_cast %290 : vector<8xf32> to vector<8x1xf32>
    %cst_140 = arith.constant 3.200000e+01 : f32
    %292 = vector.broadcast %cst_140 : f32 to vector<8x1xf32>
    %293 = arith.divf %291, %292 : vector<8x1xf32>
    %294 = vector.broadcast %286 : vector<8x1xf32> to vector<8x32xf32>
    %295 = arith.subf %282, %294 : vector<8x32xf32>
    %cst_141 = arith.constant 9.99999974E-6 : f32
    %296 = vector.broadcast %cst_141 : f32 to vector<8x1xf32>
    %297 = arith.addf %293, %296 : vector<8x1xf32>
    %298 = math.rsqrt %297 : vector<8x1xf32>
    %299 = vector.broadcast %298 : vector<8x1xf32> to vector<8x32xf32>
    %300 = arith.mulf %295, %299 : vector<8x32xf32>
    %301 = vector.broadcast %239 : vector<1x32xf32> to vector<8x32xf32>
    %302 = arith.mulf %300, %301 : vector<8x32xf32>
    %303 = vector.broadcast %241 : vector<1x32xf32> to vector<8x32xf32>
    %304 = arith.addf %302, %303 : vector<8x32xf32>
    %c1_142 = arith.constant 1 : index
    %c0_143 = arith.constant 0 : index
    %c0_144 = arith.constant 0 : index
    %305 = vector.load %arg15[%c1_142, %c0_143, %c0_144] : memref<2x32x32xbf16, #tpu.memory_space<vmem>>, vector<1x32x32xbf16>
    %306 = vector.shape_cast %305 : vector<1x32x32xbf16> to vector<32x32xbf16>
    %c1_145 = arith.constant 1 : index
    %c0_146 = arith.constant 0 : index
    %c0_147 = arith.constant 0 : index
    %307 = vector.load %arg16[%c1_145, %c0_146, %c0_147] : memref<2x1x32xf32, #tpu.memory_space<vmem>>, vector<1x1x32xf32>
    %308 = vector.shape_cast %307 : vector<1x1x32xf32> to vector<1x32xf32>
    %c1_148 = arith.constant 1 : index
    %c0_149 = arith.constant 0 : index
    %c0_150 = arith.constant 0 : index
    %309 = vector.load %arg17[%c1_148, %c0_149, %c0_150] : memref<2x32x64xbf16, #tpu.memory_space<vmem>>, vector<1x32x64xbf16>
    %310 = vector.shape_cast %309 : vector<1x32x64xbf16> to vector<32x64xbf16>
    %c1_151 = arith.constant 1 : index
    %c0_152 = arith.constant 0 : index
    %c0_153 = arith.constant 0 : index
    %311 = vector.load %arg18[%c1_151, %c0_152, %c0_153] : memref<2x1x64xf32, #tpu.memory_space<vmem>>, vector<1x1x64xf32>
    %312 = vector.shape_cast %311 : vector<1x1x64xf32> to vector<1x64xf32>
    %c1_154 = arith.constant 1 : index
    %c0_155 = arith.constant 0 : index
    %c0_156 = arith.constant 0 : index
    %313 = vector.load %arg19[%c1_154, %c0_155, %c0_156] : memref<2x32x32xbf16, #tpu.memory_space<vmem>>, vector<1x32x32xbf16>
    %314 = vector.shape_cast %313 : vector<1x32x32xbf16> to vector<32x32xbf16>
    %c1_157 = arith.constant 1 : index
    %c0_158 = arith.constant 0 : index
    %c0_159 = arith.constant 0 : index
    %315 = vector.load %arg20[%c1_157, %c0_158, %c0_159] : memref<2x1x32xf32, #tpu.memory_space<vmem>>, vector<1x1x32xf32>
    %316 = vector.shape_cast %315 : vector<1x1x32xf32> to vector<1x32xf32>
    %c1_160 = arith.constant 1 : index
    %c0_161 = arith.constant 0 : index
    %c0_162 = arith.constant 0 : index
    %317 = vector.load %arg21[%c1_160, %c0_161, %c0_162] : memref<2x1x32xf32, #tpu.memory_space<vmem>>, vector<1x1x32xf32>
    %318 = vector.shape_cast %317 : vector<1x1x32xf32> to vector<1x32xf32>
    %c1_163 = arith.constant 1 : index
    %c0_164 = arith.constant 0 : index
    %c0_165 = arith.constant 0 : index
    %319 = vector.load %arg22[%c1_163, %c0_164, %c0_165] : memref<2x1x32xf32, #tpu.memory_space<vmem>>, vector<1x1x32xf32>
    %320 = vector.shape_cast %319 : vector<1x1x32xf32> to vector<1x32xf32>
    %321 = arith.truncf %304 : vector<8x32xf32> to vector<8x32xbf16>
    %cst_166 = arith.constant dense<0.000000e+00> : vector<8x32xf32>
    %322 = tpu.matmul %321, %306, %cst_166 {dimension_numbers = #tpu.dot_dimension_numbers<[1], [0], [0], [1], [0, 0, 1, 1], [], []>} : vector<8x32xbf16>, vector<32x32xbf16>, vector<8x32xf32> -> vector<8x32xf32>
    %323 = vector.broadcast %308 : vector<1x32xf32> to vector<8x32xf32>
    %324 = arith.addf %322, %323 : vector<8x32xf32>
    %325 = arith.truncf %23 : vector<8x32xf32> to vector<8x32xbf16>
    %cst_167 = arith.constant dense<0.000000e+00> : vector<8x64xf32>
    %326 = tpu.matmul %325, %310, %cst_167 {dimension_numbers = #tpu.dot_dimension_numbers<[1], [0], [0], [1], [0, 0, 1, 1], [], []>} : vector<8x32xbf16>, vector<32x64xbf16>, vector<8x64xf32> -> vector<8x64xf32>
    %327 = vector.broadcast %312 : vector<1x64xf32> to vector<8x64xf32>
    %328 = arith.addf %326, %327 : vector<8x64xf32>
    %329 = vector.extract_strided_slice %328 {offsets = [0, 0], sizes = [8, 32], strides = [1, 1]} : vector<8x64xf32> to vector<8x32xf32>
    %330 = vector.extract_strided_slice %328 {offsets = [0, 32], sizes = [8, 32], strides = [1, 1]} : vector<8x64xf32> to vector<8x32xf32>
    %331 = vector.shape_cast %324 : vector<8x32xf32> to vector<8x4x8xf32>
    %332 = tpu.transpose %331, [1, 0, 2] : vector<8x4x8xf32> -> vector<4x8x8xf32>
    %333 = arith.truncf %332 : vector<4x8x8xf32> to vector<4x8x8xbf16>
    %334 = vector.shape_cast %329 : vector<8x32xf32> to vector<8x4x8xf32>
    %335 = tpu.transpose %334, [1, 0, 2] : vector<8x4x8xf32> -> vector<4x8x8xf32>
    %336 = arith.truncf %335 : vector<4x8x8xf32> to vector<4x8x8xbf16>
    %337 = vector.shape_cast %330 : vector<8x32xf32> to vector<8x4x8xf32>
    %338 = tpu.transpose %337, [1, 0, 2] : vector<8x4x8xf32> -> vector<4x8x8xf32>
    %339 = arith.truncf %338 : vector<4x8x8xf32> to vector<4x8x8xbf16>
    "tpu.trace_start"() <{level = 10 : i32, message = "nqd,nkd->nqk"}> : () -> ()
    %cst_168 = arith.constant dense<0.000000e+00> : vector<4x8x8xf32>
    %340 = tpu.matmul %333, %336, %cst_168 {dimension_numbers = #tpu.dot_dimension_numbers<[2], [2], [1], [1], [0, 0, 0, 1, 1, 1], [0], [0]>} : vector<4x8x8xbf16>, vector<4x8x8xbf16>, vector<4x8x8xf32> -> vector<4x8x8xf32>
    "tpu.trace_stop"() : () -> ()
    %cst_169 = arith.constant 0.353553385 : f32
    %341 = vector.broadcast %cst_169 : f32 to vector<4x8x8xf32>
    %342 = arith.mulf %340, %341 : vector<4x8x8xf32>
    %343 = vector.shape_cast %27 : vector<8x8xf32> to vector<1x8x8xf32>
    %344 = vector.broadcast %343 : vector<1x8x8xf32> to vector<4x8x8xf32>
    %345 = arith.addf %342, %344 : vector<4x8x8xf32>
    %cst_170 = arith.constant dense<0xFF800000> : vector<4x8xf32>
    %346 = vector.multi_reduction <maximumf>, %345, %cst_170 [2] : vector<4x8x8xf32> to vector<4x8xf32>
    %347 = vector.shape_cast %346 : vector<4x8xf32> to vector<4x8x1xf32>
    %348 = vector.broadcast %347 : vector<4x8x1xf32> to vector<4x8x8xf32>
    %349 = arith.subf %345, %348 : vector<4x8x8xf32>
    %350 = math.exp %349 : vector<4x8x8xf32>
    %cst_171 = arith.constant dense<0.000000e+00> : vector<4x8xf32>
    %351 = vector.multi_reduction <add>, %350, %cst_171 [2] : vector<4x8x8xf32> to vector<4x8xf32>
    %352 = vector.shape_cast %351 : vector<4x8xf32> to vector<4x8x1xf32>
    %353 = tpu.reciprocal %352 {approx = true} : vector<4x8x1xf32> -> vector<4x8x1xf32>
    %354 = vector.broadcast %353 : vector<4x8x1xf32> to vector<4x8x8xf32>
    %355 = arith.mulf %350, %354 : vector<4x8x8xf32>
    %356 = arith.truncf %355 : vector<4x8x8xf32> to vector<4x8x8xbf16>
    "tpu.trace_start"() <{level = 10 : i32, message = "nqk,nkd->nqd"}> : () -> ()
    %cst_172 = arith.constant dense<0.000000e+00> : vector<4x8x8xf32>
    %357 = tpu.matmul %356, %339, %cst_172 {dimension_numbers = #tpu.dot_dimension_numbers<[2], [1], [1], [2], [0, 0, 0, 1, 1, 2], [0], [0]>} : vector<4x8x8xbf16>, vector<4x8x8xbf16>, vector<4x8x8xf32> -> vector<4x8x8xf32>
    "tpu.trace_stop"() : () -> ()
    %358 = tpu.transpose %357, [1, 0, 2] : vector<4x8x8xf32> -> vector<8x4x8xf32>
    %359 = vector.shape_cast %358 : vector<8x4x8xf32> to vector<8x32xf32>
    %360 = arith.truncf %359 : vector<8x32xf32> to vector<8x32xbf16>
    %cst_173 = arith.constant dense<0.000000e+00> : vector<8x32xf32>
    %361 = tpu.matmul %360, %314, %cst_173 {dimension_numbers = #tpu.dot_dimension_numbers<[1], [0], [0], [1], [0, 0, 1, 1], [], []>} : vector<8x32xbf16>, vector<32x32xbf16>, vector<8x32xf32> -> vector<8x32xf32>
    %362 = vector.broadcast %316 : vector<1x32xf32> to vector<8x32xf32>
    %363 = arith.addf %361, %362 : vector<8x32xf32>
    %364 = arith.addf %363, %304 : vector<8x32xf32>
    %cst_174 = arith.constant dense<0.000000e+00> : vector<8xf32>
    %365 = vector.multi_reduction <add>, %364, %cst_174 [1] : vector<8x32xf32> to vector<8xf32>
    %366 = vector.shape_cast %365 : vector<8xf32> to vector<8x1xf32>
    %cst_175 = arith.constant 3.200000e+01 : f32
    %367 = vector.broadcast %cst_175 : f32 to vector<8x1xf32>
    %368 = arith.divf %366, %367 : vector<8x1xf32>
    %369 = vector.broadcast %368 : vector<8x1xf32> to vector<8x32xf32>
    %370 = arith.subf %364, %369 : vector<8x32xf32>
    %371 = arith.mulf %370, %370 : vector<8x32xf32>
    %cst_176 = arith.constant dense<0.000000e+00> : vector<8xf32>
    %372 = vector.multi_reduction <add>, %371, %cst_176 [1] : vector<8x32xf32> to vector<8xf32>
    %373 = vector.shape_cast %372 : vector<8xf32> to vector<8x1xf32>
    %cst_177 = arith.constant 3.200000e+01 : f32
    %374 = vector.broadcast %cst_177 : f32 to vector<8x1xf32>
    %375 = arith.divf %373, %374 : vector<8x1xf32>
    %376 = vector.broadcast %368 : vector<8x1xf32> to vector<8x32xf32>
    %377 = arith.subf %364, %376 : vector<8x32xf32>
    %cst_178 = arith.constant 9.99999974E-6 : f32
    %378 = vector.broadcast %cst_178 : f32 to vector<8x1xf32>
    %379 = arith.addf %375, %378 : vector<8x1xf32>
    %380 = math.rsqrt %379 : vector<8x1xf32>
    %381 = vector.broadcast %380 : vector<8x1xf32> to vector<8x32xf32>
    %382 = arith.mulf %377, %381 : vector<8x32xf32>
    %383 = vector.broadcast %318 : vector<1x32xf32> to vector<8x32xf32>
    %384 = arith.mulf %382, %383 : vector<8x32xf32>
    %385 = vector.broadcast %320 : vector<1x32xf32> to vector<8x32xf32>
    %386 = arith.addf %384, %385 : vector<8x32xf32>
    %c1_179 = arith.constant 1 : index
    %c0_180 = arith.constant 0 : index
    %c0_181 = arith.constant 0 : index
    %387 = vector.load %arg23[%c1_179, %c0_180, %c0_181] : memref<2x32x128xbf16, #tpu.memory_space<vmem>>, vector<1x32x128xbf16>
    %388 = vector.shape_cast %387 : vector<1x32x128xbf16> to vector<32x128xbf16>
    %c1_182 = arith.constant 1 : index
    %c0_183 = arith.constant 0 : index
    %c0_184 = arith.constant 0 : index
    %389 = vector.load %arg24[%c1_182, %c0_183, %c0_184] : memref<2x1x128xf32, #tpu.memory_space<vmem>>, vector<1x1x128xf32>
    %390 = vector.shape_cast %389 : vector<1x1x128xf32> to vector<1x128xf32>
    %c1_185 = arith.constant 1 : index
    %c0_186 = arith.constant 0 : index
    %c0_187 = arith.constant 0 : index
    %391 = vector.load %arg25[%c1_185, %c0_186, %c0_187] : memref<2x128x32xbf16, #tpu.memory_space<vmem>>, vector<1x128x32xbf16>
    %392 = vector.shape_cast %391 : vector<1x128x32xbf16> to vector<128x32xbf16>
    %c1_188 = arith.constant 1 : index
    %c0_189 = arith.constant 0 : index
    %c0_190 = arith.constant 0 : index
    %393 = vector.load %arg26[%c1_188, %c0_189, %c0_190] : memref<2x1x32xf32, #tpu.memory_space<vmem>>, vector<1x1x32xf32>
    %394 = vector.shape_cast %393 : vector<1x1x32xf32> to vector<1x32xf32>
    %c1_191 = arith.constant 1 : index
    %c0_192 = arith.constant 0 : index
    %c0_193 = arith.constant 0 : index
    %395 = vector.load %arg27[%c1_191, %c0_192, %c0_193] : memref<2x1x32xf32, #tpu.memory_space<vmem>>, vector<1x1x32xf32>
    %396 = vector.shape_cast %395 : vector<1x1x32xf32> to vector<1x32xf32>
    %c1_194 = arith.constant 1 : index
    %c0_195 = arith.constant 0 : index
    %c0_196 = arith.constant 0 : index
    %397 = vector.load %arg28[%c1_194, %c0_195, %c0_196] : memref<2x1x32xf32, #tpu.memory_space<vmem>>, vector<1x1x32xf32>
    %398 = vector.shape_cast %397 : vector<1x1x32xf32> to vector<1x32xf32>
    %399 = arith.truncf %386 : vector<8x32xf32> to vector<8x32xbf16>
    %cst_197 = arith.constant dense<0.000000e+00> : vector<8x128xf32>
    %400 = tpu.matmul %399, %388, %cst_197 {dimension_numbers = #tpu.dot_dimension_numbers<[1], [0], [0], [1], [0, 0, 1, 1], [], []>} : vector<8x32xbf16>, vector<32x128xbf16>, vector<8x128xf32> -> vector<8x128xf32>
    %401 = vector.broadcast %390 : vector<1x128xf32> to vector<8x128xf32>
    %402 = arith.addf %400, %401 : vector<8x128xf32>
    %cst_198 = arith.constant 0.000000e+00 : f32
    %403 = vector.broadcast %cst_198 : f32 to vector<8x128xf32>
    %404 = arith.maximumf %402, %403 : vector<8x128xf32>
    %405 = arith.truncf %404 : vector<8x128xf32> to vector<8x128xbf16>
    %cst_199 = arith.constant dense<0.000000e+00> : vector<8x32xf32>
    %406 = tpu.matmul %405, %392, %cst_199 {dimension_numbers = #tpu.dot_dimension_numbers<[1], [0], [0], [1], [0, 0, 1, 1], [], []>} : vector<8x128xbf16>, vector<128x32xbf16>, vector<8x32xf32> -> vector<8x32xf32>
    %407 = vector.broadcast %394 : vector<1x32xf32> to vector<8x32xf32>
    %408 = arith.addf %406, %407 : vector<8x32xf32>
    %409 = arith.addf %408, %386 : vector<8x32xf32>
    %cst_200 = arith.constant dense<0.000000e+00> : vector<8xf32>
    %410 = vector.multi_reduction <add>, %409, %cst_200 [1] : vector<8x32xf32> to vector<8xf32>
    %411 = vector.shape_cast %410 : vector<8xf32> to vector<8x1xf32>
    %cst_201 = arith.constant 3.200000e+01 : f32
    %412 = vector.broadcast %cst_201 : f32 to vector<8x1xf32>
    %413 = arith.divf %411, %412 : vector<8x1xf32>
    %414 = vector.broadcast %413 : vector<8x1xf32> to vector<8x32xf32>
    %415 = arith.subf %409, %414 : vector<8x32xf32>
    %416 = arith.mulf %415, %415 : vector<8x32xf32>
    %cst_202 = arith.constant dense<0.000000e+00> : vector<8xf32>
    %417 = vector.multi_reduction <add>, %416, %cst_202 [1] : vector<8x32xf32> to vector<8xf32>
    %418 = vector.shape_cast %417 : vector<8xf32> to vector<8x1xf32>
    %cst_203 = arith.constant 3.200000e+01 : f32
    %419 = vector.broadcast %cst_203 : f32 to vector<8x1xf32>
    %420 = arith.divf %418, %419 : vector<8x1xf32>
    %421 = vector.broadcast %413 : vector<8x1xf32> to vector<8x32xf32>
    %422 = arith.subf %409, %421 : vector<8x32xf32>
    %cst_204 = arith.constant 9.99999974E-6 : f32
    %423 = vector.broadcast %cst_204 : f32 to vector<8x1xf32>
    %424 = arith.addf %420, %423 : vector<8x1xf32>
    %425 = math.rsqrt %424 : vector<8x1xf32>
    %426 = vector.broadcast %425 : vector<8x1xf32> to vector<8x32xf32>
    %427 = arith.mulf %422, %426 : vector<8x32xf32>
    %428 = vector.broadcast %396 : vector<1x32xf32> to vector<8x32xf32>
    %429 = arith.mulf %427, %428 : vector<8x32xf32>
    %430 = vector.broadcast %398 : vector<1x32xf32> to vector<8x32xf32>
    %431 = arith.addf %429, %430 : vector<8x32xf32>
    %432 = arith.truncf %431 : vector<8x32xf32> to vector<8x32xbf16>
    %c0_205 = arith.constant 0 : index
    %c0_206 = arith.constant 0 : index
    %433 = vector.load %arg29[%c0_205, %c0_206] : memref<32x48xbf16, #tpu.memory_space<vmem>>, vector<32x48xbf16>
    %cst_207 = arith.constant dense<0.000000e+00> : vector<8x48xf32>
    %434 = tpu.matmul %432, %433, %cst_207 {dimension_numbers = #tpu.dot_dimension_numbers<[1], [0], [0], [1], [0, 0, 1, 1], [], []>} : vector<8x32xbf16>, vector<32x48xbf16>, vector<8x48xf32> -> vector<8x48xf32>
    %c0_208 = arith.constant 0 : index
    %c0_209 = arith.constant 0 : index
    %435 = vector.load %arg30[%c0_208, %c0_209] : memref<1x48xf32, #tpu.memory_space<vmem>>, vector<1x48xf32>
    %436 = vector.broadcast %435 : vector<1x48xf32> to vector<8x48xf32>
    %437 = arith.addf %434, %436 : vector<8x48xf32>
    %c0_210 = arith.constant 0 : index
    %c0_211 = arith.constant 0 : index
    %c0_212 = arith.constant 0 : index
    %438 = vector.load %arg31[%c0_210, %c0_211, %c0_212] : memref<1x8x48xf32, #tpu.memory_space<vmem>>, vector<1x8x48xf32>
    %439 = vector.shape_cast %438 : vector<1x8x48xf32> to vector<8x48xf32>
    %440 = vector.shape_cast %437 : vector<8x48xf32> to vector<1x8x48xf32>
    tpu.vector_store %arg31[%c0_210, %c0_211, %c0_212], %440 {strides = array<i32>} : memref<1x8x48xf32, #tpu.memory_space<vmem>>, vector<1x8x48xf32>,
    return
  }
  func.func @transform_0(%arg0: i32) -> (i32, i32, i32) {
    %c0_i32 = arith.constant 0 : i32
    %c0_i32_0 = arith.constant 0 : i32
    %c0_i32_1 = arith.constant 0 : i32
    return %arg0, %c0_i32, %c0_i32_0 : i32, i32, i32
  }
  func.func @transform_1(%arg0: i32) -> (i32, i32, i32) {
    %c0_i32 = arith.constant 0 : i32
    %c0_i32_0 = arith.constant 0 : i32
    %c0_i32_1 = arith.constant 0 : i32
    return %arg0, %c0_i32, %c0_i32_0 : i32, i32, i32
  }
  func.func @transform_2(%arg0: i32) -> (i32, i32, i32) {
    %c0_i32 = arith.constant 0 : i32
    %c0_i32_0 = arith.constant 0 : i32
    %c0_i32_1 = arith.constant 0 : i32
    return %arg0, %c0_i32, %c0_i32_0 : i32, i32, i32
  }
  func.func @transform_3(%arg0: i32) -> (i32, i32, i32) {
    %c0_i32 = arith.constant 0 : i32
    %c0_i32_0 = arith.constant 0 : i32
    %c0_i32_1 = arith.constant 0 : i32
    return %arg0, %c0_i32, %c0_i32_0 : i32, i32, i32
  }
  func.func @transform_4(%arg0: i32) -> (i32, i32) {
    %c0_i32 = arith.constant 0 : i32
    %c0_i32_0 = arith.constant 0 : i32
    %c0_i32_1 = arith.constant 0 : i32
    return %c0_i32, %c0_i32_0 : i32, i32
  }
  func.func @transform_5(%arg0: i32) -> (i32, i32) {
    %c0_i32 = arith.constant 0 : i32
    %c0_i32_0 = arith.constant 0 : i32
    %c0_i32_1 = arith.constant 0 : i32
    return %c0_i32, %c0_i32_0 : i32, i32
  }
  func.func @transform_6(%arg0: i32) -> (i32, i32) {
    %c0_i32 = arith.constant 0 : i32
    %c0_i32_0 = arith.constant 0 : i32
    %c0_i32_1 = arith.constant 0 : i32
    return %c0_i32, %c0_i32_0 : i32, i32
  }
  func.func @transform_7(%arg0: i32) -> (i32, i32) {
    %c0_i32 = arith.constant 0 : i32
    %c0_i32_0 = arith.constant 0 : i32
    %c0_i32_1 = arith.constant 0 : i32
    return %c0_i32, %c0_i32_0 : i32, i32
  }
  func.func @transform_8(%arg0: i32) -> (i32, i32, i32) {
    %c0_i32 = arith.constant 0 : i32
    %c0_i32_0 = arith.constant 0 : i32
    %c0_i32_1 = arith.constant 0 : i32
    %c0_i32_2 = arith.constant 0 : i32
    return %c0_i32, %c0_i32_0, %c0_i32_1 : i32, i32, i32
  }
  func.func @transform_9(%arg0: i32) -> (i32, i32, i32) {
    %c0_i32 = arith.constant 0 : i32
    %c0_i32_0 = arith.constant 0 : i32
    %c0_i32_1 = arith.constant 0 : i32
    %c0_i32_2 = arith.constant 0 : i32
    return %c0_i32, %c0_i32_0, %c0_i32_1 : i32, i32, i32
  }
  func.func @transform_10(%arg0: i32) -> (i32, i32, i32) {
    %c0_i32 = arith.constant 0 : i32
    %c0_i32_0 = arith.constant 0 : i32
    %c0_i32_1 = arith.constant 0 : i32
    %c0_i32_2 = arith.constant 0 : i32
    return %c0_i32, %c0_i32_0, %c0_i32_1 : i32, i32, i32
  }
  func.func @transform_11(%arg0: i32) -> (i32, i32, i32) {
    %c0_i32 = arith.constant 0 : i32
    %c0_i32_0 = arith.constant 0 : i32
    %c0_i32_1 = arith.constant 0 : i32
    %c0_i32_2 = arith.constant 0 : i32
    return %c0_i32, %c0_i32_0, %c0_i32_1 : i32, i32, i32
  }
  func.func @transform_12(%arg0: i32) -> (i32, i32, i32) {
    %c0_i32 = arith.constant 0 : i32
    %c0_i32_0 = arith.constant 0 : i32
    %c0_i32_1 = arith.constant 0 : i32
    %c0_i32_2 = arith.constant 0 : i32
    return %c0_i32, %c0_i32_0, %c0_i32_1 : i32, i32, i32
  }
  func.func @transform_13(%arg0: i32) -> (i32, i32, i32) {
    %c0_i32 = arith.constant 0 : i32
    %c0_i32_0 = arith.constant 0 : i32
    %c0_i32_1 = arith.constant 0 : i32
    %c0_i32_2 = arith.constant 0 : i32
    return %c0_i32, %c0_i32_0, %c0_i32_1 : i32, i32, i32
  }
  func.func @transform_14(%arg0: i32) -> (i32, i32, i32) {
    %c0_i32 = arith.constant 0 : i32
    %c0_i32_0 = arith.constant 0 : i32
    %c0_i32_1 = arith.constant 0 : i32
    %c0_i32_2 = arith.constant 0 : i32
    return %c0_i32, %c0_i32_0, %c0_i32_1 : i32, i32, i32
  }
  func.func @transform_15(%arg0: i32) -> (i32, i32, i32) {
    %c0_i32 = arith.constant 0 : i32
    %c0_i32_0 = arith.constant 0 : i32
    %c0_i32_1 = arith.constant 0 : i32
    %c0_i32_2 = arith.constant 0 : i32
    return %c0_i32, %c0_i32_0, %c0_i32_1 : i32, i32, i32
  }
  func.func @transform_16(%arg0: i32) -> (i32, i32, i32) {
    %c0_i32 = arith.constant 0 : i32
    %c0_i32_0 = arith.constant 0 : i32
    %c0_i32_1 = arith.constant 0 : i32
    %c0_i32_2 = arith.constant 0 : i32
    return %c0_i32, %c0_i32_0, %c0_i32_1 : i32, i32, i32
  }
  func.func @transform_17(%arg0: i32) -> (i32, i32, i32) {
    %c0_i32 = arith.constant 0 : i32
    %c0_i32_0 = arith.constant 0 : i32
    %c0_i32_1 = arith.constant 0 : i32
    %c0_i32_2 = arith.constant 0 : i32
    return %c0_i32, %c0_i32_0, %c0_i32_1 : i32, i32, i32
  }
  func.func @transform_18(%arg0: i32) -> (i32, i32, i32) {
    %c0_i32 = arith.constant 0 : i32
    %c0_i32_0 = arith.constant 0 : i32
    %c0_i32_1 = arith.constant 0 : i32
    %c0_i32_2 = arith.constant 0 : i32
    return %c0_i32, %c0_i32_0, %c0_i32_1 : i32, i32, i32
  }
  func.func @transform_19(%arg0: i32) -> (i32, i32, i32) {
    %c0_i32 = arith.constant 0 : i32
    %c0_i32_0 = arith.constant 0 : i32
    %c0_i32_1 = arith.constant 0 : i32
    %c0_i32_2 = arith.constant 0 : i32
    return %c0_i32, %c0_i32_0, %c0_i32_1 : i32, i32, i32
  }
  func.func @transform_20(%arg0: i32) -> (i32, i32, i32) {
    %c0_i32 = arith.constant 0 : i32
    %c0_i32_0 = arith.constant 0 : i32
    %c0_i32_1 = arith.constant 0 : i32
    %c0_i32_2 = arith.constant 0 : i32
    return %c0_i32, %c0_i32_0, %c0_i32_1 : i32, i32, i32
  }
  func.func @transform_21(%arg0: i32) -> (i32, i32, i32) {
    %c0_i32 = arith.constant 0 : i32
    %c0_i32_0 = arith.constant 0 : i32
    %c0_i32_1 = arith.constant 0 : i32
    %c0_i32_2 = arith.constant 0 : i32
    return %c0_i32, %c0_i32_0, %c0_i32_1 : i32, i32, i32
  }
  func.func @transform_22(%arg0: i32) -> (i32, i32, i32) {
    %c0_i32 = arith.constant 0 : i32
    %c0_i32_0 = arith.constant 0 : i32
    %c0_i32_1 = arith.constant 0 : i32
    %c0_i32_2 = arith.constant 0 : i32
    return %c0_i32, %c0_i32_0, %c0_i32_1 : i32, i32, i32
  }
  func.func @transform_23(%arg0: i32) -> (i32, i32, i32) {
    %c0_i32 = arith.constant 0 : i32
    %c0_i32_0 = arith.constant 0 : i32
    %c0_i32_1 = arith.constant 0 : i32
    %c0_i32_2 = arith.constant 0 : i32
    return %c0_i32, %c0_i32_0, %c0_i32_1 : i32, i32, i32
  }
  func.func @transform_24(%arg0: i32) -> (i32, i32, i32) {
    %c0_i32 = arith.constant 0 : i32
    %c0_i32_0 = arith.constant 0 : i32
    %c0_i32_1 = arith.constant 0 : i32
    %c0_i32_2 = arith.constant 0 : i32
    return %c0_i32, %c0_i32_0, %c0_i32_1 : i32, i32, i32
  }
  func.func @transform_25(%arg0: i32) -> (i32, i32, i32) {
    %c0_i32 = arith.constant 0 : i32
    %c0_i32_0 = arith.constant 0 : i32
    %c0_i32_1 = arith.constant 0 : i32
    %c0_i32_2 = arith.constant 0 : i32
    return %c0_i32, %c0_i32_0, %c0_i32_1 : i32, i32, i32
  }
  func.func @transform_26(%arg0: i32) -> (i32, i32, i32) {
    %c0_i32 = arith.constant 0 : i32
    %c0_i32_0 = arith.constant 0 : i32
    %c0_i32_1 = arith.constant 0 : i32
    %c0_i32_2 = arith.constant 0 : i32
    return %c0_i32, %c0_i32_0, %c0_i32_1 : i32, i32, i32
  }
  func.func @transform_27(%arg0: i32) -> (i32, i32, i32) {
    %c0_i32 = arith.constant 0 : i32
    %c0_i32_0 = arith.constant 0 : i32
    %c0_i32_1 = arith.constant 0 : i32
    %c0_i32_2 = arith.constant 0 : i32
    return %c0_i32, %c0_i32_0, %c0_i32_1 : i32, i32, i32
  }
  func.func @transform_28(%arg0: i32) -> (i32, i32) {
    %c0_i32 = arith.constant 0 : i32
    %c0_i32_0 = arith.constant 0 : i32
    %c0_i32_1 = arith.constant 0 : i32
    return %c0_i32, %c0_i32_0 : i32, i32
  }
  func.func @transform_29(%arg0: i32) -> (i32, i32) {
    %c0_i32 = arith.constant 0 : i32
    %c0_i32_0 = arith.constant 0 : i32
    %c0_i32_1 = arith.constant 0 : i32
    return %c0_i32, %c0_i32_0 : i32, i32
  }
  func.func @transform_30(%arg0: i32) -> (i32, i32, i32) {
    %c0_i32 = arith.constant 0 : i32
    %c0_i32_0 = arith.constant 0 : i32
    %c0_i32_1 = arith.constant 0 : i32
    return %arg0, %c0_i32, %c0_i32_0 : i32, i32, i32
  }
}

</mosaic_0001>

<bundles_post_ra>
// kernel: _lambda_.2
= control target key start
LH: loop header
LB: loop body
LE: loop exit
PB: predicated region body
PF: predicated region fallthrough
CT: control target
= control target key end

     0   :  { %s4221_s0 = inlined_call_operand.vmem [shape: f32[2,8,7], index: 0, kind: input, shape index: {}]   ;;  %s4222_s1 = inlined_call_operand.vmem [shape: f32[2,8,8], index: 1, kind: input, shape index: {}]   ;;  %s4223_s2 = inlined_call_operand.vmem [shape: f32[8,32], index: 2, kind: input, shape index: {}]   ;;  %s4224_s3 = inlined_call_operand.hbm [shape: bf16[40,32], index: 3, kind: input, shape index: {}]   ;;  %s4225_s4 = inlined_call_operand.vmem [shape: bf16[6,32], index: 4, kind: input, shape index: {}]   ;;  %s4226_s5 = inlined_call_operand.hbm [shape: f32[1,32], index: 5, kind: input, shape index: {}]   ;;  %s4227_s6 = inlined_call_operand.hbm [shape: bf16[2,32,96], index: 6, kind: input, shape index: {}]   ;;  %s4228_s7 = inlined_call_operand.hbm [shape: f32[2,1,96], index: 7, kind: input, shape index: {}]   ;;  %s4229_s8 = inlined_call_operand.hbm [shape: bf16[2,32,32], index: 8, kind: input, shape index: {}]   ;;  %s4230_s9 = inlined_call_operand.vmem [shape: f32[2,1,32], index: 9, kind: input, shape index: {}]   ;;  %s4231_s10 = inlined_call_operand.vmem [shape: f32[2,1,32], index: 10, kind: input, shape index: {}, may-alias: {10,16}]   ;;  %s4232_s11 = inlined_call_operand.vmem [shape: f32[2,1,32], index: 11, kind: input, shape index: {}, may-alias: {11,17}]   ;;  %s4233_s12 = inlined_call_operand.vmem [shape: bf16[2,32,128], index: 12, kind: input, shape index: {}]   ;;  %s4234_s13 = inlined_call_operand.vmem [shape: f32[2,1,128], index: 13, kind: input, shape index: {}]   ;;  %s4235_s14 = inlined_call_operand.hbm [shape: bf16[2,128,32], index: 14, kind: input, shape index: {}]   ;;  %s4236_s15 = inlined_call_operand.vmem [shape: f32[2,1,32], index: 15, kind: input, shape index: {}]   ;;  %s4237_s16 = inlined_call_operand.vmem [shape: f32[2,1,32], index: 16, kind: input, shape index: {}, may-alias: {10,16}]   ;;  %s4238_s17 = inlined_call_operand.vmem [shape: f32[2,1,32], index: 17, kind: input, shape index: {}, may-alias: {11,17}]   ;;  %s4239_s18 = inlined_call_operand.vmem [shape: f32[2,8,32], index: 18, kind: output, shape index: {}]  }
   0x1   :  { %4241 = sst [smem:[#allocation17_spill]] %s4221_s0 }
   0x2   :  { %4242 = sst [smem:[#allocation18_spill]] %s4222_s1 }
   0x3   :  { %4243 = sst [smem:[#allocation19_spill]] %s4223_s2 }
   0x4   :  { %4244 = sst [smem:[#allocation20_spill]] %s4226_s5 }
   0x5   :  { %4245 = sst [smem:[#allocation21_spill]] %s4228_s7 }
   0x6   :  { %4246 = sst [smem:[#allocation22_spill]] %s4239_s18 }
   0x7   :  { %23 = vsyncpa [#allocation3], 0 }
   0x8   :  { %24 = vsyncpa [#allocation5], 0 }
   0x9   :  { %25 = vsyncpa [#allocation8], 0 }
   0xa   :  { %26 = vsyncpa [#allocation11], 0  ;;  %s3585_s27 = smov 0  }
   0xb LB: > { %4247 = sst [smem:[#allocation16_spill]] %s3464_s27  ;;  %s3594_s0 = sadd.s32 4294967295, %s3464_s27   ;;  %s3464_s27 = sphi %s3585_s27, %s32_s27  }
   0xc   : > { %s4248_s5 = sld [smem:[#allocation20_spill]]  ;;  %p2863_p0 = scmp.ge.s32.totalorder %s3464_s27, 1 }
   0xd   : > { %p451_p1 = scmp.lt.s32.totalorder %s3464_s27, 3  ;;  %p3117_p2 = scmp.eq.s32.totalorder %s3594_s0, 0 }
   0xe   : > { %s3466_s1 = smov [#allocation4]   ;;  %s4250_s7 = sld [smem:[#allocation21_spill]] }
   0xf   : > { %p3599_p3 = pnand %p2863_p0, %p451_p1  ;;  %s485_s20 = sshll.u32 %s3466_s1, 4  ;;  %s486_s20 = int_to_ptr.vmem [resolvable:$true] %s485_s20 }
  0x10   : > { %s3467_s24 = smov [#allocation7]   ;;  %s465_s29 = sshll.u32 %s4224_s3, 4  ;;  %s466_s29 = int_to_ptr.hbm [resolvable:$true] %s465_s29 }
  0x11   : > { %p3098_p4 = pneg %p3599_p3  ;;  %s510_s25 = sshll.u32 %s3467_s24, 4  ;;  %s511_s25 = int_to_ptr.vmem [resolvable:$true] %s510_s25 }
  0x12   : > { %s483_s30 = sshll.u32 %s4248_s5, 4  ;;  %s3468_s1 = smov 16   ;;  %s484_s30 = int_to_ptr.hbm [resolvable:$true] %s483_s30 }
  0x13   : > { %p3610_p5 = pnand %p3117_p2, %p3098_p4  ;;  %s3469_s21 = smov 1  }
  0x14   : > { %s508_s2 = sshll.u32 %s4250_s7, 4  ;;  %s3470_s22 = smov [#allocation2]   ;;  %s509_s2 = int_to_ptr.hbm [resolvable:$true] %s508_s2 }
  0x15   : > { %3104 = dma.hbm_to_vmem [thread:$0]  (!%p3610_p5), %s484_s30, 16, %s486_s20, [#allocation5]  }
  0x16   : > { %3110 = dma.hbm_to_vmem [thread:$0]  (!%p3610_p5), %s509_s2, 32, %s511_s25, [#allocation8], %s3468_s1, %s3468_s1, %s3469_s21  }
  0x17   : > { %s467_s5 = sshll.u32 %s3470_s22, 4  ;;  %s3471_s7 = smov 64   ;;  %s468_s5 = int_to_ptr.vmem [resolvable:$true] %s467_s5 }
  0x18   : > { %s3472_s27 = smov 4   ;;  %s494_s26 = sshll.u32 %s4227_s6, 4  ;;  %s495_s26 = int_to_ptr.hbm [resolvable:$true] %s494_s26 }
  0x19   : > { %3101 = dma.hbm_to_vmem [thread:$0]  (!%p3610_p5), %s466_s29, 320, %s468_s5, [#allocation3], %s3471_s7, %s3471_s7, %s3472_s27  }
  0x1a   : > { %s3473_s30 = smov [#allocation6]   ;;  %s522_s25 = sshll.u32 %s4229_s8, 4  ;;  %s523_s25 = int_to_ptr.hbm [resolvable:$true] %s522_s25 }
  0x1b   : > { %s496_s20 = sshll.u32 %s3473_s30, 4  ;;  %s3474_s1 = smov [#allocation9]   ;;  %s497_s20 = int_to_ptr.vmem [resolvable:$true] %s496_s20 }
  0x1c   : > { %3107 = dma.hbm_to_vmem [thread:$0]  (!%p3610_p5), %s495_s26, 512, %s497_s20, [#allocation5], %s3471_s7, %s3471_s7, %s3472_s27  }
  0x1d   : > { %s524_s21 = sshll.u32 %s3474_s1, 4  ;;  %s551_s29 = sshll.u32 %s4235_s14, 4  ;;  %s525_s21 = int_to_ptr.vmem [resolvable:$true] %s524_s21  ;;  %s552_s29 = int_to_ptr.hbm [resolvable:$true] %s551_s29 }
  0x1e   : > { %3113 = dma.hbm_to_vmem [thread:$0]  (!%p3610_p5), %s523_s25, 512, %s525_s21, [#allocation8], %s3471_s7, %s3471_s7, %s3472_s27  }
  0x1f   : > { %s3475_s18 = smov [#allocation10]   ;;  %592 = sbr.rel (%p3599_p3) target bundleno = 4353 (0x1101), region = 92 }
  0x20   : > { %s553_s24 = sshll.u32 %s3475_s18, 4  ;;  %s554_s24 = int_to_ptr.vmem [resolvable:$true] %s553_s24 }
  0x21   : > { %3116 = dma.hbm_to_vmem [thread:$0]  (!%p3610_p5), %s552_s29, 2048, %s554_s24, [#allocation11], %s3471_s7, %s3471_s7, %s3472_s27  }
  0x24   : > { %3447 = dma.done.wait (%p3117_p2), [#allocation3], 320  }
  0x25   : > { %3449 = vsyncadd (%p3117_p2), [#allocation3], 4294966976 }
  0x26   : > { %3451 = dma.done.wait (%p3117_p2), [#allocation5], 528  }
  0x27   : > { %3453 = vsyncadd (%p3117_p2), [#allocation5], 4294966768 }
  0x28   : > { %3455 = dma.done.wait (%p3117_p2), [#allocation8], 544  }
  0x29   : > { %3457 = vsyncadd (%p3117_p2), [#allocation8], 4294966752 }
  0x2a   : > { %3459 = dma.done.wait (%p3117_p2), [#allocation11], 2048  }
  0x2b   : > { %3461 = vsyncadd (%p3117_p2), [#allocation11], 4294965248  ;;  %p674_p6 = scmp.lt.s32.totalorder %s3594_s0, 1  ;;  %v3476_v0 = vmov 0   ;;  %s4252_s23 = sld [smem:[#allocation17_spill]]  ;;  %vm750_vm1 = vcmask 1043456   ;;  %v698_v15 = vlaneseq }
  0x2c   : > { %3161 = vset.pattern.permute.xlu0 %v3476_v0  ;;  %v692_v2 = vld [vmem:[#allocation2 + $0x10] sm:$0xf]  ;;  %v3040_v10 = vld [vmem:[#allocation2 + $0x8] sm:$0xff]  ;;  %v3039_v12 = vld [vmem:[#allocation2] sm:$0xff]  ;;  %vm714_vm2 = vcmask 1042432   ;;  %v3478_v18 = vmov 0.0  }
  0x2d   : > { %s4258_s0 = smov (!%p674_p6, %s3594_s0), 1  ;;  %v740_v5 = vunpack.c.l.b16 %v692_v2  ;;  %v693_v13 = vld [vmem:[%s4225_s4] sm:$0x7]  ;;  %v699_v16 = vand.u32 127, %v698_v15  ;;  %vm746_vm4 = vcmask 326656   ;;  %vm710_vm5 = vcmask 48128  }
  0x2e   : > { %s3658_s7 = sshll.u32 %s4258_s0, 3  ;;  %s3477_s0 = smov 127   ;;  %v716_v14 = vsel %vm714_vm2, %v693_v13, 0  ;;  %v3042_v22 = vld [vmem:[#allocation6 + $0x8] sm:$0xff]  ;;  %v3041_v23 = vld [vmem:[#allocation6] sm:$0xff]  ;;  %vm801_vm6 = vcmask 261120  }
  0x2f   : > { %v743_v8 = vpack.c.b16 %v740_v5, %v740_v5  ;;  %725 = vmatpush.bf16.msra.mxu0 %v716_v14  ;;  %811 = vmatpush.bf16.msra.mxu2 %v3042_v22  ;;  %v3202_v25 = vld [vmem:[#allocation4] ss:$0 sm:$0xff]  ;;  %s4253_s25 = sld [smem:[#allocation19_spill]]  ;;  %v3203_v34 = vld [vmem:[#allocation7] ss:$0 sm:$0xff]  ;;  %s3479_s1 = smov 104  }
  0x30   : > { %s3480_s21 = smov 120   ;;  %s3481_s22 = smov 112   ;;  %v3483_v44 = vmov 1983009808   ;;  %vm829_vm7 = vcmask 1047556   ;;  %vm1195_vm8 = vcmask 64512  }
  0x31   : > { %s677_s26 = scalar_lea.vmem %s4252_s23, %s3658_s7  ;;  %v752_v9 = vsel %vm750_vm1, %v743_v8, 0  ;;  %s3482_s5 = smov 96   ;;  %v834_v45 = vunpack.c.l.s4 %v3483_v44  ;;  %v3484_v58 = vmov 1934713408   ;;  %vm1527_vm9 = vcmask 130048  }
  0x32   : > { %v687_v1 = vld [vmem:[%s677_s26] sm:$0xff]  ;;  %759 = vmatpush.bf16.msra.mxu1 %v752_v9  ;;  %v858_v59 = vunpack.c.l.s4 %v3484_v58  ;;  %s4254_s24 = sld [smem:[#allocation18_spill]]  ;;  %s3485_s19 = smov 64   ;;  %vm1529_vm10 = vcmask 195584  }
  0x33   : > { %vm3069_vm0 = vcmp.lt.s32.totalorder %v687_v1, 0  ;;  %v3070_v3 = vceil.f32 %v687_v1  ;;  %v3071_v4 = vfloor.f32 %v687_v1  ;;  %v697_v11 = vpack.c.bf16 %v687_v1, %v687_v1  ;;  %812 = vmatpush.bf16.msra.mxu2 %v3041_v23  ;;  %s3486_s23 = smov 16   ;;  %s3487_s26 = smov 8  }
  0x34   : > { %v3689_v49 = vunpack.c.0.s8 %v834_v45  ;;  %v3699_v0 = vunpack.c.0.s8 %v858_v59 }
  0x35   : > { %v3072_v6 = vsel %vm3069_vm0, %v3070_v3, %v3071_v4  ;;  %v695_v28 = vld [vmem:[%s4253_s25] sm:$0xff] }
  0x36   : > { %v3073_v7 = vcvt.f32.s32 %v3072_v6  ;;  %760 = vmatpush.bf16.msra.mxu1 %v3040_v10 }
  0x38   : > { %701 = vperm.xlu0 %3161, %v3073_v7   ;;  %s3783_s27 = scalar_lea.vmem %s4254_s24, %s3658_s7 }
  0x3a   : > { %761 = vmatpush.bf16.msra.mxu1 %v3039_v12 }
  0x40   : > { %708 = vrot.lane.b32.xlu0 %v697_v11, %s3477_s0  ;;  %s3488_s0 = smov 24  }
  0xaa   : > { %v702_v17 = vpop.permute.xlu0 %701 }
  0xab   : > { %vm703_vm3 = vcmp.eq.s32.totalorder %v699_v16, %v702_v17 }
  0xac   : > { %v2881_v19 = vsel %vm703_vm3, 1.0, %v3478_v18 }
  0xad   : > { %v706_v20 = vpack.c.bf16 %v2881_v19, %v2881_v19 }
  0xaf   : > { %2891 = vmatmul.msk.bf16.vlgmr.msra.gmra.mxu1 %vm746_vm4, %v706_v20 }
  0xb2   : > { %v709_v21 = vpop.permute.xlu0 %708 }
  0xb3   : > { %2882 = vmatmul.msk.bf16.vlgmr.msra.gmra.mxu0 %vm710_vm5, %v709_v21 }
 0x12c   : > { %v763_v24 = vpop.f32.mrf.mxu1 }
 0x130   : > { %v727_v26 = vpop.f32.mrf.mxu0 }
 0x131   : > { %v764_v27 = vadd.f32 %v763_v24, %v727_v26 }
 0x133   : > { %v770_v29 = vadd.f32 %v3202_v25, %v764_v27 }
 0x134   : > { %v765_v30 = vpop.f32.mrf.mxu1 }
 0x135   : > { %v3671_v31 = vadd.f32 %v770_v29, %v695_v28 }
 0x137   : > { %v785_v32 = vpack.c.bf16 %v3671_v31, %v3671_v31 }
 0x138   : > { %v729_v33 = vpop.f32.mrf.mxu0 }
 0x139   : > { %2900 = vmatmul.msk.bf16.vlgmr.msra.gmra.mxu2 %vm801_vm6, %v785_v32 }
 0x1bc   : > { %v814_v35 = vpop.f32.mrf.mxu2 }
 0x1bd   : > { %v815_v36 = vadd.f32 %v3203_v34, %v814_v35 }
 0x1bf   : > { %825 = vrot.lane.b32.xlu2 %v815_v36, %s3479_s1  ;;  %819 = vrot.lane.b32.xlu1 %v815_v36, %s3480_s21  ;;  %v831_v46 = vrot.slane %v815_v36, 4 }
 0x1c4   : > { %v816_v37 = vpop.f32.mrf.mxu2 }
 0x1c7   : > { %822 = vrot.lane.b32.xlu1 %v815_v36, %s3481_s22 }
 0x219   : > { %v826_v40 = vpop.permute.xlu2 %825 }
 0x21a   : > { %v841_v53 = vrot.slane %v826_v40, 4 }
 0x231   : > { %v820_v38 = vpop.permute.xlu1 %819 }
 0x232   : > { %v3679_v39 = vpack.i.bf16 %v820_v38, %v815_v36  ;;  %v843_v50 = vrot.slane %v820_v38, 4  ;;  %v842_v54 = vsel %vm829_vm7, %v841_v53, %v820_v38 }
 0x233   : > { %v848_v60 = vperm.slane %v842_v54, %v3689_v49 }
 0x234   : > { %3163 = vrot.lane.b32.xlu2 %v3679_v39, %s3482_s5  ;;  %v844_v55 = vsel %vm829_vm7, %v826_v40, %v843_v50 }
 0x235   : > { %v852_v61 = vperm.slane %v844_v55, %v3689_v49  ;;  %v853_v1 = vrot.slane %v848_v60, 4 }
 0x237   : > { %v865_v2 = vrot.slane %v852_v61, 4 }
 0x239   : > { %v823_v41 = vpop.permute.xlu1 %822 }
 0x23a   : > { %v3683_v42 = vpack.i.bf16 %v826_v40, %v823_v41  ;;  %v828_v43 = vrot.slane %v823_v41, 4  ;;  %v832_v48 = vsel %vm829_vm7, %v823_v41, %v831_v46 }
 0x23b   : > { %v840_v52 = vperm.slane %v832_v48, %v3689_v49 }
 0x23c   : > { %3168 = vrot.lane.b32.xlu0 %v3683_v42, %s3482_s5  ;;  %v830_v47 = vsel %vm829_vm7, %v828_v43, %v815_v36 }
 0x23d   : > { %v836_v51 = vperm.slane %v830_v47, %v3689_v49  ;;  %v867_v57 = vrot.slane %v840_v52, 4  ;;  %v866_v7 = vsel %vm829_vm7, %v865_v2, %v840_v52 }
 0x23e   : > { %v872_v11 = vperm.slane %v866_v7, %v3699_v0 }
 0x23f   : > { %v855_v56 = vrot.slane %v836_v51, 4  ;;  %v868_v63 = vsel %vm829_vm7, %v852_v61, %v867_v57  ;;  %v854_v6 = vsel %vm829_vm7, %v853_v1, %v836_v51 }
 0x240   : > { %v876_v4 = vperm.slane %v868_v63, %v3699_v0  ;;  %v860_v10 = vperm.slane %v854_v6, %v3699_v0  ;;  %v881_v21 = vrot.slane %v872_v11, 4 }
 0x241   : > { %v856_v62 = vsel %vm829_vm7, %v848_v60, %v855_v56 }
 0x242   : > { %v864_v3 = vperm.slane %v856_v62, %v3699_v0  ;;  %v883_v13 = vrot.slane %v876_v4, 4  ;;  %v877_v19 = vrot.slane %v860_v10, 4  ;;  %v882_v41 = vsel %vm829_vm7, 0.0, %v881_v21 }
 0x244   : > { %v879_v12 = vrot.slane %v864_v3, 4  ;;  %v884_v22 = vsel %vm829_vm7, 0.0, %v883_v13  ;;  %v896_v27 = vsel %vm829_vm7, %v883_v13, %v872_v11  ;;  %v878_v40 = vsel %vm829_vm7, 0.0, %v877_v19 }
 0x245   : > { %v901_v32 = vrot.slane %v884_v22, 4  ;;  %v900_v48 = vperm.slane %v896_v27, %v3689_v49 }
 0x246   : > { %v880_v20 = vsel %vm829_vm7, 0.0, %v879_v12  ;;  %v885_v43 = vsel %vm829_vm7, %v879_v12, %v860_v10 }
 0x247   : > { %v890_v30 = vrot.slane %v880_v20, 4  ;;  %v902_v50 = vsel %vm829_vm7, %v901_v32, %v882_v41  ;;  %v889_v55 = vperm.slane %v885_v43, %v3689_v49  ;;  %v921_v2 = vrot.slane %v900_v48, 4 }
 0x248   : > { %v906_v61 = vperm.slane %v902_v50, %v3689_v49 }
 0x249   : > { %v891_v56 = vsel %vm829_vm7, %v890_v30, %v878_v40  ;;  %v909_v6 = vrot.slane %v889_v55, 4 }
 0x24a   : > { %v922_v21 = vsel %vm829_vm7, %v906_v61, %v921_v2 }
 0x24b   : > { %v930_v32 = vperm.slane %v922_v21, %v3699_v0 }
 0x28e   : > { %v3164_v5 = vpop.permute.xlu2 %3163 }
 0x28f   : > { %v3166_v8 = vunpack.i.h.bf16 %v3164_v5  ;;  %v3165_v9 = vunpack.i.l.bf16 %v3164_v5  ;;  %v895_v5 = vperm.slane %v891_v56, %v3689_v49 }
 0x291   : > { %v969_v15 = vrot.slane %v3166_v8, 4  ;;  %v957_v16 = vrot.slane %v3165_v9, 4  ;;  %v910_v20 = vsel %vm829_vm7, %v895_v5, %v909_v6 }
 0x2ae   : > { %v3169_v14 = vpop.permute.xlu0 %3168 }
 0x2af   : > { %v3171_v17 = vunpack.i.h.bf16 %v3169_v14  ;;  %v3170_v18 = vunpack.i.l.bf16 %v3169_v14  ;;  %v919_v14 = vrot.slane %v906_v61, 4 }
 0x2b1   : > { %v967_v23 = vrot.slane %v3171_v17, 4  ;;  %v970_v24 = vsel %vm829_vm7, %v3171_v17, %v969_v15  ;;  %v955_v25 = vrot.slane %v3170_v18, 4  ;;  %v958_v26 = vsel %vm829_vm7, %v3170_v18, %v957_v16 }
 0x2b2   : > { %v978_v28 = vperm.slane %v970_v24, %v3689_v49  ;;  %v966_v29 = vperm.slane %v958_v26, %v3689_v49  ;;  %v920_v27 = vsel %vm829_vm7, %v919_v14, %v900_v48 }
 0x2b3   : > { %v968_v33 = vsel %vm829_vm7, %v967_v23, %v3166_v8  ;;  %v956_v34 = vsel %vm829_vm7, %v955_v25, %v3165_v9  ;;  %v907_v25 = vrot.slane %v895_v5, 4  ;;  %v926_v40 = vperm.slane %v920_v27, %v3699_v0 }
 0x2b4   : > { %v974_v35 = vperm.slane %v968_v33, %v3689_v49  ;;  %v991_v36 = vrot.slane %v978_v28, 4  ;;  %v962_v37 = vperm.slane %v956_v34, %v3689_v49  ;;  %v993_v38 = vrot.slane %v966_v29, 4 }
 0x2b6   : > { %v979_v44 = vrot.slane %v974_v35, 4  ;;  %v981_v45 = vrot.slane %v962_v37, 4  ;;  %v992_v46 = vsel %vm829_vm7, %v991_v36, %v966_v29  ;;  %v994_v47 = vsel %vm829_vm7, %v978_v28, %v993_v38 }
 0x2b7   : > { %v998_v51 = vperm.slane %v992_v46, %v3699_v0  ;;  %v1002_v52 = vperm.slane %v994_v47, %v3699_v0  ;;  %v918_v36 = vperm.slane %v910_v20, %v3699_v0  ;;  %v908_v38 = vsel %vm829_vm7, %v907_v25, %v889_v55 }
 0x2b8   : > { %v980_v53 = vsel %vm829_vm7, %v979_v44, %v962_v37  ;;  %v982_v54 = vsel %vm829_vm7, %v974_v35, %v981_v45  ;;  %v935_v47 = vrot.slane %v930_v32, 4 }
 0x2b9   : > { %v986_v57 = vperm.slane %v980_v53, %v3699_v0  ;;  %v990_v58 = vperm.slane %v982_v54, %v3699_v0  ;;  %v1007_v59 = vrot.slane %v998_v51, 4  ;;  %v1009_v60 = vrot.slane %v1002_v52, 4 }
 0x2ba   : > { %v914_v52 = vperm.slane %v908_v38, %v3699_v0 }
 0x2bb   : > { %v1003_v62 = vrot.slane %v986_v57, 4  ;;  %v1005_v63 = vrot.slane %v990_v58, 4  ;;  %v1010_v1 = vsel %vm829_vm7, 0.0, %v1009_v60  ;;  %v1022_v3 = vsel %vm829_vm7, %v1009_v60, %v998_v51 }
 0x2bc   : > { %v1027_v4 = vrot.slane %v1010_v1, 4  ;;  %v1008_v8 = vsel %vm829_vm7, 0.0, %v1007_v59  ;;  %v1026_v10 = vperm.slane %v1022_v3, %v3689_v49  ;;  %v937_v58 = vrot.slane %v918_v36, 4 }
 0x2bd   : > { %v1006_v7 = vsel %vm829_vm7, 0.0, %v1005_v63  ;;  %v1011_v9 = vsel %vm829_vm7, %v1005_v63, %v986_v57  ;;  %v1004_v15 = vsel %vm829_vm7, 0.0, %v1003_v62  ;;  %v931_v57 = vrot.slane %v926_v40, 4 }
 0x2be   : > { %v1016_v11 = vrot.slane %v1006_v7, 4  ;;  %v1015_v12 = vperm.slane %v1011_v9, %v3689_v49  ;;  %v1028_v13 = vsel %vm829_vm7, %v1027_v4, %v1008_v8  ;;  %v1047_v17 = vrot.slane %v1026_v10, 4  ;;  %v772_v9 = vld [vmem:[%s3783_s27] sm:$0xff] }
 0x2bf   : > { %v1032_v16 = vperm.slane %v1028_v13, %v3689_v49  ;;  %v936_v62 = vsel %vm829_vm7, %v935_v47, %v918_v36  ;;  %v933_v63 = vrot.slane %v914_v52, 4  ;;  %v932_v2 = vsel %vm829_vm7, %v931_v57, %v914_v52 }
 0x2c0   : > { %v1017_v18 = vsel %vm829_vm7, %v1016_v11, %v1004_v15  ;;  %v1035_v19 = vrot.slane %v1015_v12, 4  ;;  %v938_v3 = vsel %vm829_vm7, %v930_v32, %v937_v58  ;;  %v941_v4 = vpack.c.bf16 %v936_v62, %v936_v62 }
 0x2c1   : > { %v1021_v22 = vperm.slane %v1017_v18, %v3689_v49  ;;  %v1048_v23 = vsel %vm829_vm7, %v1032_v16, %v1047_v17  ;;  %v1045_v24 = vrot.slane %v1032_v16, 4  ;;  %v934_v5 = vsel %vm829_vm7, %v926_v40, %v933_v63 }
 0x2c2   : > { %v1056_v26 = vperm.slane %v1048_v23, %v3699_v0  ;;  %v939_v6 = vpack.c.bf16 %v932_v2, %v932_v2  ;;  %v942_v7 = vpack.c.bf16 %v938_v3, %v938_v3  ;;  %v940_v8 = vpack.c.bf16 %v934_v5, %v934_v5 }
 0x2c3   : > { %v1036_v28 = vsel %vm829_vm7, %v1021_v22, %v1035_v19  ;;  %v1033_v29 = vrot.slane %v1021_v22, 4  ;;  %v1046_v30 = vsel %vm829_vm7, %v1045_v24, %v1026_v10 }
 0x2c4   : > { %v1044_v33 = vperm.slane %v1036_v28, %v3699_v0  ;;  %v1061_v34 = vrot.slane %v1056_v26, 4  ;;  %v1052_v35 = vperm.slane %v1046_v30, %v3699_v0 }
 0x2c5   : > { %v1034_v37 = vsel %vm829_vm7, %v1033_v29, %v1015_v12 }
 0x2c6   : > { %v1062_v41 = vsel %vm829_vm7, %v1061_v34, %v1044_v33  ;;  %v1040_v43 = vperm.slane %v1034_v37, %v3699_v0  ;;  %v1057_v44 = vrot.slane %v1052_v35, 4  ;;  %v1063_v45 = vrot.slane %v1044_v33, 4 }
 0x2c7   : > { %v1067_v46 = vpack.c.bf16 %v1062_v41, %v1062_v41 }
 0x2c8   : > { %v1058_v48 = vsel %vm829_vm7, %v1057_v44, %v1040_v43  ;;  %v1064_v50 = vsel %vm829_vm7, %v1056_v26, %v1063_v45  ;;  %v1059_v51 = vrot.slane %v1040_v43, 4 }
 0x2c9   : > { %v1238_v53 = vsel %vm1195_vm8, %v1067_v46, 0  ;;  %v1065_v54 = vpack.c.bf16 %v1058_v48, %v1058_v48  ;;  %v1068_v55 = vpack.c.bf16 %v1064_v50, %v1064_v50 }
 0x2ca   : > { %1247 = vmatpush.bf16.xpose.msrb.mxu2 %v1238_v53  ;;  %v1060_v56 = vsel %vm829_vm7, %v1052_v35, %v1059_v51 }
 0x2cb   : > { %v1200_v59 = vsel %vm1195_vm8, %v1065_v54, 0  ;;  %v1257_v60 = vsel %vm1195_vm8, %v1068_v55, 0  ;;  %v1066_v61 = vpack.c.bf16 %v1060_v56, %v1060_v56 }
 0x2cc   : > { %1209 = vmatpush.bf16.xpose.msrb.mxu1 %v1200_v59  ;;  %1266 = vmatpush.bf16.xpose.msra.mxu3 %v1257_v60 }
 0x2cd   : > { %v1219_v1 = vsel %vm1195_vm8, %v1066_v61, 0 }
 0x2ce   : > { %1228 = vmatpush.bf16.xpose.msrb.mxu0 %v1219_v1 }
 0x2d1   : > { %2903 = vmatmul.msk.bf16.vlgmr.msrb.gmra.mxu2 %vm1195_vm8, %v941_v4 }
 0x2d3   : > { %2901 = vmatmul.msk.bf16.vlgmr.msrb.gmra.mxu1 %vm1195_vm8, %v939_v6  ;;  %2904 = vmatmul.msk.bf16.vlgmr.msra.gmra.mxu3 %vm1195_vm8, %v942_v7 }
 0x2d5   : > { %2902 = vmatmul.msk.bf16.vlgmr.msrb.gmra.mxu0 %vm1195_vm8, %v940_v8 }
 0x350   : > { %v1211_v10 = vpop.f32.mrf.mxu1 }
 0x351   : > { %v1272_v11 = vmul.f32 0.35355338, %v1211_v10 }
 0x352   : > { %v1230_v12 = vpop.f32.mrf.mxu0 }
 0x353   : > { %v1273_v13 = vmul.f32 0.35355338, %v1230_v12  ;;  %v1276_v14 = vadd.f32 %v1272_v11, %v772_v9 }
 0x354   : > { %v1249_v15 = vpop.f32.mrf.mxu2 }
 0x355   : > { %v1274_v16 = vmul.f32 0.35355338, %v1249_v15  ;;  %v1280_v17 = vsel %vm1195_vm8, %v1276_v14, -inf  ;;  %v1277_v18 = vadd.f32 %v1273_v13, %v772_v9 }
 0x356   : > { %v1268_v19 = vpop.f32.mrf.mxu3  ;;  %1281 = vmax.xlane.f32.xlu0 %v1280_v17 }
 0x357   : > { %v1275_v20 = vmul.f32 0.35355338, %v1268_v19  ;;  %v1283_v21 = vsel %vm1195_vm8, %v1277_v18, -inf  ;;  %v1278_v22 = vadd.f32 %v1274_v16, %v772_v9 }
 0x358   : > { %v1213_v23 = vpop.f32.mrf.mxu1  ;;  %1284 = vmax.xlane.f32.xlu2 %v1283_v21 }
 0x359   : > { %v1286_v24 = vsel %vm1195_vm8, %v1278_v22, -inf  ;;  %v1279_v26 = vadd.f32 %v1275_v20, %v772_v9 }
 0x35a   : > { %1287 = vmax.xlane.f32.xlu1 %v1286_v24  ;;  %v1232_v25 = vpop.f32.mrf.mxu0 }
 0x35b   : > { %v1289_v29 = vsel %vm1195_vm8, %v1279_v26, -inf }
 0x35c   : > { %v1251_v27 = vpop.f32.mrf.mxu2 }
 0x35e   : > { %v1270_v28 = vpop.f32.mrf.mxu3 }
 0x360   : > { %1290 = vmax.xlane.f32.xlu2 %v1289_v29 }
 0x373   : > { %3173 = vrot.lane.b32.xlu1 %v3679_v39, %s3485_s19 }
 0x378   : > { %3178 = vrot.lane.b32.xlu2 %v3683_v42, %s3485_s19 }
 0x3c9   : > { %v1282_v40 = vpop.xlane.xlu0 %1281 }
 0x3ca   : > { %v1292_v42 = vsub.f32 %v1276_v14, %v1282_v40 }
 0x3cb   : > { %v1285_v30 = vpop.xlane.xlu2 %1284 }
 0x3cc   : > { %v1293_v32 = vsub.f32 %v1277_v18, %v1285_v30  ;;  %v1296_v46 = vmul.f32 1.442695, %v1292_v42 }
 0x3cd   : > { %v1288_v33 = vpop.xlane.xlu1 %1287 }
 0x3ce   : > { %v1298_v34 = vmul.f32 1.442695, %v1293_v32  ;;  %v1294_v35 = vsub.f32 %v1278_v22, %v1288_v33 }
 0x3d0   : > { %3219 = vpow2.f32 %v1298_v34  ;;  %v1300_v36 = vmul.f32 1.442695, %v1294_v35 }
 0x3d2   : > { %3221 = vpow2.f32 %v1300_v36 }
 0x3d3   : > { %v1291_v37 = vpop.xlane.xlu2 %1290 }
 0x3d4   : > { %v1295_v38 = vsub.f32 %v1279_v26, %v1291_v37 }
 0x3d6   : > { %v3794_v41 = vpop.eup %3219  ;;  %v1302_v43 = vmul.f32 1.442695, %v1295_v38 }
 0x3d7   : > { %v1307_v39 = vsel %vm1195_vm8, %v3794_v41, 0.0 }
 0x3d8   : > { %v3798_v44 = vpop.eup %3221  ;;  %3223 = vpow2.f32 %v1302_v43  ;;  %1308 = vadd.xlane.f32.xlu1 %v1307_v39 }
 0x3d9   : > { %v1310_v45 = vsel %vm1195_vm8, %v3798_v44, 0.0  ;;  %3225 = vpow2.f32 %v1296_v46 }
 0x3da   : > { %1311 = vadd.xlane.f32.xlu0 %v1310_v45 }
 0x3db   : > { %v3179_v48 = vpop.permute.xlu2 %3178 }
 0x3dc   : > { %v3181_v51 = vunpack.i.h.bf16 %v3179_v48  ;;  %v3180_v52 = vunpack.i.l.bf16 %v3179_v48 }
 0x3de   : > { %v3802_v47 = vpop.eup %3223  ;;  %v1093_v55 = vrot.slane %v3181_v51, 4  ;;  %v1081_v56 = vrot.slane %v3180_v52, 4 }
 0x3df   : > { %v1313_v50 = vsel %vm1195_vm8, %v3802_v47, 0.0  ;;  %v3806_v54 = vpop.eup %3225 }
 0x3e0   : > { %v1304_v2 = vsel %vm1195_vm8, %v3806_v54, 0.0 }
 0x3e2   : > { %1314 = vadd.xlane.f32.xlu0 %v1313_v50 }
 0x3e5   : > { %v3174_v53 = vpop.permute.xlu1 %3173 }
 0x3e6   : > { %v3176_v57 = vunpack.i.h.bf16 %v3174_v53  ;;  %v3175_v58 = vunpack.i.l.bf16 %v3174_v53 }
 0x3e8   : > { %v1095_v59 = vrot.slane %v3176_v57, 4  ;;  %v1082_v60 = vsel %vm829_vm7, %v1081_v56, %v3175_v58  ;;  %v1083_v61 = vrot.slane %v3175_v58, 4  ;;  %v1094_v62 = vsel %vm829_vm7, %v1093_v55, %v3176_v57 }
 0x3e9   : > { %v1088_v63 = vperm.slane %v1082_v60, %v3689_v49  ;;  %v1100_v1 = vperm.slane %v1094_v62, %v3689_v49 }
 0x3ea   : > { %v1084_v3 = vsel %vm829_vm7, %v3180_v52, %v1083_v61  ;;  %v1096_v4 = vsel %vm829_vm7, %v3181_v51, %v1095_v59  ;;  %1305 = vadd.xlane.f32.xlu0 %v1304_v2 }
 0x3eb   : > { %v1092_v5 = vperm.slane %v1084_v3, %v3689_v49  ;;  %v1104_v6 = vperm.slane %v1096_v4, %v3689_v49  ;;  %v1105_v7 = vrot.slane %v1100_v1, 4  ;;  %v1107_v8 = vrot.slane %v1088_v63, 4 }
 0x3ed   : > { %v1106_v9 = vsel %vm829_vm7, %v1105_v7, %v1088_v63  ;;  %v1108_v10 = vsel %vm829_vm7, %v1100_v1, %v1107_v8  ;;  %v1117_v11 = vrot.slane %v1104_v6, 4  ;;  %v1119_v12 = vrot.slane %v1092_v5, 4 }
 0x3ee   : > { %v1112_v13 = vperm.slane %v1106_v9, %v3699_v0  ;;  %v1116_v14 = vperm.slane %v1108_v10, %v3699_v0 }
 0x3ef   : > { %v1118_v15 = vsel %vm829_vm7, %v1117_v11, %v1092_v5  ;;  %v1120_v16 = vsel %vm829_vm7, %v1104_v6, %v1119_v12 }
 0x3f0   : > { %v1124_v17 = vperm.slane %v1118_v15, %v3699_v0  ;;  %v1128_v18 = vperm.slane %v1120_v16, %v3699_v0  ;;  %v1129_v19 = vrot.slane %v1112_v13, 4  ;;  %v1131_v20 = vrot.slane %v1116_v14, 4 }
 0x3f2   : > { %v1132_v21 = vsel %vm829_vm7, 0.0, %v1131_v20  ;;  %v1133_v22 = vrot.slane %v1124_v17, 4  ;;  %v1135_v23 = vrot.slane %v1128_v18, 4  ;;  %v1137_v24 = vsel %vm829_vm7, %v1131_v20, %v1112_v13 }
 0x3f3   : > { %v1142_v25 = vrot.slane %v1132_v21, 4  ;;  %v1130_v26 = vsel %vm829_vm7, 0.0, %v1129_v19  ;;  %v1141_v28 = vperm.slane %v1137_v24, %v3689_v49 }
 0x3f4   : > { %v1136_v27 = vsel %vm829_vm7, 0.0, %v1135_v23  ;;  %v1148_v29 = vsel %vm829_vm7, %v1135_v23, %v1124_v17  ;;  %v1134_v34 = vsel %vm829_vm7, 0.0, %v1133_v22 }
 0x3f5   : > { %v1153_v30 = vrot.slane %v1136_v27, 4  ;;  %v1143_v32 = vsel %vm829_vm7, %v1142_v25, %v1130_v26  ;;  %v1152_v33 = vperm.slane %v1148_v29, %v3689_v49  ;;  %v1161_v36 = vrot.slane %v1141_v28, 4 }
 0x3f6   : > { %v1147_v35 = vperm.slane %v1143_v32, %v3689_v49 }
 0x3f7   : > { %v1154_v37 = vsel %vm829_vm7, %v1153_v30, %v1134_v34  ;;  %v1173_v38 = vrot.slane %v1152_v33, 4 }
 0x3f8   : > { %v1158_v40 = vperm.slane %v1154_v37, %v3689_v49  ;;  %v1159_v43 = vrot.slane %v1147_v35, 4  ;;  %v1162_v39 = vsel %vm829_vm7, %v1147_v35, %v1161_v36 }
 0x3f9   : > { %v1170_v42 = vperm.slane %v1162_v39, %v3699_v0 }
 0x3fa   : > { %v1171_v45 = vrot.slane %v1158_v40, 4  ;;  %v1174_v46 = vsel %vm829_vm7, %v1158_v40, %v1173_v38  ;;  %v1160_v48 = vsel %vm829_vm7, %v1159_v43, %v1141_v28 }
 0x3fb   : > { %v1182_v50 = vperm.slane %v1174_v46, %v3699_v0  ;;  %v1189_v51 = vrot.slane %v1170_v42, 4  ;;  %v1166_v52 = vperm.slane %v1160_v48, %v3699_v0 }
 0x3fc   : > { %v1172_v53 = vsel %vm829_vm7, %v1171_v45, %v1152_v33 }
 0x3fd   : > { %v1187_v55 = vrot.slane %v1182_v50, 4  ;;  %v1190_v56 = vsel %vm829_vm7, %v1182_v50, %v1189_v51  ;;  %v1178_v57 = vperm.slane %v1172_v53, %v3699_v0  ;;  %v1185_v58 = vrot.slane %v1166_v52, 4 }
 0x3fe   : > { %v1194_v59 = vpack.c.bf16 %v1190_v56, %v1190_v56 }
 0x3ff   : > { %v1186_v60 = vsel %vm829_vm7, %v1178_v57, %v1185_v58  ;;  %v1188_v61 = vsel %vm829_vm7, %v1187_v55, %v1170_v42  ;;  %v1183_v62 = vrot.slane %v1178_v57, 4 }
 0x400   : > { %v1389_v63 = vsel %vm750_vm1, %v1194_v59, 0  ;;  %v1192_v1 = vpack.c.bf16 %v1186_v60, %v1186_v60  ;;  %v1193_v2 = vpack.c.bf16 %v1188_v61, %v1188_v61 }
 0x401   : > { %1398 = vmatpush.bf16.msrb.mxu3 %v1389_v63  ;;  %v1184_v3 = vsel %vm829_vm7, %v1183_v62, %v1166_v52 }
 0x402   : > { %v1351_v4 = vsel %vm750_vm1, %v1192_v1, 0  ;;  %v1370_v5 = vsel %vm750_vm1, %v1193_v2, 0  ;;  %v1191_v6 = vpack.c.bf16 %v1184_v3, %v1184_v3 }
 0x403   : > { %1360 = vmatpush.bf16.msra.mxu0 %v1351_v4  ;;  %1379 = vmatpush.bf16.msra.mxu2 %v1370_v5 }
 0x404   : > { %v1332_v7 = vsel %vm750_vm1, %v1191_v6, 0 }
 0x405   : > { %1341 = vmatpush.bf16.msra.mxu1 %v1332_v7 }
 0x44b   : > { %v1309_v8 = vpop.xlane.xlu1 %1308 }
 0x44c   : > { %3227 = vrcp.f32 %v1309_v8 }
 0x44d   : > { %v1312_v9 = vpop.xlane.xlu0 %1311 }
 0x44e   : > { %3229 = vrcp.f32 %v1312_v9 }
 0x452   : > { %v3228_v10 = vpop.eup %3227 }
 0x453   : > { %v1321_v11 = vmul.f32 %v3228_v10, %v3794_v41 }
 0x454   : > { %v3230_v12 = vpop.eup %3229 }
 0x455   : > { %v1325_v13 = vpack.c.bf16 %v1321_v11, %v1321_v11  ;;  %v1322_v14 = vmul.f32 %v3230_v12, %v3798_v44  ;;  %v1315_v15 = vpop.xlane.xlu0 %1314 }
 0x456   : > { %3231 = vrcp.f32 %v1315_v15 }
 0x457   : > { %v1326_v16 = vpack.c.bf16 %v1322_v14, %v1322_v14  ;;  %2906 = vmatmul.msk.bf16.vlgmr.msra.gmra.mxu0 %vm1195_vm8, %v1325_v13 }
 0x459   : > { %2907 = vmatmul.msk.bf16.vlgmr.msra.gmra.mxu2 %vm1195_vm8, %v1326_v16 }
 0x45c   : > { %v3232_v17 = vpop.eup %3231 }
 0x45d   : > { %v1323_v18 = vmul.f32 %v3232_v17, %v3802_v47  ;;  %v1306_v19 = vpop.xlane.xlu0 %1305 }
 0x45e   : > { %3233 = vrcp.f32 %v1306_v19 }
 0x45f   : > { %v1327_v20 = vpack.c.bf16 %v1323_v18, %v1323_v18 }
 0x461   : > { %2908 = vmatmul.msk.bf16.vlgmr.msrb.gmra.mxu3 %vm1195_vm8, %v1327_v20 }
 0x464   : > { %v3234_v41 = vpop.eup %3233 }
 0x465   : > { %v1320_v21 = vmul.f32 %v3234_v41, %v3806_v54 }
 0x467   : > { %v1324_v22 = vpack.c.bf16 %v1320_v21, %v1320_v21 }
 0x469   : > { %2905 = vmatmul.msk.bf16.vlgmr.msra.gmra.mxu1 %vm1195_vm8, %v1324_v22 }
 0x4d4   : > { %v1362_v44 = vpop.f32.mrf.mxu0 }
 0x4d5   : > { %v1418_v25 = vrot.slane %v1362_v44, 4 }
 0x4dc   : > { %v1364_v23 = vpop.f32.mrf.mxu0  ;;  %v1381_v24 = vpop.f32.mrf.mxu2 }
 0x4dd   : > { %v1404_v28 = vrot.slane %v1381_v24, 4 }
 0x4e4   : > { %v1383_v26 = vpop.f32.mrf.mxu2  ;;  %v1400_v27 = vpop.f32.mrf.mxu3 }
 0x4e5   : > { %v1416_v29 = vrot.slane %v1400_v27, 4  ;;  %v1419_v47 = vsel %vm829_vm7, %v1400_v27, %v1418_v25 }
 0x4e6   : > { %v1427_v30 = vperm.slane %v1419_v47, %v3689_v49  ;;  %v1343_v32 = vpop.f32.mrf.mxu1 }
 0x4e7   : > { %v1417_v33 = vsel %vm829_vm7, %v1416_v29, %v1362_v44  ;;  %v1405_v54 = vsel %vm829_vm7, %v1404_v28, %v1343_v32  ;;  %v1406_v34 = vrot.slane %v1343_v32, 4  ;;  %v3043_v32 = vld [vmem:[#allocation9] sm:$0xff] }
 0x4e8   : > { %v1423_v35 = vperm.slane %v1417_v33, %v3689_v49  ;;  %v1411_v36 = vperm.slane %v1405_v54, %v3689_v49  ;;  %v1440_v40 = vrot.slane %v1427_v30, 4 }
 0x4e9   : > { %v1407_v37 = vsel %vm829_vm7, %v1381_v24, %v1406_v34 }
 0x4ea   : > { %v1428_v38 = vrot.slane %v1423_v35, 4  ;;  %v1415_v43 = vperm.slane %v1407_v37, %v3689_v49  ;;  %v1430_v39 = vrot.slane %v1411_v36, 4 }
 0x4ec   : > { %v1429_v42 = vsel %vm829_vm7, %v1428_v38, %v1411_v36  ;;  %v1431_v45 = vsel %vm829_vm7, %v1423_v35, %v1430_v39  ;;  %v1441_v46 = vsel %vm829_vm7, %v1440_v40, %v1415_v43  ;;  %v1442_v48 = vrot.slane %v1415_v43, 4  ;;  %v1402_v50 = vpop.f32.mrf.mxu3  ;;  %v3204_v40 = vld [vmem:[%s4230_s9] ss:$0 sm:$0xff] }
 0x4ed   : > { %v1435_v51 = vperm.slane %v1429_v42, %v3699_v0  ;;  %v1439_v52 = vperm.slane %v1431_v45, %v3699_v0  ;;  %v1447_v53 = vperm.slane %v1441_v46, %v3699_v0 }
 0x4ee   : > { %v1443_v55 = vsel %vm829_vm7, %v1427_v30, %v1442_v48  ;;  %v1345_v56 = vpop.f32.mrf.mxu1  ;;  %v3044_v30 = vld [vmem:[#allocation9 + $0x8] sm:$0xff]  ;;  %v3489_v48 = vmov 32.0  }
 0x4ef   : > { %v1451_v57 = vperm.slane %v1443_v55, %v3699_v0  ;;  %v1452_v58 = vrot.slane %v1435_v51, 4  ;;  %v1454_v59 = vrot.slane %v1439_v52, 4  ;;  %v1456_v61 = vrot.slane %v1447_v53, 4  ;;  %1556 = vmatpush.bf16.msrb.mxu1 %v3044_v30 }
 0x4f0   : > { %3235 = vrcp.f32 %v3489_v48 }
 0x4f1   : > { %v1455_v60 = vsel %vm829_vm7, 0.0, %v1454_v59  ;;  %v1458_v62 = vrot.slane %v1451_v57, 4  ;;  %v1460_v63 = vsel %vm829_vm7, %v1454_v59, %v1435_v51  ;;  %v1453_v2 = vsel %vm829_vm7, 0.0, %v1452_v58 }
 0x4f2   : > { %v1465_v1 = vrot.slane %v1455_v60, 4  ;;  %v1464_v4 = vperm.slane %v1460_v63, %v3689_v49  ;;  %v1457_v9 = vsel %vm829_vm7, 0.0, %v1456_v61  ;;  %v3046_v61 = vld [vmem:[%s4233_s12 + $0x8] sm:$0xff]  ;;  %v3054_v63 = vld [vmem:[#allocation10 + $0x38] sm:$0xff] }
 0x4f3   : > { %v1459_v3 = vsel %vm829_vm7, 0.0, %v1458_v62  ;;  %v1471_v5 = vsel %vm829_vm7, %v1458_v62, %v1447_v53  ;;  %1557 = vmatpush.bf16.msrb.mxu1 %v3043_v32  ;;  %1650 = vmatpush.bf16.msrb.mxu0 %v3046_v61  ;;  %v3045_v62 = vld [vmem:[%s4233_s12] sm:$0xff]  ;;  %v3211_v61 = vld [vmem:[#allocation7 + $0x1] ss:$0 sm:$0xff] }
 0x4f4   : > { %v1476_v6 = vrot.slane %v1459_v3, 4  ;;  %v1466_v7 = vsel %vm829_vm7, %v1465_v1, %v1453_v2  ;;  %v1475_v8 = vperm.slane %v1471_v5, %v3689_v49  ;;  %v1484_v11 = vrot.slane %v1464_v4, 4  ;;  %1710 = vmatpush.bf16.msrb.mxu2 %v3054_v63  ;;  %v3053_v3 = vld [vmem:[#allocation10 + $0x30] sm:$0xff]  ;;  %v3052_v5 = vld [vmem:[#allocation10 + $0x28] sm:$0xff] }
 0x4f5   : > { %v1470_v10 = vperm.slane %v1466_v7, %v3689_v49 }
 0x4f6   : > { %v1477_v12 = vsel %vm829_vm7, %v1476_v6, %v1457_v9  ;;  %v1496_v13 = vrot.slane %v1475_v8, 4  ;;  %v3236_v50 = vpop.eup %3235  ;;  %v3051_v6 = vld [vmem:[#allocation10 + $0x20] sm:$0xff]  ;;  %v3050_v9 = vld [vmem:[#allocation10 + $0x18] sm:$0xff] }
 0x4f7   : > { %v1481_v14 = vperm.slane %v1477_v12, %v3689_v49  ;;  %v1482_v15 = vrot.slane %v1470_v10, 4  ;;  %v1485_v16 = vsel %vm829_vm7, %v1470_v10, %v1484_v11  ;;  %v1568_v51 = vmul.f32 32.0, %v3236_v50  ;;  %1651 = vmatpush.bf16.msrb.mxu0 %v3045_v62  ;;  %v3049_v12 = vld [vmem:[#allocation10 + $0x10] sm:$0xff] }
 0x4f8   : > { %v1493_v22 = vperm.slane %v1485_v16, %v3699_v0  ;;  %vm1572_vm11 = vweird.f32 %v3236_v50  ;;  %1711 = vmatpush.bf16.msrb.mxu2 %v3053_v3 }
 0x4f9   : > { %v1497_v17 = vsel %vm829_vm7, %v1481_v14, %v1496_v13  ;;  %v1483_v18 = vsel %vm829_vm7, %v1482_v15, %v1464_v4  ;;  %v1494_v19 = vrot.slane %v1481_v14, 4  ;;  %v1569_v52 = vsub.f32 1.0, %v1568_v51  ;;  %v3205_v15 = vld [vmem:[%s4231_s10] ss:$0 sm:$0xff] }
 0x4fa   : > { %v1505_v20 = vperm.slane %v1497_v17, %v3699_v0  ;;  %v1489_v41 = vperm.slane %v1483_v18, %v3699_v0  ;;  %v1512_v29 = vrot.slane %v1493_v22, 4  ;;  %v3206_v17 = vld [vmem:[%s4232_s11] ss:$0 sm:$0xff] }
 0x4fb   : > { %v1495_v21 = vsel %vm829_vm7, %v1494_v19, %v1475_v8  ;;  %v1570_v53 = vmul.f32 %v3236_v50, %v1569_v52 }
 0x4fc   : > { %v1510_v44 = vrot.slane %v1505_v20, 4  ;;  %v1501_v23 = vperm.slane %v1495_v21, %v3699_v0  ;;  %v1508_v24 = vrot.slane %v1489_v41, 4  ;;  %v1513_v47 = vsel %vm829_vm7, %v1505_v20, %v1512_v29  ;;  %1712 = vmatpush.bf16.msrb.mxu2 %v3052_v5  ;;  %v3048_v21 = vld [vmem:[#allocation10 + $0x8] sm:$0xff] }
 0x4fd   : > { %v1571_v55 = vadd.f32 %v3236_v50, %v1570_v53  ;;  %v3209_v53 = vld [vmem:[%s4237_s16] ss:$0 sm:$0xff] }
 0x4fe   : > { %v1511_v25 = vsel %vm829_vm7, %v1510_v44, %v1493_v22  ;;  %v1506_v26 = vrot.slane %v1501_v23, 4  ;;  %v1509_v27 = vsel %vm829_vm7, %v1501_v23, %v1508_v24  ;;  %v3047_v22 = vld [vmem:[#allocation10] sm:$0xff]  ;;  %v3207_v44 = vld [vmem:[%s4234_s13] ss:$0 sm:$0xff] }
 0x4ff   : > { %1519 = vrot.lane.b32.xlu0 %v1511_v25, %s3486_s23  ;;  %1515 = vrot.lane.b32.xlu2 %v1509_v27, %s3487_s26  ;;  %v3914_v56 = vsel %vm1572_vm11, %v3236_v50, %v1571_v55 }
 0x500   : > { %v1507_v28 = vsel %vm829_vm7, %v1506_v26, %v1489_v41  ;;  %1713 = vmatpush.bf16.msrb.mxu2 %v3051_v6 }
 0x504   : > { %1714 = vmatpush.bf16.msrb.mxu2 %v3050_v9 }
 0x507   : > { %1523 = vrot.lane.b32.xlu2 %v1513_v47, %s3488_s0 }
 0x508   : > { %1715 = vmatpush.bf16.msrb.mxu2 %v3049_v12 }
 0x50c   : > { %1716 = vmatpush.bf16.msrb.mxu2 %v3048_v21 }
 0x510   : > { %1717 = vmatpush.bf16.msrb.mxu2 %v3047_v22 }
 0x559   : > { %v1516_v33 = vpop.permute.xlu2 %1515 }
 0x55a   : > { %v1526_v54 = vsel %vm1195_vm8, %v1507_v28, %v1516_v33  ;;  %v3208_v28 = vld [vmem:[%s4236_s15] ss:$0 sm:$0xff] }
 0x561   : > { %v1524_v35 = vpop.permute.xlu2 %1523 }
 0x571   : > { %v1520_v34 = vpop.permute.xlu0 %1519 }
 0x572   : > { %v1528_v36 = vsel %vm1527_vm9, %v1526_v54, %v1520_v34 }
 0x573   : > { %v1530_v37 = vsel %vm1529_vm10, %v1528_v36, %v1524_v35 }
 0x574   : > { %v1531_v38 = vpack.c.bf16 %v1530_v37, %v1530_v37 }
 0x576   : > { %2917 = vmatmul.msk.bf16.vlgmr.msrb.gmra.mxu1 %vm801_vm6, %v1531_v38  ;;  %v3056_v38 = vld [vmem:[#allocation6 + $0x18] sm:$0xff] }
 0x577   : > { %1797 = vmatpush.bf16.msra.mxu3 %v3056_v38 }
 0x5f3   : > { %v1559_v43 = vpop.f32.mrf.mxu1 }
 0x5f4   : > { %v1560_v39 = vadd.f32 %v3204_v40, %v1559_v43  ;;  %v3055_v40 = vld [vmem:[#allocation6 + $0x10] sm:$0xff] }
 0x5f5   : > { %1798 = vmatpush.bf16.msra.mxu3 %v3055_v40 }
 0x5f6   : > { %v1563_v42 = vadd.f32 %v1560_v39, %v3671_v31 }
 0x5f8   : > { %v1564_v45 = vsel %vm801_vm6, %v1563_v42, 0.0 }
 0x5f9   : > { %1565 = vadd.xlane.f32.xlu2 %v1564_v45 }
 0x5fb   : > { %v1561_v46 = vpop.f32.mrf.mxu1 }
 0x66c   : > { %v1566_v57 = vpop.xlane.xlu2 %1565 }
 0x66d   : > { %v1574_v58 = vmul.f32 %v3914_v56, %v1566_v57  ;;  %v3210_v57 = vld [vmem:[%s4238_s17] ss:$0 sm:$0xff] }
 0x66f   : > { %v1575_v59 = vsub.f32 %v1563_v42, %v1574_v58 }
 0x671   : > { %v1576_v60 = vmul.f32 %v1575_v59, %v1575_v59 }
 0x673   : > { %v1577_v31 = vsel %vm801_vm6, %v1576_v60, 0.0 }
 0x674   : > { %1578 = vadd.xlane.f32.xlu0 %v1577_v31 }
 0x6e7   : > { %v1579_v1 = vpop.xlane.xlu0 %1578 }
 0x6e8   : > { %v1580_v2 = vmul.f32 %v1579_v1, %v3914_v56 }
 0x6ea   : > { %v1581_v4 = vadd.f32 1e-05, %v1580_v2 }
 0x6ec   : > { %3237 = vrsqrt.f32 %v1581_v4  ;;  %vm1588_vm13 = vweird.f32 %v1581_v4 }
 0x6f2   : > { %v3238_v7 = vpop.eup %3237 }
 0x6f3   : > { %v1583_v8 = vmul.f32 %v3238_v7, %v1581_v4  ;;  %vm1589_vm12 = vweird.f32 %v3238_v7 }
 0x6f4   : > { %vm1590_vm14 = vmor %vm1588_vm13, %vm1589_vm12 }
 0x6f5   : > { %v1584_v10 = vmul.f32 %v3238_v7, %v1583_v8 }
 0x6f7   : > { %v1585_v11 = vmul.f32 0.5, %v1584_v10 }
 0x6f9   : > { %v1586_v13 = vsub.f32 1.5, %v1585_v11 }
 0x6fb   : > { %v1587_v14 = vmul.f32 %v3238_v7, %v1586_v13 }
 0x6fd   : > { %v1591_v16 = vsel %vm1590_vm14, %v3238_v7, %v1587_v14 }
 0x6fe   : > { %v1592_v18 = vmul.f32 %v1591_v16, %v1575_v59 }
 0x700   : > { %v1596_v19 = vmul.f32 %v3205_v15, %v1592_v18 }
 0x702   : > { %v1600_v20 = vadd.f32 %v3206_v17, %v1596_v19 }
 0x704   : > { %v1625_v41 = vpack.c.bf16 %v1600_v20, %v1600_v20 }
 0x706   : > { %2926 = vmatmul.msk.bf16.vlgmr.msrb.gmra.mxu0 %vm801_vm6, %v1625_v41 }
 0x783   : > { %v1653_v23 = vpop.f32.mrf.mxu0 }
 0x784   : > { %v1654_v24 = vadd.f32 %v3207_v44, %v1653_v23 }
 0x786   : > { %v1657_v25 = vmax.f32 %v1654_v24, 0.0 }
 0x788   : > { %v1658_v26 = vpack.c.bf16 %v1657_v25, %v1657_v25 }
 0x78a   : > { %1718 = vmatmul.bf16.vlgmr.msrb.gmra.mxu2 %v1658_v26 }
 0x78b   : > { %v1655_v27 = vpop.f32.mrf.mxu0 }
 0x80d   : > { %v1719_v29 = vpop.f32.mrf.mxu2 }
 0x80e   : > { %v1720_v47 = vadd.f32 %v3208_v28, %v1719_v29 }
 0x810   : > { %v1723_v30 = vadd.f32 %v1720_v47, %v1600_v20 }
 0x812   : > { %v1724_v32 = vsel %vm801_vm6, %v1723_v30, 0.0 }
 0x813   : > { %1725 = vadd.xlane.f32.xlu1 %v1724_v32 }
 0x815   : > { %v1721_v33 = vpop.f32.mrf.mxu2 }
 0x886   : > { %v1726_v54 = vpop.xlane.xlu1 %1725 }
 0x887   : > { %v1727_v34 = vmul.f32 %v1726_v54, %v3914_v56 }
 0x889   : > { %v1728_v35 = vsub.f32 %v1723_v30, %v1727_v34 }
 0x88b   : > { %v1729_v36 = vmul.f32 %v1728_v35, %v1728_v35 }
 0x88d   : > { %v1730_v37 = vsel %vm801_vm6, %v1729_v36, 0.0 }
 0x88e   : > { %1731 = vadd.xlane.f32.xlu1 %v1730_v37 }
 0x901   : > { %v1732_v43 = vpop.xlane.xlu1 %1731 }
 0x902   : > { %v1733_v39 = vmul.f32 %v1732_v43, %v3914_v56 }
 0x904   : > { %v1734_v42 = vadd.f32 1e-05, %v1733_v39 }
 0x906   : > { %3239 = vrsqrt.f32 %v1734_v42  ;;  %vm1741_vm0 = vweird.f32 %v1734_v42 }
 0x90c   : > { %v3240_v45 = vpop.eup %3239 }
 0x90d   : > { %v1736_v46 = vmul.f32 %v3240_v45, %v1734_v42  ;;  %vm1742_vm15 = vweird.f32 %v3240_v45 }
 0x90e   : > { %vm1743_vm2 = vmor %vm1741_vm0, %vm1742_vm15 }
 0x90f   : > { %v1737_v48 = vmul.f32 %v3240_v45, %v1736_v46 }
 0x911   : > { %v1738_v50 = vmul.f32 0.5, %v1737_v48 }
 0x913   : > { %v1739_v51 = vsub.f32 1.5, %v1738_v50 }
 0x915   : > { %v1740_v52 = vmul.f32 %v3240_v45, %v1739_v51 }
 0x917   : > { %v1744_v55 = vsel %vm1743_vm2, %v3240_v45, %v1740_v52 }
 0x918   : > { %v1745_v58 = vmul.f32 %v1744_v55, %v1728_v35 }
 0x91a   : > { %v1749_v59 = vmul.f32 %v3209_v53, %v1745_v58 }
 0x91c   : > { %v3948_v60 = vadd.f32 %v3210_v57, %v1749_v59 }
 0x91e   : > { %v1772_v31 = vpack.c.bf16 %v3948_v60, %v3948_v60 }
 0x920   : > { %2970 = vmatmul.msk.bf16.vlgmr.msra.gmra.mxu3 %vm801_vm6, %v1772_v31 }
 0x9a3   : > { %v1800_v62 = vpop.f32.mrf.mxu3 }
 0x9a4   : > { %v1801_v63 = vadd.f32 %v3211_v61, %v1800_v62 }
 0x9a6   : > { %1811 = vrot.lane.b32.xlu0 %v1801_v63, %s3479_s1  ;;  %1808 = vrot.lane.b32.xlu2 %v1801_v63, %s3481_s22  ;;  %v1816_v8 = vrot.slane %v1801_v63, 4 }
 0x9a7   : > { %1805 = vrot.lane.b32.xlu1 %v1801_v63, %s3480_s21 }
 0x9ab   : > { %v1802_v1 = vpop.f32.mrf.mxu3 }
 0xa00   : > { %v1809_v2 = vpop.permute.xlu2 %1808 }
 0xa01   : > { %v1814_v7 = vrot.slane %v1809_v2, 4  ;;  %v1817_v12 = vsel %vm829_vm7, %v1809_v2, %v1816_v8 }
 0xa02   : > { %v1825_v16 = vperm.slane %v1817_v12, %v3689_v49 }
 0xa03   : > { %v1815_v11 = vsel %vm829_vm7, %v1814_v7, %v1801_v63 }
 0xa04   : > { %v1821_v15 = vperm.slane %v1815_v11, %v3689_v49  ;;  %v1852_v20 = vrot.slane %v1825_v16, 4 }
 0xa06   : > { %v1840_v19 = vrot.slane %v1821_v15, 4 }
 0xa18   : > { %v1812_v3 = vpop.permute.xlu0 %1811 }
 0xa19   : > { %v1806_v4 = vpop.permute.xlu1 %1805  ;;  %v3956_v5 = vpack.i.bf16 %v1812_v3, %v1809_v2  ;;  %v1826_v9 = vrot.slane %v1812_v3, 4 }
 0xa1a   : > { %v3958_v6 = vpack.i.bf16 %v1806_v4, %v1801_v63  ;;  %v1828_v10 = vrot.slane %v1806_v4, 4 }
 0xa1b   : > { %3188 = vrot.lane.b32.xlu2 %v3956_v5, %s3482_s5  ;;  %v1827_v13 = vsel %vm829_vm7, %v1826_v9, %v1806_v4 }
 0xa1c   : > { %3183 = vrot.lane.b32.xlu1 %v3958_v6, %s3482_s5  ;;  %v1829_v14 = vsel %vm829_vm7, %v1812_v3, %v1828_v10  ;;  %v1833_v17 = vperm.slane %v1827_v13, %v3689_v49  ;;  %s4255_s5 = sld [smem:[#allocation22_spill]] }
 0xa1d   : > { %v1837_v18 = vperm.slane %v1829_v14, %v3689_v49 }
 0xa1e   : > { %v1838_v41 = vrot.slane %v1833_v17, 4  ;;  %v1841_v21 = vsel %vm829_vm7, %v1833_v17, %v1840_v19 }
 0xa1f   : > { %v1850_v22 = vrot.slane %v1837_v18, 4  ;;  %v1853_v44 = vsel %vm829_vm7, %v1837_v18, %v1852_v20  ;;  %v1849_v23 = vperm.slane %v1841_v21, %v3699_v0 }
 0xa20   : > { %v1861_v24 = vperm.slane %v1853_v44, %v3699_v0  ;;  %v1839_v26 = vsel %vm829_vm7, %v1838_v41, %v1821_v15 }
 0xa21   : > { %v1851_v27 = vsel %vm829_vm7, %v1850_v22, %v1825_v16  ;;  %v1845_v47 = vperm.slane %v1839_v26, %v3699_v0  ;;  %v1864_v32 = vrot.slane %v1849_v23, 4 }
 0xa22   : > { %v1857_v30 = vperm.slane %v1851_v27, %v3699_v0  ;;  %v1868_v33 = vrot.slane %v1861_v24, 4 }
 0xa23   : > { %v1862_v38 = vrot.slane %v1845_v47, 4  ;;  %v1865_v40 = vsel %vm829_vm7, 0.0, %v1864_v32  ;;  %v1870_v22 = vsel %vm829_vm7, %v1864_v32, %v1845_v47 }
 0xa24   : > { %v1866_v43 = vrot.slane %v1857_v30, 4  ;;  %v1869_v39 = vsel %vm829_vm7, 0.0, %v1868_v33  ;;  %v1875_v52 = vrot.slane %v1865_v40, 4  ;;  %v1881_v7 = vsel %vm829_vm7, %v1868_v33, %v1857_v30 }
 0xa25   : > { %v1886_v53 = vrot.slane %v1869_v39, 4  ;;  %v1863_v62 = vsel %vm829_vm7, 0.0, %v1862_v38  ;;  %v1885_v18 = vperm.slane %v1881_v7, %v3689_v49 }
 0xa26   : > { %v1867_v63 = vsel %vm829_vm7, 0.0, %v1866_v43  ;;  %v1876_v10 = vsel %vm829_vm7, %v1875_v52, %v1863_v62 }
 0xa27   : > { %v1887_v11 = vsel %vm829_vm7, %v1886_v53, %v1867_v63  ;;  %v1880_v19 = vperm.slane %v1876_v10, %v3689_v49 }
 0xa28   : > { %v1891_v24 = vperm.slane %v1887_v11, %v3689_v49 }
 0xa29   : > { %v1892_v47 = vrot.slane %v1880_v19, 4 }
 0xa75   : > { %v3189_v25 = vpop.permute.xlu2 %3188 }
 0xa76   : > { %v3191_v28 = vunpack.i.h.bf16 %v3189_v25  ;;  %v3190_v29 = vunpack.i.l.bf16 %v3189_v25 }
 0xa78   : > { %v1952_v34 = vrot.slane %v3191_v28, 4  ;;  %v1940_v35 = vrot.slane %v3190_v29, 4 }
 0xa8e   : > { %v3184_v54 = vpop.permute.xlu1 %3183 }
 0xa8f   : > { %v3186_v36 = vunpack.i.h.bf16 %v3184_v54  ;;  %v3185_v37 = vunpack.i.l.bf16 %v3184_v54  ;;  %v1906_v54 = vrot.slane %v1885_v18, 4 }
 0xa91   : > { %v1953_v42 = vsel %vm829_vm7, %v1952_v34, %v3186_v36  ;;  %v1954_v45 = vrot.slane %v3186_v36, 4  ;;  %v1941_v46 = vsel %vm829_vm7, %v1940_v35, %v3185_v37  ;;  %v1942_v48 = vrot.slane %v3185_v37, 4 }
 0xa92   : > { %v1959_v50 = vperm.slane %v1953_v42, %v3689_v49  ;;  %v1947_v51 = vperm.slane %v1941_v46, %v3689_v49  ;;  %v1874_v36 = vperm.slane %v1870_v22, %v3689_v49  ;;  %v1904_v42 = vrot.slane %v1891_v24, 4 }
 0xa93   : > { %v1955_v55 = vsel %vm829_vm7, %v3191_v28, %v1954_v45  ;;  %v1943_v57 = vsel %vm829_vm7, %v3190_v29, %v1942_v48  ;;  %v1907_v46 = vsel %vm829_vm7, %v1891_v24, %v1906_v54 }
 0xa94   : > { %v1963_v58 = vperm.slane %v1955_v55, %v3689_v49  ;;  %v1964_v59 = vrot.slane %v1959_v50, 4  ;;  %v1951_v31 = vperm.slane %v1943_v57, %v3689_v49  ;;  %v1966_v61 = vrot.slane %v1947_v51, 4 }
 0xa95   : > { %v1893_v52 = vsel %vm829_vm7, %v1892_v47, %v1874_v36 }
 0xa96   : > { %v1976_v1 = vrot.slane %v1963_v58, 4  ;;  %v1965_v2 = vsel %vm829_vm7, %v1964_v59, %v1947_v51  ;;  %v1967_v3 = vsel %vm829_vm7, %v1959_v50, %v1966_v61  ;;  %v1978_v4 = vrot.slane %v1951_v31, 4 }
 0xa97   : > { %v1971_v8 = vperm.slane %v1965_v2, %v3699_v0  ;;  %v1975_v9 = vperm.slane %v1967_v3, %v3699_v0  ;;  %v1915_v61 = vperm.slane %v1907_v46, %v3699_v0  ;;  %v1899_v2 = vperm.slane %v1893_v52, %v3699_v0 }
 0xa98   : > { %v1977_v12 = vsel %vm829_vm7, %v1976_v1, %v1951_v31  ;;  %v1979_v13 = vsel %vm829_vm7, %v1963_v58, %v1978_v4  ;;  %v1894_v58 = vrot.slane %v1874_v36, 4  ;;  %v1905_v31 = vsel %vm829_vm7, %v1904_v42, %v1885_v18 }
 0xa99   : > { %v1983_v14 = vperm.slane %v1977_v12, %v3699_v0  ;;  %v1987_v15 = vperm.slane %v1979_v13, %v3699_v0  ;;  %v1988_v16 = vrot.slane %v1971_v8, 4  ;;  %v1990_v17 = vrot.slane %v1975_v9, 4 }
 0xa9a   : > { %v1911_v9 = vperm.slane %v1905_v31, %v3699_v0  ;;  %v1895_v12 = vsel %vm829_vm7, %v1880_v19, %v1894_v58 }
 0xa9b   : > { %v1991_v20 = vsel %vm829_vm7, 0.0, %v1990_v17  ;;  %v1992_v41 = vrot.slane %v1983_v14, 4  ;;  %v1994_v21 = vrot.slane %v1987_v15, 4  ;;  %v1996_v44 = vsel %vm829_vm7, %v1990_v17, %v1971_v8 }
 0xa9c   : > { %v2001_v23 = vrot.slane %v1991_v20, 4  ;;  %v1989_v25 = vsel %vm829_vm7, 0.0, %v1988_v16  ;;  %v2000_v27 = vperm.slane %v1996_v44, %v3689_v49  ;;  %v1918_v15 = vrot.slane %v1899_v2, 4 }
 0xa9d   : > { %v1995_v26 = vsel %vm829_vm7, 0.0, %v1994_v21  ;;  %v2007_v28 = vsel %vm829_vm7, %v1994_v21, %v1983_v14  ;;  %v1993_v32 = vsel %vm829_vm7, 0.0, %v1992_v41  ;;  %v1920_v16 = vrot.slane %v1915_v61, 4 }
 0xa9e   : > { %v2002_v29 = vsel %vm829_vm7, %v2001_v23, %v1989_v25  ;;  %v2012_v30 = vrot.slane %v1995_v26, 4  ;;  %v2011_v33 = vperm.slane %v2007_v28, %v3689_v49  ;;  %v2020_v35 = vrot.slane %v2000_v27, 4 }
 0xa9f   : > { %v2006_v34 = vperm.slane %v2002_v29, %v3689_v49  ;;  %v1903_v41 = vperm.slane %v1895_v12, %v3699_v0  ;;  %v1916_v21 = vrot.slane %v1911_v9, 4  ;;  %v1919_v44 = vsel %vm829_vm7, %v1911_v9, %v1918_v15 }
 0xaa0   : > { %v2013_v37 = vsel %vm829_vm7, %v2012_v30, %v1993_v32  ;;  %v2032_v38 = vrot.slane %v2011_v33, 4  ;;  %v1925_v25 = vpack.c.bf16 %v1919_v44, %v1919_v44 }
 0xaa1   : > { %v2017_v40 = vperm.slane %v2013_v37, %v3689_v49  ;;  %v2018_v43 = vrot.slane %v2006_v34, 4  ;;  %v2021_v39 = vsel %vm829_vm7, %v2006_v34, %v2020_v35  ;;  %v1921_v23 = vsel %vm829_vm7, %v1920_v16, %v1903_v41  ;;  %v3261_v34 = vld [vmem:[%s3783_s27] sm:$0xff]  ;;  %s685_s27 = scalar_lea.vmem %s4255_s5, %s3658_s7 }
 0xaa2   : > { %v2029_v45 = vperm.slane %v2021_v39, %v3699_v0  ;;  %v1917_v24 = vsel %vm829_vm7, %v1916_v21, %v1899_v2  ;;  %v1926_v26 = vpack.c.bf16 %v1921_v23, %v1921_v23  ;;  %v1922_v28 = vrot.slane %v1903_v41, 4 }
 0xaa3   : > { %v2019_v48 = vsel %vm829_vm7, %v2018_v43, %v2000_v27  ;;  %v2030_v50 = vrot.slane %v2017_v40, 4  ;;  %v2033_v51 = vsel %vm829_vm7, %v2017_v40, %v2032_v38  ;;  %v1924_v27 = vpack.c.bf16 %v1917_v24, %v1917_v24 }
 0xaa4   : > { %v2025_v53 = vperm.slane %v2019_v48, %v3699_v0  ;;  %v2041_v55 = vperm.slane %v2033_v51, %v3699_v0  ;;  %v2048_v57 = vrot.slane %v2029_v45, 4  ;;  %v1923_v29 = vsel %vm829_vm7, %v1915_v61, %v1922_v28 }
 0xaa5   : > { %v2031_v59 = vsel %vm829_vm7, %v2030_v50, %v2011_v33  ;;  %v1927_v30 = vpack.c.bf16 %v1923_v29, %v1923_v29 }
 0xaa6   : > { %v2037_v62 = vperm.slane %v2031_v59, %v3699_v0  ;;  %v2044_v63 = vrot.slane %v2025_v53, 4  ;;  %v2046_v1 = vrot.slane %v2041_v55, 4  ;;  %v2049_v3 = vsel %vm829_vm7, %v2041_v55, %v2048_v57 }
 0xaa7   : > { %v2053_v14 = vpack.c.bf16 %v2049_v3, %v2049_v3 }
 0xaa8   : > { %v2045_v4 = vsel %vm829_vm7, %v2037_v62, %v2044_v63  ;;  %v2047_v7 = vsel %vm829_vm7, %v2046_v1, %v2029_v45  ;;  %v2042_v8 = vrot.slane %v2037_v62, 4 }
 0xaa9   : > { %v2051_v10 = vpack.c.bf16 %v2045_v4, %v2045_v4  ;;  %v2052_v11 = vpack.c.bf16 %v2047_v7, %v2047_v7  ;;  %v2241_v19 = vsel %vm1195_vm8, %v2053_v14, 0 }
 0xaaa   : > { %v2043_v13 = vsel %vm829_vm7, %v2042_v8, %v2025_v53 }
 0xaab   : > { %v2203_v17 = vsel %vm1195_vm8, %v2051_v10, 0  ;;  %v2222_v18 = vsel %vm1195_vm8, %v2052_v11, 0  ;;  %v2050_v20 = vpack.c.bf16 %v2043_v13, %v2043_v13 }
 0xaac   : > { %2212 = vmatpush.bf16.xpose.msra.mxu0 %v2203_v17  ;;  %2231 = vmatpush.bf16.xpose.msrb.mxu3 %v2222_v18 }
 0xaad   : > { %v2184_v22 = vsel %vm1195_vm8, %v2050_v20, 0 }
 0xaae   : > { %2193 = vmatpush.bf16.xpose.msra.mxu1 %v2184_v22 }
 0xab3   : > { %2972 = vmatmul.msk.bf16.vlgmr.msra.gmra.mxu0 %vm1195_vm8, %v1925_v25  ;;  %2973 = vmatmul.msk.bf16.vlgmr.msrb.gmra.mxu3 %vm1195_vm8, %v1926_v26 }
 0xab5   : > { %2971 = vmatmul.msk.bf16.vlgmr.msra.gmra.mxu1 %vm1195_vm8, %v1924_v27 }
 0xab6   : > { %2250 = vmatpush.bf16.xpose.msrb.mxu1 %v2241_v19 }
 0xac5   : > { %2974 = vmatmul.msk.bf16.vlgmr.msrb.gmra.mxu1 %vm1195_vm8, %v1927_v30 }
 0xb30   : > { %v2214_v33 = vpop.f32.mrf.mxu0 }
 0xb31   : > { %v2257_v54 = vmul.f32 0.35355338, %v2214_v33 }
 0xb32   : > { %v2195_v47 = vpop.f32.mrf.mxu1 }
 0xb33   : > { %v2256_v32 = vmul.f32 0.35355338, %v2195_v47  ;;  %v2261_v35 = vadd.f32 %v3261_v34, %v2257_v54 }
 0xb35   : > { %v2267_v36 = vsel %vm1195_vm8, %v2261_v35, -inf  ;;  %v2260_v37 = vadd.f32 %v3261_v34, %v2256_v32 }
 0xb36   : > { %v2233_v38 = vpop.f32.mrf.mxu3  ;;  %2268 = vmax.xlane.f32.xlu1 %v2267_v36 }
 0xb37   : > { %v2258_v40 = vmul.f32 0.35355338, %v2233_v38  ;;  %v2264_v43 = vsel %vm1195_vm8, %v2260_v37, -inf }
 0xb38   : > { %v2216_v39 = vpop.f32.mrf.mxu0  ;;  %2265 = vmax.xlane.f32.xlu2 %v2264_v43 }
 0xb39   : > { %v2262_v42 = vadd.f32 %v3261_v34, %v2258_v40 }
 0xb3a   : > { %v2197_v45 = vpop.f32.mrf.mxu1 }
 0xb3b   : > { %v2270_v46 = vsel %vm1195_vm8, %v2262_v42, -inf }
 0xb3c   : > { %2271 = vmax.xlane.f32.xlu0 %v2270_v46 }
 0xb3e   : > { %v2235_v48 = vpop.f32.mrf.mxu3 }
 0xb42   : > { %v2252_v50 = vpop.f32.mrf.mxu1 }
 0xb43   : > { %v2259_v51 = vmul.f32 0.35355338, %v2252_v50 }
 0xb45   : > { %v2263_v52 = vadd.f32 %v3261_v34, %v2259_v51 }
 0xb47   : > { %v2273_v53 = vsel %vm1195_vm8, %v2263_v52, -inf }
 0xb48   : > { %2274 = vmax.xlane.f32.xlu0 %v2273_v53 }
 0xb4a   : > { %v2254_v55 = vpop.f32.mrf.mxu1 }
 0xb4f   : > { %3193 = vrot.lane.b32.xlu1 %v3958_v6, %s3485_s19 }
 0xb50   : > { %3198 = vrot.lane.b32.xlu2 %v3956_v5, %s3485_s19 }
 0xba9   : > { %v2269_v57 = vpop.xlane.xlu1 %2268 }
 0xbaa   : > { %v2277_v58 = vsub.f32 %v2261_v35, %v2269_v57 }
 0xbab   : > { %v2266_v62 = vpop.xlane.xlu2 %2265 }
 0xbac   : > { %v2282_v59 = vmul.f32 1.442695, %v2277_v58  ;;  %v2276_v2 = vsub.f32 %v2260_v37, %v2266_v62 }
 0xbae   : > { %3241 = vpow2.f32 %v2282_v59  ;;  %v2280_v6 = vmul.f32 1.442695, %v2276_v2 }
 0xbaf   : > { %v2272_v31 = vpop.xlane.xlu0 %2271 }
 0xbb0   : > { %v2278_v61 = vsub.f32 %v2262_v42, %v2272_v31 }
 0xbb2   : > { %v2284_v63 = vmul.f32 1.442695, %v2278_v61 }
 0xbb3   : > { %v3199_v5 = vpop.permute.xlu2 %3198 }
 0xbb4   : > { %v4061_v1 = vpop.eup %3241  ;;  %3243 = vpow2.f32 %v2284_v63  ;;  %v3201_v10 = vunpack.i.h.bf16 %v3199_v5  ;;  %v3200_v11 = vunpack.i.l.bf16 %v3199_v5 }
 0xbb5   : > { %v2291_v3 = vsel %vm1195_vm8, %v4061_v1, 0.0  ;;  %3245 = vpow2.f32 %v2280_v6 }
 0xbb6   : > { %2292 = vadd.xlane.f32.xlu0 %v2291_v3  ;;  %v2078_v15 = vrot.slane %v3201_v10, 4  ;;  %v2066_v16 = vrot.slane %v3200_v11, 4 }
 0xbba   : > { %v4065_v4 = vpop.eup %3243 }
 0xbbb   : > { %v2275_v7 = vpop.xlane.xlu0 %2274  ;;  %v2294_v9 = vsel %vm1195_vm8, %v4065_v4, 0.0  ;;  %v4069_v14 = vpop.eup %3245 }
 0xbbc   : > { %v2279_v8 = vsub.f32 %v2263_v52, %v2275_v7  ;;  %v2288_v23 = vsel %vm1195_vm8, %v4069_v14, 0.0 }
 0xbbe   : > { %v2286_v12 = vmul.f32 1.442695, %v2279_v8  ;;  %2295 = vadd.xlane.f32.xlu0 %v2294_v9 }
 0xbc0   : > { %3247 = vpow2.f32 %v2286_v12 }
 0xbc1   : > { %v3194_v13 = vpop.permute.xlu1 %3193 }
 0xbc2   : > { %v3196_v17 = vunpack.i.h.bf16 %v3194_v13  ;;  %v3195_v18 = vunpack.i.l.bf16 %v3194_v13 }
 0xbc4   : > { %v2080_v20 = vrot.slane %v3196_v17, 4  ;;  %v2067_v41 = vsel %vm829_vm7, %v2066_v16, %v3195_v18  ;;  %v2068_v21 = vrot.slane %v3195_v18, 4  ;;  %v2079_v22 = vsel %vm829_vm7, %v2078_v15, %v3196_v17 }
 0xbc5   : > { %v2073_v19 = vperm.slane %v2067_v41, %v3689_v49  ;;  %v2085_v44 = vperm.slane %v2079_v22, %v3689_v49 }
 0xbc6   : > { %v4077_v24 = vpop.eup %3247  ;;  %v2069_v25 = vsel %vm829_vm7, %v3200_v11, %v2068_v21  ;;  %v2081_v26 = vsel %vm829_vm7, %v3201_v10, %v2080_v20  ;;  %2289 = vadd.xlane.f32.xlu0 %v2288_v23 }
 0xbc7   : > { %v2077_v27 = vperm.slane %v2069_v25, %v3689_v49  ;;  %v2089_v28 = vperm.slane %v2081_v26, %v3689_v49  ;;  %v2090_v29 = vrot.slane %v2085_v44, 4  ;;  %v2092_v30 = vrot.slane %v2073_v19, 4 }
 0xbc8   : > { %v2297_v33 = vsel %vm1195_vm8, %v4077_v24, 0.0 }
 0xbc9   : > { %v2091_v54 = vsel %vm829_vm7, %v2090_v29, %v2073_v19  ;;  %v2093_v47 = vsel %vm829_vm7, %v2085_v44, %v2092_v30  ;;  %v2102_v32 = vrot.slane %v2089_v28, 4  ;;  %v2104_v34 = vrot.slane %v2077_v27, 4  ;;  %2298 = vadd.xlane.f32.xlu1 %v2297_v33 }
 0xbca   : > { %v2097_v35 = vperm.slane %v2091_v54, %v3699_v0  ;;  %v2101_v36 = vperm.slane %v2093_v47, %v3699_v0 }
 0xbcb   : > { %v2103_v37 = vsel %vm829_vm7, %v2102_v32, %v2077_v27  ;;  %v2105_v38 = vsel %vm829_vm7, %v2089_v28, %v2104_v34 }
 0xbcc   : > { %v2109_v40 = vperm.slane %v2103_v37, %v3699_v0  ;;  %v2113_v43 = vperm.slane %v2105_v38, %v3699_v0  ;;  %v2114_v39 = vrot.slane %v2097_v35, 4  ;;  %v2116_v42 = vrot.slane %v2101_v36, 4 }
 0xbce   : > { %v2117_v45 = vsel %vm829_vm7, 0.0, %v2116_v42  ;;  %v2118_v46 = vrot.slane %v2109_v40, 4  ;;  %v2120_v48 = vrot.slane %v2113_v43, 4  ;;  %v2122_v50 = vsel %vm829_vm7, %v2116_v42, %v2097_v35 }
 0xbcf   : > { %v2127_v51 = vrot.slane %v2117_v45, 4  ;;  %v2115_v52 = vsel %vm829_vm7, 0.0, %v2114_v39  ;;  %v2126_v55 = vperm.slane %v2122_v50, %v3689_v49 }
 0xbd0   : > { %v2121_v53 = vsel %vm829_vm7, 0.0, %v2120_v48  ;;  %v2133_v57 = vsel %vm829_vm7, %v2120_v48, %v2109_v40  ;;  %v2119_v61 = vsel %vm829_vm7, 0.0, %v2118_v46 }
 0xbd1   : > { %v2138_v58 = vrot.slane %v2121_v53, 4  ;;  %v2128_v59 = vsel %vm829_vm7, %v2127_v51, %v2115_v52  ;;  %v2137_v31 = vperm.slane %v2133_v57, %v3689_v49  ;;  %v2146_v63 = vrot.slane %v2126_v55, 4 }
 0xbd2   : > { %v2132_v62 = vperm.slane %v2128_v59, %v3689_v49 }
 0xbd3   : > { %v2139_v2 = vsel %vm829_vm7, %v2138_v58, %v2119_v61  ;;  %v2158_v3 = vrot.slane %v2137_v31, 4 }
 0xbd4   : > { %v2143_v6 = vperm.slane %v2139_v2, %v3689_v49  ;;  %v2147_v5 = vsel %vm829_vm7, %v2132_v62, %v2146_v63  ;;  %v2144_v7 = vrot.slane %v2132_v62, 4 }
 0xbd5   : > { %v2155_v8 = vperm.slane %v2147_v5, %v3699_v0 }
 0xbd6   : > { %v2159_v9 = vsel %vm829_vm7, %v2143_v6, %v2158_v3  ;;  %v2145_v10 = vsel %vm829_vm7, %v2144_v7, %v2126_v55  ;;  %v2156_v11 = vrot.slane %v2143_v6, 4 }
 0xbd7   : > { %v2167_v12 = vperm.slane %v2159_v9, %v3699_v0  ;;  %v2174_v13 = vrot.slane %v2155_v8, 4  ;;  %v2151_v15 = vperm.slane %v2145_v10, %v3699_v0 }
 0xbd8   : > { %v2157_v16 = vsel %vm829_vm7, %v2156_v11, %v2137_v31 }
 0xbd9   : > { %v2175_v17 = vsel %vm829_vm7, %v2167_v12, %v2174_v13  ;;  %v2163_v18 = vperm.slane %v2157_v16, %v3699_v0  ;;  %v2170_v20 = vrot.slane %v2151_v15, 4  ;;  %v2172_v41 = vrot.slane %v2167_v12, 4 }
 0xbda   : > { %v2179_v21 = vpack.c.bf16 %v2175_v17, %v2175_v17 }
 0xbdb   : > { %v2171_v22 = vsel %vm829_vm7, %v2163_v18, %v2170_v20  ;;  %v2173_v19 = vsel %vm829_vm7, %v2172_v41, %v2155_v8  ;;  %v2168_v44 = vrot.slane %v2163_v18, 4 }
 0xbdc   : > { %v2373_v23 = vsel %vm750_vm1, %v2179_v21, 0  ;;  %v2177_v25 = vpack.c.bf16 %v2171_v22, %v2171_v22  ;;  %v2178_v26 = vpack.c.bf16 %v2173_v19, %v2173_v19 }
 0xbdd   : > { %2382 = vmatpush.bf16.msra.mxu1 %v2373_v23  ;;  %v2169_v27 = vsel %vm829_vm7, %v2168_v44, %v2151_v15 }
 0xbde   : > { %v2335_v28 = vsel %vm750_vm1, %v2177_v25, 0  ;;  %v2354_v29 = vsel %vm750_vm1, %v2178_v26, 0  ;;  %v2176_v30 = vpack.c.bf16 %v2169_v27, %v2169_v27 }
 0xbdf   : > { %2344 = vmatpush.bf16.msra.mxu2 %v2335_v28  ;;  %2363 = vmatpush.bf16.msra.mxu3 %v2354_v29 }
 0xbe0   : > { %v2316_v33 = vsel %vm750_vm1, %v2176_v30, 0 }
 0xbe1   : > { %2325 = vmatpush.bf16.msrb.mxu0 %v2316_v33 }
 0xc29   : > { %v2293_v54 = vpop.xlane.xlu0 %2292 }
 0xc2a   : > { %3249 = vrcp.f32 %v2293_v54 }
 0xc30   : > { %v3250_v47 = vpop.eup %3249 }
 0xc31   : > { %v2305_v32 = vmul.f32 %v3250_v47, %v4061_v1  ;;  %v2296_v34 = vpop.xlane.xlu0 %2295 }
 0xc32   : > { %3251 = vrcp.f32 %v2296_v34 }
 0xc33   : > { %v2309_v35 = vpack.c.bf16 %v2305_v32, %v2305_v32 }
 0xc35   : > { %2976 = vmatmul.msk.bf16.vlgmr.msra.gmra.mxu2 %vm1195_vm8, %v2309_v35 }
 0xc38   : > { %v3252_v36 = vpop.eup %3251 }
 0xc39   : > { %v2306_v37 = vmul.f32 %v3252_v36, %v4065_v4  ;;  %v2290_v38 = vpop.xlane.xlu0 %2289 }
 0xc3a   : > { %3253 = vrcp.f32 %v2290_v38 }
 0xc3b   : > { %v2310_v40 = vpack.c.bf16 %v2306_v37, %v2306_v37 }
 0xc3c   : > { %v2299_v43 = vpop.xlane.xlu1 %2298 }
 0xc3d   : > { %3255 = vrcp.f32 %v2299_v43  ;;  %2977 = vmatmul.msk.bf16.vlgmr.msra.gmra.mxu3 %vm1195_vm8, %v2310_v40 }
 0xc40   : > { %v3254_v39 = vpop.eup %3253 }
 0xc41   : > { %v2304_v42 = vmul.f32 %v3254_v39, %v4069_v14 }
 0xc43   : > { %v3256_v45 = vpop.eup %3255  ;;  %v2308_v1 = vpack.c.bf16 %v2304_v42, %v2304_v42 }
 0xc44   : > { %v2307_v46 = vmul.f32 %v3256_v45, %v4077_v24 }
 0xc45   : > { %2975 = vmatmul.msk.bf16.vlgmr.msrb.gmra.mxu0 %vm1195_vm8, %v2308_v1 }
 0xc46   : > { %v2311_v48 = vpack.c.bf16 %v2307_v46, %v2307_v46 }
 0xc48   : > { %2978 = vmatmul.msk.bf16.vlgmr.msra.gmra.mxu1 %vm1195_vm8, %v2311_v48 }
 0xcb8   : > { %v2346_v4 = vpop.f32.mrf.mxu2 }
 0xcb9   : > { %v2402_v58 = vrot.slane %v2346_v4, 4 }
 0xcc0   : > { %v2348_v50 = vpop.f32.mrf.mxu2  ;;  %v2365_v51 = vpop.f32.mrf.mxu3 }
 0xcc1   : > { %v2388_v52 = vrot.slane %v2365_v51, 4 }
 0xcc2   : > { %v2327_v53 = vpop.f32.mrf.mxu0 }
 0xcc3   : > { %v2389_v55 = vsel %vm829_vm7, %v2388_v52, %v2327_v53  ;;  %v2390_v57 = vrot.slane %v2327_v53, 4 }
 0xcc4   : > { %v2395_v59 = vperm.slane %v2389_v55, %v3689_v49 }
 0xcc5   : > { %v2391_v14 = vsel %vm829_vm7, %v2365_v51, %v2390_v57  ;;  %v2384_v31 = vpop.f32.mrf.mxu1 }
 0xcc6   : > { %v2399_v24 = vperm.slane %v2391_v14, %v3689_v49  ;;  %v2400_v61 = vrot.slane %v2384_v31, 4  ;;  %v2403_v62 = vsel %vm829_vm7, %v2384_v31, %v2402_v58  ;;  %v2414_v5 = vrot.slane %v2395_v59, 4 }
 0xcc7   : > { %v2411_v63 = vperm.slane %v2403_v62, %v3689_v49 }
 0xcc8   : > { %v2426_v2 = vrot.slane %v2399_v24, 4  ;;  %v2401_v3 = vsel %vm829_vm7, %v2400_v61, %v2346_v4  ;;  %v2367_v6 = vpop.f32.mrf.mxu3 }
 0xcc9   : > { %v2407_v7 = vperm.slane %v2401_v3, %v3689_v49  ;;  %v2424_v8 = vrot.slane %v2411_v63, 4  ;;  %v3212_v6 = vld [vmem:[%s4230_s9 + $0x1] ss:$0 sm:$0xff] }
 0xcca   : > { %v2427_v9 = vsel %vm829_vm7, %v2411_v63, %v2426_v2  ;;  %v2329_v10 = vpop.f32.mrf.mxu0 }
 0xccb   : > { %v2412_v11 = vrot.slane %v2407_v7, 4  ;;  %v2415_v12 = vsel %vm829_vm7, %v2407_v7, %v2414_v5  ;;  %v2425_v13 = vsel %vm829_vm7, %v2424_v8, %v2399_v24  ;;  %v2435_v15 = vperm.slane %v2427_v9, %v3699_v0 }
 0xccc   : > { %v2423_v16 = vperm.slane %v2415_v12, %v3699_v0  ;;  %v2431_v17 = vperm.slane %v2425_v13, %v3699_v0 }
 0xccd   : > { %v2413_v18 = vsel %vm829_vm7, %v2412_v11, %v2395_v59  ;;  %v2442_v20 = vrot.slane %v2435_v15, 4  ;;  %v2386_v41 = vpop.f32.mrf.mxu1  ;;  %v3058_v59 = vld [vmem:[#allocation9 + $0x18] sm:$0xff] }
 0xcce   : > { %v2419_v21 = vperm.slane %v2413_v18, %v3699_v0  ;;  %v2438_v22 = vrot.slane %v2423_v16, 4  ;;  %v2440_v19 = vrot.slane %v2431_v17, 4  ;;  %2538 = vmatpush.bf16.msra.mxu0 %v3058_v59  ;;  %v3068_v18 = vld [vmem:[#allocation10 + $0x78] sm:$0xff] }
 0xccf   : > { %v2443_v44 = vsel %vm829_vm7, 0.0, %v2442_v20  ;;  %v2455_v23 = vsel %vm829_vm7, %v2442_v20, %v2431_v17  ;;  %v3060_v17 = vld [vmem:[%s4233_s12 + $0x18] sm:$0xff]  ;;  %2691 = vmatpush.bf16.msrb.mxu3 %v3068_v18 }
 0xcd0   : > { %v2436_v25 = vrot.slane %v2419_v21, 4  ;;  %v2439_v26 = vsel %vm829_vm7, 0.0, %v2438_v22  ;;  %v2459_v27 = vperm.slane %v2455_v23, %v3689_v49  ;;  %v2460_v29 = vrot.slane %v2443_v44, 4  ;;  %2631 = vmatpush.bf16.msrb.mxu2 %v3060_v17  ;;  %v3065_v44 = vld [vmem:[#allocation10 + $0x60] sm:$0xff] }
 0xcd1   : > { %v2449_v28 = vrot.slane %v2439_v26, 4  ;;  %v2444_v30 = vsel %vm829_vm7, %v2438_v22, %v2419_v21  ;;  %v2441_v33 = vsel %vm829_vm7, 0.0, %v2440_v19  ;;  %v3067_v21 = vld [vmem:[#allocation10 + $0x70] sm:$0xff]  ;;  %v3066_v19 = vld [vmem:[#allocation10 + $0x68] sm:$0xff]  ;;  %v3064_v26 = vld [vmem:[#allocation10 + $0x58] sm:$0xff] }
 0xcd2   : > { %v2437_v54 = vsel %vm829_vm7, 0.0, %v2436_v25  ;;  %v2448_v47 = vperm.slane %v2444_v30, %v3689_v49  ;;  %v2480_v32 = vrot.slane %v2459_v27, 4  ;;  %v2461_v35 = vsel %vm829_vm7, %v2460_v29, %v2441_v33  ;;  %v3063_v29 = vld [vmem:[#allocation10 + $0x50] sm:$0xff] }
 0xcd3   : > { %v2450_v34 = vsel %vm829_vm7, %v2449_v28, %v2437_v54  ;;  %v2465_v37 = vperm.slane %v2461_v35, %v3689_v49  ;;  %2692 = vmatpush.bf16.msrb.mxu3 %v3067_v21  ;;  %v3213_v54 = vld [vmem:[%s4231_s10 + $0x1] ss:$0 sm:$0xff] }
 0xcd4   : > { %v2454_v36 = vperm.slane %v2450_v34, %v3689_v49  ;;  %v2468_v38 = vrot.slane %v2448_v47, 4 }
 0xcd5   : > { %v2481_v43 = vsel %vm829_vm7, %v2465_v37, %v2480_v32  ;;  %v2478_v42 = vrot.slane %v2465_v37, 4  ;;  %v3214_v32 = vld [vmem:[%s4232_s11 + $0x1] ss:$0 sm:$0xff] }
 0xcd6   : > { %v2469_v40 = vsel %vm829_vm7, %v2454_v36, %v2468_v38  ;;  %v2466_v39 = vrot.slane %v2454_v36, 4  ;;  %v2489_v45 = vperm.slane %v2481_v43, %v3699_v0  ;;  %v3062_v38 = vld [vmem:[#allocation10 + $0x48] sm:$0xff] }
 0xcd7   : > { %v2479_v46 = vsel %vm829_vm7, %v2478_v42, %v2459_v27  ;;  %v2477_v48 = vperm.slane %v2469_v40, %v3699_v0  ;;  %2693 = vmatpush.bf16.msrb.mxu3 %v3066_v19  ;;  %v3061_v40 = vld [vmem:[#allocation10 + $0x40] sm:$0xff]  ;;  %v3215_v43 = vld [vmem:[%s4234_s13 + $0x1] ss:$0 sm:$0xff] }
 0xcd8   : > { %v2467_v1 = vsel %vm829_vm7, %v2466_v39, %v2448_v47  ;;  %v2494_v4 = vrot.slane %v2489_v45, 4  ;;  %v2485_v49 = vperm.slane %v2479_v46, %v3699_v0 }
 0xcd9   : > { %v2473_v50 = vperm.slane %v2467_v1, %v3699_v0  ;;  %v2496_v58 = vrot.slane %v2477_v48, 4  ;;  %v3057_v0 = vld [vmem:[#allocation9 + $0x10] sm:$0xff] }
 0xcda   : > { %v2495_v51 = vsel %vm829_vm7, %v2494_v4, %v2477_v48  ;;  %v2490_v52 = vrot.slane %v2485_v49, 4  ;;  %2539 = vmatpush.bf16.msra.mxu0 %v3057_v0  ;;  %v3216_v48 = vld [vmem:[%s4236_s15 + $0x1] ss:$0 sm:$0xff] }
 0xcdb   : > { %v2492_v53 = vrot.slane %v2473_v50, 4  ;;  %2503 = vrot.lane.b32.xlu0 %v2495_v51, %s3486_s23  ;;  %v2497_v14 = vsel %vm829_vm7, %v2489_v45, %v2496_v58  ;;  %2694 = vmatpush.bf16.msrb.mxu3 %v3065_v44 }
 0xcdc   : > { %v2491_v57 = vsel %vm829_vm7, %v2490_v52, %v2473_v50 }
 0xcdd   : > { %v2493_v55 = vsel %vm829_vm7, %v2485_v49, %v2492_v53 }
 0xcde   : > { %2499 = vrot.lane.b32.xlu2 %v2493_v55, %s3487_s26 }
 0xcdf   : > { %2695 = vmatpush.bf16.msrb.mxu3 %v3064_v26 }
 0xce3   : > { %2696 = vmatpush.bf16.msrb.mxu3 %v3063_v29 }
 0xce6   : > { %2507 = vrot.lane.b32.xlu2 %v2497_v14, %s3488_s0 }
 0xce7   : > { %2697 = vmatpush.bf16.msrb.mxu3 %v3062_v38 }
 0xceb   : > { %2698 = vmatpush.bf16.msrb.mxu3 %v3061_v40 }
 0xd38   : > { %v2500_v31 = vpop.permute.xlu2 %2499 }
 0xd39   : > { %v2510_v24 = vsel %vm1195_vm8, %v2491_v57, %v2500_v31 }
 0xd40   : > { %v2508_v62 = vpop.permute.xlu2 %2507 }
 0xd4d   : > { %v2504_v61 = vpop.permute.xlu0 %2503 }
 0xd4e   : > { %v2511_v63 = vsel %vm1527_vm9, %v2510_v24, %v2504_v61 }
 0xd4f   : > { %v2512_v2 = vsel %vm1529_vm10, %v2511_v63, %v2508_v62 }
 0xd50   : > { %v2513_v3 = vpack.c.bf16 %v2512_v2, %v2512_v2 }
 0xd52   : > { %2987 = vmatmul.msk.bf16.vlgmr.msra.gmra.mxu0 %vm801_vm6, %v2513_v3 }
 0xdcf   : > { %v2541_v5 = vpop.f32.mrf.mxu0 }
 0xdd0   : > { %v2542_v7 = vadd.f32 %v3212_v6, %v2541_v5  ;;  %v3217_v6 = vld [vmem:[%s4237_s16 + $0x1] ss:$0 sm:$0xff] }
 0xdd2   : > { %v2545_v8 = vadd.f32 %v2542_v7, %v3948_v60  ;;  %v3059_v60 = vld [vmem:[%s4233_s12 + $0x10] sm:$0xff] }
 0xdd3   : > { %2632 = vmatpush.bf16.msrb.mxu2 %v3059_v60 }
 0xdd4   : > { %v2546_v9 = vsel %vm801_vm6, %v2545_v8, 0.0 }
 0xdd5   : > { %2547 = vadd.xlane.f32.xlu2 %v2546_v9 }
 0xdd7   : > { %v2543_v10 = vpop.f32.mrf.mxu0 }
 0xe48   : > { %v2548_v11 = vpop.xlane.xlu2 %2547 }
 0xe49   : > { %v2549_v12 = vmul.f32 %v2548_v11, %v3914_v56 }
 0xe4b   : > { %v2550_v13 = vsub.f32 %v2545_v8, %v2549_v12 }
 0xe4d   : > { %v2551_v15 = vmul.f32 %v2550_v13, %v2550_v13 }
 0xe4f   : > { %v2552_v16 = vsel %vm801_vm6, %v2551_v15, 0.0 }
 0xe50   : > { %2553 = vadd.xlane.f32.xlu0 %v2552_v16 }
 0xec3   : > { %v2554_v20 = vpop.xlane.xlu0 %2553 }
 0xec4   : > { %v2555_v41 = vmul.f32 %v2554_v20, %v3914_v56 }
 0xec6   : > { %v2556_v22 = vadd.f32 1e-05, %v2555_v41 }
 0xec8   : > { %3257 = vrsqrt.f32 %v2556_v22  ;;  %vm2563_vm3 = vweird.f32 %v2556_v22 }
 0xece   : > { %v3258_v23 = vpop.eup %3257 }
 0xecf   : > { %v2558_v25 = vmul.f32 %v3258_v23, %v2556_v22  ;;  %vm2564_vm1 = vweird.f32 %v3258_v23 }
 0xed0   : > { %vm2565_vm4 = vmor %vm2563_vm3, %vm2564_vm1 }
 0xed1   : > { %v2559_v27 = vmul.f32 %v3258_v23, %v2558_v25 }
 0xed3   : > { %v2560_v28 = vmul.f32 0.5, %v2559_v27 }
 0xed5   : > { %v2561_v30 = vsub.f32 1.5, %v2560_v28 }
 0xed7   : > { %v2562_v33 = vmul.f32 %v3258_v23, %v2561_v30 }
 0xed9   : > { %v2566_v47 = vsel %vm2565_vm4, %v3258_v23, %v2562_v33 }
 0xeda   : > { %v2567_v34 = vmul.f32 %v2566_v47, %v2550_v13 }
 0xedc   : > { %v2571_v35 = vmul.f32 %v3213_v54, %v2567_v34 }
 0xede   : > { %v2575_v36 = vadd.f32 %v3214_v32, %v2571_v35 }
 0xee0   : > { %v2606_v37 = vpack.c.bf16 %v2575_v36, %v2575_v36 }
 0xee2   : > { %3004 = vmatmul.msk.bf16.vlgmr.msrb.gmra.mxu2 %vm801_vm6, %v2606_v37 }
 0xf65   : > { %v2634_v39 = vpop.f32.mrf.mxu2 }
 0xf66   : > { %v2635_v42 = vadd.f32 %v3215_v43, %v2634_v39 }
 0xf68   : > { %v2638_v45 = vmax.f32 %v2635_v42, 0.0 }
 0xf6a   : > { %v2639_v1 = vpack.c.bf16 %v2638_v45, %v2638_v45 }
 0xf6c   : > { %2699 = vmatmul.bf16.vlgmr.msrb.gmra.mxu3 %v2639_v1 }
 0xf6d   : > { %v2636_v46 = vpop.f32.mrf.mxu2 }
 0xfef   : > { %v2700_v4 = vpop.f32.mrf.mxu3 }
 0xff0   : > { %v2701_v50 = vadd.f32 %v3216_v48, %v2700_v4 }
 0xff2   : > { %v2704_v49 = vadd.f32 %v2701_v50, %v2575_v36 }
 0xff4   : > { %v2705_v51 = vsel %vm801_vm6, %v2704_v49, 0.0 }
 0xff5   : > { %2706 = vadd.xlane.f32.xlu1 %v2705_v51 }
 0xff7   : > { %v2702_v52 = vpop.f32.mrf.mxu3 }
0x1068   : > { %v2707_v53 = vpop.xlane.xlu1 %2706 }
0x1069   : > { %v2708_v55 = vmul.f32 %v2707_v53, %v3914_v56 }
0x106b   : > { %v2709_v57 = vsub.f32 %v2704_v49, %v2708_v55 }
0x106d   : > { %v2710_v58 = vmul.f32 %v2709_v57, %v2709_v57 }
0x106f   : > { %v2711_v14 = vsel %vm801_vm6, %v2710_v58, 0.0 }
0x1070   : > { %2712 = vadd.xlane.f32.xlu1 %v2711_v14 }
0x10e3   : > { %v2713_v59 = vpop.xlane.xlu1 %2712 }
0x10e4   : > { %v2714_v0 = vmul.f32 %v2713_v59, %v3914_v56  ;;  %v3218_v56 = vld [vmem:[%s4238_s17 + $0x1] ss:$0 sm:$0xff] }
0x10e6   : > { %v2715_v31 = vadd.f32 1e-05, %v2714_v0 }
0x10e8   : > { %3259 = vrsqrt.f32 %v2715_v31  ;;  %vm2722_vm7 = vweird.f32 %v2715_v31 }
0x10ee   : > { %v3260_v24 = vpop.eup %3259 }
0x10ef   : > { %v2717_v61 = vmul.f32 %v3260_v24, %v2715_v31  ;;  %vm2723_vm5 = vweird.f32 %v3260_v24 }
0x10f0   : > { %vm2724_vm8 = vmor %vm2722_vm7, %vm2723_vm5 }
0x10f1   : > { %v2718_v62 = vmul.f32 %v3260_v24, %v2717_v61 }
0x10f3   : > { %v2719_v63 = vmul.f32 0.5, %v2718_v62 }
0x10f5   : > { %v2720_v2 = vsub.f32 1.5, %v2719_v63 }
0x10f7   : > { %v2721_v3 = vmul.f32 %v3260_v24, %v2720_v2 }
0x10f9   : > { %v2725_v5 = vsel %vm2724_vm8, %v3260_v24, %v2721_v3 }
0x10fa   : > { %v2726_v7 = vmul.f32 %v2725_v5, %v2709_v57 }
0x10fc   : > { %v2730_v8 = vmul.f32 %v3217_v6, %v2726_v7 }
0x10fe   : > { %v2734_v9 = vadd.f32 %v3218_v56, %v2730_v8 }
0x1100   : > { %2735 = vst.msk [vmem:[%s685_s27] sm:$0xff] %vm801_vm6, %v2734_v9 }
0x1101 PF: > { %s4256_s19 = sld [smem:[#allocation16_spill]] }
0x1107   : > { %s32_s27 = sadd.s32 1, %s4256_s19  }
0x1108   : > { %p29_p7 = scmp.ge.s32.totalorder %s32_s27, 4  }
0x110a   :  { %31 = sbr.rel (!%p29_p7) target bundleno = 11 (0xb), region = 162 }
0x110f   :  { %2755 = vsyncpa [#allocation3], 1 }
0x1110   :  { %2757 = vsyncpa [#allocation3 + $0x1], 1 }
0x1111   :  { %2758 = vsyncpa [#allocation5], 1 }
0x1112   :  { %2759 = vsyncpa [#allocation8], 1 }
0x1113   :  { %2760 = vsyncpa [#allocation11], 1 }

// kernel: _lambda_.3
= control target key start
LH: loop header
LB: loop body
LE: loop exit
PB: predicated region body
PF: predicated region fallthrough
CT: control target
= control target key end

     0   :  { %s6597_s6 = smov 1   ;;  %s6598_s10 = smov 2   ;;  %s8170_s0 = inlined_call_operand.smem [shape: u32[31], index: -1, kind: input, shape index: {}] }
   0x1   :  { %s6668_s5 = sld [smem:[%s8170_s0]]   ;;  %s6599_s14 = smov 3  }
   0x2   :  { %s6673_s9 = sld [smem:[%s8170_s0 + %s6597_s6]]   ;;  %s6600_s18 = smov 4  }
   0x3   :  { %s6678_s13 = sld [smem:[%s8170_s0 + %s6598_s10]]   ;;  %s6601_s22 = smov 5  }
   0x4   :  { %s6683_s17 = sld [smem:[%s8170_s0 + %s6599_s14]]   ;;  %s6602_s26 = smov 6  }
   0x5   :  { %s6688_s21 = sld [smem:[%s8170_s0 + %s6600_s18]]   ;;  %s6603_s30 = smov 7  }
   0x6   :  { %s6693_s25 = sld [smem:[%s8170_s0 + %s6601_s22]]   ;;  %s6604_s4 = smov 8  }
   0x7   :  { %8221 = sst [smem:[#allocation36_spill]] %s6668_s5  ;;  %s6605_s10 = smov 9  }
   0x8   :  { %8222 = sst [smem:[#allocation37_spill]] %s6673_s9  ;;  %s6606_s15 = smov 10  }
   0x9   :  { %8223 = sst [smem:[#allocation38_spill]] %s6678_s13  ;;  %s6607_s20 = smov 11  }
   0xa   :  { %8224 = sst [smem:[#allocation39_spill]] %s6683_s17  ;;  %s6609_s1 = smov 13  }
   0xb   :  { %8225 = sst [smem:[#allocation40_spill]] %s6688_s21  ;;  %s6610_s7 = smov 14  }
   0xc   :  { %s6698_s29 = sld [smem:[%s8170_s0 + %s6602_s26]]   ;;  %s6608_s26 = smov 12  }
   0xd   :  { %s6703_s3 = sld [smem:[%s8170_s0 + %s6603_s30]]   ;;  %s6612_s22 = smov 16  }
   0xe   :  { %s6708_s8 = sld [smem:[%s8170_s0 + %s6604_s4]]   ;;  %s6613_s28 = smov 17  }
   0xf   :  { %s6713_s14 = sld [smem:[%s8170_s0 + %s6605_s10]]  }
  0x10   :  { %s6718_s19 = sld [smem:[%s8170_s0 + %s6606_s15]]   ;;  %s6611_s15 = smov 15  }
  0x11   :  { %s6723_s24 = sld [smem:[%s8170_s0 + %s6607_s20]]  }
  0x12   :  { %s6728_s30 = sld [smem:[%s8170_s0 + %s6608_s26]]  }
  0x13   :  { %8226 = sst [smem:[#allocation41_spill]] %s6703_s3 }
  0x14   :  { %8227 = sst [smem:[#allocation42_spill]] %s6708_s8 }
  0x15   :  { %s6733_s6 = sld [smem:[%s8170_s0 + %s6609_s1]]  }
  0x16   :  { %s6738_s12 = sld [smem:[%s8170_s0 + %s6610_s7]]   ;;  %s6614_s7 = smov 18  }
  0x17   :  { %s6743_s20 = sld [smem:[%s8170_s0 + %s6611_s15]]   ;;  %s6615_s15 = smov 19  }
  0x18   :  { %8228 = sst [smem:[#allocation43_spill]] %s6728_s30 }
  0x19   :  { %s6748_s27 = sld [smem:[%s8170_s0 + %s6612_s22]]   ;;  %s6616_s22 = smov 20  }
  0x1a   :  { %s6753_s4 = sld [smem:[%s8170_s0 + %s6613_s28]]   ;;  %s6617_s28 = smov 21  }
  0x1b   :  { %8229 = sst [smem:[#allocation44_spill]] %s6733_s6 }
  0x1c   :  { %8230 = sst [smem:[#allocation45_spill]] %s6738_s12 }
  0x1d   :  { %s6758_s17 = sld [smem:[%s8170_s0 + %s6614_s7]]   ;;  %s6618_s7 = smov 22  }
  0x1e   :  { %s6763_s6 = sld [smem:[%s8170_s0 + %s6615_s15]]   ;;  %s6619_s15 = smov 23  }
  0x1f   :  { %8231 = sst [smem:[#allocation46_spill]] %s6748_s27 }
  0x20   :  { %8232 = sst [smem:[#allocation47_spill]] %s6753_s4 }
  0x21   :  { %s6768_s30 = sld [smem:[%s8170_s0 + %s6616_s22]]   ;;  %s6620_s22 = smov 24  }
  0x22   :  { %s6773_s12 = sld [smem:[%s8170_s0 + %s6617_s28]]   ;;  %s6621_s28 = smov 25  }
  0x23   :  { %8233 = sst [smem:[#allocation48_spill]] %s6758_s17 }
  0x24   :  { %8234 = sst [smem:[#allocation49_spill]] %s6763_s6 }
  0x25   :  { %s6778_s17 = sld [smem:[%s8170_s0 + %s6618_s7]]   ;;  %s6622_s7 = smov 26  }
  0x26   :  { %s6783_s27 = sld [smem:[%s8170_s0 + %s6619_s15]]   ;;  %s6623_s15 = smov 27  }
  0x27   :  { %8235 = sst [smem:[#allocation50_spill]] %s6768_s30 }
  0x28   :  { %8236 = sst [smem:[#allocation51_spill]] %s6773_s12 }
  0x29   :  { %s6788_s30 = sld [smem:[%s8170_s0 + %s6620_s22]]   ;;  %s6624_s22 = smov 28  }
  0x2a   :  { %s6793_s12 = sld [smem:[%s8170_s0 + %s6621_s28]]   ;;  %s6625_s28 = smov 29  }
  0x2b   :  { %8237 = sst [smem:[#allocation52_spill]] %s6778_s17 }
  0x2c   :  { %s6798_s17 = sld [smem:[%s8170_s0 + %s6622_s7]]   ;;  %s6626_s7 = smov 30  }
  0x2d   :  { %s6803_s9 = sld [smem:[%s8170_s0 + %s6623_s15]]  }
  0x2e   :  { %s6808_s13 = sld [smem:[%s8170_s0 + %s6624_s22]]  }
  0x2f   :  { %s6813_s21 = sld [smem:[%s8170_s0 + %s6625_s28]]  }
  0x32   :  { %8238 = sst [smem:[#allocation53_spill]] %s6798_s17 }
  0x33   :  { %s6818_s17 = sld [smem:[%s8170_s0 + %s6626_s7]]  }
  0x39   :  { %8239 = sst [smem:[#allocation54_spill]] %s6818_s17 }
  0x3a   :  { %66 = vsyncpa [#allocation3], 0 }
  0x3b   :  { %67 = vsyncpa [#allocation6], 0 }
  0x3c   :  { %68 = vsyncpa [#allocation9], 0 }
  0x3d   :  { %69 = vsyncpa [#allocation12], 0 }
  0x3e   :  { %70 = vsyncpa [#allocation15], 0 }
  0x3f   :  { %71 = vsyncpa [#allocation18], 0 }
  0x40   :  { %72 = vsyncpa [#allocation21], 0 }
  0x41   :  { %73 = vsyncpa [#allocation24], 0 }
  0x42   :  { %74 = vsyncpa [#allocation4], 0 }
  0x43   :  { %76 = vsyncpa [#allocation4 + $0x1], 0  ;;  %s6820_s15 = smov 0   ;;  %s6822_s16 = smov 0  }
  0x44   :  { %s6824_s18 = smov 0   ;;  %s6826_s22 = smov 0  }
  0x45 LB: > { %s8240_s6 = sld [smem:[#allocation49_spill]]  ;;  %s6841_s0 = sadd.s32 4294967295, %s6595_s22   ;;  %s6595_s22 = sphi %s6826_s22, %s8292_s22   ;;  %s6591_s18 = sphi %s6824_s18, %s8295_s18   ;;  %s6587_s16 = sphi %s6822_s16, %s8294_s16   ;;  %s6583_s15 = sphi %s6820_s15, %s8293_s15  }
  0x46   : > { %s8241_s4 = sld [smem:[#allocation47_spill]]  ;;  %s5301_s23 = sadd.s32 4294967294, %s6595_s22  }
  0x47   : > { %s8242_s3 = sld [smem:[#allocation41_spill]]  ;;  %s6845_s26 = sadd.s32 1, %s6595_s22  }
  0x48   : > { %s8243_s8 = sld [smem:[#allocation42_spill]]  ;;  %s739_s28 = sadd.s32 1, %s6591_s18 }
  0x49   : > { %8244 = sst [smem:[#allocation55_spill]] %s6583_s15  ;;  %s736_s1 = ssub.s32 %s6595_s22, %s6845_s26 }
  0x4a   : > { %8245 = sst [smem:[#allocation56_spill]] %s6587_s16  ;;  %p749_p0 = scmp.ne.s32.totalorder %s6591_s18, %s6587_s16 }
  0x4b   : > { %8246 = sst [smem:[#allocation57_spill]] %s6591_s18  ;;  %p737_p1 = scmp.eq.s32.totalorder %s736_s1, 0 }
  0x4c   : > { %8247 = sst [smem:[#allocation58_spill]] %s6595_s22  ;;  %p750_p2 = scmp.eq.s32.totalorder %s6841_s0, 1 }
  0x4d   : > { %8248 = sst [smem:[#allocation59_spill]] %s6845_s26  ;;  %p755_p3 = scmp.ne.s32.totalorder %s6587_s16, %s6583_s15 }
  0x4e   : > { %p756_p4 = scmp.eq.s32.totalorder %s5301_s23, 1  ;;  %p6858_p5 = por %p750_p2, %p749_p0 }
  0x4f   : > { %s6856_s2 = scalar_select %p737_p1, %s6591_s18, %s739_s28  }
  0x50   : > { %s8250_s7 = scalar_select %p6858_p5, 1, 0 }
  0x51   : > { %8249 = sst [smem:[#allocation60_spill]] %s6856_s2  ;;  %p6862_p6 = por %p756_p4, %p755_p3 }
  0x52   : > { %8251 = sst [smem:[#allocation61_spill]] %s8250_s7  ;;  %p5302_p7 = scmp.ge.s32.totalorder %s6595_s22, 1 }
  0x53   : > { %s8252_s10 = scalar_select %p6862_p6, 1, 0 }
  0x54   : > { %p763_p8 = scmp.lt.s32.totalorder %s6595_s22, 3  ;;  %p5756_p9 = scmp.eq.s32.totalorder %s6841_s0, 0 }
  0x55   : > { %8253 = sst [smem:[#allocation62_spill]] %s8252_s10  ;;  %s792_s1 = sshll.u32 %s6698_s29, 4  ;;  %s793_s1 = int_to_ptr.hbm [resolvable:$true] %s792_s1 }
  0x56   : > { %p6869_p10 = pnand %p5302_p7, %p763_p8  ;;  %s6627_s23 = smov [#allocation5]  }
  0x57   : > { %s794_s28 = sshll.u32 %s6627_s23, 4  ;;  %s815_s18 = sshll.u32 %s8243_s8, 4  ;;  %s795_s28 = int_to_ptr.vmem [resolvable:$true] %s794_s28  ;;  %s6883_s18 = int_to_ptr.hbm [resolvable:$true] %s815_s18 }
  0x58   : > { %p5706_p11 = pneg %p6869_p10  ;;  %s6051_s26 = sshra.s32 %s793_s1, 4  ;;  %s6052_s26 = int_to_ptr.hbm [resolvable:$true] %s6051_s26 }
  0x59   : > { %s6053_s10 = scalar_lea.hbm %s6052_s26, 4  ;;  %s6058_s23 = scalar_lea.hbm %s6698_s29, 4 }
  0x5a   : > { %p6878_p12 = pnand %p5756_p9, %p5706_p11  ;;  %p6054_p13 = scmp.ne.s32.totalorder %s6052_s26, %s6053_s10 }
  0x5b   : > { %p6059_p3 = scmp.lt.s32.totalorder %s6052_s26, %s6698_s29  ;;  %p6060_p4 = scmp.lt.s32.totalorder %s6058_s23, %s6053_s10 }
  0x5c   : > { %p6887_p0 = pneg %p6878_p12 }
  0x5d   : > { %p6061_p7 = por %p6060_p4, %p6059_p3 }
  0x5e   : > { %p6056_p1 = pnand %p6887_p0, %p6054_p13 }
  0x60   : > { %p6057_p2 = pneg %p6056_p1 }
  0x62   : > { %p6062_p8 = pnand %p6061_p7, %p6057_p2 }
  0x64   : > { %6065 = shalt.err (!%p6062_p8)
}
  0x65   : > { %5712 = dma.hbm_to_vmem [thread:$0]  (!%p6878_p12), %s793_s1, 64, %s795_s28, [#allocation6]  }
  0x66   : > { %s6628_s22 = smov [#allocation8]   ;;  %s843_s17 = sshll.u32 %s6718_s19, 4  ;;  %s6898_s17 = int_to_ptr.hbm [resolvable:$true] %s843_s17 }
  0x67   : > { %s817_s7 = sshll.u32 %s6628_s22, 4  ;;  %s6081_s16 = sshra.s32 %s6883_s18, 4  ;;  %s818_s7 = int_to_ptr.vmem [resolvable:$true] %s817_s7  ;;  %s6082_s16 = int_to_ptr.hbm [resolvable:$true] %s6081_s16 }
  0x68   : > { %s6083_s26 = scalar_lea.hbm %s6082_s16, 32  ;;  %s6088_s10 = scalar_lea.hbm %s8243_s8, 32 }
  0x69   : > { %p6084_p11 = scmp.ne.s32.totalorder %s6082_s16, %s6083_s26  ;;  %p6089_p2 = scmp.lt.s32.totalorder %s6082_s16, %s8243_s8 }
  0x6a   : > { %p6090_p3 = scmp.lt.s32.totalorder %s6088_s10, %s6083_s26 }
  0x6b   : > { %p6086_p13 = pnand %p6084_p11, %p6887_p0 }
  0x6c   : > { %p6091_p4 = por %p6090_p3, %p6089_p2 }
  0x6d   : > { %p6087_p1 = pneg %p6086_p13 }
  0x6f   : > { %p6092_p7 = pnand %p6091_p4, %p6087_p1 }
  0x71   : > { %6095 = shalt.err (!%p6092_p7)
}
  0x72   : > { %s8191_s1 = smov 64   ;;  %s8193_s22 = smov 4  }
  0x73   : > { %5718 = dma.hbm_to_vmem [thread:$0]  (!%p6878_p12), %s6883_s18, 512, %s818_s7, [#allocation9], %s8191_s1, %s8191_s1, %s8193_s22  }
  0x74   : > { %s6631_s28 = smov [#allocation11]   ;;  %s880_s23 = sshll.u32 %s6743_s20, 4  ;;  %s881_s23 = int_to_ptr.hbm [resolvable:$true] %s880_s23 }
  0x75   : > { %s845_s16 = sshll.u32 %s6631_s28, 4  ;;  %s6111_s26 = sshra.s32 %s6898_s17, 4  ;;  %s846_s16 = int_to_ptr.vmem [resolvable:$true] %s845_s16  ;;  %s6112_s26 = int_to_ptr.hbm [resolvable:$true] %s6111_s26 }
  0x76   : > { %s6113_s10 = scalar_lea.hbm %s6112_s26, 32  ;;  %s6118_s8 = scalar_lea.hbm %s6718_s19, 32 }
  0x77   : > { %p6114_p8 = scmp.ne.s32.totalorder %s6112_s26, %s6113_s10  ;;  %p6119_p1 = scmp.lt.s32.totalorder %s6112_s26, %s6718_s19 }
  0x78   : > { %p6120_p2 = scmp.lt.s32.totalorder %s6118_s8, %s6113_s10 }
  0x79   : > { %p6116_p11 = pnand %p6114_p8, %p6887_p0 }
  0x7a   : > { %p6121_p3 = por %p6120_p2, %p6119_p1 }
  0x7b   : > { %p6117_p13 = pneg %p6116_p11 }
  0x7d   : > { %p6122_p4 = pnand %p6121_p3, %p6117_p13 }
  0x7f   : > { %6125 = shalt.err (!%p6122_p4)
}
  0x80   : > { %5724 = dma.hbm_to_vmem [thread:$0]  (!%p6878_p12), %s6898_s17, 512, %s846_s16, [#allocation12], %s8191_s1, %s8191_s1, %s8193_s22  }
  0x81   : > { %s6632_s18 = smov [#allocation14]   ;;  %s914_s28 = sshll.u32 %s8240_s6, 4  ;;  %s6924_s28 = int_to_ptr.hbm [resolvable:$true] %s914_s28 }
  0x82   : > { %s882_s7 = sshll.u32 %s6632_s18, 4  ;;  %s6141_s8 = sshra.s32 %s881_s23, 4  ;;  %s883_s7 = int_to_ptr.vmem [resolvable:$true] %s882_s7  ;;  %s6142_s8 = int_to_ptr.hbm [resolvable:$true] %s6141_s8 }
  0x83   : > { %s6143_s26 = scalar_lea.hbm %s6142_s8, 2  ;;  %s6148_s10 = scalar_lea.hbm %s6743_s20, 2 }
  0x84   : > { %p6144_p7 = scmp.ne.s32.totalorder %s6142_s8, %s6143_s26  ;;  %p6149_p13 = scmp.lt.s32.totalorder %s6142_s8, %s6743_s20 }
  0x85   : > { %p6150_p1 = scmp.lt.s32.totalorder %s6148_s10, %s6143_s26 }
  0x86   : > { %p6146_p8 = pnand %p6144_p7, %p6887_p0 }
  0x87   : > { %p6151_p2 = por %p6150_p1, %p6149_p13 }
  0x88   : > { %p6147_p11 = pneg %p6146_p8 }
  0x8a   : > { %p6152_p3 = pnand %p6151_p2, %p6147_p11 }
  0x8c   : > { %6155 = shalt.err (!%p6152_p3)
}
  0x8d   : > { %s8195_s17 = smov 16   ;;  %s8197_s16 = smov 1  }
  0x8e   : > { %5730 = dma.hbm_to_vmem [thread:$0]  (!%p6878_p12), %s881_s23, 32, %s883_s7, [#allocation15], %s8195_s17, %s8195_s17, %s8197_s16  }
  0x8f   : > { %s951_s18 = sshll.u32 %s6788_s30, 4  ;;  %s6635_s1 = smov [#allocation17]   ;;  %s6936_s18 = int_to_ptr.hbm [resolvable:$true] %s951_s18 }
  0x90   : > { %s916_s8 = sshll.u32 %s6635_s1, 4  ;;  %s6171_s26 = sshra.s32 %s6924_s28, 4  ;;  %s917_s8 = int_to_ptr.vmem [resolvable:$true] %s916_s8  ;;  %s6172_s26 = int_to_ptr.hbm [resolvable:$true] %s6171_s26 }
  0x91   : > { %s6173_s10 = scalar_lea.hbm %s6172_s26, 2  ;;  %s6178_s22 = scalar_lea.hbm %s8240_s6, 2 }
  0x92   : > { %p6174_p4 = scmp.ne.s32.totalorder %s6172_s26, %s6173_s10  ;;  %p6179_p11 = scmp.lt.s32.totalorder %s6172_s26, %s8240_s6 }
  0x93   : > { %p6180_p13 = scmp.lt.s32.totalorder %s6178_s22, %s6173_s10 }
  0x94   : > { %p6176_p7 = pnand %p6174_p4, %p6887_p0 }
  0x95   : > { %p6181_p1 = por %p6180_p13, %p6179_p11 }
  0x96   : > { %p6177_p8 = pneg %p6176_p7 }
  0x98   : > { %p6182_p2 = pnand %p6181_p1, %p6177_p8 }
  0x9a   : > { %6185 = shalt.err (!%p6182_p2)
}
  0x9b   : > { %5736 = dma.hbm_to_vmem [thread:$0]  (!%p6878_p12), %s6924_s28, 32, %s917_s8, [#allocation18], %s8195_s17, %s8195_s17, %s8197_s16  }
  0x9c   : > { %s6636_s1 = smov [#allocation20]   ;;  %s985_s7 = sshll.u32 %s6808_s13, 4  ;;  %s6950_s7 = int_to_ptr.hbm [resolvable:$true] %s985_s7 }
  0x9d   : > { %s953_s23 = sshll.u32 %s6636_s1, 4  ;;  %s6201_s22 = sshra.s32 %s6936_s18, 4  ;;  %s954_s23 = int_to_ptr.vmem [resolvable:$true] %s953_s23  ;;  %s6202_s22 = int_to_ptr.hbm [resolvable:$true] %s6201_s22 }
  0x9e   : > { %s6203_s26 = scalar_lea.hbm %s6202_s22, 128  ;;  %s6208_s10 = scalar_lea.hbm %s6788_s30, 128 }
  0x9f   : > { %p6204_p3 = scmp.ne.s32.totalorder %s6202_s22, %s6203_s26  ;;  %p6209_p8 = scmp.lt.s32.totalorder %s6202_s22, %s6788_s30 }
  0xa0   : > { %p6210_p11 = scmp.lt.s32.totalorder %s6208_s10, %s6203_s26 }
  0xa1   : > { %p6206_p4 = pnand %p6204_p3, %p6887_p0 }
  0xa2   : > { %p6211_p13 = por %p6210_p11, %p6209_p8 }
  0xa3   : > { %p6207_p7 = pneg %p6206_p4 }
  0xa5   : > { %p6212_p1 = pnand %p6211_p13, %p6207_p7 }
  0xa7   : > { %6215 = shalt.err (!%p6212_p1)
}
  0xa8   : > { %s8257_s28 = smov 4   ;;  %s8258_s8 = smov 64  }
  0xa9   : > { %5742 = dma.hbm_to_vmem [thread:$0]  (!%p6878_p12), %s6936_s18, 2048, %s954_s23, [#allocation21], %s8258_s8, %s8258_s8, %s8257_s28  }
  0xaa   : > { %s777_s1 = sshll.u32 %s6693_s25, 4  ;;  %s6637_s17 = smov [#allocation23]   ;;  %s6964_s1 = int_to_ptr.hbm [resolvable:$true] %s777_s1 }
  0xab   : > { %s987_s16 = sshll.u32 %s6637_s17, 4  ;;  %s6231_s22 = sshra.s32 %s6950_s7, 4  ;;  %s988_s16 = int_to_ptr.vmem [resolvable:$true] %s987_s16  ;;  %s6232_s22 = int_to_ptr.hbm [resolvable:$true] %s6231_s22 }
  0xac   : > { %s6233_s26 = scalar_lea.hbm %s6232_s22, 16  ;;  %s6238_s10 = scalar_lea.hbm %s6808_s13, 16 }
  0xad   : > { %p6234_p2 = scmp.ne.s32.totalorder %s6232_s22, %s6233_s26  ;;  %p6239_p7 = scmp.lt.s32.totalorder %s6232_s22, %s6808_s13 }
  0xae   : > { %p6240_p8 = scmp.lt.s32.totalorder %s6238_s10, %s6233_s26 }
  0xaf   : > { %p6236_p3 = pnand %p6234_p2, %p6887_p0 }
  0xb0   : > { %p6241_p11 = por %p6240_p8, %p6239_p7 }
  0xb1   : > { %p6237_p4 = pneg %p6236_p3 }
  0xb3   : > { %p6242_p13 = pnand %p6241_p11, %p6237_p4 }
  0xb5   : > { %6245 = shalt.err (!%p6242_p13)
}
  0xb6   : > { %5748 = dma.hbm_to_vmem [thread:$0]  (!%p6878_p12), %s6950_s7, 256, %s988_s16, [#allocation24], %s8258_s8, %s8258_s8, %s8257_s28  }
  0xb7   : > { %s6638_s17 = smov [#allocation2]   ;;  %s804_s23 = sshll.u32 %s8242_s3, 4  ;;  %s6978_s23 = int_to_ptr.hbm [resolvable:$true] %s804_s23 }
  0xb8   : > { %s779_s18 = sshll.u32 %s6638_s17, 4  ;;  %s6261_s22 = sshra.s32 %s6964_s1, 4  ;;  %s780_s18 = int_to_ptr.vmem [resolvable:$true] %s779_s18  ;;  %s6262_s22 = int_to_ptr.hbm [resolvable:$true] %s6261_s22 }
  0xb9   : > { %s6263_s26 = scalar_lea.hbm %s6262_s22, 24  ;;  %s6268_s10 = scalar_lea.hbm %s6693_s25, 24 }
  0xba   : > { %p6264_p1 = scmp.ne.s32.totalorder %s6262_s22, %s6263_s26  ;;  %p6269_p4 = scmp.lt.s32.totalorder %s6262_s22, %s6693_s25 }
  0xbb   : > { %p6270_p7 = scmp.lt.s32.totalorder %s6268_s10, %s6263_s26 }
  0xbc   : > { %p6266_p2 = pnand %p6264_p1, %p6887_p0 }
  0xbd   : > { %p6271_p8 = por %p6270_p7, %p6269_p4 }
  0xbe   : > { %p6267_p3 = pneg %p6266_p2 }
  0xc0   : > { %p6272_p11 = pnand %p6271_p8, %p6267_p3 }
  0xc2   : > { %6275 = shalt.err (!%p6272_p11)
}
  0xc3   : > { %5709 = dma.hbm_to_vmem [thread:$0]  (!%p6878_p12), %s6964_s1, 384, %s780_s18, [#allocation3], %s8258_s8, %s8258_s8, %s8257_s28  }
  0xc4   : > { %s829_s16 = sshll.u32 %s6713_s14, 4  ;;  %s6639_s7 = smov [#allocation7]   ;;  %s6992_s16 = int_to_ptr.hbm [resolvable:$true] %s829_s16 }
  0xc5   : > { %s806_s17 = sshll.u32 %s6639_s7, 4  ;;  %s6291_s22 = sshra.s32 %s6978_s23, 4  ;;  %s807_s17 = int_to_ptr.vmem [resolvable:$true] %s806_s17  ;;  %s6292_s22 = int_to_ptr.hbm [resolvable:$true] %s6291_s22 }
  0xc6   : > { %s6293_s26 = scalar_lea.hbm %s6292_s22, 1  ;;  %s6298_s10 = scalar_lea.hbm %s8242_s3, 1 }
  0xc7   : > { %p6294_p13 = scmp.ne.s32.totalorder %s6292_s22, %s6293_s26  ;;  %p6299_p3 = scmp.lt.s32.totalorder %s6292_s22, %s8242_s3 }
  0xc8   : > { %p6300_p4 = scmp.lt.s32.totalorder %s6298_s10, %s6293_s26 }
  0xc9   : > { %p6296_p1 = pnand %p6294_p13, %p6887_p0 }
  0xca   : > { %p6301_p7 = por %p6300_p4, %p6299_p3 }
  0xcb   : > { %p6297_p2 = pneg %p6296_p1 }
  0xcd   : > { %p6302_p8 = pnand %p6301_p7, %p6297_p2 }
  0xcf   : > { %6305 = shalt.err (!%p6302_p8)
}
  0xd0   : > { %5715 = dma.hbm_to_vmem [thread:$0]  (!%p6878_p12), %s6978_s23, 16, %s807_s17, [#allocation6]  }
  0xd1   : > { %s6640_s28 = smov [#allocation10]   ;;  %s857_s1 = sshll.u32 %s6723_s24, 4  ;;  %s7003_s1 = int_to_ptr.hbm [resolvable:$true] %s857_s1 }
  0xd2   : > { %s831_s8 = sshll.u32 %s6640_s28, 4  ;;  %s6321_s18 = sshra.s32 %s6992_s16, 4  ;;  %s832_s8 = int_to_ptr.vmem [resolvable:$true] %s831_s8  ;;  %s6322_s18 = int_to_ptr.hbm [resolvable:$true] %s6321_s18 }
  0xd3   : > { %s6323_s7 = scalar_lea.hbm %s6322_s18, 2  ;;  %s6328_s22 = scalar_lea.hbm %s6713_s14, 2 }
  0xd4   : > { %p6324_p11 = scmp.ne.s32.totalorder %s6322_s18, %s6323_s7  ;;  %p6329_p2 = scmp.lt.s32.totalorder %s6322_s18, %s6713_s14 }
  0xd5   : > { %p6330_p3 = scmp.lt.s32.totalorder %s6328_s22, %s6323_s7 }
  0xd6   : > { %p6326_p13 = pnand %p6324_p11, %p6887_p0 }
  0xd7   : > { %p6331_p4 = por %p6330_p3, %p6329_p2 }
  0xd8   : > { %p6327_p1 = pneg %p6326_p13 }
  0xda   : > { %p6332_p7 = pnand %p6331_p4, %p6327_p1 }
  0xdc   : > { %6335 = shalt.err (!%p6332_p7)
}
  0xdd   : > { %s8259_s23 = smov 1   ;;  %s8260_s17 = smov 16  }
  0xde   : > { %5721 = dma.hbm_to_vmem [thread:$0]  (!%p6878_p12), %s6992_s16, 32, %s832_s8, [#allocation9], %s8260_s17, %s8260_s17, %s8259_s23  }
  0xdf   : > { %s897_s26 = sshll.u32 %s8241_s4, 4  ;;  %s6641_s10 = smov [#allocation13]   ;;  %s7017_s26 = int_to_ptr.hbm [resolvable:$true] %s897_s26 }
  0xe0   : > { %s859_s28 = sshll.u32 %s6641_s10, 4  ;;  %s6351_s18 = sshra.s32 %s7003_s1, 4  ;;  %s860_s28 = int_to_ptr.vmem [resolvable:$true] %s859_s28  ;;  %s6352_s18 = int_to_ptr.hbm [resolvable:$true] %s6351_s18 }
  0xe1   : > { %s6353_s7 = scalar_lea.hbm %s6352_s18, 2  ;;  %s6358_s22 = scalar_lea.hbm %s6723_s24, 2 }
  0xe2   : > { %p6354_p8 = scmp.ne.s32.totalorder %s6352_s18, %s6353_s7  ;;  %p6359_p1 = scmp.lt.s32.totalorder %s6352_s18, %s6723_s24 }
  0xe3   : > { %p6360_p2 = scmp.lt.s32.totalorder %s6358_s22, %s6353_s7 }
  0xe4   : > { %p6356_p11 = pnand %p6354_p8, %p6887_p0 }
  0xe5   : > { %p6361_p3 = por %p6360_p2, %p6359_p1 }
  0xe6   : > { %p6357_p13 = pneg %p6356_p11 }
  0xe8   : > { %p6362_p4 = pnand %p6361_p3, %p6357_p13 }
  0xea   : > { %6365 = shalt.err (!%p6362_p4)
}
  0xeb   : > { %5727 = dma.hbm_to_vmem [thread:$0]  (!%p6878_p12), %s7003_s1, 32, %s860_s28, [#allocation12], %s8260_s17, %s8260_s17, %s8259_s23  }
  0xec   : > { %s6642_s16 = smov [#allocation16]   ;;  %s937_s10 = sshll.u32 %s6783_s27, 4  ;;  %s7031_s10 = int_to_ptr.hbm [resolvable:$true] %s937_s10 }
  0xed   : > { %s899_s8 = sshll.u32 %s6642_s16, 4  ;;  %s6381_s18 = sshra.s32 %s7017_s26, 4  ;;  %s900_s8 = int_to_ptr.vmem [resolvable:$true] %s899_s8  ;;  %s6382_s18 = int_to_ptr.hbm [resolvable:$true] %s6381_s18 }
  0xee   : > { %s6383_s7 = scalar_lea.hbm %s6382_s18, 2  ;;  %s6388_s22 = scalar_lea.hbm %s8241_s4, 2 }
  0xef   : > { %p6384_p7 = scmp.ne.s32.totalorder %s6382_s18, %s6383_s7  ;;  %p6389_p13 = scmp.lt.s32.totalorder %s6382_s18, %s8241_s4 }
  0xf0   : > { %p6390_p1 = scmp.lt.s32.totalorder %s6388_s22, %s6383_s7 }
  0xf1   : > { %p6386_p8 = pnand %p6384_p7, %p6887_p0 }
  0xf2   : > { %p6391_p2 = por %p6390_p1, %p6389_p13 }
  0xf3   : > { %p6387_p11 = pneg %p6386_p8 }
  0xf5   : > { %p6392_p3 = pnand %p6391_p2, %p6387_p11 }
  0xf7   : > { %6395 = shalt.err (!%p6392_p3)
}
  0xf8   : > { %5733 = dma.hbm_to_vmem [thread:$0]  (!%p6878_p12), %s7017_s26, 32, %s900_s8, [#allocation15], %s8260_s17, %s8260_s17, %s8259_s23  }
  0xf9   : > { %s965_s1 = sshll.u32 %s6793_s12, 4  ;;  %s6643_s28 = smov [#allocation19]   ;;  %s7045_s1 = int_to_ptr.hbm [resolvable:$true] %s965_s1 }
  0xfa   : > { %s939_s16 = sshll.u32 %s6643_s28, 4  ;;  %s6411_s18 = sshra.s32 %s7031_s10, 4  ;;  %s940_s16 = int_to_ptr.vmem [resolvable:$true] %s939_s16  ;;  %s6412_s18 = int_to_ptr.hbm [resolvable:$true] %s6411_s18 }
  0xfb   : > { %s6413_s7 = scalar_lea.hbm %s6412_s18, 2  ;;  %s6418_s22 = scalar_lea.hbm %s6783_s27, 2 }
  0xfc   : > { %p6414_p4 = scmp.ne.s32.totalorder %s6412_s18, %s6413_s7  ;;  %p6419_p11 = scmp.lt.s32.totalorder %s6412_s18, %s6783_s27 }
  0xfd   : > { %p6420_p13 = scmp.lt.s32.totalorder %s6418_s22, %s6413_s7 }
  0xfe   : > { %p6416_p7 = pnand %p6414_p4, %p6887_p0 }
  0xff   : > { %p6421_p1 = por %p6420_p13, %p6419_p11 }
 0x100   : > { %p6417_p8 = pneg %p6416_p7 }
 0x102   : > { %p6422_p2 = pnand %p6421_p1, %p6417_p8 }
 0x104   : > { %6425 = shalt.err (!%p6422_p2)
}
 0x105   : > { %5739 = dma.hbm_to_vmem [thread:$0]  (!%p6878_p12), %s7031_s10, 32, %s940_s16, [#allocation18], %s8260_s17, %s8260_s17, %s8259_s23  }
 0x106   : > { %s6644_s26 = smov [#allocation22]   ;;  %s1000_s28 = sshll.u32 %s6813_s21, 4  ;;  %s1001_s28 = int_to_ptr.hbm [resolvable:$true] %s1000_s28 }
 0x107   : > { %s967_s8 = sshll.u32 %s6644_s26, 4  ;;  %s6441_s18 = sshra.s32 %s7045_s1, 4  ;;  %s968_s8 = int_to_ptr.vmem [resolvable:$true] %s967_s8  ;;  %s6442_s18 = int_to_ptr.hbm [resolvable:$true] %s6441_s18 }
 0x108   : > { %s6443_s7 = scalar_lea.hbm %s6442_s18, 2  ;;  %s6448_s22 = scalar_lea.hbm %s6793_s12, 2 }
 0x109   : > { %p6444_p3 = scmp.ne.s32.totalorder %s6442_s18, %s6443_s7  ;;  %p6449_p8 = scmp.lt.s32.totalorder %s6442_s18, %s6793_s12 }
 0x10a   : > { %p6450_p11 = scmp.lt.s32.totalorder %s6448_s22, %s6443_s7 }
 0x10b   : > { %p6446_p4 = pnand %p6444_p3, %p6887_p0 }
 0x10c   : > { %p6451_p13 = por %p6450_p11, %p6449_p8 }
 0x10d   : > { %p6447_p7 = pneg %p6446_p4 }
 0x10f   : > { %p6452_p1 = pnand %p6451_p13, %p6447_p7 }
 0x111   : > { %6455 = shalt.err (!%p6452_p1)
}
 0x112   : > { %5745 = dma.hbm_to_vmem [thread:$0]  (!%p6878_p12), %s7045_s1, 32, %s968_s8, [#allocation21], %s8260_s17, %s8260_s17, %s8259_s23  }
 0x113   : > { %s6645_s10 = smov [#allocation25]   ;;  %s6471_s26 = sshra.s32 %s1001_s28, 4  ;;  %s6472_s26 = int_to_ptr.hbm [resolvable:$true] %s6471_s26 }
 0x114   : > { %s1002_s16 = sshll.u32 %s6645_s10, 4  ;;  %s6473_s18 = scalar_lea.hbm %s6472_s26, 1  ;;  %s1003_s16 = int_to_ptr.vmem [resolvable:$true] %s1002_s16 }
 0x115   : > { %p6474_p2 = scmp.ne.s32.totalorder %s6472_s26, %s6473_s18  ;;  %s6478_s7 = scalar_lea.hbm %s6813_s21, 1 }
 0x116   : > { %p6479_p7 = scmp.lt.s32.totalorder %s6472_s26, %s6813_s21  ;;  %p6480_p8 = scmp.lt.s32.totalorder %s6478_s7, %s6473_s18 }
 0x117   : > { %p6476_p3 = pnand %p6474_p2, %p6887_p0 }
 0x118   : > { %p6481_p11 = por %p6480_p8, %p6479_p7 }
 0x119   : > { %p6477_p4 = pneg %p6476_p3 }
 0x11b   : > { %p6482_p13 = pnand %p6481_p11, %p6477_p4 }
 0x11d   : > { %6485 = shalt.err (!%p6482_p13)
}
 0x11e   : > { %5751 = dma.hbm_to_vmem [thread:$0]  (!%p6878_p12), %s1001_s28, 16, %s1003_s16, [#allocation24]  }
 0x11f   : > { %1043 = sbr.rel (%p6869_p10) target bundleno = 7499 (0x1d4b), region = 140 }
 0x124   : > { %6546 = dma.done.wait (%p5756_p9), [#allocation3], 384  }
 0x125   : > { %6548 = vsyncadd (%p5756_p9), [#allocation3], 4294966912 }
 0x126   : > { %6550 = dma.done.wait (%p5756_p9), [#allocation6], 80  }
 0x127   : > { %6552 = vsyncadd (%p5756_p9), [#allocation6], 4294967216 }
 0x128   : > { %6554 = dma.done.wait (%p5756_p9), [#allocation9], 544  }
 0x129   : > { %6556 = vsyncadd (%p5756_p9), [#allocation9], 4294966752 }
 0x12a   : > { %6558 = dma.done.wait (%p5756_p9), [#allocation12], 544  }
 0x12b   : > { %6560 = vsyncadd (%p5756_p9), [#allocation12], 4294966752 }
 0x12c   : > { %6562 = dma.done.wait (%p5756_p9), [#allocation15], 64  }
 0x12d   : > { %6564 = vsyncadd (%p5756_p9), [#allocation15], 4294967232 }
 0x12e   : > { %6566 = dma.done.wait (%p5756_p9), [#allocation18], 64  }
 0x12f   : > { %6568 = vsyncadd (%p5756_p9), [#allocation18], 4294967232 }
 0x130   : > { %6570 = dma.done.wait (%p5756_p9), [#allocation21], 2080  }
 0x131   : > { %6572 = vsyncadd (%p5756_p9), [#allocation21], 4294965216 }
 0x132   : > { %6574 = dma.done.wait (%p5756_p9), [#allocation24], 272  }
 0x133   : > { %6576 = vsyncadd (%p5756_p9), [#allocation24], 4294967024  ;;  %s8261_s5 = sld [smem:[#allocation36_spill]]  ;;  %p1203_p10 = scmp.lt.s32.totalorder %s6841_s0, 1  ;;  %v6646_v0 = vmov 0   ;;  %vm1248_vm0 = vcmask 1042432   ;;  %v1232_v13 = vlaneseq }
 0x134   : > { %5882 = vset.pattern.permute.xlu0 %v6646_v0  ;;  %v1227_v5 = vld [vmem:[#allocation5] sm:$0x7]  ;;  %s6647_s23 = smov 127   ;;  %v5596_v9 = vld [vmem:[#allocation2 + $0x10] sm:$0xff]  ;;  %v5595_v10 = vld [vmem:[#allocation2 + $0x8] sm:$0xff]  ;;  %vm1244_vm2 = vcmask 48128  }
 0x135   : > { %s1204_s15 = scalar_select %p1203_p10, %s6841_s0, 1  ;;  %v1250_v6 = vsel %vm1248_vm0, %v1227_v5, 0  ;;  %1292 = vmatpush.bf16.msra.mxu1 %v5596_v9  ;;  %v5594_v11 = vld [vmem:[#allocation2] sm:$0xff]  ;;  %v1233_v14 = vand.u32 127, %v1232_v13  ;;  %v6648_v16 = vmov 0.0   ;;  %vm1283_vm4 = vcmask 392192  }
 0x136   : > { %1259 = vmatpush.bf16.msra.mxu3 %v1250_v6  ;;  %s8262_s17 = sld [smem:[#allocation40_spill]]  ;;  %v5598_v19 = vld [vmem:[#allocation8 + $0x8] sm:$0xff]  ;;  %v5597_v20 = vld [vmem:[#allocation8] sm:$0xff]  ;;  %v5943_v22 = vld [vmem:[#allocation7] ss:$0 sm:$0xff]  ;;  %vm1336_vm5 = vcmask 261120  }
 0x137   : > { %s7112_s2 = sshll.u32 %s1204_s15, 3  ;;  %1346 = vmatpush.bf16.msra.mxu2 %v5598_v19  ;;  %v5944_v31 = vld [vmem:[#allocation10] ss:$0 sm:$0xff]  ;;  %s8201_s1 = smov 104   ;;  %v6653_v41 = vmov 1983009808  }
 0x138   : > { %s8209_s8 = smov 120   ;;  %s8211_s28 = smov 112   ;;  %v1369_v42 = vunpack.c.l.s4 %v6653_v41  ;;  %vm1364_vm6 = vcmask 1047556   ;;  %v6654_v55 = vmov 1934713408   ;;  %vm1730_vm7 = vcmask 64512  }
 0x139   : > { %s1206_s11 = scalar_lea.vmem %s8261_s5, %s7112_s2  ;;  %1293 = vmatpush.bf16.msra.mxu1 %v5595_v10  ;;  %s8213_s22 = smov 96   ;;  %v1393_v56 = vunpack.c.l.s4 %v6654_v55  ;;  %vm1866_vm8 = vcmask 1043456   ;;  %vm2063_vm9 = vcmask 130048   ;;  %vm2065_vm10 = vcmask 195584  }
 0x13a   : > { %v1220_v1 = vld [vmem:[%s1206_s11] sm:$0xff]  ;;  %v7136_v46 = vunpack.c.0.s8 %v1369_v42  ;;  %s8263_s10 = sld [smem:[#allocation38_spill]]  ;;  %s8199_s26 = smov 64  }
 0x13b   : > { %v1231_v2 = vpack.c.bf16 %v1220_v1, %v1220_v1  ;;  %vm5639_vm1 = vcmp.lt.s32.totalorder %v1220_v1, 0  ;;  %v5640_v3 = vceil.f32 %v1220_v1  ;;  %v5641_v4 = vfloor.f32 %v1220_v1  ;;  %1347 = vmatpush.bf16.msra.mxu2 %v5597_v20  ;;  %s8207_s18 = smov 16   ;;  %s8205_s7 = smov 8  }
 0x13c   : > { %v1229_v25 = vld [vmem:[%s8262_s17] sm:$0xff]  ;;  %v7146_v61 = vunpack.c.0.s8 %v1393_v56  ;;  %s8203_s15 = smov 24   ;;  %s8264_s11 = sld [smem:[#allocation37_spill]] }
 0x13d   : > { %1242 = vrot.lane.b32.xlu0 %v1231_v2, %s6647_s23  ;;  %v5642_v7 = vsel %vm5639_vm1, %v5640_v3, %v5641_v4  ;;  %1294 = vmatpush.bf16.msra.mxu1 %v5594_v11  ;;  %s8265_s23 = sld [smem:[#allocation46_spill]]  ;;  %s8281_s3 = smov 96  }
 0x13e   : > { %v5643_v8 = vcvt.f32.s32 %v5642_v7  ;;  %s8284_s4 = smov 8   ;;  %s8285_s5 = smov 24  }
 0x140   : > { %s7228_s16 = scalar_lea.vmem %s8263_s10, %s7112_s2  ;;  %s8266_s10 = sld [smem:[#allocation45_spill]] }
 0x142   : > { %s1210_s17 = scalar_lea.vmem %s8264_s11, %s7112_s2  ;;  %s8267_s11 = sld [smem:[#allocation43_spill]] }
 0x145   : > { %1235 = vperm.xlu0 %5882, %v5643_v8  }
 0x1af   : > { %v1243_v12 = vpop.permute.xlu0 %1242 }
 0x1b0   : > { %5341 = vmatmul.msk.bf16.vlgmr.msra.gmra.mxu3 %vm1244_vm2, %v1243_v12 }
 0x1b7   : > { %v1236_v15 = vpop.permute.xlu0 %1235 }
 0x1b8   : > { %vm1237_vm3 = vcmp.eq.s32.totalorder %v1233_v14, %v1236_v15 }
 0x1b9   : > { %v5340_v17 = vsel %vm1237_vm3, 1.0, %v6648_v16 }
 0x1ba   : > { %v1240_v18 = vpack.c.bf16 %v5340_v17, %v5340_v17 }
 0x1bc   : > { %5354 = vmatmul.msk.bf16.vlgmr.msra.gmra.mxu1 %vm1283_vm4, %v1240_v18 }
 0x233   : > { %v1261_v21 = vpop.f32.mrf.mxu3 }
 0x239   : > { %v1296_v23 = vpop.f32.mrf.mxu1 }
 0x23a   : > { %v1297_v24 = vadd.f32 %v1296_v23, %v1261_v21 }
 0x23b   : > { %v1263_v26 = vpop.f32.mrf.mxu3 }
 0x23c   : > { %v1303_v27 = vadd.f32 %v5943_v22, %v1297_v24 }
 0x23e   : > { %v7118_v28 = vadd.f32 %v1303_v27, %v1229_v25 }
 0x240   : > { %v1320_v29 = vpack.c.bf16 %v7118_v28, %v7118_v28 }
 0x241   : > { %v1298_v30 = vpop.f32.mrf.mxu1 }
 0x242   : > { %5363 = vmatmul.msk.bf16.vlgmr.msra.gmra.mxu2 %vm1336_vm5, %v1320_v29 }
 0x2c5   : > { %v1349_v32 = vpop.f32.mrf.mxu2 }
 0x2c6   : > { %v1350_v33 = vadd.f32 %v5944_v31, %v1349_v32 }
 0x2c8   : > { %1360 = vrot.lane.b32.xlu2 %v1350_v33, %s8201_s1  ;;  %1354 = vrot.lane.b32.xlu1 %v1350_v33, %s8209_s8  ;;  %v1366_v43 = vrot.slane %v1350_v33, 4 }
 0x2cd   : > { %v1351_v34 = vpop.f32.mrf.mxu2 }
 0x2d0   : > { %1357 = vrot.lane.b32.xlu1 %v1350_v33, %s8211_s28 }
 0x322   : > { %v1361_v37 = vpop.permute.xlu2 %1360 }
 0x323   : > { %v1376_v50 = vrot.slane %v1361_v37, 4 }
 0x33a   : > { %v1355_v35 = vpop.permute.xlu1 %1354 }
 0x33b   : > { %v7126_v36 = vpack.i.bf16 %v1355_v35, %v1350_v33  ;;  %v1378_v47 = vrot.slane %v1355_v35, 4  ;;  %v1377_v51 = vsel %vm1364_vm6, %v1376_v50, %v1355_v35 }
 0x33c   : > { %v1383_v57 = vperm.slane %v1377_v51, %v7136_v46 }
 0x33d   : > { %5884 = vrot.lane.b32.xlu2 %v7126_v36, %s8213_s22  ;;  %v1379_v52 = vsel %vm1364_vm6, %v1361_v37, %v1378_v47 }
 0x33e   : > { %v1387_v58 = vperm.slane %v1379_v52, %v7136_v46  ;;  %v1388_v62 = vrot.slane %v1383_v57, 4 }
 0x340   : > { %v1400_v63 = vrot.slane %v1387_v58, 4 }
 0x342   : > { %v1358_v38 = vpop.permute.xlu1 %1357 }
 0x343   : > { %v7130_v39 = vpack.i.bf16 %v1361_v37, %v1358_v38  ;;  %v1363_v40 = vrot.slane %v1358_v38, 4  ;;  %v1367_v45 = vsel %vm1364_vm6, %v1358_v38, %v1366_v43 }
 0x344   : > { %v1375_v49 = vperm.slane %v1367_v45, %v7136_v46 }
 0x345   : > { %5889 = vrot.lane.b32.xlu1 %v7130_v39, %s8213_s22  ;;  %v1365_v44 = vsel %vm1364_vm6, %v1363_v40, %v1350_v33 }
 0x346   : > { %v1371_v48 = vperm.slane %v1365_v44, %v7136_v46  ;;  %v1402_v54 = vrot.slane %v1375_v49, 4  ;;  %v1401_v4 = vsel %vm1364_vm6, %v1400_v63, %v1375_v49 }
 0x347   : > { %v1407_v8 = vperm.slane %v1401_v4, %v7146_v61 }
 0x348   : > { %v1390_v53 = vrot.slane %v1371_v48, 4  ;;  %v1403_v60 = vsel %vm1364_vm6, %v1387_v58, %v1402_v54  ;;  %v1389_v3 = vsel %vm1364_vm6, %v1388_v62, %v1371_v48 }
 0x349   : > { %v1411_v1 = vperm.slane %v1403_v60, %v7146_v61  ;;  %v1395_v7 = vperm.slane %v1389_v3, %v7146_v61  ;;  %v1416_v18 = vrot.slane %v1407_v8, 4 }
 0x34a   : > { %v1391_v59 = vsel %vm1364_vm6, %v1383_v57, %v1390_v53 }
 0x34b   : > { %v1399_v0 = vperm.slane %v1391_v59, %v7146_v61  ;;  %v1418_v10 = vrot.slane %v1411_v1, 4  ;;  %v1412_v16 = vrot.slane %v1395_v7, 4  ;;  %v1417_v38 = vsel %vm1364_vm6, 0.0, %v1416_v18 }
 0x34d   : > { %v1414_v9 = vrot.slane %v1399_v0, 4  ;;  %v1419_v19 = vsel %vm1364_vm6, 0.0, %v1418_v10  ;;  %v1431_v24 = vsel %vm1364_vm6, %v1418_v10, %v1407_v8  ;;  %v1413_v37 = vsel %vm1364_vm6, 0.0, %v1412_v16 }
 0x34e   : > { %v1436_v29 = vrot.slane %v1419_v19, 4  ;;  %v1435_v44 = vperm.slane %v1431_v24, %v7136_v46 }
 0x34f   : > { %v1415_v17 = vsel %vm1364_vm6, 0.0, %v1414_v9  ;;  %v1420_v51 = vsel %vm1364_vm6, %v1414_v9, %v1395_v7 }
 0x350   : > { %v1425_v27 = vrot.slane %v1415_v17, 4  ;;  %v1437_v45 = vsel %vm1364_vm6, %v1436_v29, %v1417_v38  ;;  %v1424_v62 = vperm.slane %v1420_v51, %v7136_v46 }
 0x351   : > { %v1441_v57 = vperm.slane %v1437_v45, %v7136_v46 }
 0x352   : > { %v1426_v52 = vsel %vm1364_vm6, %v1425_v27, %v1413_v37  ;;  %v1444_v16 = vrot.slane %v1424_v62, 4 }
 0x353   : > { %v1430_v1 = vperm.slane %v1426_v52, %v7136_v46  ;;  %v1454_v10 = vrot.slane %v1441_v57, 4 }
 0x397   : > { %v5885_v2 = vpop.permute.xlu2 %5884 }
 0x398   : > { %v5887_v5 = vunpack.i.h.bf16 %v5885_v2  ;;  %v5886_v6 = vunpack.i.l.bf16 %v5885_v2  ;;  %v1456_v2 = vrot.slane %v1435_v44, 4 }
 0x39a   : > { %v1504_v12 = vrot.slane %v5887_v5, 4  ;;  %v1492_v13 = vrot.slane %v5886_v6, 4  ;;  %v1457_v17 = vsel %vm1364_vm6, %v1441_v57, %v1456_v2 }
 0x39b   : > { %v1465_v27 = vperm.slane %v1457_v17, %v7146_v61 }
 0x3b7   : > { %v5890_v11 = vpop.permute.xlu1 %5889 }
 0x3b8   : > { %v5892_v14 = vunpack.i.h.bf16 %v5890_v11  ;;  %v5891_v15 = vunpack.i.l.bf16 %v5890_v11 }
 0x3ba   : > { %v1502_v20 = vrot.slane %v5892_v14, 4  ;;  %v1505_v21 = vsel %vm1364_vm6, %v5892_v14, %v1504_v12  ;;  %v1490_v22 = vrot.slane %v5891_v15, 4  ;;  %v1493_v23 = vsel %vm1364_vm6, %v5891_v15, %v1492_v13 }
 0x3bb   : > { %v1513_v25 = vperm.slane %v1505_v21, %v7136_v46  ;;  %v1501_v26 = vperm.slane %v1493_v23, %v7136_v46  ;;  %v1442_v21 = vrot.slane %v1430_v1, 4  ;;  %v1455_v23 = vsel %vm1364_vm6, %v1454_v10, %v1435_v44 }
 0x3bc   : > { %v1503_v30 = vsel %vm1364_vm6, %v1502_v20, %v5887_v5  ;;  %v1491_v31 = vsel %vm1364_vm6, %v1490_v22, %v5886_v6  ;;  %v1470_v44 = vrot.slane %v1465_v27, 4 }
 0x3bd   : > { %v1509_v32 = vperm.slane %v1503_v30, %v7136_v46  ;;  %v1526_v33 = vrot.slane %v1513_v25, 4  ;;  %v1497_v34 = vperm.slane %v1491_v31, %v7136_v46  ;;  %v1528_v35 = vrot.slane %v1501_v26, 4 }
 0x3bf   : > { %v1514_v40 = vrot.slane %v1509_v32, 4  ;;  %v1516_v41 = vrot.slane %v1497_v34, 4  ;;  %v1527_v42 = vsel %vm1364_vm6, %v1526_v33, %v1501_v26  ;;  %v1529_v43 = vsel %vm1364_vm6, %v1513_v25, %v1528_v35 }
 0x3c0   : > { %v1533_v47 = vperm.slane %v1527_v42, %v7146_v61  ;;  %v1537_v48 = vperm.slane %v1529_v43, %v7146_v61  ;;  %v1461_v35 = vperm.slane %v1455_v23, %v7146_v61 }
 0x3c1   : > { %v1515_v49 = vsel %vm1364_vm6, %v1514_v40, %v1497_v34  ;;  %v1517_v50 = vsel %vm1364_vm6, %v1509_v32, %v1516_v41  ;;  %v1445_v32 = vsel %vm1364_vm6, %v1430_v1, %v1444_v16  ;;  %v1443_v34 = vsel %vm1364_vm6, %v1442_v21, %v1424_v62 }
 0x3c2   : > { %v1521_v53 = vperm.slane %v1515_v49, %v7146_v61  ;;  %v1525_v54 = vperm.slane %v1517_v50, %v7146_v61  ;;  %v1542_v55 = vrot.slane %v1533_v47, 4  ;;  %v1544_v56 = vrot.slane %v1537_v48, 4 }
 0x3c3   : > { %v1453_v43 = vperm.slane %v1445_v32, %v7146_v61  ;;  %v1449_v49 = vperm.slane %v1443_v34, %v7146_v61 }
 0x3c4   : > { %v1538_v58 = vrot.slane %v1521_v53, 4  ;;  %v1540_v59 = vrot.slane %v1525_v54, 4  ;;  %v1545_v60 = vsel %vm1364_vm6, 0.0, %v1544_v56  ;;  %v1557_v63 = vsel %vm1364_vm6, %v1544_v56, %v1533_v47 }
 0x3c5   : > { %v1562_v0 = vrot.slane %v1545_v60, 4  ;;  %v1543_v4 = vsel %vm1364_vm6, 0.0, %v1542_v55  ;;  %v1561_v6 = vperm.slane %v1557_v63, %v7136_v46  ;;  %v1466_v54 = vrot.slane %v1461_v35, 4 }
 0x3c6   : > { %v1541_v3 = vsel %vm1364_vm6, 0.0, %v1540_v59  ;;  %v1546_v5 = vsel %vm1364_vm6, %v1540_v59, %v1521_v53  ;;  %v1539_v11 = vsel %vm1364_vm6, 0.0, %v1538_v58  ;;  %v1471_v58 = vsel %vm1364_vm6, %v1470_v44, %v1453_v43 }
 0x3c7   : > { %v1551_v7 = vrot.slane %v1541_v3, 4  ;;  %v1550_v8 = vperm.slane %v1546_v5, %v7136_v46  ;;  %v1563_v9 = vsel %vm1364_vm6, %v1562_v0, %v1543_v4  ;;  %v1582_v13 = vrot.slane %v1561_v6, 4 }
 0x3c8   : > { %v1567_v12 = vperm.slane %v1563_v9, %v7136_v46  ;;  %v1468_v59 = vrot.slane %v1449_v49, 4  ;;  %v1467_v62 = vsel %vm1364_vm6, %v1466_v54, %v1449_v49  ;;  %v1476_v63 = vpack.c.bf16 %v1471_v58, %v1471_v58  ;;  %v1306_v9 = vld [vmem:[%s7228_s16] sm:$0xff] }
 0x3c9   : > { %v1552_v14 = vsel %vm1364_vm6, %v1551_v7, %v1539_v11  ;;  %v1570_v15 = vrot.slane %v1550_v8, 4  ;;  %v1474_v1 = vpack.c.bf16 %v1467_v62, %v1467_v62  ;;  %v1472_v3 = vrot.slane %v1453_v43, 4 }
 0x3ca   : > { %v1556_v18 = vperm.slane %v1552_v14, %v7136_v46  ;;  %v1583_v19 = vsel %vm1364_vm6, %v1567_v12, %v1582_v13  ;;  %v1580_v20 = vrot.slane %v1567_v12, 4  ;;  %v1469_v0 = vsel %vm1364_vm6, %v1461_v35, %v1468_v59 }
 0x3cb   : > { %v1591_v22 = vperm.slane %v1583_v19, %v7146_v61  ;;  %v1475_v2 = vpack.c.bf16 %v1469_v0, %v1469_v0  ;;  %v1473_v4 = vsel %vm1364_vm6, %v1465_v27, %v1472_v3 }
 0x3cc   : > { %v1571_v24 = vsel %vm1364_vm6, %v1556_v18, %v1570_v15  ;;  %v1568_v25 = vrot.slane %v1556_v18, 4  ;;  %v1581_v26 = vsel %vm1364_vm6, %v1580_v20, %v1561_v6  ;;  %v1477_v5 = vpack.c.bf16 %v1473_v4, %v1473_v4 }
 0x3cd   : > { %v1579_v29 = vperm.slane %v1571_v24, %v7146_v61  ;;  %v1596_v30 = vrot.slane %v1591_v22, 4  ;;  %v1587_v31 = vperm.slane %v1581_v26, %v7146_v61 }
 0x3ce   : > { %v1569_v33 = vsel %vm1364_vm6, %v1568_v25, %v1550_v8 }
 0x3cf   : > { %v1597_v37 = vsel %vm1364_vm6, %v1596_v30, %v1579_v29  ;;  %v1598_v38 = vrot.slane %v1579_v29, 4  ;;  %v1575_v40 = vperm.slane %v1569_v33, %v7146_v61  ;;  %v1592_v41 = vrot.slane %v1587_v31, 4 }
 0x3d0   : > { %v1602_v42 = vpack.c.bf16 %v1597_v37, %v1597_v37 }
 0x3d1   : > { %v1593_v45 = vsel %vm1364_vm6, %v1592_v41, %v1575_v40  ;;  %v1599_v47 = vsel %vm1364_vm6, %v1591_v22, %v1598_v38  ;;  %v1594_v48 = vrot.slane %v1575_v40, 4 }
 0x3d2   : > { %v1773_v50 = vsel %vm1730_vm7, %v1602_v42, 0  ;;  %v1600_v51 = vpack.c.bf16 %v1593_v45, %v1593_v45  ;;  %v1603_v52 = vpack.c.bf16 %v1599_v47, %v1599_v47 }
 0x3d3   : > { %1782 = vmatpush.bf16.xpose.msrb.mxu2 %v1773_v50  ;;  %v1595_v53 = vsel %vm1364_vm6, %v1587_v31, %v1594_v48 }
 0x3d4   : > { %v1735_v55 = vsel %vm1730_vm7, %v1600_v51, 0  ;;  %v1792_v56 = vsel %vm1730_vm7, %v1603_v52, 0  ;;  %v1601_v57 = vpack.c.bf16 %v1595_v53, %v1595_v53 }
 0x3d5   : > { %1744 = vmatpush.bf16.xpose.msrb.mxu3 %v1735_v55 }
 0x3d6   : > { %v1754_v60 = vsel %vm1730_vm7, %v1601_v57, 0 }
 0x3d7   : > { %1763 = vmatpush.bf16.xpose.msra.mxu0 %v1754_v60 }
 0x3da   : > { %5366 = vmatmul.msk.bf16.vlgmr.msrb.gmra.mxu2 %vm1730_vm7, %v1476_v63 }
 0x3dc   : > { %5364 = vmatmul.msk.bf16.vlgmr.msrb.gmra.mxu3 %vm1730_vm7, %v1474_v1 }
 0x3dd   : > { %1801 = vmatpush.bf16.xpose.msra.mxu3 %v1792_v56 }
 0x3de   : > { %5365 = vmatmul.msk.bf16.vlgmr.msra.gmra.mxu0 %vm1730_vm7, %v1475_v2 }
 0x3ec   : > { %5367 = vmatmul.msk.bf16.vlgmr.msra.gmra.mxu3 %vm1730_vm7, %v1477_v5 }
 0x45b   : > { %v1765_v6 = vpop.f32.mrf.mxu0 }
 0x45c   : > { %v1808_v13 = vmul.f32 0.35355338, %v1765_v6 }
 0x45d   : > { %v1784_v7 = vpop.f32.mrf.mxu2 }
 0x45e   : > { %v1809_v8 = vmul.f32 0.35355338, %v1784_v7  ;;  %v1812_v19 = vadd.f32 %v1808_v13, %v1306_v9 }
 0x45f   : > { %v1746_v10 = vpop.f32.mrf.mxu3 }
 0x460   : > { %v1807_v11 = vmul.f32 0.35355338, %v1746_v10  ;;  %v1813_v12 = vadd.f32 %v1809_v8, %v1306_v9  ;;  %v1818_v21 = vsel %vm1730_vm7, %v1812_v19, -inf }
 0x462   : > { %v1821_v14 = vsel %vm1730_vm7, %v1813_v12, -inf  ;;  %v1811_v15 = vadd.f32 %v1807_v11, %v1306_v9 }
 0x463   : > { %1822 = vmax.xlane.f32.xlu2 %v1821_v14  ;;  %v1767_v16 = vpop.f32.mrf.mxu0 }
 0x464   : > { %v1815_v17 = vsel %vm1730_vm7, %v1811_v15, -inf }
 0x465   : > { %v1786_v18 = vpop.f32.mrf.mxu2  ;;  %1816 = vmax.xlane.f32.xlu1 %v1815_v17 }
 0x467   : > { %v1748_v20 = vpop.f32.mrf.mxu3 }
 0x46b   : > { %1819 = vmax.xlane.f32.xlu2 %v1818_v21 }
 0x46f   : > { %v1803_v22 = vpop.f32.mrf.mxu3 }
 0x470   : > { %v1810_v23 = vmul.f32 0.35355338, %v1803_v22 }
 0x472   : > { %v1814_v24 = vadd.f32 %v1810_v23, %v1306_v9 }
 0x474   : > { %v1824_v25 = vsel %vm1730_vm7, %v1814_v24, -inf }
 0x475   : > { %1825 = vmax.xlane.f32.xlu0 %v1824_v25 }
 0x477   : > { %v1805_v26 = vpop.f32.mrf.mxu3 }
 0x483   : > { %5894 = vrot.lane.b32.xlu2 %v7126_v36, %s8199_s26 }
 0x489   : > { %5899 = vrot.lane.b32.xlu0 %v7130_v39, %s8199_s26  ;;  %s8269_s26 = sld [smem:[#allocation39_spill]] }
 0x4d6   : > { %v1823_v27 = vpop.xlane.xlu2 %1822 }
 0x4d7   : > { %v1829_v29 = vsub.f32 %v1813_v12, %v1823_v27 }
 0x4d8   : > { %v1817_v37 = vpop.xlane.xlu1 %1816 }
 0x4d9   : > { %v1835_v30 = vmul.f32 1.442695, %v1829_v29  ;;  %v1827_v39 = vsub.f32 %v1811_v15, %v1817_v37 }
 0x4db   : > { %5971 = vpow2.f32 %v1835_v30  ;;  %v1831_v43 = vmul.f32 1.442695, %v1827_v39 }
 0x4de   : > { %v1820_v31 = vpop.xlane.xlu2 %1819 }
 0x4df   : > { %v1828_v32 = vsub.f32 %v1812_v19, %v1820_v31 }
 0x4e1   : > { %v7239_v33 = vpop.eup %5971  ;;  %v1833_v34 = vmul.f32 1.442695, %v1828_v32 }
 0x4e2   : > { %v1845_v35 = vsel %vm1730_vm7, %v7239_v33, 0.0 }
 0x4e3   : > { %5973 = vpow2.f32 %v1833_v34  ;;  %1846 = vadd.xlane.f32.xlu1 %v1845_v35 }
 0x4e6   : > { %v5895_v47 = vpop.permute.xlu2 %5894 }
 0x4e7   : > { %v5897_v49 = vunpack.i.h.bf16 %v5895_v47  ;;  %v5896_v50 = vunpack.i.l.bf16 %v5895_v47 }
 0x4e8   : > { %v1826_v38 = vpop.xlane.xlu0 %1825 }
 0x4e9   : > { %v7243_v36 = vpop.eup %5973  ;;  %v1830_v40 = vsub.f32 %v1814_v24, %v1826_v38  ;;  %v1630_v53 = vrot.slane %v5897_v49, 4  ;;  %v1618_v54 = vrot.slane %v5896_v50, 4 }
 0x4ea   : > { %v1842_v41 = vsel %vm1730_vm7, %v7243_v36, 0.0 }
 0x4eb   : > { %v1837_v42 = vmul.f32 1.442695, %v1830_v40  ;;  %1843 = vadd.xlane.f32.xlu0 %v1842_v41 }
 0x4ed   : > { %5975 = vpow2.f32 %v1837_v42 }
 0x4ee   : > { %5977 = vpow2.f32 %v1831_v43 }
 0x4f3   : > { %v7247_v44 = vpop.eup %5975 }
 0x4f4   : > { %v1848_v45 = vsel %vm1730_vm7, %v7247_v44, 0.0  ;;  %v7251_v48 = vpop.eup %5977 }
 0x4f5   : > { %1849 = vadd.xlane.f32.xlu1 %v1848_v45  ;;  %v1839_v52 = vsel %vm1730_vm7, %v7251_v48, 0.0 }
 0x4fb   : > { %v5900_v51 = vpop.permute.xlu0 %5899 }
 0x4fc   : > { %v5902_v55 = vunpack.i.h.bf16 %v5900_v51  ;;  %v5901_v56 = vunpack.i.l.bf16 %v5900_v51 }
 0x4fd   : > { %1840 = vadd.xlane.f32.xlu1 %v1839_v52 }
 0x4fe   : > { %v1628_v57 = vrot.slane %v5902_v55, 4  ;;  %v1631_v58 = vsel %vm1364_vm6, %v5902_v55, %v1630_v53  ;;  %v1616_v59 = vrot.slane %v5901_v56, 4  ;;  %v1619_v60 = vsel %vm1364_vm6, %v5901_v56, %v1618_v54 }
 0x4ff   : > { %v1639_v62 = vperm.slane %v1631_v58, %v7136_v46  ;;  %v1627_v63 = vperm.slane %v1619_v60, %v7136_v46 }
 0x500   : > { %v1629_v0 = vsel %vm1364_vm6, %v1628_v57, %v5897_v49  ;;  %v1617_v1 = vsel %vm1364_vm6, %v1616_v59, %v5896_v50 }
 0x501   : > { %v1635_v2 = vperm.slane %v1629_v0, %v7136_v46  ;;  %v1652_v3 = vrot.slane %v1639_v62, 4  ;;  %v1623_v4 = vperm.slane %v1617_v1, %v7136_v46  ;;  %v1654_v5 = vrot.slane %v1627_v63, 4 }
 0x503   : > { %v1640_v6 = vrot.slane %v1635_v2, 4  ;;  %v1642_v7 = vrot.slane %v1623_v4, 4  ;;  %v1653_v8 = vsel %vm1364_vm6, %v1652_v3, %v1627_v63  ;;  %v1655_v9 = vsel %vm1364_vm6, %v1639_v62, %v1654_v5 }
 0x504   : > { %v1659_v10 = vperm.slane %v1653_v8, %v7146_v61  ;;  %v1663_v11 = vperm.slane %v1655_v9, %v7146_v61 }
 0x505   : > { %v1641_v12 = vsel %vm1364_vm6, %v1640_v6, %v1623_v4  ;;  %v1643_v13 = vsel %vm1364_vm6, %v1635_v2, %v1642_v7 }
 0x506   : > { %v1647_v14 = vperm.slane %v1641_v12, %v7146_v61  ;;  %v1651_v15 = vperm.slane %v1643_v13, %v7146_v61  ;;  %v1668_v16 = vrot.slane %v1659_v10, 4  ;;  %v1670_v17 = vrot.slane %v1663_v11, 4 }
 0x508   : > { %v1664_v18 = vrot.slane %v1647_v14, 4  ;;  %v1666_v19 = vrot.slane %v1651_v15, 4  ;;  %v1671_v20 = vsel %vm1364_vm6, 0.0, %v1670_v17  ;;  %v1683_v21 = vsel %vm1364_vm6, %v1670_v17, %v1659_v10 }
 0x509   : > { %v1688_v22 = vrot.slane %v1671_v20, 4  ;;  %v1669_v24 = vsel %vm1364_vm6, 0.0, %v1668_v16  ;;  %v1687_v25 = vperm.slane %v1683_v21, %v7136_v46 }
 0x50a   : > { %v1667_v23 = vsel %vm1364_vm6, 0.0, %v1666_v19  ;;  %v1672_v26 = vsel %vm1364_vm6, %v1666_v19, %v1647_v14  ;;  %v1665_v31 = vsel %vm1364_vm6, 0.0, %v1664_v18 }
 0x50b   : > { %v1677_v27 = vrot.slane %v1667_v23, 4  ;;  %v1676_v29 = vperm.slane %v1672_v26, %v7136_v46  ;;  %v1689_v30 = vsel %vm1364_vm6, %v1688_v22, %v1669_v24  ;;  %v1708_v34 = vrot.slane %v1687_v25, 4 }
 0x50c   : > { %v1693_v32 = vperm.slane %v1689_v30, %v7136_v46 }
 0x50d   : > { %v1678_v35 = vsel %vm1364_vm6, %v1677_v27, %v1665_v31  ;;  %v1696_v37 = vrot.slane %v1676_v29, 4 }
 0x50e   : > { %v1682_v38 = vperm.slane %v1678_v35, %v7136_v46  ;;  %v1709_v40 = vsel %vm1364_vm6, %v1693_v32, %v1708_v34  ;;  %v1706_v39 = vrot.slane %v1693_v32, 4 }
 0x50f   : > { %v1717_v41 = vperm.slane %v1709_v40, %v7146_v61 }
 0x510   : > { %v1697_v42 = vsel %vm1364_vm6, %v1682_v38, %v1696_v37  ;;  %v1694_v43 = vrot.slane %v1682_v38, 4  ;;  %v1707_v45 = vsel %vm1364_vm6, %v1706_v39, %v1687_v25 }
 0x511   : > { %v1705_v47 = vperm.slane %v1697_v42, %v7146_v61  ;;  %v1722_v49 = vrot.slane %v1717_v41, 4  ;;  %v1713_v50 = vperm.slane %v1707_v45, %v7146_v61 }
 0x512   : > { %v1695_v51 = vsel %vm1364_vm6, %v1694_v43, %v1676_v29 }
 0x513   : > { %v1723_v52 = vsel %vm1364_vm6, %v1722_v49, %v1705_v47  ;;  %v1701_v53 = vperm.slane %v1695_v51, %v7146_v61  ;;  %v1718_v54 = vrot.slane %v1713_v50, 4  ;;  %v1724_v55 = vrot.slane %v1705_v47, 4 }
 0x514   : > { %v1728_v56 = vpack.c.bf16 %v1723_v52, %v1723_v52 }
 0x515   : > { %v1719_v57 = vsel %vm1364_vm6, %v1718_v54, %v1701_v53  ;;  %v1725_v58 = vsel %vm1364_vm6, %v1717_v41, %v1724_v55  ;;  %v1720_v59 = vrot.slane %v1701_v53, 4 }
 0x516   : > { %v1906_v60 = vsel %vm1866_vm8, %v1728_v56, 0  ;;  %v1726_v62 = vpack.c.bf16 %v1719_v57, %v1719_v57  ;;  %v1729_v63 = vpack.c.bf16 %v1725_v58, %v1725_v58 }
 0x517   : > { %1915 = vmatpush.bf16.msra.mxu2 %v1906_v60  ;;  %v1721_v0 = vsel %vm1364_vm6, %v1713_v50, %v1720_v59 }
 0x518   : > { %v1868_v1 = vsel %vm1866_vm8, %v1726_v62, 0  ;;  %v1925_v2 = vsel %vm1866_vm8, %v1729_v63, 0  ;;  %v1727_v3 = vpack.c.bf16 %v1721_v0, %v1721_v0 }
 0x519   : > { %1877 = vmatpush.bf16.msrb.mxu1 %v1868_v1  ;;  %1934 = vmatpush.bf16.msrb.mxu3 %v1925_v2 }
 0x51a   : > { %v1887_v4 = vsel %vm1866_vm8, %v1727_v3, 0 }
 0x51b   : > { %1896 = vmatpush.bf16.msrb.mxu0 %v1887_v4 }
 0x556   : > { %v1847_v5 = vpop.xlane.xlu1 %1846 }
 0x557   : > { %5979 = vrcp.f32 %v1847_v5 }
 0x55d   : > { %v5980_v6 = vpop.eup %5979 }
 0x55e   : > { %v1857_v7 = vmul.f32 %v5980_v6, %v7239_v33  ;;  %v1844_v8 = vpop.xlane.xlu0 %1843 }
 0x55f   : > { %5981 = vrcp.f32 %v1844_v8 }
 0x560   : > { %v1861_v9 = vpack.c.bf16 %v1857_v7, %v1857_v7 }
 0x562   : > { %5370 = vmatmul.msk.bf16.vlgmr.msra.gmra.mxu2 %vm1730_vm7, %v1861_v9 }
 0x565   : > { %v5982_v10 = vpop.eup %5981 }
 0x566   : > { %v1856_v11 = vmul.f32 %v5982_v10, %v7243_v36 }
 0x568   : > { %v1850_v12 = vpop.xlane.xlu1 %1849  ;;  %v1860_v13 = vpack.c.bf16 %v1856_v11, %v1856_v11 }
 0x569   : > { %5983 = vrcp.f32 %v1850_v12 }
 0x56a   : > { %5369 = vmatmul.msk.bf16.vlgmr.msrb.gmra.mxu0 %vm1730_vm7, %v1860_v13 }
 0x56f   : > { %v5984_v14 = vpop.eup %5983 }
 0x570   : > { %v1858_v15 = vmul.f32 %v5984_v14, %v7247_v44  ;;  %v1841_v16 = vpop.xlane.xlu1 %1840 }
 0x571   : > { %5985 = vrcp.f32 %v1841_v16 }
 0x572   : > { %v1862_v17 = vpack.c.bf16 %v1858_v15, %v1858_v15 }
 0x574   : > { %5371 = vmatmul.msk.bf16.vlgmr.msrb.gmra.mxu3 %vm1730_vm7, %v1862_v17 }
 0x577   : > { %v5986_v33 = vpop.eup %5985 }
 0x578   : > { %v1855_v18 = vmul.f32 %v5986_v33, %v7251_v48 }
 0x57a   : > { %v1859_v19 = vpack.c.bf16 %v1855_v18, %v1855_v18 }
 0x57c   : > { %5368 = vmatmul.msk.bf16.vlgmr.msrb.gmra.mxu1 %vm1730_vm7, %v1859_v19 }
 0x5e5   : > { %v1917_v36 = vpop.f32.mrf.mxu2 }
 0x5e6   : > { %v1940_v25 = vrot.slane %v1917_v36, 4 }
 0x5e7   : > { %v1898_v20 = vpop.f32.mrf.mxu0 }
 0x5e8   : > { %v1954_v23 = vrot.slane %v1898_v20, 4 }
 0x5ed   : > { %v1919_v21 = vpop.f32.mrf.mxu2 }
 0x5ef   : > { %v1900_v22 = vpop.f32.mrf.mxu0 }
 0x5f7   : > { %v1936_v24 = vpop.f32.mrf.mxu3 }
 0x5f8   : > { %v1952_v26 = vrot.slane %v1936_v24, 4  ;;  %v1955_v44 = vsel %vm1364_vm6, %v1936_v24, %v1954_v23 }
 0x5f9   : > { %v1963_v27 = vperm.slane %v1955_v44, %v7136_v46  ;;  %v1879_v29 = vpop.f32.mrf.mxu1 }
 0x5fa   : > { %v1953_v30 = vsel %vm1364_vm6, %v1952_v26, %v1898_v20  ;;  %v1941_v48 = vsel %vm1364_vm6, %v1940_v25, %v1879_v29  ;;  %v1942_v31 = vrot.slane %v1879_v29, 4  ;;  %v5599_v29 = vld [vmem:[#allocation11] sm:$0xff] }
 0x5fb   : > { %v1959_v32 = vperm.slane %v1953_v30, %v7136_v46  ;;  %v1947_v34 = vperm.slane %v1941_v48, %v7136_v46  ;;  %v1976_v38 = vrot.slane %v1963_v27, 4 }
 0x5fc   : > { %v1943_v35 = vsel %vm1364_vm6, %v1917_v36, %v1942_v31 }
 0x5fd   : > { %v1964_v37 = vrot.slane %v1959_v32, 4  ;;  %v1951_v40 = vperm.slane %v1943_v35, %v7136_v46  ;;  %v1966_v39 = vrot.slane %v1947_v34, 4 }
 0x5ff   : > { %v1965_v41 = vsel %vm1364_vm6, %v1964_v37, %v1947_v34  ;;  %v1967_v42 = vsel %vm1364_vm6, %v1959_v32, %v1966_v39  ;;  %v1977_v43 = vsel %vm1364_vm6, %v1976_v38, %v1951_v40  ;;  %v1978_v45 = vrot.slane %v1951_v40, 4  ;;  %v1938_v47 = vpop.f32.mrf.mxu3  ;;  %v5604_v38 = vld [vmem:[%s8265_s23 + $0x8] sm:$0xff]  ;;  %v5603_v40 = vld [vmem:[%s8265_s23] sm:$0xff] }
 0x600   : > { %v1971_v49 = vperm.slane %v1965_v41, %v7146_v61  ;;  %v1975_v50 = vperm.slane %v1967_v42, %v7146_v61  ;;  %v1983_v51 = vperm.slane %v1977_v43, %v7146_v61  ;;  %2211 = vmatpush.bf16.msrb.mxu2 %v5604_v38  ;;  %v1305_v39 = vld [vmem:[%s1210_s17] sm:$0xff]  ;;  %s8268_s17 = sld [smem:[#allocation44_spill]] }
 0x601   : > { %v1979_v52 = vsel %vm1364_vm6, %v1963_v27, %v1978_v45  ;;  %v1881_v53 = vpop.f32.mrf.mxu1  ;;  %v5600_v27 = vld [vmem:[#allocation11 + $0x8] sm:$0xff]  ;;  %v7358_v41 = vpack.c.bf16 %v1305_v39, %v1305_v39  ;;  %v5945_v42 = vld [vmem:[#allocation13] ss:$0 sm:$0xff] }
 0x602   : > { %v1987_v54 = vperm.slane %v1979_v52, %v7146_v61  ;;  %v1988_v55 = vrot.slane %v1971_v49, 4  ;;  %v1990_v56 = vrot.slane %v1975_v50, 4  ;;  %v1992_v58 = vrot.slane %v1983_v51, 4  ;;  %2092 = vmatpush.bf16.msra.mxu1 %v5600_v27 }
 0x604   : > { %v1991_v57 = vsel %vm1364_vm6, 0.0, %v1990_v56  ;;  %v1994_v59 = vrot.slane %v1987_v54, 4  ;;  %v1996_v60 = vsel %vm1364_vm6, %v1990_v56, %v1971_v49  ;;  %v1989_v63 = vsel %vm1364_vm6, 0.0, %v1988_v55  ;;  %2212 = vmatpush.bf16.msrb.mxu2 %v5603_v40 }
 0x605   : > { %v2001_v62 = vrot.slane %v1991_v57, 4  ;;  %v2000_v1 = vperm.slane %v1996_v60, %v7136_v46  ;;  %v1993_v6 = vsel %vm1364_vm6, 0.0, %v1992_v58 }
 0x606   : > { %v1995_v0 = vsel %vm1364_vm6, 0.0, %v1994_v59  ;;  %v2007_v2 = vsel %vm1364_vm6, %v1994_v59, %v1983_v51  ;;  %2093 = vmatpush.bf16.msra.mxu1 %v5599_v29  ;;  %v6659_v51 = vmov 32.0  }
 0x607   : > { %v2012_v3 = vrot.slane %v1995_v0, 4  ;;  %v2002_v4 = vsel %vm1364_vm6, %v2001_v62, %v1989_v63  ;;  %v2011_v5 = vperm.slane %v2007_v2, %v7136_v46  ;;  %v2020_v8 = vrot.slane %v2000_v1, 4  ;;  %5398 = vmatmul.msk.bf16.vlgmr.msrb.gmra.mxu2 %vm1336_vm5, %v7358_v41  ;;  %v5948_v63 = vld [vmem:[#allocation16] ss:$0 sm:$0xff] }
 0x608   : > { %v2006_v7 = vperm.slane %v2002_v4, %v7136_v46  ;;  %5987 = vrcp.f32 %v6659_v51  ;;  %v5601_v4 = vld [vmem:[%s8266_s10] sm:$0xff] }
 0x609   : > { %v2013_v9 = vsel %vm1364_vm6, %v2012_v3, %v1993_v6  ;;  %v2032_v10 = vrot.slane %v2011_v5, 4  ;;  %v5602_v3 = vld [vmem:[%s8266_s10 + $0x8] sm:$0xff] }
 0x60a   : > { %v2017_v11 = vperm.slane %v2013_v9, %v7136_v46  ;;  %v2018_v12 = vrot.slane %v2006_v7, 4  ;;  %v2021_v13 = vsel %vm1364_vm6, %v2006_v7, %v2020_v8  ;;  %2179 = vmatpush.bf16.msra.mxu0 %v5602_v3 }
 0x60b   : > { %v2029_v19 = vperm.slane %v2021_v13, %v7146_v61 }
 0x60c   : > { %v2033_v14 = vsel %vm1364_vm6, %v2017_v11, %v2032_v10  ;;  %v2019_v15 = vsel %vm1364_vm6, %v2018_v12, %v2000_v1  ;;  %v2030_v16 = vrot.slane %v2017_v11, 4 }
 0x60d   : > { %v2041_v17 = vperm.slane %v2033_v14, %v7146_v61  ;;  %v2025_v33 = vperm.slane %v2019_v15, %v7146_v61  ;;  %v2048_v26 = vrot.slane %v2029_v19, 4  ;;  %v5946_v14 = vld [vmem:[%s8267_s11] ss:$0 sm:$0xff] }
 0x60e   : > { %v2031_v18 = vsel %vm1364_vm6, %v2030_v16, %v2011_v5  ;;  %v5988_v52 = vpop.eup %5987  ;;  %2180 = vmatpush.bf16.msra.mxu0 %v5601_v4  ;;  %v5947_v16 = vld [vmem:[%s8268_s17] ss:$0 sm:$0xff] }
 0x60f   : > { %v2046_v36 = vrot.slane %v2041_v17, 4  ;;  %v2037_v20 = vperm.slane %v2031_v18, %v7146_v61  ;;  %v2044_v21 = vrot.slane %v2025_v33, 4  ;;  %v2049_v44 = vsel %vm1364_vm6, %v2041_v17, %v2048_v26 }
 0x610   : > { %v2104_v53 = vmul.f32 32.0, %v5988_v52  ;;  %vm2108_vm11 = vweird.f32 %v5988_v52 }
 0x611   : > { %v2047_v22 = vsel %vm1364_vm6, %v2046_v36, %v2029_v19  ;;  %v2042_v23 = vrot.slane %v2037_v20, 4  ;;  %v2045_v24 = vsel %vm1364_vm6, %v2037_v20, %v2044_v21 }
 0x612   : > { %2055 = vrot.lane.b32.xlu1 %v2047_v22, %s8207_s18  ;;  %2051 = vrot.lane.b32.xlu2 %v2045_v24, %s8205_s7  ;;  %v2105_v54 = vsub.f32 1.0, %v2104_v53 }
 0x613   : > { %v2043_v25 = vsel %vm1364_vm6, %v2042_v23, %v2025_v33 }
 0x614   : > { %v2106_v55 = vmul.f32 %v5988_v52, %v2105_v54 }
 0x616   : > { %v2107_v56 = vadd.f32 %v5988_v52, %v2106_v55 }
 0x618   : > { %v7364_v57 = vsel %vm2108_vm11, %v5988_v52, %v2107_v56 }
 0x61a   : > { %2059 = vrot.lane.b32.xlu2 %v2049_v44, %s8203_s15 }
 0x66c   : > { %v2052_v30 = vpop.permute.xlu2 %2051 }
 0x66d   : > { %v2062_v48 = vsel %vm1730_vm7, %v2043_v25, %v2052_v30 }
 0x674   : > { %v2060_v32 = vpop.permute.xlu2 %2059 }
 0x684   : > { %v2056_v31 = vpop.permute.xlu1 %2055 }
 0x685   : > { %v2064_v34 = vsel %vm2063_vm9, %v2062_v48, %v2056_v31 }
 0x686   : > { %v2066_v35 = vsel %vm2065_vm10, %v2064_v34, %v2060_v32 }
 0x687   : > { %v2067_v37 = vpack.c.bf16 %v2066_v35, %v2066_v35 }
 0x689   : > { %5380 = vmatmul.msk.bf16.vlgmr.msra.gmra.mxu1 %vm1336_vm5, %v2067_v37 }
 0x68a   : > { %v2214_v0 = vpop.f32.mrf.mxu2 }
 0x68b   : > { %v7368_v1 = vadd.f32 %v5948_v63, %v2214_v0 }
 0x68d   : > { %2343 = vrot.lane.b32.xlu0 %v7368_v1, %s8209_s8  ;;  %v2354_v20 = vrot.slane %v7368_v1, 4 }
 0x692   : > { %v2216_v2 = vpop.f32.mrf.mxu2 }
 0x695   : > { %2349 = vrot.lane.b32.xlu0 %v7368_v1, %s8201_s1 }
 0x6ff   : > { %v7390_v22 = vpop.permute.xlu0 %2343 }
 0x700   : > { %v2366_v26 = vrot.slane %v7390_v22, 4 }
 0x706   : > { %v2095_v43 = vpop.f32.mrf.mxu1 }
 0x707   : > { %v2096_v45 = vadd.f32 %v5945_v42, %v2095_v43  ;;  %v7399_v29 = vpop.permute.xlu0 %2349 }
 0x708   : > { %v2364_v30 = vrot.slane %v7399_v29, 4  ;;  %v2367_v48 = vsel %vm1364_vm6, %v7399_v29, %v2366_v26 }
 0x709   : > { %v2099_v47 = vadd.f32 %v2096_v45, %v7118_v28  ;;  %v2375_v32 = vperm.slane %v2367_v48, %v7136_v46 }
 0x70a   : > { %v2365_v34 = vsel %vm1364_vm6, %v2364_v30, %v7390_v22 }
 0x70b   : > { %v2100_v49 = vsel %vm1336_vm5, %v2099_v47, 0.0  ;;  %v2371_v35 = vperm.slane %v2365_v34, %v7136_v46  ;;  %v2388_v37 = vrot.slane %v2375_v32, 4 }
 0x70c   : > { %2101 = vadd.xlane.f32.xlu2 %v2100_v49 }
 0x70d   : > { %v2376_v39 = vrot.slane %v2371_v35, 4 }
 0x70e   : > { %v2097_v50 = vpop.f32.mrf.mxu1 }
 0x724   : > { %2346 = vrot.lane.b32.xlu2 %v7368_v1, %s8211_s28 }
 0x77f   : > { %v2102_v58 = vpop.xlane.xlu2 %2101 }
 0x780   : > { %v2110_v59 = vmul.f32 %v7364_v57, %v2102_v58 }
 0x782   : > { %v2111_v28 = vsub.f32 %v2099_v47, %v2110_v59 }
 0x784   : > { %v2112_v60 = vmul.f32 %v2111_v28, %v2111_v28 }
 0x786   : > { %v2113_v62 = vsel %vm1336_vm5, %v2112_v60, 0.0 }
 0x787   : > { %2114 = vadd.xlane.f32.xlu1 %v2113_v62  ;;  %v7386_v36 = vpop.permute.xlu2 %2346 }
 0x788   : > { %v2352_v21 = vrot.slane %v7386_v36, 4  ;;  %v2355_v23 = vsel %vm1364_vm6, %v7386_v36, %v2354_v20 }
 0x789   : > { %v2363_v25 = vperm.slane %v2355_v23, %v7136_v46 }
 0x78a   : > { %v2353_v24 = vsel %vm1364_vm6, %v2352_v21, %v7368_v1 }
 0x78b   : > { %v2359_v44 = vperm.slane %v2353_v24, %v7136_v46  ;;  %v2390_v27 = vrot.slane %v2363_v25, 4  ;;  %v2389_v43 = vsel %vm1364_vm6, %v2388_v37, %v2363_v25 }
 0x78c   : > { %v2395_v47 = vperm.slane %v2389_v43, %v7146_v61 }
 0x78d   : > { %v2378_v31 = vrot.slane %v2359_v44, 4  ;;  %v2391_v38 = vsel %vm1364_vm6, %v2375_v32, %v2390_v27  ;;  %v2377_v50 = vsel %vm1364_vm6, %v2376_v39, %v2359_v44 }
 0x78e   : > { %v2399_v40 = vperm.slane %v2391_v38, %v7146_v61  ;;  %v2383_v51 = vperm.slane %v2377_v50, %v7146_v61  ;;  %v2404_v53 = vrot.slane %v2395_v47, 4  ;;  %v5949_v38 = vld [vmem:[#allocation14] ss:$0 sm:$0xff] }
 0x78f   : > { %v2379_v42 = vsel %vm1364_vm6, %v2371_v35, %v2378_v31 }
 0x790   : > { %v2387_v45 = vperm.slane %v2379_v42, %v7146_v61  ;;  %v2406_v49 = vrot.slane %v2399_v40, 4  ;;  %v2400_v58 = vrot.slane %v2383_v51, 4 }
 0x792   : > { %v2402_v52 = vrot.slane %v2387_v45, 4  ;;  %v2407_v54 = vsel %vm1364_vm6, 0.0, %v2406_v49  ;;  %v2419_v55 = vsel %vm1364_vm6, %v2406_v49, %v2395_v47  ;;  %v2401_v63 = vsel %vm1364_vm6, 0.0, %v2400_v58 }
 0x793   : > { %v2424_v56 = vrot.slane %v2407_v54, 4  ;;  %v2423_v0 = vperm.slane %v2419_v55, %v7136_v46 }
 0x794   : > { %v2403_v59 = vsel %vm1364_vm6, 0.0, %v2402_v52 }
 0x795   : > { %v2413_v60 = vrot.slane %v2403_v59, 4 }
 0x797   : > { %v2414_v3 = vsel %vm1364_vm6, %v2413_v60, %v2401_v63 }
 0x798   : > { %v2418_v4 = vperm.slane %v2414_v3, %v7136_v46 }
 0x7fa   : > { %v2115_v5 = vpop.xlane.xlu1 %2114 }
 0x7fb   : > { %v2116_v6 = vmul.f32 %v2115_v5, %v7364_v57 }
 0x7fd   : > { %v2117_v7 = vadd.f32 1e-05, %v2116_v6  ;;  %v2408_v6 = vsel %vm1364_vm6, %v2402_v52, %v2383_v51 }
 0x7ff   : > { %5989 = vrsqrt.f32 %v2117_v7  ;;  %vm2124_vm13 = vweird.f32 %v2117_v7 }
 0x805   : > { %v5990_v8 = vpop.eup %5989 }
 0x806   : > { %v2119_v9 = vmul.f32 %v5990_v8, %v2117_v7  ;;  %vm2125_vm12 = vweird.f32 %v5990_v8  ;;  %v2412_v7 = vperm.slane %v2408_v6, %v7136_v46 }
 0x807   : > { %vm2126_vm14 = vmor %vm2124_vm13, %vm2125_vm12 }
 0x808   : > { %v2120_v10 = vmul.f32 %v5990_v8, %v2119_v9 }
 0x80a   : > { %v2121_v11 = vmul.f32 0.5, %v2120_v10  ;;  %v2444_v10 = vrot.slane %v2423_v0, 4 }
 0x80c   : > { %v2122_v12 = vsub.f32 1.5, %v2121_v11 }
 0x80e   : > { %v2123_v13 = vmul.f32 %v5990_v8, %v2122_v12 }
 0x810   : > { %v2127_v15 = vsel %vm2126_vm14, %v5990_v8, %v2123_v13  ;;  %v2430_v8 = vrot.slane %v2418_v4, 4  ;;  %v2432_v13 = vrot.slane %v2412_v7, 4 }
 0x811   : > { %v2128_v17 = vmul.f32 %v2127_v15, %v2111_v28  ;;  %v2405_v28 = vsel %vm1364_vm6, 0.0, %v2404_v53 }
 0x812   : > { %v2425_v62 = vsel %vm1364_vm6, %v2424_v56, %v2405_v28  ;;  %v2431_v12 = vsel %vm1364_vm6, %v2430_v8, %v2412_v7 }
 0x813   : > { %v2132_v33 = vmul.f32 %v5946_v14, %v2128_v17  ;;  %v2429_v2 = vperm.slane %v2425_v62, %v7136_v46  ;;  %v2437_v15 = vperm.slane %v2431_v12, %v7146_v61 }
 0x815   : > { %v7381_v18 = vadd.f32 %v5947_v16, %v2132_v33  ;;  %v2442_v5 = vrot.slane %v2429_v2, 4  ;;  %v2445_v14 = vsel %vm1364_vm6, %v2429_v2, %v2444_v10  ;;  %v2433_v33 = vsel %vm1364_vm6, %v2418_v4, %v2432_v13 }
 0x816   : > { %v2453_v17 = vperm.slane %v2445_v14, %v7146_v61  ;;  %v2456_v20 = vrot.slane %v2437_v15, 4  ;;  %v2441_v21 = vperm.slane %v2433_v33, %v7146_v61 }
 0x817   : > { %v2154_v19 = vpack.c.bf16 %v7381_v18, %v7381_v18  ;;  %v2443_v9 = vsel %vm1364_vm6, %v2442_v5, %v2423_v0 }
 0x818   : > { %v2449_v11 = vperm.slane %v2443_v9, %v7146_v61  ;;  %v2458_v23 = vrot.slane %v2453_v17, 4  ;;  %v2460_v44 = vrot.slane %v2441_v21, 4 }
 0x819   : > { %5389 = vmatmul.msk.bf16.vlgmr.msra.gmra.mxu0 %vm1336_vm5, %v2154_v19 }
 0x81a   : > { %v2454_v16 = vrot.slane %v2449_v11, 4  ;;  %v2457_v25 = vsel %vm1364_vm6, %v2449_v11, %v2456_v20  ;;  %v2459_v26 = vsel %vm1364_vm6, %v2458_v23, %v2441_v21  ;;  %v2461_v31 = vsel %vm1364_vm6, %v2453_v17, %v2460_v44 }
 0x81b   : > { %v2463_v30 = vpack.c.bf16 %v2457_v25, %v2457_v25  ;;  %v2464_v48 = vpack.c.bf16 %v2459_v26, %v2459_v26  ;;  %v2465_v35 = vpack.c.bf16 %v2461_v31, %v2461_v31 }
 0x81c   : > { %v2455_v19 = vsel %vm1364_vm6, %v2454_v16, %v2437_v15 }
 0x81d   : > { %v2462_v24 = vpack.c.bf16 %v2455_v19, %v2455_v19  ;;  %v2615_v32 = vsel %vm1730_vm7, %v2463_v30, 0  ;;  %v2634_v34 = vsel %vm1730_vm7, %v2464_v48, 0  ;;  %v2653_v37 = vsel %vm1730_vm7, %v2465_v35, 0 }
 0x81e   : > { %2624 = vmatpush.bf16.xpose.msrb.mxu1 %v2615_v32  ;;  %2643 = vmatpush.bf16.xpose.msrb.mxu0 %v2634_v34 }
 0x81f   : > { %v2596_v27 = vsel %vm1730_vm7, %v2462_v24, 0  ;;  %2662 = vmatpush.bf16.xpose.msra.mxu2 %v2653_v37 }
 0x820   : > { %2605 = vmatpush.bf16.xpose.msra.mxu3 %v2596_v27 }
 0x896   : > { %v2182_v40 = vpop.f32.mrf.mxu0 }
 0x897   : > { %v2183_v39 = vadd.f32 %v5949_v38, %v2182_v40 }
 0x899   : > { %2222 = vrot.lane.b32.xlu1 %v2183_v39, %s8211_s28  ;;  %2219 = vrot.lane.b32.xlu0 %v2183_v39, %s8209_s8  ;;  %v2230_v49 = vrot.slane %v2183_v39, 4 }
 0x89e   : > { %v2184_v42 = vpop.f32.mrf.mxu0 }
 0x8a1   : > { %2225 = vrot.lane.b32.xlu0 %v2183_v39, %s8201_s1  ;;  %s7493_s1 = scalar_lea.vmem %s8269_s26, %s7112_s2  ;;  %s8270_s2 = sld [smem:[#allocation48_spill]] }
 0x8a2   : > { %s8271_s26 = sld [smem:[#allocation52_spill]] }
 0x90b   : > { %v2223_v43 = vpop.permute.xlu1 %2222  ;;  %v2220_v45 = vpop.permute.xlu0 %2219 }
 0x90c   : > { %v2228_v47 = vrot.slane %v2223_v43, 4  ;;  %v2231_v50 = vsel %vm1364_vm6, %v2223_v43, %v2230_v49  ;;  %v2242_v53 = vrot.slane %v2220_v45, 4 }
 0x90d   : > { %v2239_v52 = vperm.slane %v2231_v50, %v7136_v46 }
 0x90e   : > { %v2229_v51 = vsel %vm1364_vm6, %v2228_v47, %v2183_v39 }
 0x90f   : > { %v2235_v54 = vperm.slane %v2229_v51, %v7136_v46  ;;  %v2266_v59 = vrot.slane %v2239_v52, 4 }
 0x911   : > { %v2254_v62 = vrot.slane %v2235_v54, 4 }
 0x913   : > { %v2226_v55 = vpop.permute.xlu0 %2225 }
 0x914   : > { %v2240_v56 = vrot.slane %v2226_v55, 4  ;;  %v2243_v58 = vsel %vm1364_vm6, %v2226_v55, %v2242_v53 }
 0x915   : > { %v2251_v28 = vperm.slane %v2243_v58, %v7136_v46 }
 0x916   : > { %v2241_v60 = vsel %vm1364_vm6, %v2240_v56, %v2220_v45 }
 0x917   : > { %v2247_v63 = vperm.slane %v2241_v60, %v7136_v46  ;;  %v2264_v0 = vrot.slane %v2251_v28, 4  ;;  %v2267_v2 = vsel %vm1364_vm6, %v2251_v28, %v2266_v59  ;;  %v1307_v60 = vld [vmem:[%s7493_s1] sm:$0xff] }
 0x918   : > { %v2275_v3 = vperm.slane %v2267_v2, %v7146_v61 }
 0x919   : > { %v2252_v4 = vrot.slane %v2247_v63, 4  ;;  %v2255_v5 = vsel %vm1364_vm6, %v2247_v63, %v2254_v62  ;;  %v2265_v6 = vsel %vm1364_vm6, %v2264_v0, %v2239_v52 }
 0x91a   : > { %v2263_v7 = vperm.slane %v2255_v5, %v7146_v61  ;;  %v2271_v8 = vperm.slane %v2265_v6, %v7146_v61  ;;  %v2282_v9 = vrot.slane %v2275_v3, 4 }
 0x91b   : > { %v2253_v10 = vsel %vm1364_vm6, %v2252_v4, %v2235_v54 }
 0x91c   : > { %v2259_v11 = vperm.slane %v2253_v10, %v7146_v61  ;;  %v2278_v12 = vrot.slane %v2263_v7, 4  ;;  %v2280_v13 = vrot.slane %v2271_v8, 4  ;;  %v2283_v14 = vsel %vm1364_vm6, 0.0, %v2282_v9 }
 0x91d   : > { %v2295_v15 = vsel %vm1364_vm6, %v2282_v9, %v2271_v8  ;;  %v2300_v16 = vrot.slane %v2283_v14, 4 }
 0x91e   : > { %v2276_v17 = vrot.slane %v2259_v11, 4  ;;  %v2279_v33 = vsel %vm1364_vm6, 0.0, %v2278_v12  ;;  %v2281_v19 = vsel %vm1364_vm6, 0.0, %v2280_v13  ;;  %v2284_v20 = vsel %vm1364_vm6, %v2278_v12, %v2259_v11 }
 0x91f   : > { %v2288_v21 = vperm.slane %v2284_v20, %v7136_v46  ;;  %v2289_v23 = vrot.slane %v2279_v33, 4  ;;  %v2299_v24 = vperm.slane %v2295_v15, %v7136_v46  ;;  %v2301_v25 = vsel %vm1364_vm6, %v2300_v16, %v2281_v19 }
 0x920   : > { %v2277_v26 = vsel %vm1364_vm6, 0.0, %v2276_v17  ;;  %v2305_v44 = vperm.slane %v2301_v25, %v7136_v46  ;;  %v5903_v19 = vpack.i.bf16 %v7390_v22, %v7368_v1  ;;  %v5908_v20 = vpack.i.bf16 %v7399_v29, %v7386_v36 }
 0x921   : > { %v2290_v27 = vsel %vm1364_vm6, %v2289_v23, %v2277_v26  ;;  %v2308_v30 = vrot.slane %v2288_v21, 4  ;;  %v2320_v48 = vrot.slane %v2299_v24, 4 }
 0x922   : > { %v2294_v31 = vperm.slane %v2290_v27, %v7136_v46  ;;  %v2318_v32 = vrot.slane %v2305_v44, 4 }
 0x923   : > { %v2321_v34 = vsel %vm1364_vm6, %v2305_v44, %v2320_v48 }
 0x924   : > { %v2319_v35 = vsel %vm1364_vm6, %v2318_v32, %v2299_v24  ;;  %v2309_v37 = vsel %vm1364_vm6, %v2294_v31, %v2308_v30  ;;  %v2329_v38 = vperm.slane %v2321_v34, %v7146_v61  ;;  %v2306_v40 = vrot.slane %v2294_v31, 4 }
 0x925   : > { %v2317_v39 = vperm.slane %v2309_v37, %v7146_v61  ;;  %v2325_v42 = vperm.slane %v2319_v35, %v7146_v61 }
 0x926   : > { %v2334_v43 = vrot.slane %v2329_v38, 4  ;;  %v2307_v45 = vsel %vm1364_vm6, %v2306_v40, %v2288_v21 }
 0x927   : > { %v2313_v47 = vperm.slane %v2307_v45, %v7146_v61  ;;  %v2330_v49 = vrot.slane %v2325_v42, 4  ;;  %v2336_v50 = vrot.slane %v2317_v39, 4 }
 0x928   : > { %v2335_v51 = vsel %vm1364_vm6, %v2334_v43, %v2317_v39 }
 0x929   : > { %v2340_v52 = vpack.c.bf16 %v2335_v51, %v2335_v51  ;;  %v2331_v53 = vsel %vm1364_vm6, %v2330_v49, %v2313_v47  ;;  %v2337_v54 = vsel %vm1364_vm6, %v2329_v38, %v2336_v50  ;;  %v2332_v55 = vrot.slane %v2313_v47, 4 }
 0x92a   : > { %v2338_v56 = vpack.c.bf16 %v2331_v53, %v2331_v53  ;;  %v2341_v58 = vpack.c.bf16 %v2337_v54, %v2337_v54 }
 0x92b   : > { %5401 = vmatmul.msk.bf16.vlgmr.msrb.gmra.mxu0 %vm1730_vm7, %v2340_v52  ;;  %v2333_v59 = vsel %vm1364_vm6, %v2325_v42, %v2332_v55 }
 0x92c   : > { %5399 = vmatmul.msk.bf16.vlgmr.msra.gmra.mxu3 %vm1730_vm7, %v2338_v56  ;;  %5402 = vmatmul.msk.bf16.vlgmr.msra.gmra.mxu2 %vm1730_vm7, %v2341_v58  ;;  %v2339_v28 = vpack.c.bf16 %v2333_v59, %v2333_v59 }
 0x92e   : > { %5400 = vmatmul.msk.bf16.vlgmr.msrb.gmra.mxu1 %vm1730_vm7, %v2339_v28 }
 0x9a8   : > { %v2645_v62 = vpop.f32.mrf.mxu0 }
 0x9a9   : > { %v2670_v63 = vmul.f32 0.35355338, %v2645_v62 }
 0x9ab   : > { %v2626_v0 = vpop.f32.mrf.mxu1  ;;  %v2674_v2 = vadd.f32 %v2670_v63, %v1307_v60 }
 0x9ac   : > { %v2669_v3 = vmul.f32 0.35355338, %v2626_v0 }
 0x9ad   : > { %v2682_v4 = vsel %vm1730_vm7, %v2674_v2, -inf }
 0x9ae   : > { %2683 = vmax.xlane.f32.xlu1 %v2682_v4  ;;  %v2673_v5 = vadd.f32 %v2669_v3, %v1307_v60 }
 0x9af   : > { %v2607_v6 = vpop.f32.mrf.mxu3  ;;  %v2664_v7 = vpop.f32.mrf.mxu2 }
 0x9b0   : > { %v2668_v8 = vmul.f32 0.35355338, %v2607_v6  ;;  %v2647_v9 = vpop.f32.mrf.mxu0  ;;  %v2671_v10 = vmul.f32 0.35355338, %v2664_v7  ;;  %v2679_v11 = vsel %vm1730_vm7, %v2673_v5, -inf }
 0x9b1   : > { %2680 = vmax.xlane.f32.xlu2 %v2679_v11 }
 0x9b2   : > { %v2675_v12 = vadd.f32 %v2671_v10, %v1307_v60  ;;  %v2672_v15 = vadd.f32 %v2668_v8, %v1307_v60 }
 0x9b3   : > { %v2628_v13 = vpop.f32.mrf.mxu1 }
 0x9b4   : > { %v2685_v14 = vsel %vm1730_vm7, %v2675_v12, -inf  ;;  %v2676_v33 = vsel %vm1730_vm7, %v2672_v15, -inf }
 0x9b5   : > { %2686 = vmax.xlane.f32.xlu0 %v2685_v14 }
 0x9b7   : > { %v2609_v16 = vpop.f32.mrf.mxu3  ;;  %v2666_v17 = vpop.f32.mrf.mxu2 }
 0x9b9   : > { %2677 = vmax.xlane.f32.xlu2 %v2676_v33 }
 0x9c9   : > { %5904 = vrot.lane.b32.xlu0 %v5903_v19, %s8213_s22 }
 0x9d1   : > { %5909 = vrot.lane.b32.xlu2 %v5908_v20, %s8213_s22  ;;  %s8279_s22 = smov 120  }
 0xa21   : > { %v2684_v21 = vpop.xlane.xlu1 %2683 }
 0xa22   : > { %v2690_v23 = vsub.f32 %v2674_v2, %v2684_v21 }
 0xa24   : > { %v2696_v24 = vmul.f32 1.442695, %v2690_v23  ;;  %v2681_v25 = vpop.xlane.xlu2 %2680 }
 0xa25   : > { %v2689_v32 = vsub.f32 %v2673_v5, %v2681_v25 }
 0xa26   : > { %5991 = vpow2.f32 %v2696_v24 }
 0xa27   : > { %v2694_v38 = vmul.f32 1.442695, %v2689_v32 }
 0xa28   : > { %v2687_v44 = vpop.xlane.xlu0 %2686 }
 0xa29   : > { %v2691_v22 = vsub.f32 %v2675_v12, %v2687_v44 }
 0xa2b   : > { %v2698_v36 = vmul.f32 1.442695, %v2691_v22 }
 0xa2c   : > { %v7506_v26 = vpop.eup %5991  ;;  %v2678_v27 = vpop.xlane.xlu2 %2677 }
 0xa2d   : > { %v2688_v30 = vsub.f32 %v2672_v15, %v2678_v27  ;;  %v2706_v1 = vsel %vm1730_vm7, %v7506_v26, 0.0 }
 0xa2e   : > { %2707 = vadd.xlane.f32.xlu0 %v2706_v1 }
 0xa2f   : > { %v2692_v48 = vmul.f32 1.442695, %v2688_v30 }
 0xa31   : > { %5993 = vpow2.f32 %v2692_v48 }
 0xa32   : > { %5995 = vpow2.f32 %v2698_v36 }
 0xa33   : > { %5997 = vpow2.f32 %v2694_v38 }
 0xa34   : > { %v5910_v29 = vpop.permute.xlu2 %5909 }
 0xa35   : > { %v5912_v34 = vunpack.i.h.bf16 %v5910_v29  ;;  %v5911_v35 = vunpack.i.l.bf16 %v5910_v29 }
 0xa37   : > { %v7510_v31 = vpop.eup %5993  ;;  %v2490_v39 = vrot.slane %v5912_v34, 4  ;;  %v2478_v42 = vrot.slane %v5911_v35, 4 }
 0xa38   : > { %v2700_v37 = vsel %vm1730_vm7, %v7510_v31, 0.0  ;;  %v7514_v47 = vpop.eup %5995 }
 0xa39   : > { %2701 = vadd.xlane.f32.xlu1 %v2700_v37  ;;  %v2709_v58 = vsel %vm1730_vm7, %v7514_v47, 0.0  ;;  %v7530_v6 = vpop.eup %5997 }
 0xa3a   : > { %v2703_v16 = vsel %vm1730_vm7, %v7530_v6, 0.0 }
 0xa3b   : > { %v5905_v40 = vpop.permute.xlu0 %5904 }
 0xa3c   : > { %v5907_v43 = vunpack.i.h.bf16 %v5905_v40  ;;  %v5906_v45 = vunpack.i.l.bf16 %v5905_v40 }
 0xa3e   : > { %v2492_v49 = vrot.slane %v5907_v43, 4  ;;  %v2479_v50 = vsel %vm1364_vm6, %v2478_v42, %v5906_v45  ;;  %v2480_v51 = vrot.slane %v5906_v45, 4  ;;  %v2491_v52 = vsel %vm1364_vm6, %v2490_v39, %v5907_v43 }
 0xa3f   : > { %v2485_v53 = vperm.slane %v2479_v50, %v7136_v46  ;;  %v2497_v54 = vperm.slane %v2491_v52, %v7136_v46 }
 0xa40   : > { %v2481_v55 = vsel %vm1364_vm6, %v5911_v35, %v2480_v51  ;;  %v2493_v56 = vsel %vm1364_vm6, %v5912_v34, %v2492_v49 }
 0xa41   : > { %v2489_v59 = vperm.slane %v2481_v55, %v7136_v46  ;;  %v2501_v28 = vperm.slane %v2493_v56, %v7136_v46  ;;  %v2502_v60 = vrot.slane %v2497_v54, 4  ;;  %v2504_v62 = vrot.slane %v2485_v53, 4  ;;  %2710 = vadd.xlane.f32.xlu1 %v2709_v58 }
 0xa43   : > { %v2503_v63 = vsel %vm1364_vm6, %v2502_v60, %v2485_v53  ;;  %v2505_v0 = vsel %vm1364_vm6, %v2497_v54, %v2504_v62  ;;  %v2514_v2 = vrot.slane %v2501_v28, 4  ;;  %v2516_v3 = vrot.slane %v2489_v59, 4 }
 0xa44   : > { %v2509_v4 = vperm.slane %v2503_v63, %v7146_v61  ;;  %v2513_v5 = vperm.slane %v2505_v0, %v7146_v61 }
 0xa45   : > { %v2515_v7 = vsel %vm1364_vm6, %v2514_v2, %v2489_v59  ;;  %v2517_v8 = vsel %vm1364_vm6, %v2501_v28, %v2516_v3 }
 0xa46   : > { %v2521_v9 = vperm.slane %v2515_v7, %v7146_v61  ;;  %v2525_v10 = vperm.slane %v2517_v8, %v7146_v61  ;;  %v2526_v11 = vrot.slane %v2509_v4, 4  ;;  %v2528_v12 = vrot.slane %v2513_v5, 4 }
 0xa48   : > { %v2529_v13 = vsel %vm1364_vm6, 0.0, %v2528_v12  ;;  %v2530_v14 = vrot.slane %v2521_v9, 4  ;;  %v2532_v15 = vrot.slane %v2525_v10, 4  ;;  %v2534_v17 = vsel %vm1364_vm6, %v2528_v12, %v2509_v4 }
 0xa49   : > { %v2539_v33 = vrot.slane %v2529_v13, 4  ;;  %2704 = vadd.xlane.f32.xlu1 %v2703_v16  ;;  %v2527_v19 = vsel %vm1364_vm6, 0.0, %v2526_v11  ;;  %v2538_v21 = vperm.slane %v2534_v17, %v7136_v46 }
 0xa4a   : > { %v2533_v20 = vsel %vm1364_vm6, 0.0, %v2532_v15  ;;  %v2545_v23 = vsel %vm1364_vm6, %v2532_v15, %v2521_v9  ;;  %v2531_v27 = vsel %vm1364_vm6, 0.0, %v2530_v14 }
 0xa4b   : > { %v2550_v24 = vrot.slane %v2533_v20, 4  ;;  %v2540_v25 = vsel %vm1364_vm6, %v2539_v33, %v2527_v19  ;;  %v2549_v44 = vperm.slane %v2545_v23, %v7136_v46  ;;  %v2558_v1 = vrot.slane %v2538_v21, 4 }
 0xa4c   : > { %v2544_v30 = vperm.slane %v2540_v25, %v7136_v46 }
 0xa4d   : > { %v2551_v22 = vsel %vm1364_vm6, %v2550_v24, %v2531_v27  ;;  %v2570_v48 = vrot.slane %v2549_v44, 4 }
 0xa4e   : > { %v2555_v36 = vperm.slane %v2551_v22, %v7136_v46  ;;  %v2559_v29 = vsel %vm1364_vm6, %v2544_v30, %v2558_v1  ;;  %v2556_v32 = vrot.slane %v2544_v30, 4 }
 0xa4f   : > { %v2567_v34 = vperm.slane %v2559_v29, %v7146_v61 }
 0xa50   : > { %v2571_v35 = vsel %vm1364_vm6, %v2555_v36, %v2570_v48  ;;  %v2557_v37 = vsel %vm1364_vm6, %v2556_v32, %v2538_v21  ;;  %v2568_v38 = vrot.slane %v2555_v36, 4 }
 0xa51   : > { %v2579_v40 = vperm.slane %v2571_v35, %v7146_v61  ;;  %v2586_v39 = vrot.slane %v2567_v34, 4  ;;  %v2563_v42 = vperm.slane %v2557_v37, %v7146_v61 }
 0xa52   : > { %v2569_v43 = vsel %vm1364_vm6, %v2568_v38, %v2549_v44 }
 0xa53   : > { %v2587_v45 = vsel %vm1364_vm6, %v2579_v40, %v2586_v39  ;;  %v2575_v49 = vperm.slane %v2569_v43, %v7146_v61  ;;  %v2582_v50 = vrot.slane %v2563_v42, 4  ;;  %v2584_v51 = vrot.slane %v2579_v40, 4 }
 0xa54   : > { %v2591_v52 = vpack.c.bf16 %v2587_v45, %v2587_v45 }
 0xa55   : > { %v2583_v53 = vsel %vm1364_vm6, %v2575_v49, %v2582_v50  ;;  %v2585_v54 = vsel %vm1364_vm6, %v2584_v51, %v2567_v34  ;;  %v2580_v55 = vrot.slane %v2575_v49, 4 }
 0xa56   : > { %v2785_v56 = vsel %vm1866_vm8, %v2591_v52, 0  ;;  %v2589_v58 = vpack.c.bf16 %v2583_v53, %v2583_v53  ;;  %v2590_v59 = vpack.c.bf16 %v2585_v54, %v2585_v54 }
 0xa57   : > { %2794 = vmatpush.bf16.msrb.mxu2 %v2785_v56  ;;  %v2581_v28 = vsel %vm1364_vm6, %v2580_v55, %v2563_v42 }
 0xa58   : > { %v2747_v60 = vsel %vm1866_vm8, %v2589_v58, 0  ;;  %v2766_v62 = vsel %vm1866_vm8, %v2590_v59, 0  ;;  %v2588_v63 = vpack.c.bf16 %v2581_v28, %v2581_v28 }
 0xa59   : > { %2756 = vmatpush.bf16.msra.mxu1 %v2747_v60  ;;  %2775 = vmatpush.bf16.msra.mxu0 %v2766_v62 }
 0xa5a   : > { %v2728_v0 = vsel %vm1866_vm8, %v2588_v63, 0 }
 0xa5b   : > { %2737 = vmatpush.bf16.msrb.mxu3 %v2728_v0 }
 0xaa1   : > { %v2708_v2 = vpop.xlane.xlu0 %2707 }
 0xaa2   : > { %5999 = vrcp.f32 %v2708_v2 }
 0xaa8   : > { %v6000_v3 = vpop.eup %5999 }
 0xaa9   : > { %v2718_v4 = vmul.f32 %v6000_v3, %v7506_v26 }
 0xaab   : > { %v2722_v5 = vpack.c.bf16 %v2718_v4, %v2718_v4 }
 0xaac   : > { %v2702_v7 = vpop.xlane.xlu1 %2701 }
 0xaad   : > { %6001 = vrcp.f32 %v2702_v7  ;;  %5405 = vmatmul.msk.bf16.vlgmr.msra.gmra.mxu0 %vm1730_vm7, %v2722_v5 }
 0xab3   : > { %v6002_v8 = vpop.eup %6001 }
 0xab4   : > { %v2716_v9 = vmul.f32 %v6002_v8, %v7510_v31  ;;  %v2711_v10 = vpop.xlane.xlu1 %2710 }
 0xab5   : > { %6003 = vrcp.f32 %v2711_v10 }
 0xab6   : > { %v2720_v11 = vpack.c.bf16 %v2716_v9, %v2716_v9 }
 0xab8   : > { %5403 = vmatmul.msk.bf16.vlgmr.msrb.gmra.mxu3 %vm1730_vm7, %v2720_v11 }
 0xabb   : > { %v6004_v12 = vpop.eup %6003 }
 0xabc   : > { %v2719_v13 = vmul.f32 %v6004_v12, %v7514_v47  ;;  %v2705_v14 = vpop.xlane.xlu1 %2704 }
 0xabd   : > { %6005 = vrcp.f32 %v2705_v14 }
 0xabe   : > { %v2723_v15 = vpack.c.bf16 %v2719_v13, %v2719_v13 }
 0xac0   : > { %5406 = vmatmul.msk.bf16.vlgmr.msrb.gmra.mxu2 %vm1730_vm7, %v2723_v15 }
 0xac3   : > { %v6006_v26 = vpop.eup %6005 }
 0xac4   : > { %v2717_v16 = vmul.f32 %v6006_v26, %v7530_v6 }
 0xac6   : > { %v2721_v17 = vpack.c.bf16 %v2717_v16, %v2717_v16 }
 0xac8   : > { %5404 = vmatmul.msk.bf16.vlgmr.msra.gmra.mxu1 %vm1730_vm7, %v2721_v17 }
 0xb2a   : > { %v2777_v31 = vpop.f32.mrf.mxu0 }
 0xb2b   : > { %v2800_v20 = vrot.slane %v2777_v31, 4 }
 0xb32   : > { %v2779_v33 = vpop.f32.mrf.mxu0 }
 0xb3b   : > { %v2739_v19 = vpop.f32.mrf.mxu3 }
 0xb3c   : > { %v2802_v21 = vrot.slane %v2739_v19, 4  ;;  %v2801_v23 = vsel %vm1364_vm6, %v2800_v20, %v2739_v19 }
 0xb3d   : > { %v2807_v24 = vperm.slane %v2801_v23, %v7136_v46 }
 0xb3e   : > { %v2803_v47 = vsel %vm1364_vm6, %v2777_v31, %v2802_v21 }
 0xb3f   : > { %v2811_v30 = vperm.slane %v2803_v47, %v7136_v46  ;;  %v2826_v48 = vrot.slane %v2807_v24, 4 }
 0xb41   : > { %v2838_v32 = vrot.slane %v2811_v30, 4 }
 0xb43   : > { %v2741_v25 = vpop.f32.mrf.mxu3  ;;  %v2796_v44 = vpop.f32.mrf.mxu2 }
 0xb44   : > { %v2812_v27 = vrot.slane %v2796_v44, 4 }
 0xb45   : > { %v2758_v6 = vpop.f32.mrf.mxu1 }
 0xb46   : > { %v2813_v1 = vsel %vm1364_vm6, %v2812_v27, %v2758_v6  ;;  %v2814_v22 = vrot.slane %v2758_v6, 4  ;;  %v5605_v6 = vld [vmem:[%s8270_s2] sm:$0xff] }
 0xb47   : > { %v2819_v36 = vperm.slane %v2813_v1, %v7136_v46 }
 0xb48   : > { %v2815_v29 = vsel %vm1364_vm6, %v2796_v44, %v2814_v22 }
 0xb49   : > { %v2823_v34 = vperm.slane %v2815_v29, %v7136_v46  ;;  %v2824_v35 = vrot.slane %v2819_v36, 4  ;;  %v2827_v37 = vsel %vm1364_vm6, %v2819_v36, %v2826_v48 }
 0xb4a   : > { %v2835_v38 = vperm.slane %v2827_v37, %v7146_v61 }
 0xb4b   : > { %v2825_v40 = vsel %vm1364_vm6, %v2824_v35, %v2807_v24  ;;  %v2836_v39 = vrot.slane %v2823_v34, 4  ;;  %v2839_v42 = vsel %vm1364_vm6, %v2823_v34, %v2838_v32  ;;  %v2798_v43 = vpop.f32.mrf.mxu2  ;;  %v5950_v35 = vld [vmem:[#allocation17] ss:$0 sm:$0xff] }
 0xb4c   : > { %v2831_v45 = vperm.slane %v2825_v40, %v7146_v61  ;;  %v2847_v49 = vperm.slane %v2839_v42, %v7146_v61  ;;  %v2850_v50 = vrot.slane %v2835_v38, 4 }
 0xb4d   : > { %v2837_v51 = vsel %vm1364_vm6, %v2836_v39, %v2811_v30  ;;  %v2760_v52 = vpop.f32.mrf.mxu1  ;;  %v5606_v30 = vld [vmem:[%s8270_s2 + $0x8] sm:$0xff] }
 0xb4e   : > { %v2843_v53 = vperm.slane %v2837_v51, %v7146_v61  ;;  %v2848_v54 = vrot.slane %v2831_v45, 4  ;;  %v2851_v55 = vsel %vm1364_vm6, 0.0, %v2850_v50  ;;  %v2854_v56 = vrot.slane %v2847_v49, 4  ;;  %2950 = vmatpush.bf16.msra.mxu3 %v5606_v30  ;;  %v5608_v52 = vld [vmem:[%s8271_s26 + $0x8] sm:$0xff] }
 0xb4f   : > { %v2856_v58 = vsel %vm1364_vm6, %v2850_v50, %v2831_v45  ;;  %v2861_v59 = vrot.slane %v2851_v55, 4  ;;  %3037 = vmatpush.bf16.msrb.mxu1 %v5608_v52 }
 0xb50   : > { %v2849_v28 = vsel %vm1364_vm6, 0.0, %v2848_v54  ;;  %v2852_v60 = vrot.slane %v2843_v53, 4  ;;  %v2855_v62 = vsel %vm1364_vm6, 0.0, %v2854_v56  ;;  %v2860_v63 = vperm.slane %v2856_v58, %v7136_v46  ;;  %v5616_v54 = vld [vmem:[#allocation20 + $0x38] sm:$0xff] }
 0xb51   : > { %v2872_v0 = vrot.slane %v2855_v62, 4  ;;  %v2862_v2 = vsel %vm1364_vm6, %v2861_v59, %v2849_v28  ;;  %v2867_v3 = vsel %vm1364_vm6, %v2854_v56, %v2843_v53  ;;  %v5607_v53 = vld [vmem:[%s8271_s26] sm:$0xff]  ;;  %3097 = vmatpush.bf16.msrb.mxu0 %v5616_v54  ;;  %v5614_v59 = vld [vmem:[#allocation20 + $0x28] sm:$0xff]  ;;  %v5613_v28 = vld [vmem:[#allocation20 + $0x20] sm:$0xff] }
 0xb52   : > { %v2853_v4 = vsel %vm1364_vm6, 0.0, %v2852_v60  ;;  %v2866_v5 = vperm.slane %v2862_v2, %v7136_v46  ;;  %v2871_v7 = vperm.slane %v2867_v3, %v7136_v46  ;;  %v2880_v8 = vrot.slane %v2860_v63, 4  ;;  %2951 = vmatpush.bf16.msra.mxu3 %v5605_v6  ;;  %v5615_v56 = vld [vmem:[#allocation20 + $0x30] sm:$0xff] }
 0xb53   : > { %v2873_v9 = vsel %vm1364_vm6, %v2872_v0, %v2853_v4  ;;  %3038 = vmatpush.bf16.msrb.mxu1 %v5607_v53  ;;  %v5611_v3 = vld [vmem:[#allocation20 + $0x10] sm:$0xff] }
 0xb54   : > { %v2877_v10 = vperm.slane %v2873_v9, %v7136_v46  ;;  %v2892_v11 = vrot.slane %v2871_v7, 4  ;;  %v2878_v12 = vrot.slane %v2866_v5, 4  ;;  %v2881_v13 = vsel %vm1364_vm6, %v2866_v5, %v2880_v8  ;;  %v5957_v53 = vld [vmem:[#allocation10 + $0x1] ss:$0 sm:$0xff] }
 0xb55   : > { %v2889_v33 = vperm.slane %v2881_v13, %v7146_v61  ;;  %3098 = vmatpush.bf16.msrb.mxu0 %v5615_v56 }
 0xb56   : > { %v2893_v14 = vsel %vm1364_vm6, %v2877_v10, %v2892_v11  ;;  %v2879_v15 = vsel %vm1364_vm6, %v2878_v12, %v2860_v63  ;;  %v2890_v26 = vrot.slane %v2877_v10, 4  ;;  %v5612_v63 = vld [vmem:[#allocation20 + $0x18] sm:$0xff] }
 0xb57   : > { %v2901_v16 = vperm.slane %v2893_v14, %v7146_v61  ;;  %v2885_v17 = vperm.slane %v2879_v15, %v7146_v61  ;;  %v2908_v44 = vrot.slane %v2889_v33, 4  ;;  %v5610_v14 = vld [vmem:[#allocation20 + $0x8] sm:$0xff]  ;;  %v5609_v15 = vld [vmem:[#allocation20] sm:$0xff] }
 0xb58   : > { %v2891_v31 = vsel %vm1364_vm6, %v2890_v26, %v2871_v7  ;;  %v5953_v26 = vld [vmem:[#allocation19] ss:$0 sm:$0xff] }
 0xb59   : > { %v2906_v19 = vrot.slane %v2901_v16, 4  ;;  %v2897_v20 = vperm.slane %v2891_v31, %v7146_v61  ;;  %v2904_v21 = vrot.slane %v2885_v17, 4  ;;  %v2909_v27 = vsel %vm1364_vm6, %v2901_v16, %v2908_v44  ;;  %3099 = vmatpush.bf16.msrb.mxu0 %v5614_v59 }
 0xb5b   : > { %v2907_v23 = vsel %vm1364_vm6, %v2906_v19, %v2889_v33  ;;  %v2902_v47 = vrot.slane %v2897_v20, 4  ;;  %v2905_v24 = vsel %vm1364_vm6, %v2897_v20, %v2904_v21  ;;  %v5954_v20 = vld [vmem:[#allocation22] ss:$0 sm:$0xff] }
 0xb5c   : > { %2915 = vrot.lane.b32.xlu1 %v2907_v23, %s8207_s18  ;;  %2911 = vrot.lane.b32.xlu2 %v2905_v24, %s8205_s7  ;;  %s8274_s18 = sld [smem:[#allocation51_spill]] }
 0xb5d   : > { %v2903_v25 = vsel %vm1364_vm6, %v2902_v47, %v2885_v17  ;;  %3100 = vmatpush.bf16.msrb.mxu0 %v5613_v28 }
 0xb61   : > { %3101 = vmatpush.bf16.msrb.mxu0 %v5612_v63 }
 0xb62   : > { %s8275_s8 = smov %s8274_s18  ;;  %v5952_v9 = vld [vmem:[%s8274_s18] ss:$0 sm:$0xff]  ;;  %s8276_s18 = sld [smem:[#allocation53_spill]] }
 0xb64   : > { %2919 = vrot.lane.b32.xlu2 %v2909_v27, %s8203_s15  ;;  %s8272_s15 = sld [smem:[#allocation50_spill]] }
 0xb65   : > { %3102 = vmatpush.bf16.msrb.mxu0 %v5611_v3 }
 0xb68   : > { %s8277_s28 = smov %s8276_s18 }
 0xb69   : > { %3103 = vmatpush.bf16.msrb.mxu0 %v5610_v14 }
 0xb6a   : > { %s8273_s7 = smov %s8272_s15  ;;  %v5951_v7 = vld [vmem:[%s8272_s15] ss:$0 sm:$0xff]  ;;  %s8278_s15 = smov 112  }
 0xb6d   : > { %3104 = vmatpush.bf16.msrb.mxu0 %v5609_v15 }
 0xbb6   : > { %v2912_v1 = vpop.permute.xlu2 %2911 }
 0xbb7   : > { %v2922_v22 = vsel %vm1730_vm7, %v2903_v25, %v2912_v1 }
 0xbbe   : > { %v2920_v36 = vpop.permute.xlu2 %2919 }
 0xbce   : > { %v2916_v48 = vpop.permute.xlu1 %2915 }
 0xbcf   : > { %v2923_v29 = vsel %vm2063_vm9, %v2922_v22, %v2916_v48  ;;  %v5618_v22 = vld [vmem:[#allocation8 + $0x18] sm:$0xff]  ;;  %v5617_v48 = vld [vmem:[#allocation8 + $0x10] sm:$0xff] }
 0xbd0   : > { %v2924_v32 = vsel %vm2065_vm10, %v2923_v29, %v2920_v36  ;;  %3184 = vmatpush.bf16.msra.mxu2 %v5618_v22 }
 0xbd1   : > { %v2925_v34 = vpack.c.bf16 %v2924_v32, %v2924_v32 }
 0xbd3   : > { %5415 = vmatmul.msk.bf16.vlgmr.msra.gmra.mxu3 %vm1336_vm5, %v2925_v34 }
 0xbd4   : > { %3185 = vmatpush.bf16.msra.mxu2 %v5617_v48 }
 0xc56   : > { %v2953_v37 = vpop.f32.mrf.mxu3 }
 0xc57   : > { %v2954_v38 = vadd.f32 %v5950_v35, %v2953_v37 }
 0xc59   : > { %v2957_v40 = vadd.f32 %v2954_v38, %v7381_v18 }
 0xc5b   : > { %v2958_v39 = vsel %vm1336_vm5, %v2957_v40, 0.0 }
 0xc5c   : > { %2959 = vadd.xlane.f32.xlu2 %v2958_v39 }
 0xc5e   : > { %v2955_v42 = vpop.f32.mrf.mxu3 }
 0xc5f   : > { %v5955_v42 = vld [vmem:[%s8276_s18] ss:$0 sm:$0xff]  ;;  %s8280_s18 = smov 104  }
 0xccf   : > { %v2960_v43 = vpop.xlane.xlu2 %2959 }
 0xcd0   : > { %v2961_v45 = vmul.f32 %v2960_v43, %v7364_v57 }
 0xcd2   : > { %v2962_v49 = vsub.f32 %v2957_v40, %v2961_v45  ;;  %v5956_v45 = vld [vmem:[%s6803_s9] ss:$0 sm:$0xff] }
 0xcd4   : > { %v2963_v50 = vmul.f32 %v2962_v49, %v2962_v49 }
 0xcd6   : > { %v2964_v51 = vsel %vm1336_vm5, %v2963_v50, 0.0 }
 0xcd7   : > { %2965 = vadd.xlane.f32.xlu1 %v2964_v51 }
 0xd4a   : > { %v2966_v55 = vpop.xlane.xlu1 %2965 }
 0xd4b   : > { %v2967_v18 = vmul.f32 %v2966_v55, %v7364_v57 }
 0xd4d   : > { %v2968_v58 = vadd.f32 1e-05, %v2967_v18 }
 0xd4f   : > { %6007 = vrsqrt.f32 %v2968_v58  ;;  %vm2975_vm0 = vweird.f32 %v2968_v58 }
 0xd55   : > { %v6008_v60 = vpop.eup %6007 }
 0xd56   : > { %v2970_v62 = vmul.f32 %v6008_v60, %v2968_v58  ;;  %vm2976_vm15 = vweird.f32 %v6008_v60 }
 0xd57   : > { %vm2977_vm1 = vmor %vm2975_vm0, %vm2976_vm15 }
 0xd58   : > { %v2971_v0 = vmul.f32 %v6008_v60, %v2970_v62 }
 0xd5a   : > { %v2972_v2 = vmul.f32 0.5, %v2971_v0 }
 0xd5c   : > { %v2973_v4 = vsub.f32 1.5, %v2972_v2 }
 0xd5e   : > { %v2974_v5 = vmul.f32 %v6008_v60, %v2973_v4 }
 0xd60   : > { %v2978_v8 = vsel %vm2977_vm1, %v6008_v60, %v2974_v5 }
 0xd61   : > { %v2979_v10 = vmul.f32 %v2978_v8, %v2962_v49 }
 0xd63   : > { %v2983_v11 = vmul.f32 %v5951_v7, %v2979_v10 }
 0xd65   : > { %v2987_v12 = vadd.f32 %v5952_v9, %v2983_v11 }
 0xd67   : > { %v3012_v13 = vpack.c.bf16 %v2987_v12, %v2987_v12 }
 0xd69   : > { %5424 = vmatmul.msk.bf16.vlgmr.msrb.gmra.mxu1 %vm1336_vm5, %v3012_v13 }
 0xde6   : > { %v3040_v16 = vpop.f32.mrf.mxu1 }
 0xde7   : > { %v3041_v17 = vadd.f32 %v5953_v26, %v3040_v16 }
 0xde9   : > { %v3044_v31 = vmax.f32 %v3041_v17, 0.0 }
 0xdeb   : > { %v3045_v33 = vpack.c.bf16 %v3044_v31, %v3044_v31 }
 0xded   : > { %3105 = vmatmul.bf16.vlgmr.msrb.gmra.mxu0 %v3045_v33 }
 0xdee   : > { %v3042_v19 = vpop.f32.mrf.mxu1 }
 0xe6a   : > { %v3106_v21 = vpop.f32.mrf.mxu0 }
 0xe6b   : > { %v3107_v23 = vadd.f32 %v5954_v20, %v3106_v21 }
 0xe6d   : > { %v3110_v47 = vadd.f32 %v3107_v23, %v2987_v12 }
 0xe6f   : > { %v3111_v24 = vsel %vm1336_vm5, %v3110_v47, 0.0 }
 0xe70   : > { %3112 = vadd.xlane.f32.xlu0 %v3111_v24 }
 0xe72   : > { %v3108_v25 = vpop.f32.mrf.mxu0 }
 0xee3   : > { %v3113_v44 = vpop.xlane.xlu0 %3112 }
 0xee4   : > { %v3114_v27 = vmul.f32 %v3113_v44, %v7364_v57 }
 0xee6   : > { %v3115_v30 = vsub.f32 %v3110_v47, %v3114_v27 }
 0xee8   : > { %v3116_v6 = vmul.f32 %v3115_v30, %v3115_v30 }
 0xeea   : > { %v3117_v1 = vsel %vm1336_vm5, %v3116_v6, 0.0 }
 0xeeb   : > { %3118 = vadd.xlane.f32.xlu0 %v3117_v1 }
 0xf5e   : > { %v3119_v36 = vpop.xlane.xlu0 %3118 }
 0xf5f   : > { %v3120_v29 = vmul.f32 %v3119_v36, %v7364_v57 }
 0xf61   : > { %v3121_v32 = vadd.f32 1e-05, %v3120_v29 }
 0xf63   : > { %6009 = vrsqrt.f32 %v3121_v32  ;;  %vm3128_vm3 = vweird.f32 %v3121_v32 }
 0xf69   : > { %v6010_v34 = vpop.eup %6009 }
 0xf6a   : > { %v3123_v35 = vmul.f32 %v6010_v34, %v3121_v32  ;;  %vm3129_vm2 = vweird.f32 %v6010_v34 }
 0xf6b   : > { %vm3130_vm11 = vmor %vm3128_vm3, %vm3129_vm2 }
 0xf6c   : > { %v3124_v37 = vmul.f32 %v6010_v34, %v3123_v35 }
 0xf6e   : > { %v3125_v38 = vmul.f32 0.5, %v3124_v37 }
 0xf70   : > { %v3126_v40 = vsub.f32 1.5, %v3125_v38 }
 0xf72   : > { %v3127_v39 = vmul.f32 %v6010_v34, %v3126_v40 }
 0xf74   : > { %v3131_v43 = vsel %vm3130_vm11, %v6010_v34, %v3127_v39 }
 0xf75   : > { %v3132_v49 = vmul.f32 %v3131_v43, %v3115_v30 }
 0xf77   : > { %v3136_v50 = vmul.f32 %v5955_v42, %v3132_v49 }
 0xf79   : > { %v7639_v51 = vadd.f32 %v5956_v45, %v3136_v50 }
 0xf7b   : > { %v3159_v52 = vpack.c.bf16 %v7639_v51, %v7639_v51 }
 0xf7d   : > { %5467 = vmatmul.msk.bf16.vlgmr.msra.gmra.mxu2 %vm1336_vm5, %v3159_v52 }
0x1000   : > { %v3187_v54 = vpop.f32.mrf.mxu2 }
0x1001   : > { %v3188_v55 = vadd.f32 %v5957_v53, %v3187_v54 }
0x1003   : > { %3195 = vrot.lane.b32.xlu2 %v3188_v55, %s8278_s15  ;;  %3192 = vrot.lane.b32.xlu0 %v3188_v55, %s8279_s22  ;;  %v3203_v63 = vrot.slane %v3188_v55, 4 }
0x1008   : > { %v3189_v18 = vpop.f32.mrf.mxu2 }
0x100b   : > { %3198 = vrot.lane.b32.xlu0 %v3188_v55, %s8280_s18 }
0x105d   : > { %v3196_v59 = vpop.permute.xlu2 %3195 }
0x105e   : > { %v3201_v62 = vrot.slane %v3196_v59, 4  ;;  %v3204_v0 = vsel %vm1364_vm6, %v3196_v59, %v3203_v63 }
0x105f   : > { %v3212_v7 = vperm.slane %v3204_v0, %v7136_v46 }
0x1060   : > { %v3202_v4 = vsel %vm1364_vm6, %v3201_v62, %v3188_v55 }
0x1061   : > { %v3208_v9 = vperm.slane %v3202_v4, %v7136_v46  ;;  %v3239_v11 = vrot.slane %v3212_v7, 4 }
0x1063   : > { %v3227_v13 = vrot.slane %v3208_v9, 4 }
0x1075   : > { %v3193_v56 = vpop.permute.xlu0 %3192 }
0x1076   : > { %v7647_v58 = vpack.i.bf16 %v3193_v56, %v3188_v55  ;;  %v3215_v2 = vrot.slane %v3193_v56, 4 }
0x1078   : > { %5914 = vrot.lane.b32.xlu1 %v7647_v58, %s8281_s3 }
0x107d   : > { %v3199_v28 = vpop.permute.xlu0 %3198 }
0x107e   : > { %v7651_v60 = vpack.i.bf16 %v3199_v28, %v3196_v59  ;;  %v3213_v3 = vrot.slane %v3199_v28, 4  ;;  %v3216_v5 = vsel %vm1364_vm6, %v3199_v28, %v3215_v2 }
0x107f   : > { %v3224_v10 = vperm.slane %v3216_v5, %v7136_v46 }
0x1080   : > { %5919 = vrot.lane.b32.xlu0 %v7651_v60, %s8281_s3  ;;  %v3214_v8 = vsel %vm1364_vm6, %v3213_v3, %v3193_v56 }
0x1081   : > { %v3220_v12 = vperm.slane %v3214_v8, %v7136_v46  ;;  %v3237_v14 = vrot.slane %v3224_v10, 4  ;;  %v3240_v15 = vsel %vm1364_vm6, %v3224_v10, %v3239_v11 }
0x1082   : > { %v3248_v17 = vperm.slane %v3240_v15, %v7146_v61 }
0x1083   : > { %v3225_v26 = vrot.slane %v3220_v12, 4  ;;  %v3228_v16 = vsel %vm1364_vm6, %v3220_v12, %v3227_v13  ;;  %v3238_v31 = vsel %vm1364_vm6, %v3237_v14, %v3212_v7 }
0x1084   : > { %v3236_v33 = vperm.slane %v3228_v16, %v7146_v61  ;;  %v3244_v21 = vperm.slane %v3238_v31, %v7146_v61  ;;  %v3255_v23 = vrot.slane %v3248_v17, 4 }
0x1085   : > { %v3226_v20 = vsel %vm1364_vm6, %v3225_v26, %v3208_v9 }
0x1086   : > { %v3232_v25 = vperm.slane %v3226_v20, %v7146_v61  ;;  %v3251_v44 = vrot.slane %v3236_v33, 4  ;;  %v3253_v27 = vrot.slane %v3244_v21, 4  ;;  %v3256_v30 = vsel %vm1364_vm6, 0.0, %v3255_v23 }
0x1087   : > { %v3273_v40 = vrot.slane %v3256_v30, 4  ;;  %v3268_v56 = vsel %vm1364_vm6, %v3255_v23, %v3244_v21 }
0x1088   : > { %v3249_v29 = vrot.slane %v3232_v25, 4  ;;  %v3252_v32 = vsel %vm1364_vm6, 0.0, %v3251_v44  ;;  %v3254_v43 = vsel %vm1364_vm6, 0.0, %v3253_v27  ;;  %v3257_v0 = vsel %vm1364_vm6, %v3251_v44, %v3232_v25 }
0x1089   : > { %v3262_v45 = vrot.slane %v3252_v32, 4  ;;  %v3274_v2 = vsel %vm1364_vm6, %v3273_v40, %v3254_v43  ;;  %v3272_v5 = vperm.slane %v3268_v56, %v7136_v46  ;;  %v3261_v15 = vperm.slane %v3257_v0, %v7136_v46 }
0x108a   : > { %v3250_v18 = vsel %vm1364_vm6, 0.0, %v3249_v29  ;;  %v3278_v14 = vperm.slane %v3274_v2, %v7136_v46 }
0x108b   : > { %v3263_v9 = vsel %vm1364_vm6, %v3262_v45, %v3250_v18  ;;  %v3293_v31 = vrot.slane %v3272_v5, 4  ;;  %v3281_v29 = vrot.slane %v3261_v15, 4 }
0x108c   : > { %v3267_v20 = vperm.slane %v3263_v9, %v7136_v46  ;;  %v3291_v25 = vrot.slane %v3278_v14, 4 }
0x108d   : > { %v3294_v32 = vsel %vm1364_vm6, %v3278_v14, %v3293_v31 }
0x10ea   : > { %v5915_v19 = vpop.permute.xlu1 %5914 }
0x10eb   : > { %v5917_v47 = vunpack.i.h.bf16 %v5915_v19  ;;  %v5916_v24 = vunpack.i.l.bf16 %v5915_v19 }
0x10ed   : > { %v3341_v1 = vrot.slane %v5917_v47, 4  ;;  %v3329_v22 = vrot.slane %v5916_v24, 4 }
0x10f2   : > { %v5920_v6 = vpop.permute.xlu0 %5919 }
0x10f3   : > { %v5922_v48 = vunpack.i.h.bf16 %v5920_v6  ;;  %v5921_v36 = vunpack.i.l.bf16 %v5920_v6 }
0x10f5   : > { %v3339_v34 = vrot.slane %v5922_v48, 4  ;;  %v3342_v35 = vsel %vm1364_vm6, %v5922_v48, %v3341_v1  ;;  %v3327_v37 = vrot.slane %v5921_v36, 4  ;;  %v3330_v38 = vsel %vm1364_vm6, %v5921_v36, %v3329_v22 }
0x10f6   : > { %v3350_v39 = vperm.slane %v3342_v35, %v7136_v46  ;;  %v3338_v42 = vperm.slane %v3330_v38, %v7136_v46  ;;  %v3279_v38 = vrot.slane %v3267_v20, 4 }
0x10f7   : > { %v3340_v49 = vsel %vm1364_vm6, %v3339_v34, %v5917_v47  ;;  %v3328_v50 = vsel %vm1364_vm6, %v3327_v37, %v5916_v24 }
0x10f8   : > { %v3346_v52 = vperm.slane %v3340_v49, %v7136_v46  ;;  %v3363_v53 = vrot.slane %v3350_v39, 4  ;;  %v3334_v54 = vperm.slane %v3328_v50, %v7136_v46  ;;  %v3365_v55 = vrot.slane %v3338_v42, 4 }
0x10f9   : > { %v3302_v49 = vperm.slane %v3294_v32, %v7146_v61  ;;  %v3280_v18 = vsel %vm1364_vm6, %v3279_v38, %v3261_v15 }
0x10fa   : > { %v3351_v59 = vrot.slane %v3346_v52, 4  ;;  %v3353_v28 = vrot.slane %v3334_v54, 4  ;;  %v3364_v62 = vsel %vm1364_vm6, %v3363_v53, %v3338_v42  ;;  %v3366_v63 = vsel %vm1364_vm6, %v3350_v39, %v3365_v55 }
0x10fb   : > { %v3370_v3 = vperm.slane %v3364_v62, %v7146_v61  ;;  %v3374_v4 = vperm.slane %v3366_v63, %v7146_v61  ;;  %v3292_v39 = vsel %vm1364_vm6, %v3291_v25, %v3272_v5 }
0x10fc   : > { %v3352_v7 = vsel %vm1364_vm6, %v3351_v59, %v3334_v54  ;;  %v3354_v8 = vsel %vm1364_vm6, %v3346_v52, %v3353_v28  ;;  %v3282_v54 = vsel %vm1364_vm6, %v3267_v20, %v3281_v29  ;;  %v3298_v56 = vperm.slane %v3292_v39, %v7146_v61 }
0x10fd   : > { %v3358_v10 = vperm.slane %v3352_v7, %v7146_v61  ;;  %v3362_v11 = vperm.slane %v3354_v8, %v7146_v61  ;;  %v3379_v12 = vrot.slane %v3370_v3, 4  ;;  %v3381_v13 = vrot.slane %v3374_v4, 4 }
0x10fe   : > { %v3290_v2 = vperm.slane %v3282_v54, %v7146_v61  ;;  %v3286_v8 = vperm.slane %v3280_v18, %v7146_v61 }
0x10ff   : > { %v3375_v26 = vrot.slane %v3358_v10, 4  ;;  %v3377_v16 = vrot.slane %v3362_v11, 4  ;;  %v3382_v17 = vsel %vm1364_vm6, 0.0, %v3381_v13  ;;  %v3394_v33 = vsel %vm1364_vm6, %v3381_v13, %v3370_v3 }
0x1100   : > { %v3399_v19 = vrot.slane %v3382_v17, 4  ;;  %v3380_v23 = vsel %vm1364_vm6, 0.0, %v3379_v12  ;;  %v3398_v47 = vperm.slane %v3394_v33, %v7136_v46  ;;  %v3307_v3 = vrot.slane %v3302_v49, 4 }
0x1101   : > { %v3378_v21 = vsel %vm1364_vm6, 0.0, %v3377_v16  ;;  %v3383_v24 = vsel %vm1364_vm6, %v3377_v16, %v3358_v10  ;;  %v3376_v6 = vsel %vm1364_vm6, 0.0, %v3375_v26  ;;  %v3303_v13 = vrot.slane %v3298_v56, 4 }
0x1102   : > { %v3388_v44 = vrot.slane %v3378_v21, 4  ;;  %v3387_v27 = vperm.slane %v3383_v24, %v7136_v46  ;;  %v3400_v30 = vsel %vm1364_vm6, %v3399_v19, %v3380_v23  ;;  %v3419_v22 = vrot.slane %v3398_v47, 4 }
0x1103   : > { %v3404_v1 = vperm.slane %v3400_v30, %v7136_v46  ;;  %v3308_v16 = vsel %vm1364_vm6, %v3307_v3, %v3290_v2  ;;  %v3305_v17 = vrot.slane %v3286_v8, 4  ;;  %v3304_v33 = vsel %vm1364_vm6, %v3303_v13, %v3286_v8 }
0x1104   : > { %v3389_v48 = vsel %vm1364_vm6, %v3388_v44, %v3376_v6  ;;  %v3407_v36 = vrot.slane %v3387_v27, 4  ;;  %v3313_v19 = vpack.c.bf16 %v3308_v16, %v3308_v16  ;;  %v3311_v21 = vpack.c.bf16 %v3304_v33, %v3304_v33 }
0x1105   : > { %v3393_v34 = vperm.slane %v3389_v48, %v7136_v46  ;;  %v3420_v35 = vsel %vm1364_vm6, %v3404_v1, %v3419_v22  ;;  %v3417_v37 = vrot.slane %v3404_v1, 4  ;;  %v3306_v20 = vsel %vm1364_vm6, %v3298_v56, %v3305_v17  ;;  %v6049_v22 = vld [vmem:[%s7228_s16] sm:$0xff]  ;;  %s8282_s16 = smov 64  }
0x1106   : > { %v3428_v40 = vperm.slane %v3420_v35, %v7146_v61  ;;  %v3312_v23 = vpack.c.bf16 %v3306_v20, %v3306_v20 }
0x1107   : > { %v3408_v42 = vsel %vm1364_vm6, %v3393_v34, %v3407_v36  ;;  %v3405_v43 = vrot.slane %v3393_v34, 4  ;;  %v3418_v45 = vsel %vm1364_vm6, %v3417_v37, %v3398_v47  ;;  %v3309_v47 = vrot.slane %v3290_v2, 4 }
0x1108   : > { %v3416_v50 = vperm.slane %v3408_v42, %v7146_v61  ;;  %v3433_v52 = vrot.slane %v3428_v40, 4  ;;  %v3424_v53 = vperm.slane %v3418_v45, %v7146_v61 }
0x1109   : > { %v3406_v55 = vsel %vm1364_vm6, %v3405_v43, %v3387_v27  ;;  %v3310_v24 = vsel %vm1364_vm6, %v3302_v49, %v3309_v47 }
0x110a   : > { %v3434_v59 = vsel %vm1364_vm6, %v3433_v52, %v3416_v50  ;;  %v3412_v28 = vperm.slane %v3406_v55, %v7146_v61  ;;  %v3429_v62 = vrot.slane %v3424_v53, 4  ;;  %v3435_v63 = vrot.slane %v3416_v50, 4 }
0x110b   : > { %v3439_v0 = vpack.c.bf16 %v3434_v59, %v3434_v59  ;;  %v3314_v25 = vpack.c.bf16 %v3310_v24, %v3310_v24 }
0x110c   : > { %v3430_v4 = vsel %vm1364_vm6, %v3429_v62, %v3412_v28  ;;  %v3436_v5 = vsel %vm1364_vm6, %v3428_v40, %v3435_v63  ;;  %v3431_v7 = vrot.slane %v3412_v28, 4 }
0x110d   : > { %v3609_v9 = vsel %vm1730_vm7, %v3439_v0, 0  ;;  %v3437_v10 = vpack.c.bf16 %v3430_v4, %v3430_v4  ;;  %v3440_v11 = vpack.c.bf16 %v3436_v5, %v3436_v5 }
0x110e   : > { %3618 = vmatpush.bf16.xpose.msrb.mxu2 %v3609_v9  ;;  %v3432_v12 = vsel %vm1364_vm6, %v3424_v53, %v3431_v7 }
0x110f   : > { %v3571_v14 = vsel %vm1730_vm7, %v3437_v10, 0  ;;  %v3628_v15 = vsel %vm1730_vm7, %v3440_v11, 0  ;;  %v3438_v26 = vpack.c.bf16 %v3432_v12, %v3432_v12 }
0x1110   : > { %3580 = vmatpush.bf16.xpose.msrb.mxu3 %v3571_v14 }
0x1111   : > { %v3590_v31 = vsel %vm1730_vm7, %v3438_v26, 0 }
0x1112   : > { %3599 = vmatpush.bf16.xpose.msra.mxu1 %v3590_v31 }
0x1115   : > { %5470 = vmatmul.msk.bf16.vlgmr.msrb.gmra.mxu2 %vm1730_vm7, %v3313_v19 }
0x1117   : > { %5468 = vmatmul.msk.bf16.vlgmr.msrb.gmra.mxu3 %vm1730_vm7, %v3311_v21 }
0x1118   : > { %3637 = vmatpush.bf16.xpose.msra.mxu3 %v3628_v15 }
0x1119   : > { %5469 = vmatmul.msk.bf16.vlgmr.msra.gmra.mxu1 %vm1730_vm7, %v3312_v23 }
0x1127   : > { %5471 = vmatmul.msk.bf16.vlgmr.msra.gmra.mxu3 %vm1730_vm7, %v3314_v25 }
0x1196   : > { %v3601_v44 = vpop.f32.mrf.mxu1 }
0x1197   : > { %v3644_v36 = vmul.f32 0.35355338, %v3601_v44 }
0x1198   : > { %v3620_v27 = vpop.f32.mrf.mxu2 }
0x1199   : > { %v3645_v30 = vmul.f32 0.35355338, %v3620_v27  ;;  %v3648_v38 = vadd.f32 %v6049_v22, %v3644_v36 }
0x119a   : > { %v3582_v6 = vpop.f32.mrf.mxu3 }
0x119b   : > { %v3643_v1 = vmul.f32 0.35355338, %v3582_v6  ;;  %v3649_v48 = vadd.f32 %v6049_v22, %v3645_v30  ;;  %v3654_v39 = vsel %vm1730_vm7, %v3648_v38, -inf }
0x119d   : > { %v3657_v29 = vsel %vm1730_vm7, %v3649_v48, -inf  ;;  %v3647_v32 = vadd.f32 %v6049_v22, %v3643_v1 }
0x119e   : > { %3658 = vmax.xlane.f32.xlu2 %v3657_v29  ;;  %v3603_v34 = vpop.f32.mrf.mxu1 }
0x119f   : > { %v3651_v35 = vsel %vm1730_vm7, %v3647_v32, -inf }
0x11a0   : > { %v3622_v37 = vpop.f32.mrf.mxu2  ;;  %3652 = vmax.xlane.f32.xlu1 %v3651_v35 }
0x11a2   : > { %v3584_v40 = vpop.f32.mrf.mxu3 }
0x11a6   : > { %3655 = vmax.xlane.f32.xlu2 %v3654_v39 }
0x11aa   : > { %v3639_v42 = vpop.f32.mrf.mxu3 }
0x11ab   : > { %v3646_v43 = vmul.f32 0.35355338, %v3639_v42 }
0x11ad   : > { %v3650_v45 = vadd.f32 %v6049_v22, %v3646_v43 }
0x11af   : > { %v3660_v49 = vsel %vm1730_vm7, %v3650_v45, -inf }
0x11b0   : > { %3661 = vmax.xlane.f32.xlu0 %v3660_v49 }
0x11b2   : > { %v3641_v50 = vpop.f32.mrf.mxu3 }
0x11be   : > { %5929 = vrot.lane.b32.xlu2 %v7651_v60, %s8282_s16 }
0x11c4   : > { %5924 = vrot.lane.b32.xlu0 %v7647_v58, %s8282_s16  ;;  %s8283_s16 = smov 16  }
0x1211   : > { %v3659_v52 = vpop.xlane.xlu2 %3658 }
0x1212   : > { %v3665_v53 = vsub.f32 %v3649_v48, %v3659_v52 }
0x1213   : > { %v3653_v54 = vpop.xlane.xlu1 %3652 }
0x1214   : > { %v3671_v55 = vmul.f32 1.442695, %v3665_v53  ;;  %v3663_v18 = vsub.f32 %v3647_v32, %v3653_v54 }
0x1216   : > { %6011 = vpow2.f32 %v3671_v55  ;;  %v3667_v56 = vmul.f32 1.442695, %v3663_v18 }
0x1218   : > { %6013 = vpow2.f32 %v3667_v56 }
0x1219   : > { %v3656_v59 = vpop.xlane.xlu2 %3655 }
0x121a   : > { %v3664_v28 = vsub.f32 %v3648_v38, %v3656_v59 }
0x121c   : > { %v7752_v62 = vpop.eup %6011  ;;  %v3669_v63 = vmul.f32 1.442695, %v3664_v28 }
0x121d   : > { %v3681_v0 = vsel %vm1730_vm7, %v7752_v62, 0.0 }
0x121e   : > { %6015 = vpow2.f32 %v3669_v63  ;;  %3682 = vadd.xlane.f32.xlu1 %v3681_v0  ;;  %v7756_v60 = vpop.eup %6013 }
0x121f   : > { %v3675_v5 = vsel %vm1730_vm7, %v7756_v60, 0.0 }
0x1221   : > { %v5930_v10 = vpop.permute.xlu2 %5929 }
0x1222   : > { %v5932_v11 = vunpack.i.h.bf16 %v5930_v10  ;;  %v5931_v12 = vunpack.i.l.bf16 %v5930_v10 }
0x1223   : > { %v3662_v58 = vpop.xlane.xlu0 %3661 }
0x1224   : > { %v7758_v2 = vpop.eup %6015  ;;  %v3666_v3 = vsub.f32 %v3650_v45, %v3662_v58  ;;  %v3465_v14 = vrot.slane %v5932_v11, 4  ;;  %v3453_v15 = vrot.slane %v5931_v12, 4 }
0x1225   : > { %v3678_v4 = vsel %vm1730_vm7, %v7758_v2, 0.0 }
0x1226   : > { %v3673_v7 = vmul.f32 1.442695, %v3666_v3  ;;  %3679 = vadd.xlane.f32.xlu2 %v3678_v4  ;;  %3676 = vadd.xlane.f32.xlu1 %v3675_v5 }
0x1228   : > { %6017 = vpow2.f32 %v3673_v7 }
0x122e   : > { %v7764_v8 = vpop.eup %6017 }
0x122f   : > { %v3684_v9 = vsel %vm1730_vm7, %v7764_v8, 0.0 }
0x1230   : > { %3685 = vadd.xlane.f32.xlu0 %v3684_v9 }
0x1236   : > { %v5925_v13 = vpop.permute.xlu0 %5924 }
0x1237   : > { %v5927_v26 = vunpack.i.h.bf16 %v5925_v13  ;;  %v5926_v16 = vunpack.i.l.bf16 %v5925_v13 }
0x1239   : > { %v3466_v17 = vsel %vm1364_vm6, %v3465_v14, %v5927_v26  ;;  %v3467_v31 = vrot.slane %v5927_v26, 4  ;;  %v3454_v33 = vsel %vm1364_vm6, %v3453_v15, %v5926_v16  ;;  %v3455_v19 = vrot.slane %v5926_v16, 4 }
0x123a   : > { %v3472_v20 = vperm.slane %v3466_v17, %v7136_v46  ;;  %v3460_v21 = vperm.slane %v3454_v33, %v7136_v46 }
0x123b   : > { %v3468_v23 = vsel %vm1364_vm6, %v5932_v11, %v3467_v31  ;;  %v3456_v47 = vsel %vm1364_vm6, %v5931_v12, %v3455_v19 }
0x123c   : > { %v3476_v24 = vperm.slane %v3468_v23, %v7136_v46  ;;  %v3477_v25 = vrot.slane %v3472_v20, 4  ;;  %v3464_v44 = vperm.slane %v3456_v47, %v7136_v46  ;;  %v3479_v27 = vrot.slane %v3460_v21, 4 }
0x123e   : > { %v3489_v30 = vrot.slane %v3476_v24, 4  ;;  %v3478_v6 = vsel %vm1364_vm6, %v3477_v25, %v3460_v21  ;;  %v3480_v1 = vsel %vm1364_vm6, %v3472_v20, %v3479_v27  ;;  %v3491_v22 = vrot.slane %v3464_v44, 4 }
0x123f   : > { %v3484_v48 = vperm.slane %v3478_v6, %v7146_v61  ;;  %v3488_v36 = vperm.slane %v3480_v1, %v7146_v61 }
0x1240   : > { %v3490_v29 = vsel %vm1364_vm6, %v3489_v30, %v3464_v44  ;;  %v3492_v32 = vsel %vm1364_vm6, %v3476_v24, %v3491_v22 }
0x1241   : > { %v3496_v34 = vperm.slane %v3490_v29, %v7146_v61  ;;  %v3500_v35 = vperm.slane %v3492_v32, %v7146_v61  ;;  %v3501_v37 = vrot.slane %v3484_v48, 4  ;;  %v3503_v38 = vrot.slane %v3488_v36, 4 }
0x1243   : > { %v3504_v40 = vsel %vm1364_vm6, 0.0, %v3503_v38  ;;  %v3505_v39 = vrot.slane %v3496_v34, 4  ;;  %v3507_v42 = vrot.slane %v3500_v35, 4  ;;  %v3509_v43 = vsel %vm1364_vm6, %v3503_v38, %v3484_v48 }
0x1244   : > { %v3514_v45 = vrot.slane %v3504_v40, 4  ;;  %v3502_v49 = vsel %vm1364_vm6, 0.0, %v3501_v37  ;;  %v3513_v52 = vperm.slane %v3509_v43, %v7136_v46 }
0x1245   : > { %v3508_v50 = vsel %vm1364_vm6, 0.0, %v3507_v42  ;;  %v3520_v53 = vsel %vm1364_vm6, %v3507_v42, %v3496_v34  ;;  %v3506_v56 = vsel %vm1364_vm6, 0.0, %v3505_v39 }
0x1246   : > { %v3525_v54 = vrot.slane %v3508_v50, 4  ;;  %v3515_v55 = vsel %vm1364_vm6, %v3514_v45, %v3502_v49  ;;  %v3524_v18 = vperm.slane %v3520_v53, %v7136_v46  ;;  %v3533_v28 = vrot.slane %v3513_v52, 4 }
0x1247   : > { %v3519_v59 = vperm.slane %v3515_v55, %v7136_v46 }
0x1248   : > { %v3526_v63 = vsel %vm1364_vm6, %v3525_v54, %v3506_v56  ;;  %v3545_v0 = vrot.slane %v3524_v18, 4 }
0x1249   : > { %v3530_v58 = vperm.slane %v3526_v63, %v7136_v46  ;;  %v3534_v3 = vsel %vm1364_vm6, %v3519_v59, %v3533_v28  ;;  %v3531_v4 = vrot.slane %v3519_v59, 4 }
0x124a   : > { %v3542_v5 = vperm.slane %v3534_v3, %v7146_v61 }
0x124b   : > { %v3546_v7 = vsel %vm1364_vm6, %v3530_v58, %v3545_v0  ;;  %v3532_v9 = vsel %vm1364_vm6, %v3531_v4, %v3513_v52  ;;  %v3543_v10 = vrot.slane %v3530_v58, 4 }
0x124c   : > { %v3554_v11 = vperm.slane %v3546_v7, %v7146_v61  ;;  %v3561_v12 = vrot.slane %v3542_v5, 4  ;;  %v3538_v13 = vperm.slane %v3532_v9, %v7146_v61 }
0x124d   : > { %v3544_v14 = vsel %vm1364_vm6, %v3543_v10, %v3524_v18 }
0x124e   : > { %v3562_v15 = vsel %vm1364_vm6, %v3554_v11, %v3561_v12  ;;  %v3550_v26 = vperm.slane %v3544_v14, %v7146_v61  ;;  %v3557_v16 = vrot.slane %v3538_v13, 4  ;;  %v3559_v17 = vrot.slane %v3554_v11, 4 }
0x124f   : > { %v3566_v31 = vpack.c.bf16 %v3562_v15, %v3562_v15 }
0x1250   : > { %v3558_v33 = vsel %vm1364_vm6, %v3550_v26, %v3557_v16  ;;  %v3560_v19 = vsel %vm1364_vm6, %v3559_v17, %v3542_v5  ;;  %v3555_v20 = vrot.slane %v3550_v26, 4 }
0x1251   : > { %v3760_v21 = vsel %vm1866_vm8, %v3566_v31, 0  ;;  %v3564_v23 = vpack.c.bf16 %v3558_v33, %v3558_v33  ;;  %v3565_v47 = vpack.c.bf16 %v3560_v19, %v3560_v19 }
0x1252   : > { %3769 = vmatpush.bf16.msrb.mxu3 %v3760_v21  ;;  %v3556_v24 = vsel %vm1364_vm6, %v3555_v20, %v3538_v13 }
0x1253   : > { %v3722_v25 = vsel %vm1866_vm8, %v3564_v23, 0  ;;  %v3741_v44 = vsel %vm1866_vm8, %v3565_v47, 0  ;;  %v3563_v27 = vpack.c.bf16 %v3556_v24, %v3556_v24 }
0x1254   : > { %3731 = vmatpush.bf16.msra.mxu0 %v3722_v25  ;;  %3750 = vmatpush.bf16.msra.mxu2 %v3741_v44 }
0x1255   : > { %v3703_v30 = vsel %vm1866_vm8, %v3563_v27, 0 }
0x1256   : > { %3712 = vmatpush.bf16.msrb.mxu1 %v3703_v30 }
0x1291   : > { %v3683_v6 = vpop.xlane.xlu1 %3682 }
0x1292   : > { %6019 = vrcp.f32 %v3683_v6 }
0x1298   : > { %v6020_v1 = vpop.eup %6019 }
0x1299   : > { %v3693_v22 = vmul.f32 %v6020_v1, %v7752_v62  ;;  %v3680_v48 = vpop.xlane.xlu2 %3679  ;;  %v3677_v36 = vpop.xlane.xlu1 %3676 }
0x129a   : > { %6021 = vrcp.f32 %v3680_v48 }
0x129b   : > { %v3697_v29 = vpack.c.bf16 %v3693_v22, %v3693_v22  ;;  %6023 = vrcp.f32 %v3677_v36 }
0x129d   : > { %5474 = vmatmul.msk.bf16.vlgmr.msra.gmra.mxu2 %vm1730_vm7, %v3697_v29 }
0x12a0   : > { %v6022_v32 = vpop.eup %6021 }
0x12a1   : > { %v6024_v34 = vpop.eup %6023  ;;  %v3692_v35 = vmul.f32 %v6022_v32, %v7758_v2 }
0x12a2   : > { %v3691_v37 = vmul.f32 %v6024_v34, %v7756_v60 }
0x12a3   : > { %v3696_v38 = vpack.c.bf16 %v3692_v35, %v3692_v35  ;;  %v3686_v40 = vpop.xlane.xlu0 %3685 }
0x12a4   : > { %v3695_v39 = vpack.c.bf16 %v3691_v37, %v3691_v37  ;;  %6025 = vrcp.f32 %v3686_v40 }
0x12a5   : > { %5473 = vmatmul.msk.bf16.vlgmr.msra.gmra.mxu0 %vm1730_vm7, %v3696_v38 }
0x12a6   : > { %5472 = vmatmul.msk.bf16.vlgmr.msrb.gmra.mxu1 %vm1730_vm7, %v3695_v39 }
0x12aa   : > { %v6026_v62 = vpop.eup %6025 }
0x12ab   : > { %v3694_v42 = vmul.f32 %v6026_v62, %v7764_v8 }
0x12ad   : > { %v3698_v43 = vpack.c.bf16 %v3694_v42, %v3694_v42 }
0x12af   : > { %5475 = vmatmul.msk.bf16.vlgmr.msrb.gmra.mxu3 %vm1730_vm7, %v3698_v43 }
0x1320   : > { %v3752_v45 = vpop.f32.mrf.mxu2 }
0x1321   : > { %v3775_v53 = vrot.slane %v3752_v45, 4 }
0x1322   : > { %v3733_v49 = vpop.f32.mrf.mxu0 }
0x1323   : > { %v3714_v50 = vpop.f32.mrf.mxu1  ;;  %v3789_v59 = vrot.slane %v3733_v49, 4 }
0x1324   : > { %v3777_v52 = vrot.slane %v3714_v50, 4  ;;  %v3776_v18 = vsel %vm1364_vm6, %v3775_v53, %v3714_v50 }
0x1325   : > { %v3782_v8 = vperm.slane %v3776_v18, %v7136_v46 }
0x1326   : > { %v3778_v55 = vsel %vm1364_vm6, %v3752_v45, %v3777_v52 }
0x1327   : > { %v3786_v56 = vperm.slane %v3778_v55, %v7136_v46  ;;  %v3801_v5 = vrot.slane %v3782_v8, 4 }
0x1328   : > { %v3754_v2 = vpop.f32.mrf.mxu2 }
0x1329   : > { %v3813_v58 = vrot.slane %v3786_v56, 4 }
0x132a   : > { %v3735_v60 = vpop.f32.mrf.mxu0 }
0x132b   : > { %v3716_v54 = vpop.f32.mrf.mxu1 }
0x1332   : > { %v3771_v28 = vpop.f32.mrf.mxu3 }
0x1333   : > { %v3787_v63 = vrot.slane %v3771_v28, 4  ;;  %v3790_v0 = vsel %vm1364_vm6, %v3771_v28, %v3789_v59  ;;  %v5620_v59 = vld [vmem:[#allocation11 + $0x18] sm:$0xff] }
0x1334   : > { %v3798_v3 = vperm.slane %v3790_v0, %v7136_v46  ;;  %3925 = vmatpush.bf16.msra.mxu1 %v5620_v59 }
0x1335   : > { %v3788_v4 = vsel %vm1364_vm6, %v3787_v63, %v3733_v49 }
0x1336   : > { %v3794_v7 = vperm.slane %v3788_v4, %v7136_v46  ;;  %v3811_v9 = vrot.slane %v3798_v3, 4  ;;  %v3814_v10 = vsel %vm1364_vm6, %v3798_v3, %v3813_v58 }
0x1337   : > { %v3822_v11 = vperm.slane %v3814_v10, %v7146_v61 }
0x1338   : > { %v3799_v12 = vrot.slane %v3794_v7, 4  ;;  %v3802_v13 = vsel %vm1364_vm6, %v3794_v7, %v3801_v5  ;;  %v3812_v14 = vsel %vm1364_vm6, %v3811_v9, %v3786_v56  ;;  %v5958_v7 = vld [vmem:[#allocation13 + $0x1] ss:$0 sm:$0xff] }
0x1339   : > { %v3810_v15 = vperm.slane %v3802_v13, %v7146_v61  ;;  %v3818_v26 = vperm.slane %v3812_v14, %v7146_v61  ;;  %v3829_v16 = vrot.slane %v3822_v11, 4  ;;  %v5624_v14 = vld [vmem:[%s8265_s23 + $0x18] sm:$0xff] }
0x133a   : > { %v3800_v17 = vsel %vm1364_vm6, %v3799_v12, %v3782_v8  ;;  %v3773_v31 = vpop.f32.mrf.mxu3  ;;  %v5619_v8 = vld [vmem:[#allocation11 + $0x10] sm:$0xff]  ;;  %4041 = vmatpush.bf16.msrb.mxu2 %v5624_v14 }
0x133b   : > { %v3806_v33 = vperm.slane %v3800_v17, %v7146_v61  ;;  %v3825_v19 = vrot.slane %v3810_v15, 4  ;;  %v3827_v20 = vrot.slane %v3818_v26, 4  ;;  %v3830_v21 = vsel %vm1364_vm6, 0.0, %v3829_v16  ;;  %3926 = vmatpush.bf16.msra.mxu1 %v5619_v8  ;;  %v5623_v15 = vld [vmem:[%s8265_s23 + $0x10] sm:$0xff] }
0x133c   : > { %v3842_v23 = vsel %vm1364_vm6, %v3829_v16, %v3818_v26  ;;  %v3847_v47 = vrot.slane %v3830_v21, 4 }
0x133d   : > { %v3823_v24 = vrot.slane %v3806_v33, 4  ;;  %v3826_v25 = vsel %vm1364_vm6, 0.0, %v3825_v19  ;;  %v3828_v44 = vsel %vm1364_vm6, 0.0, %v3827_v20  ;;  %v3846_v27 = vperm.slane %v3842_v23, %v7136_v46  ;;  %v5621_v23 = vld [vmem:[%s8266_s10 + $0x10] sm:$0xff] }
0x133e   : > { %v3836_v30 = vrot.slane %v3826_v25, 4  ;;  %v3831_v6 = vsel %vm1364_vm6, %v3825_v19, %v3806_v33  ;;  %v3848_v1 = vsel %vm1364_vm6, %v3847_v47, %v3828_v44  ;;  %4042 = vmatpush.bf16.msrb.mxu2 %v5623_v15  ;;  %v5961_v33 = vld [vmem:[#allocation16 + $0x1] ss:$0 sm:$0xff]  ;;  %v5622_v19 = vld [vmem:[%s8266_s10 + $0x18] sm:$0xff] }
0x133f   : > { %v3824_v22 = vsel %vm1364_vm6, 0.0, %v3823_v24  ;;  %v3835_v48 = vperm.slane %v3831_v6, %v7136_v46  ;;  %v3852_v36 = vperm.slane %v3848_v1, %v7136_v46  ;;  %v3867_v29 = vrot.slane %v3846_v27, 4  ;;  %4013 = vmatpush.bf16.msrb.mxu0 %v5622_v19 }
0x1340   : > { %v3837_v32 = vsel %vm1364_vm6, %v3836_v30, %v3824_v22 }
0x1341   : > { %v3841_v34 = vperm.slane %v3837_v32, %v7136_v46  ;;  %v3855_v35 = vrot.slane %v3835_v48, 4  ;;  %v3868_v37 = vsel %vm1364_vm6, %v3852_v36, %v3867_v29  ;;  %v3865_v38 = vrot.slane %v3852_v36, 4  ;;  %5516 = vmatmul.msk.bf16.vlgmr.msrb.gmra.mxu2 %vm1336_vm5, %v7358_v41  ;;  %v5960_v29 = vld [vmem:[%s8268_s17 + $0x1] ss:$0 sm:$0xff] }
0x1342   : > { %v3876_v40 = vperm.slane %v3868_v37, %v7146_v61 }
0x1343   : > { %v3856_v39 = vsel %vm1364_vm6, %v3841_v34, %v3855_v35  ;;  %v3853_v62 = vrot.slane %v3841_v34, 4  ;;  %v3866_v42 = vsel %vm1364_vm6, %v3865_v38, %v3846_v27  ;;  %4014 = vmatpush.bf16.msrb.mxu0 %v5621_v23 }
0x1344   : > { %v3864_v43 = vperm.slane %v3856_v39, %v7146_v61  ;;  %v3881_v45 = vrot.slane %v3876_v40, 4  ;;  %v3872_v49 = vperm.slane %v3866_v42, %v7146_v61 }
0x1345   : > { %v3854_v50 = vsel %vm1364_vm6, %v3853_v62, %v3835_v48  ;;  %v5959_v48 = vld [vmem:[%s8267_s11 + $0x1] ss:$0 sm:$0xff] }
0x1346   : > { %v3882_v2 = vsel %vm1364_vm6, %v3881_v45, %v3864_v43  ;;  %v3860_v52 = vperm.slane %v3854_v50, %v7146_v61  ;;  %v3877_v60 = vrot.slane %v3872_v49, 4  ;;  %v3883_v18 = vrot.slane %v3864_v43, 4 }
0x1347   : > { %3890 = vrot.lane.b32.xlu1 %v3882_v2, %s8283_s16 }
0x1348   : > { %v3878_v53 = vsel %vm1364_vm6, %v3877_v60, %v3860_v52  ;;  %v3879_v54 = vrot.slane %v3860_v52, 4  ;;  %v3884_v56 = vsel %vm1364_vm6, %v3876_v40, %v3883_v18 }
0x134a   : > { %v3880_v55 = vsel %vm1364_vm6, %v3872_v49, %v3879_v54 }
0x134f   : > { %3886 = vrot.lane.b32.xlu1 %v3880_v55, %s8284_s4 }
0x1357   : > { %3894 = vrot.lane.b32.xlu1 %v3884_v56, %s8285_s5 }
0x13b9   : > { %v3891_v28 = vpop.permute.xlu1 %3890 }
0x13c1   : > { %v3887_v63 = vpop.permute.xlu1 %3886 }
0x13c2   : > { %v3897_v0 = vsel %vm1730_vm7, %v3878_v53, %v3887_v63 }
0x13c3   : > { %v3898_v3 = vsel %vm2063_vm9, %v3897_v0, %v3891_v28 }
0x13c4   : > { %v4044_v20 = vpop.f32.mrf.mxu2 }
0x13c5   : > { %v7876_v21 = vadd.f32 %v5961_v33, %v4044_v20 }
0x13c7   : > { %4173 = vrot.lane.b32.xlu1 %v7876_v21, %s8279_s22  ;;  %v4184_v40 = vrot.slane %v7876_v21, 4 }
0x13c9   : > { %v3895_v58 = vpop.permute.xlu1 %3894 }
0x13ca   : > { %v3899_v4 = vsel %vm2065_vm10, %v3898_v3, %v3895_v58 }
0x13cb   : > { %v3900_v5 = vpack.c.bf16 %v3899_v4, %v3899_v4 }
0x13cc   : > { %v4046_v47 = vpop.f32.mrf.mxu2 }
0x13cd   : > { %5484 = vmatmul.msk.bf16.vlgmr.msra.gmra.mxu1 %vm1336_vm5, %v3900_v5 }
0x1439   : > { %v7897_v62 = vpop.permute.xlu1 %4173 }
0x143a   : > { %v4196_v43 = vrot.slane %v7897_v62, 4 }
0x144a   : > { %v3928_v9 = vpop.f32.mrf.mxu1 }
0x144b   : > { %v3929_v10 = vadd.f32 %v5958_v7, %v3928_v9 }
0x144d   : > { %v3932_v11 = vadd.f32 %v3929_v10, %v7639_v51 }
0x144f   : > { %v3933_v12 = vsel %vm1336_vm5, %v3932_v11, 0.0 }
0x1450   : > { %3934 = vadd.xlane.f32.xlu0 %v3933_v12 }
0x1452   : > { %v3930_v13 = vpop.f32.mrf.mxu1 }
0x1464   : > { %4176 = vrot.lane.b32.xlu0 %v7876_v21, %s8278_s15 }
0x14c3   : > { %v3935_v26 = vpop.xlane.xlu0 %3934 }
0x14c4   : > { %v3936_v16 = vmul.f32 %v3935_v26, %v7364_v57 }
0x14c6   : > { %v3937_v17 = vsub.f32 %v3932_v11, %v3936_v16 }
0x14c8   : > { %v3938_v31 = vmul.f32 %v3937_v17, %v3937_v17 }
0x14ca   : > { %v3939_v51 = vsel %vm1336_vm5, %v3938_v31, 0.0 }
0x14cb   : > { %3940 = vadd.xlane.f32.xlu2 %v3939_v51 }
0x14d6   : > { %v7899_v42 = vpop.permute.xlu0 %4176 }
0x14d7   : > { %v4182_v45 = vrot.slane %v7899_v42, 4  ;;  %v4185_v49 = vsel %vm1364_vm6, %v7899_v42, %v4184_v40 }
0x14d8   : > { %v4193_v50 = vperm.slane %v4185_v49, %v7136_v46 }
0x14d9   : > { %v4183_v52 = vsel %vm1364_vm6, %v4182_v45, %v7876_v21 }
0x14da   : > { %v4189_v54 = vperm.slane %v4183_v52, %v7136_v46  ;;  %v4220_v55 = vrot.slane %v4193_v50, 4 }
0x14dc   : > { %v4208_v59 = vrot.slane %v4189_v54, 4 }
0x14e3   : > { %4179 = vrot.lane.b32.xlu2 %v7876_v21, %s8280_s18 }
0x153e   : > { %v3941_v41 = vpop.xlane.xlu2 %3940 }
0x153f   : > { %v3942_v24 = vmul.f32 %v3941_v41, %v7364_v57 }
0x1541   : > { %v3943_v25 = vadd.f32 1e-05, %v3942_v24 }
0x1543   : > { %6027 = vrsqrt.f32 %v3943_v25  ;;  %vm3950_vm13 = vweird.f32 %v3943_v25 }
0x1546   : > { %v7893_v38 = vpop.permute.xlu2 %4179 }
0x1547   : > { %v4194_v39 = vrot.slane %v7893_v38, 4  ;;  %v4197_v60 = vsel %vm1364_vm6, %v7893_v38, %v4196_v43 }
0x1548   : > { %v4205_v18 = vperm.slane %v4197_v60, %v7136_v46 }
0x1549   : > { %v6028_v44 = vpop.eup %6027  ;;  %v4195_v2 = vsel %vm1364_vm6, %v4194_v39, %v7897_v62 }
0x154a   : > { %v3945_v27 = vmul.f32 %v6028_v44, %v3943_v25  ;;  %vm3951_vm12 = vweird.f32 %v6028_v44  ;;  %v4201_v53 = vperm.slane %v4195_v2, %v7136_v46  ;;  %v4218_v8 = vrot.slane %v4205_v18, 4 }
0x154b   : > { %vm3952_vm14 = vmor %vm3950_vm13, %vm3951_vm12  ;;  %v4221_v28 = vsel %vm1364_vm6, %v4205_v18, %v4220_v55 }
0x154c   : > { %v3946_v30 = vmul.f32 %v6028_v44, %v3945_v27  ;;  %v4206_v56 = vrot.slane %v4201_v53, 4  ;;  %v4229_v0 = vperm.slane %v4221_v28, %v7146_v61  ;;  %v4209_v58 = vsel %vm1364_vm6, %v4201_v53, %v4208_v59  ;;  %v5962_v59 = vld [vmem:[#allocation14 + $0x1] ss:$0 sm:$0xff] }
0x154d   : > { %v4219_v4 = vsel %vm1364_vm6, %v4218_v8, %v4193_v50  ;;  %v4217_v5 = vperm.slane %v4209_v58, %v7146_v61 }
0x154e   : > { %v3947_v6 = vmul.f32 0.5, %v3946_v30  ;;  %v4207_v63 = vsel %vm1364_vm6, %v4206_v56, %v4189_v54  ;;  %v4225_v7 = vperm.slane %v4219_v4, %v7146_v61  ;;  %v4236_v9 = vrot.slane %v4229_v0, 4 }
0x154f   : > { %v4213_v3 = vperm.slane %v4207_v63, %v7146_v61  ;;  %v4232_v11 = vrot.slane %v4217_v5, 4 }
0x1550   : > { %v3948_v1 = vsub.f32 1.5, %v3947_v6  ;;  %v4234_v12 = vrot.slane %v4225_v7, 4  ;;  %v4237_v13 = vsel %vm1364_vm6, 0.0, %v4236_v9  ;;  %v4249_v14 = vsel %vm1364_vm6, %v4236_v9, %v4225_v7 }
0x1551   : > { %v4230_v10 = vrot.slane %v4213_v3, 4  ;;  %v4254_v15 = vrot.slane %v4237_v13, 4  ;;  %v4233_v16 = vsel %vm1364_vm6, 0.0, %v4232_v11  ;;  %v4253_v33 = vperm.slane %v4249_v14, %v7136_v46 }
0x1552   : > { %v3949_v22 = vmul.f32 %v6028_v44, %v3948_v1  ;;  %v4243_v31 = vrot.slane %v4233_v16, 4  ;;  %v4238_v47 = vsel %vm1364_vm6, %v4232_v11, %v4213_v3 }
0x1553   : > { %v4231_v26 = vsel %vm1364_vm6, 0.0, %v4230_v10  ;;  %v4242_v24 = vperm.slane %v4238_v47, %v7136_v46  ;;  %v4274_v27 = vrot.slane %v4253_v33, 4 }
0x1554   : > { %v3953_v36 = vsel %vm3952_vm14, %v6028_v44, %v3949_v22  ;;  %v4244_v20 = vsel %vm1364_vm6, %v4243_v31, %v4231_v26 }
0x1555   : > { %v3954_v32 = vmul.f32 %v3953_v36, %v3937_v17  ;;  %v4235_v17 = vsel %vm1364_vm6, 0.0, %v4234_v12  ;;  %v4248_v23 = vperm.slane %v4244_v20, %v7136_v46  ;;  %v4262_v1 = vrot.slane %v4242_v24, 4 }
0x1556   : > { %v4255_v51 = vsel %vm1364_vm6, %v4254_v15, %v4235_v17 }
0x1557   : > { %v3958_v34 = vmul.f32 %v5959_v48, %v3954_v32  ;;  %v4259_v19 = vperm.slane %v4255_v51, %v7136_v46  ;;  %v4260_v25 = vrot.slane %v4248_v23, 4  ;;  %v4263_v32 = vsel %vm1364_vm6, %v4248_v23, %v4262_v1 }
0x1558   : > { %v4271_v40 = vperm.slane %v4263_v32, %v7146_v61 }
0x1559   : > { %v7888_v35 = vadd.f32 %v5960_v29, %v3958_v34  ;;  %v4272_v41 = vrot.slane %v4259_v19, 4  ;;  %v4261_v6 = vsel %vm1364_vm6, %v4260_v25, %v4242_v24  ;;  %v4275_v22 = vsel %vm1364_vm6, %v4259_v19, %v4274_v27 }
0x155a   : > { %v4267_v48 = vperm.slane %v4261_v6, %v7146_v61  ;;  %v4283_v29 = vperm.slane %v4275_v22, %v7146_v61  ;;  %v4290_v50 = vrot.slane %v4271_v40, 4 }
0x155b   : > { %v3988_v37 = vpack.c.bf16 %v7888_v35, %v7888_v35  ;;  %v4273_v44 = vsel %vm1364_vm6, %v4272_v41, %v4253_v33 }
0x155c   : > { %v4279_v30 = vperm.slane %v4273_v44, %v7146_v61  ;;  %v4288_v39 = vrot.slane %v4283_v29, 4  ;;  %v4291_v53 = vsel %vm1364_vm6, %v4283_v29, %v4290_v50 }
0x155d   : > { %5507 = vmatmul.msk.bf16.vlgmr.msrb.gmra.mxu0 %vm1336_vm5, %v3988_v37  ;;  %v4286_v37 = vrot.slane %v4267_v48, 4  ;;  %v4295_v18 = vpack.c.bf16 %v4291_v53, %v4291_v53 }
0x155e   : > { %v4284_v36 = vrot.slane %v4279_v30, 4  ;;  %v4289_v49 = vsel %vm1364_vm6, %v4288_v39, %v4271_v40 }
0x155f   : > { %v4287_v45 = vsel %vm1364_vm6, %v4279_v30, %v4286_v37  ;;  %v4294_v60 = vpack.c.bf16 %v4289_v49, %v4289_v49  ;;  %v4483_v56 = vsel %vm1730_vm7, %v4295_v18, 0 }
0x1560   : > { %v4285_v34 = vsel %vm1364_vm6, %v4284_v36, %v4267_v48  ;;  %v4293_v52 = vpack.c.bf16 %v4287_v45, %v4287_v45  ;;  %4492 = vmatpush.bf16.xpose.msra.mxu2 %v4483_v56 }
0x1561   : > { %v4292_v43 = vpack.c.bf16 %v4285_v34, %v4285_v34  ;;  %v4464_v55 = vsel %vm1730_vm7, %v4294_v60, 0 }
0x1562   : > { %v4445_v54 = vsel %vm1730_vm7, %v4293_v52, 0  ;;  %4473 = vmatpush.bf16.xpose.msra.mxu0 %v4464_v55 }
0x1563   : > { %v4426_v2 = vsel %vm1730_vm7, %v4292_v43, 0  ;;  %4454 = vmatpush.bf16.xpose.msrb.mxu1 %v4445_v54 }
0x1564   : > { %4435 = vmatpush.bf16.xpose.msra.mxu3 %v4426_v2 }
0x15da   : > { %v4016_v8 = vpop.f32.mrf.mxu0 }
0x15db   : > { %v4017_v28 = vadd.f32 %v5962_v59, %v4016_v8 }
0x15dd   : > { %4055 = vrot.lane.b32.xlu0 %v4017_v28, %s8280_s18  ;;  %4049 = vrot.lane.b32.xlu1 %v4017_v28, %s8279_s22  ;;  %v4060_v10 = vrot.slane %v4017_v28, 4 }
0x15e2   : > { %v4018_v63 = vpop.f32.mrf.mxu0 }
0x15e5   : > { %4052 = vrot.lane.b32.xlu1 %v4017_v28, %s8278_s15 }
0x164f   : > { %v4050_v0 = vpop.permute.xlu1 %4049  ;;  %v4056_v58 = vpop.permute.xlu0 %4055 }
0x1650   : > { %v4072_v3 = vrot.slane %v4050_v0, 4  ;;  %v4070_v4 = vrot.slane %v4056_v58, 4 }
0x1652   : > { %v4073_v5 = vsel %vm1364_vm6, %v4056_v58, %v4072_v3  ;;  %v4071_v7 = vsel %vm1364_vm6, %v4070_v4, %v4050_v0 }
0x1653   : > { %v4081_v9 = vperm.slane %v4073_v5, %v7136_v46  ;;  %v4077_v11 = vperm.slane %v4071_v7, %v7136_v46 }
0x1655   : > { %v4094_v15 = vrot.slane %v4081_v9, 4  ;;  %v4082_v17 = vrot.slane %v4077_v11, 4 }
0x1657   : > { %v4053_v12 = vpop.permute.xlu1 %4052 }
0x1658   : > { %v4058_v13 = vrot.slane %v4053_v12, 4  ;;  %v4061_v14 = vsel %vm1364_vm6, %v4053_v12, %v4060_v10 }
0x1659   : > { %v4069_v26 = vperm.slane %v4061_v14, %v7136_v46 }
0x165a   : > { %v4059_v16 = vsel %vm1364_vm6, %v4058_v13, %v4017_v28 }
0x165b   : > { %v4065_v31 = vperm.slane %v4059_v16, %v7136_v46  ;;  %v4095_v51 = vsel %vm1364_vm6, %v4094_v15, %v4069_v26  ;;  %v4096_v33 = vrot.slane %v4069_v26, 4 }
0x165c   : > { %v4101_v19 = vperm.slane %v4095_v51, %v7146_v61 }
0x165d   : > { %v4083_v20 = vsel %vm1364_vm6, %v4082_v17, %v4065_v31  ;;  %v4084_v23 = vrot.slane %v4065_v31, 4  ;;  %v4097_v41 = vsel %vm1364_vm6, %v4081_v9, %v4096_v33  ;;  %v6050_v17 = vld [vmem:[%s7493_s1] sm:$0xff]  ;;  %s5591_s1 = sshll.u32 %s6841_s0, 3 }
0x165e   : > { %v4089_v47 = vperm.slane %v4083_v20, %v7146_v61  ;;  %v4105_v24 = vperm.slane %v4097_v41, %v7146_v61  ;;  %v4110_v27 = vrot.slane %v4101_v19, 4 }
0x165f   : > { %v4085_v25 = vsel %vm1364_vm6, %v4077_v11, %v4084_v23 }
0x1660   : > { %v4093_v44 = vperm.slane %v4085_v25, %v7146_v61  ;;  %v4112_v30 = vrot.slane %v4105_v24, 4  ;;  %v4106_v6 = vrot.slane %v4089_v47, 4  ;;  %v4111_v34 = vsel %vm1364_vm6, 0.0, %v4110_v27 }
0x1662   : > { %v4108_v1 = vrot.slane %v4093_v44, 4  ;;  %v4113_v22 = vsel %vm1364_vm6, 0.0, %v4112_v30  ;;  %v4125_v48 = vsel %vm1364_vm6, %v4112_v30, %v4101_v19  ;;  %v4107_v49 = vsel %vm1364_vm6, 0.0, %v4106_v6 }
0x1663   : > { %v4129_v36 = vperm.slane %v4125_v48, %v7136_v46  ;;  %v4130_v29 = vrot.slane %v4113_v22, 4 }
0x1664   : > { %v4109_v32 = vsel %vm1364_vm6, 0.0, %v4108_v1  ;;  %v4114_v37 = vsel %vm1364_vm6, %v4108_v1, %v4089_v47 }
0x1665   : > { %v4118_v40 = vperm.slane %v4114_v37, %v7136_v46  ;;  %v4119_v39 = vrot.slane %v4109_v32, 4  ;;  %v4131_v43 = vsel %vm1364_vm6, %v4130_v29, %v4111_v34  ;;  %v4150_v45 = vrot.slane %v4129_v36, 4 }
0x1666   : > { %v4135_v50 = vperm.slane %v4131_v43, %v7136_v46  ;;  %v5938_v29 = vpack.i.bf16 %v7893_v38, %v7899_v42  ;;  %v5933_v32 = vpack.i.bf16 %v7897_v62, %v7876_v21 }
0x1667   : > { %v4120_v2 = vsel %vm1364_vm6, %v4119_v39, %v4107_v49  ;;  %v4138_v52 = vrot.slane %v4118_v40, 4 }
0x1668   : > { %v4124_v60 = vperm.slane %v4120_v2, %v7136_v46  ;;  %v4148_v53 = vrot.slane %v4135_v50, 4  ;;  %v4151_v54 = vsel %vm1364_vm6, %v4135_v50, %v4150_v45 }
0x1669   : > { %v4159_v55 = vperm.slane %v4151_v54, %v7146_v61 }
0x166a   : > { %v4136_v18 = vrot.slane %v4124_v60, 4  ;;  %v4149_v56 = vsel %vm1364_vm6, %v4148_v53, %v4129_v36  ;;  %v4139_v59 = vsel %vm1364_vm6, %v4124_v60, %v4138_v52 }
0x166b   : > { %v4147_v8 = vperm.slane %v4139_v59, %v7146_v61  ;;  %v4164_v28 = vrot.slane %v4159_v55, 4  ;;  %v4155_v63 = vperm.slane %v4149_v56, %v7146_v61 }
0x166c   : > { %v4137_v0 = vsel %vm1364_vm6, %v4136_v18, %v4118_v40 }
0x166d   : > { %v4165_v58 = vsel %vm1364_vm6, %v4164_v28, %v4147_v8  ;;  %v4143_v3 = vperm.slane %v4137_v0, %v7146_v61  ;;  %v4160_v4 = vrot.slane %v4155_v63, 4  ;;  %v4166_v5 = vrot.slane %v4147_v8, 4 }
0x166e   : > { %v4170_v7 = vpack.c.bf16 %v4165_v58, %v4165_v58 }
0x166f   : > { %v4161_v9 = vsel %vm1364_vm6, %v4160_v4, %v4143_v3  ;;  %v4167_v10 = vsel %vm1364_vm6, %v4159_v55, %v4166_v5  ;;  %v4162_v11 = vrot.slane %v4143_v3, 4 }
0x1670   : > { %5519 = vmatmul.msk.bf16.vlgmr.msra.gmra.mxu0 %vm1730_vm7, %v4170_v7  ;;  %v4168_v12 = vpack.c.bf16 %v4161_v9, %v4161_v9  ;;  %v4171_v13 = vpack.c.bf16 %v4167_v10, %v4167_v10 }
0x1671   : > { %v4163_v14 = vsel %vm1364_vm6, %v4155_v63, %v4162_v11 }
0x1672   : > { %5517 = vmatmul.msk.bf16.vlgmr.msra.gmra.mxu3 %vm1730_vm7, %v4168_v12  ;;  %5520 = vmatmul.msk.bf16.vlgmr.msra.gmra.mxu2 %vm1730_vm7, %v4171_v13  ;;  %v4169_v15 = vpack.c.bf16 %v4163_v14, %v4163_v14 }
0x1674   : > { %5518 = vmatmul.msk.bf16.vlgmr.msrb.gmra.mxu1 %vm1730_vm7, %v4169_v15 }
0x16ed   : > { %v4475_v26 = vpop.f32.mrf.mxu0 }
0x16ee   : > { %v4500_v16 = vmul.f32 0.35355338, %v4475_v26 }
0x16f0   : > { %v4504_v31 = vadd.f32 %v6050_v17, %v4500_v16 }
0x16f1   : > { %v4456_v51 = vpop.f32.mrf.mxu1 }
0x16f2   : > { %v4512_v33 = vsel %vm1730_vm7, %v4504_v31, -inf  ;;  %v4499_v27 = vmul.f32 0.35355338, %v4456_v51 }
0x16f3   : > { %4513 = vmax.xlane.f32.xlu2 %v4512_v33 }
0x16f4   : > { %v4503_v48 = vadd.f32 %v6050_v17, %v4499_v27 }
0x16f5   : > { %v4437_v19 = vpop.f32.mrf.mxu3  ;;  %v4477_v20 = vpop.f32.mrf.mxu0 }
0x16f6   : > { %v4498_v23 = vmul.f32 0.35355338, %v4437_v19  ;;  %v4494_v41 = vpop.f32.mrf.mxu2  ;;  %v4509_v36 = vsel %vm1730_vm7, %v4503_v48, -inf }
0x16f7   : > { %v4501_v47 = vmul.f32 0.35355338, %v4494_v41 }
0x16f8   : > { %v4502_v24 = vadd.f32 %v6050_v17, %v4498_v23 }
0x16f9   : > { %v4458_v25 = vpop.f32.mrf.mxu1  ;;  %v4505_v44 = vadd.f32 %v6050_v17, %v4501_v47 }
0x16fa   : > { %v4506_v30 = vsel %vm1730_vm7, %v4502_v24, -inf }
0x16fb   : > { %v4515_v6 = vsel %vm1730_vm7, %v4505_v44, -inf  ;;  %4507 = vmax.xlane.f32.xlu1 %v4506_v30 }
0x16fc   : > { %4516 = vmax.xlane.f32.xlu0 %v4515_v6 }
0x16fd   : > { %v4439_v1 = vpop.f32.mrf.mxu3 }
0x16fe   : > { %v4496_v22 = vpop.f32.mrf.mxu2 }
0x1703   : > { %4510 = vmax.xlane.f32.xlu1 %v4509_v36 }
0x170b   : > { %5939 = vrot.lane.b32.xlu2 %v5938_v29, %s8281_s3 }
0x1710   : > { %5934 = vrot.lane.b32.xlu0 %v5933_v32, %s8281_s3  ;;  %s8287_s3 = sld [smem:[#allocation54_spill]] }
0x1716   : > { %s5026_s18 = scalar_lea.hbm %s8287_s3, %s5591_s1  ;;  %s6521_s0 = scalar_lea.hbm %s8287_s3, 16 }
0x1717   : > { %s5030_s6 = sshll.u32 %s5026_s18, 4  ;;  %s5031_s6 = int_to_ptr.hbm [resolvable:$true] %s5030_s6 }
0x1766   : > { %v4514_v45 = vpop.xlane.xlu2 %4513 }
0x1767   : > { %v4520_v52 = vsub.f32 %v4504_v31, %v4514_v45 }
0x1769   : > { %v4526_v62 = vmul.f32 1.442695, %v4520_v52 }
0x176e   : > { %v4508_v34 = vpop.xlane.xlu1 %4507  ;;  %v5940_v42 = vpop.permute.xlu2 %5939 }
0x176f   : > { %v4517_v37 = vpop.xlane.xlu0 %4516  ;;  %v4518_v40 = vsub.f32 %v4502_v24, %v4508_v34  ;;  %v5942_v54 = vunpack.i.h.bf16 %v5940_v42  ;;  %v5941_v55 = vunpack.i.l.bf16 %v5940_v42 }
0x1770   : > { %v4521_v39 = vsub.f32 %v4505_v44, %v4517_v37 }
0x1771   : > { %v4522_v43 = vmul.f32 1.442695, %v4518_v40  ;;  %v4320_v28 = vrot.slane %v5942_v54, 4  ;;  %v4308_v63 = vrot.slane %v5941_v55, 4 }
0x1772   : > { %v4528_v49 = vmul.f32 1.442695, %v4521_v39 }
0x1773   : > { %6029 = vpow2.f32 %v4522_v43 }
0x1774   : > { %6031 = vpow2.f32 %v4528_v49 }
0x1776   : > { %v4511_v50 = vpop.xlane.xlu1 %4510 }
0x1777   : > { %v4519_v2 = vsub.f32 %v4503_v48, %v4511_v50 }
0x1779   : > { %v8009_v60 = vpop.eup %6029  ;;  %v4524_v38 = vmul.f32 1.442695, %v4519_v2 }
0x177a   : > { %v4530_v21 = vsel %vm1730_vm7, %v8009_v60, 0.0  ;;  %v8013_v53 = vpop.eup %6031 }
0x177b   : > { %6033 = vpow2.f32 %v4524_v38  ;;  %4531 = vadd.xlane.f32.xlu1 %v4530_v21  ;;  %v4539_v59 = vsel %vm1730_vm7, %v8013_v53, 0.0 }
0x177c   : > { %6035 = vpow2.f32 %v4526_v62 }
0x1781   : > { %v8015_v18 = vpop.eup %6033 }
0x1782   : > { %v5935_v56 = vpop.permute.xlu0 %5934  ;;  %v4533_v8 = vsel %vm1730_vm7, %v8015_v18, 0.0  ;;  %v8023_v9 = vpop.eup %6035 }
0x1783   : > { %v5937_v0 = vunpack.i.h.bf16 %v5935_v56  ;;  %v5936_v58 = vunpack.i.l.bf16 %v5935_v56  ;;  %4540 = vadd.xlane.f32.xlu1 %v4539_v59  ;;  %4534 = vadd.xlane.f32.xlu0 %v4533_v8  ;;  %v4536_v17 = vsel %vm1730_vm7, %v8023_v9, 0.0 }
0x1785   : > { %v4322_v3 = vrot.slane %v5937_v0, 4  ;;  %v4309_v4 = vsel %vm1364_vm6, %v4308_v63, %v5936_v58  ;;  %v4310_v5 = vrot.slane %v5936_v58, 4  ;;  %v4321_v7 = vsel %vm1364_vm6, %v4320_v28, %v5937_v0 }
0x1786   : > { %v4315_v10 = vperm.slane %v4309_v4, %v7136_v46  ;;  %v4327_v11 = vperm.slane %v4321_v7, %v7136_v46 }
0x1787   : > { %v4311_v12 = vsel %vm1364_vm6, %v5941_v55, %v4310_v5  ;;  %v4323_v13 = vsel %vm1364_vm6, %v5942_v54, %v4322_v3 }
0x1788   : > { %v4319_v14 = vperm.slane %v4311_v12, %v7136_v46  ;;  %v4331_v15 = vperm.slane %v4323_v13, %v7136_v46  ;;  %v4332_v26 = vrot.slane %v4327_v11, 4  ;;  %v4334_v16 = vrot.slane %v4315_v10, 4 }
0x178a   : > { %v4333_v31 = vsel %vm1364_vm6, %v4332_v26, %v4315_v10  ;;  %v4335_v51 = vsel %vm1364_vm6, %v4327_v11, %v4334_v16  ;;  %v4344_v33 = vrot.slane %v4331_v15, 4  ;;  %v4346_v19 = vrot.slane %v4319_v14, 4 }
0x178b   : > { %v4339_v20 = vperm.slane %v4333_v31, %v7146_v61  ;;  %v4343_v23 = vperm.slane %v4335_v51, %v7146_v61  ;;  %4537 = vadd.xlane.f32.xlu1 %v4536_v17 }
0x178c   : > { %v4345_v41 = vsel %vm1364_vm6, %v4344_v33, %v4319_v14  ;;  %v4347_v47 = vsel %vm1364_vm6, %v4331_v15, %v4346_v19 }
0x178d   : > { %v4351_v24 = vperm.slane %v4345_v41, %v7146_v61  ;;  %v4355_v25 = vperm.slane %v4347_v47, %v7146_v61  ;;  %v4356_v44 = vrot.slane %v4339_v20, 4  ;;  %v4358_v27 = vrot.slane %v4343_v23, 4 }
0x178f   : > { %v4359_v30 = vsel %vm1364_vm6, 0.0, %v4358_v27  ;;  %v4360_v6 = vrot.slane %v4351_v24, 4  ;;  %v4362_v1 = vrot.slane %v4355_v25, 4  ;;  %v4364_v22 = vsel %vm1364_vm6, %v4358_v27, %v4339_v20 }
0x1790   : > { %v4369_v48 = vrot.slane %v4359_v30, 4  ;;  %v4357_v36 = vsel %vm1364_vm6, 0.0, %v4356_v44  ;;  %v4368_v32 = vperm.slane %v4364_v22, %v7136_v46 }
0x1791   : > { %v4363_v29 = vsel %vm1364_vm6, 0.0, %v4362_v1  ;;  %v4375_v34 = vsel %vm1364_vm6, %v4362_v1, %v4351_v24  ;;  %v4361_v43 = vsel %vm1364_vm6, 0.0, %v4360_v6 }
0x1792   : > { %v4380_v37 = vrot.slane %v4363_v29, 4  ;;  %v4370_v40 = vsel %vm1364_vm6, %v4369_v48, %v4357_v36  ;;  %v4379_v39 = vperm.slane %v4375_v34, %v7136_v46  ;;  %v4388_v49 = vrot.slane %v4368_v32, 4 }
0x1793   : > { %v4374_v45 = vperm.slane %v4370_v40, %v7136_v46 }
0x1794   : > { %v4381_v50 = vsel %vm1364_vm6, %v4380_v37, %v4361_v43  ;;  %v4400_v2 = vrot.slane %v4379_v39, 4 }
0x1795   : > { %v4385_v52 = vperm.slane %v4381_v50, %v7136_v46  ;;  %v4389_v38 = vsel %vm1364_vm6, %v4374_v45, %v4388_v49  ;;  %v4386_v21 = vrot.slane %v4374_v45, 4 }
0x1796   : > { %v4397_v62 = vperm.slane %v4389_v38, %v7146_v61 }
0x1797   : > { %v4401_v42 = vsel %vm1364_vm6, %v4385_v52, %v4400_v2  ;;  %v4387_v54 = vsel %vm1364_vm6, %v4386_v21, %v4368_v32  ;;  %v4398_v55 = vrot.slane %v4385_v52, 4 }
0x1798   : > { %v4409_v56 = vperm.slane %v4401_v42, %v7146_v61  ;;  %v4416_v59 = vrot.slane %v4397_v62, 4  ;;  %v4393_v8 = vperm.slane %v4387_v54, %v7146_v61 }
0x1799   : > { %v4399_v28 = vsel %vm1364_vm6, %v4398_v55, %v4379_v39 }
0x179a   : > { %v4417_v63 = vsel %vm1364_vm6, %v4409_v56, %v4416_v59  ;;  %v4405_v0 = vperm.slane %v4399_v28, %v7146_v61  ;;  %v4412_v58 = vrot.slane %v4393_v8, 4  ;;  %v4414_v3 = vrot.slane %v4409_v56, 4 }
0x179b   : > { %v4421_v4 = vpack.c.bf16 %v4417_v63, %v4417_v63 }
0x179c   : > { %v4413_v5 = vsel %vm1364_vm6, %v4405_v0, %v4412_v58  ;;  %v4415_v7 = vsel %vm1364_vm6, %v4414_v3, %v4397_v62  ;;  %v4410_v10 = vrot.slane %v4405_v0, 4 }
0x179d   : > { %v4615_v11 = vsel %vm1866_vm8, %v4421_v4, 0  ;;  %v4419_v12 = vpack.c.bf16 %v4413_v5, %v4413_v5  ;;  %v4420_v13 = vpack.c.bf16 %v4415_v7, %v4415_v7 }
0x179e   : > { %4624 = vmatpush.bf16.msrb.mxu2 %v4615_v11  ;;  %v4411_v14 = vsel %vm1364_vm6, %v4410_v10, %v4393_v8 }
0x179f   : > { %v4577_v15 = vsel %vm1866_vm8, %v4419_v12, 0  ;;  %v4596_v26 = vsel %vm1866_vm8, %v4420_v13, 0  ;;  %v4418_v16 = vpack.c.bf16 %v4411_v14, %v4411_v14 }
0x17a0   : > { %4586 = vmatpush.bf16.msra.mxu1 %v4577_v15  ;;  %4605 = vmatpush.bf16.msrb.mxu0 %v4596_v26 }
0x17a1   : > { %v4558_v17 = vsel %vm1866_vm8, %v4418_v16, 0 }
0x17a2   : > { %4567 = vmatpush.bf16.msrb.mxu3 %v4558_v17 }
0x17ee   : > { %v4532_v31 = vpop.xlane.xlu1 %4531 }
0x17ef   : > { %6037 = vrcp.f32 %v4532_v31 }
0x17f5   : > { %v6038_v51 = vpop.eup %6037 }
0x17f6   : > { %v4546_v33 = vmul.f32 %v6038_v51, %v8009_v60  ;;  %v4535_v19 = vpop.xlane.xlu0 %4534  ;;  %v4541_v20 = vpop.xlane.xlu1 %4540 }
0x17f7   : > { %6039 = vrcp.f32 %v4535_v19 }
0x17f8   : > { %v4550_v23 = vpack.c.bf16 %v4546_v33, %v4546_v33  ;;  %6041 = vrcp.f32 %v4541_v20 }
0x17fa   : > { %5521 = vmatmul.msk.bf16.vlgmr.msrb.gmra.mxu3 %vm1730_vm7, %v4550_v23 }
0x17fd   : > { %v6040_v41 = vpop.eup %6039 }
0x17fe   : > { %v6042_v47 = vpop.eup %6041  ;;  %v4547_v24 = vmul.f32 %v6040_v41, %v8015_v18  ;;  %v4538_v25 = vpop.xlane.xlu1 %4537 }
0x17ff   : > { %v4549_v44 = vmul.f32 %v6042_v47, %v8013_v53  ;;  %6043 = vrcp.f32 %v4538_v25 }
0x1800   : > { %v4551_v27 = vpack.c.bf16 %v4547_v24, %v4547_v24 }
0x1801   : > { %v4553_v30 = vpack.c.bf16 %v4549_v44, %v4549_v44 }
0x1802   : > { %5522 = vmatmul.msk.bf16.vlgmr.msra.gmra.mxu1 %vm1730_vm7, %v4551_v27 }
0x1803   : > { %5524 = vmatmul.msk.bf16.vlgmr.msrb.gmra.mxu2 %vm1730_vm7, %v4553_v30 }
0x1805   : > { %v6044_v60 = vpop.eup %6043 }
0x1806   : > { %v4548_v6 = vmul.f32 %v6044_v60, %v8023_v9 }
0x1808   : > { %v4552_v1 = vpack.c.bf16 %v4548_v6, %v4548_v6 }
0x180a   : > { %5523 = vmatmul.msk.bf16.vlgmr.msrb.gmra.mxu0 %vm1730_vm7, %v4552_v1 }
0x187d   : > { %v4569_v22 = vpop.f32.mrf.mxu3 }
0x187e   : > { %v4632_v29 = vrot.slane %v4569_v22, 4 }
0x187f   : > { %v4588_v48 = vpop.f32.mrf.mxu1 }
0x1880   : > { %v4644_v36 = vrot.slane %v4588_v48, 4 }
0x1885   : > { %v4571_v18 = vpop.f32.mrf.mxu3 }
0x1886   : > { %v4626_v32 = vpop.f32.mrf.mxu2 }
0x1887   : > { %v4642_v53 = vrot.slane %v4626_v32, 4  ;;  %v4645_v34 = vsel %vm1364_vm6, %v4626_v32, %v4644_v36  ;;  %v4590_v37 = vpop.f32.mrf.mxu1  ;;  %v4607_v40 = vpop.f32.mrf.mxu0 }
0x1888   : > { %v4653_v39 = vperm.slane %v4645_v34, %v7136_v46  ;;  %v4630_v43 = vrot.slane %v4607_v40, 4  ;;  %v4633_v45 = vsel %vm1364_vm6, %v4607_v40, %v4632_v29  ;;  %v5626_v40 = vld [vmem:[%s8270_s2 + $0x18] sm:$0xff] }
0x1889   : > { %v4643_v9 = vsel %vm1364_vm6, %v4642_v53, %v4588_v48  ;;  %v4641_v49 = vperm.slane %v4633_v45, %v7136_v46  ;;  %4780 = vmatpush.bf16.msra.mxu3 %v5626_v40  ;;  %v5638_v40 = vld [vmem:[#allocation23 + $0x8] sm:$0xff] }
0x188a   : > { %v4649_v50 = vperm.slane %v4643_v9, %v7136_v46  ;;  %v4666_v2 = vrot.slane %v4653_v39, 4  ;;  %v4631_v52 = vsel %vm1364_vm6, %v4630_v43, %v4569_v22  ;;  %5007 = vmatpush.bf16.msra.mxu2 %v5638_v40 }
0x188b   : > { %v4637_v38 = vperm.slane %v4631_v52, %v7136_v46  ;;  %v4668_v21 = vrot.slane %v4641_v49, 4  ;;  %v5963_v52 = vld [vmem:[#allocation17 + $0x1] ss:$0 sm:$0xff] }
0x188c   : > { %v4654_v62 = vrot.slane %v4649_v50, 4  ;;  %v4667_v42 = vsel %vm1364_vm6, %v4666_v2, %v4641_v49 }
0x188d   : > { %v4656_v54 = vrot.slane %v4637_v38, 4  ;;  %v4669_v55 = vsel %vm1364_vm6, %v4653_v39, %v4668_v21  ;;  %v4673_v56 = vperm.slane %v4667_v42, %v7146_v61  ;;  %v5625_v39 = vld [vmem:[%s8270_s2 + $0x10] sm:$0xff] }
0x188e   : > { %v4655_v59 = vsel %vm1364_vm6, %v4654_v62, %v4637_v38  ;;  %v4677_v8 = vperm.slane %v4669_v55, %v7146_v61  ;;  %v4628_v28 = vpop.f32.mrf.mxu2  ;;  %4781 = vmatpush.bf16.msra.mxu3 %v5625_v39  ;;  %v5637_v39 = vld [vmem:[#allocation23] sm:$0xff] }
0x188f   : > { %v4657_v63 = vsel %vm1364_vm6, %v4649_v50, %v4656_v54  ;;  %v4661_v0 = vperm.slane %v4655_v59, %v7146_v61  ;;  %v4609_v58 = vpop.f32.mrf.mxu0  ;;  %v4682_v4 = vrot.slane %v4673_v56, 4  ;;  %5008 = vmatpush.bf16.msra.mxu2 %v5637_v39 }
0x1890   : > { %v4665_v3 = vperm.slane %v4657_v63, %v7146_v61  ;;  %v4684_v5 = vrot.slane %v4677_v8, 4  ;;  %v5628_v63 = vld [vmem:[%s8271_s26 + $0x18] sm:$0xff]  ;;  %v5636_v58 = vld [vmem:[#allocation20 + $0x78] sm:$0xff] }
0x1891   : > { %v4678_v7 = vrot.slane %v4661_v0, 4  ;;  %v4683_v26 = vsel %vm1364_vm6, 0.0, %v4682_v4  ;;  %4873 = vmatpush.bf16.msrb.mxu1 %v5628_v63  ;;  %4933 = vmatpush.bf16.msra.mxu0 %v5636_v58  ;;  %v5635_v4 = vld [vmem:[#allocation20 + $0x70] sm:$0xff] }
0x1892   : > { %v4680_v10 = vrot.slane %v4665_v3, 4  ;;  %v4685_v11 = vsel %vm1364_vm6, 0.0, %v4684_v5  ;;  %v4697_v12 = vsel %vm1364_vm6, %v4684_v5, %v4673_v56 }
0x1893   : > { %v4701_v13 = vperm.slane %v4697_v12, %v7136_v46  ;;  %v4702_v14 = vrot.slane %v4685_v11, 4  ;;  %v4679_v19 = vsel %vm1364_vm6, 0.0, %v4678_v7  ;;  %v5634_v7 = vld [vmem:[#allocation20 + $0x68] sm:$0xff] }
0x1894   : > { %v4681_v15 = vsel %vm1364_vm6, 0.0, %v4680_v10  ;;  %v4686_v16 = vsel %vm1364_vm6, %v4680_v10, %v4661_v0  ;;  %v5627_v0 = vld [vmem:[%s8271_s26 + $0x10] sm:$0xff] }
0x1895   : > { %v4703_v17 = vsel %vm1364_vm6, %v4702_v14, %v4683_v26  ;;  %v4690_v31 = vperm.slane %v4686_v16, %v7136_v46  ;;  %v4691_v51 = vrot.slane %v4681_v15, 4  ;;  %v4722_v33 = vrot.slane %v4701_v13, 4  ;;  %4874 = vmatpush.bf16.msrb.mxu1 %v5627_v0  ;;  %4934 = vmatpush.bf16.msra.mxu0 %v5635_v4  ;;  %v5633_v10 = vld [vmem:[#allocation20 + $0x60] sm:$0xff]  ;;  %v5631_v26 = vld [vmem:[#allocation20 + $0x50] sm:$0xff] }
0x1896   : > { %v4707_v20 = vperm.slane %v4703_v17, %v7136_v46 }
0x1897   : > { %v4692_v23 = vsel %vm1364_vm6, %v4691_v51, %v4679_v19  ;;  %v4710_v41 = vrot.slane %v4690_v31, 4 }
0x1898   : > { %v4696_v47 = vperm.slane %v4692_v23, %v7136_v46  ;;  %v4723_v24 = vsel %vm1364_vm6, %v4707_v20, %v4722_v33  ;;  %v4720_v25 = vrot.slane %v4707_v20, 4  ;;  %v5965_v33 = vld [vmem:[%s8275_s8 + $0x1] ss:$0 sm:$0xff]  ;;  %s6515_s8 = sshra.s32 %s5031_s6, 4  ;;  %s6516_s8 = int_to_ptr.hbm [resolvable:$true] %s6515_s8 }
0x1899   : > { %v4731_v44 = vperm.slane %v4723_v24, %v7146_v61  ;;  %4935 = vmatpush.bf16.msra.mxu0 %v5634_v7  ;;  %v5629_v24 = vld [vmem:[#allocation20 + $0x40] sm:$0xff]  ;;  %p6522_p1 = scmp.lt.s32.totalorder %s6516_s8, %s8287_s3 }
0x189a   : > { %v4711_v27 = vsel %vm1364_vm6, %v4696_v47, %v4710_v41  ;;  %v4708_v30 = vrot.slane %v4696_v47, 4  ;;  %v4721_v60 = vsel %vm1364_vm6, %v4720_v25, %v4701_v13  ;;  %v5632_v13 = vld [vmem:[#allocation20 + $0x58] sm:$0xff]  ;;  %v5630_v47 = vld [vmem:[#allocation20 + $0x48] sm:$0xff] }
0x189b   : > { %v4719_v6 = vperm.slane %v4711_v27, %v7146_v61  ;;  %v4736_v1 = vrot.slane %v4731_v44, 4  ;;  %v4727_v22 = vperm.slane %v4721_v60, %v7146_v61  ;;  %v5966_v25 = vld [vmem:[#allocation19 + $0x1] ss:$0 sm:$0xff] }
0x189c   : > { %v4709_v48 = vsel %vm1364_vm6, %v4708_v30, %v4690_v31  ;;  %v5964_v31 = vld [vmem:[%s8273_s7 + $0x1] ss:$0 sm:$0xff] }
0x189d   : > { %v4737_v46 = vsel %vm1364_vm6, %v4736_v1, %v4719_v6  ;;  %v4715_v36 = vperm.slane %v4709_v48, %v7146_v61  ;;  %v4732_v18 = vrot.slane %v4727_v22, 4  ;;  %v4738_v34 = vrot.slane %v4719_v6, 4  ;;  %4936 = vmatpush.bf16.msra.mxu0 %v5633_v10  ;;  %v5967_v1 = vld [vmem:[#allocation22 + $0x1] ss:$0 sm:$0xff] }
0x189e   : > { %4745 = vrot.lane.b32.xlu1 %v4737_v46, %s8283_s16 }
0x189f   : > { %v4734_v29 = vrot.slane %v4715_v36, 4  ;;  %v4733_v32 = vsel %vm1364_vm6, %v4732_v18, %v4715_v36  ;;  %v4739_v37 = vsel %vm1364_vm6, %v4731_v44, %v4738_v34 }
0x18a1   : > { %v4735_v53 = vsel %vm1364_vm6, %v4727_v22, %v4734_v29  ;;  %4937 = vmatpush.bf16.msra.mxu0 %v5632_v13 }
0x18a2   : > { %4741 = vrot.lane.b32.xlu2 %v4735_v53, %s8284_s4 }
0x18a5   : > { %4938 = vmatpush.bf16.msra.mxu0 %v5631_v26 }
0x18a9   : > { %4939 = vmatpush.bf16.msra.mxu0 %v5630_v47 }
0x18aa   : > { %4749 = vrot.lane.b32.xlu2 %v4739_v37, %s8285_s5  ;;  %s8286_s5 = sld [smem:[#allocation56_spill]] }
0x18ad   : > { %4940 = vmatpush.bf16.msra.mxu0 %v5629_v24 }
0x18b0   : > { %s1200_s4 = sand.u32 1, %s8286_s5   ;;  %s6517_s5 = scalar_lea.hbm %s6516_s8, 8 }
0x18b1   : > { %s5335_s22 = sshll.u32 %s1200_s4, 3  ;;  %s5016_s7 = scalar_lea.sflag [#allocation4], %s1200_s4 }
0x18b2   : > { %s1202_s16 = scalar_lea.vmem [#allocation26], %s5335_s22  ;;  %p6518_p9 = scmp.ne.s32.totalorder %s6516_s8, %s6517_s5 }
0x18b3   : > { %s5028_s2 = sshll.u32 %s1202_s16, 4  ;;  %p6523_p2 = scmp.lt.s32.totalorder %s6521_s0, %s6517_s5  ;;  %s5029_s2 = int_to_ptr.vmem [resolvable:$true] %s5028_s2 }
0x18b4   : > { %p6519_p12 = pnand %p6518_p9, %p6858_p5 }
0x18b5   : > { %p6524_p3 = por %p6523_p2, %p6522_p1 }
0x18b6   : > { %p6520_p0 = pneg %p6519_p12 }
0x18b8   : > { %p6525_p4 = pnand %p6524_p3, %p6520_p0 }
0x18fc   : > { %v4742_v61 = vpop.permute.xlu2 %4741 }
0x18fd   : > { %v4752_v43 = vsel %vm1730_vm7, %v4733_v32, %v4742_v61 }
0x1904   : > { %v4750_v9 = vpop.permute.xlu2 %4749 }
0x1910   : > { %v4746_v45 = vpop.permute.xlu1 %4745 }
0x1911   : > { %v4753_v49 = vsel %vm2063_vm9, %v4752_v43, %v4746_v45 }
0x1912   : > { %v4754_v50 = vsel %vm2065_vm10, %v4753_v49, %v4750_v9 }
0x1913   : > { %v4755_v2 = vpack.c.bf16 %v4754_v50, %v4754_v50 }
0x1915   : > { %5533 = vmatmul.msk.bf16.vlgmr.msra.gmra.mxu3 %vm1336_vm5, %v4755_v2 }
0x1998   : > { %v4783_v38 = vpop.f32.mrf.mxu3 }
0x1999   : > { %v4784_v21 = vadd.f32 %v5963_v52, %v4783_v38 }
0x199b   : > { %v4787_v62 = vadd.f32 %v4784_v21, %v7888_v35  ;;  %v5968_v21 = vld [vmem:[%s8277_s28 + $0x1] ss:$0 sm:$0xff] }
0x199d   : > { %v4788_v42 = vsel %vm1336_vm5, %v4787_v62, 0.0 }
0x199e   : > { %4789 = vadd.xlane.f32.xlu2 %v4788_v42  ;;  %v5969_v42 = vld [vmem:[%s6803_s9 + $0x1] ss:$0 sm:$0xff] }
0x19a0   : > { %v4785_v54 = vpop.f32.mrf.mxu3 }
0x1a11   : > { %v4790_v55 = vpop.xlane.xlu2 %4789 }
0x1a12   : > { %v4791_v56 = vmul.f32 %v4790_v55, %v7364_v57 }
0x1a14   : > { %v4792_v59 = vsub.f32 %v4787_v62, %v4791_v56 }
0x1a16   : > { %v4793_v8 = vmul.f32 %v4792_v59, %v4792_v59 }
0x1a18   : > { %v4794_v28 = vsel %vm1336_vm5, %v4793_v8, 0.0 }
0x1a19   : > { %4795 = vadd.xlane.f32.xlu1 %v4794_v28 }
0x1a8c   : > { %v4796_v3 = vpop.xlane.xlu1 %4795 }
0x1a8d   : > { %v4797_v35 = vmul.f32 %v4796_v3, %v7364_v57 }
0x1a8f   : > { %v4798_v5 = vadd.f32 1e-05, %v4797_v35 }
0x1a91   : > { %6045 = vrsqrt.f32 %v4798_v5  ;;  %vm4805_vm7 = vweird.f32 %v4798_v5 }
0x1a97   : > { %v6046_v11 = vpop.eup %6045 }
0x1a98   : > { %v4800_v12 = vmul.f32 %v6046_v11, %v4798_v5  ;;  %vm4806_vm6 = vweird.f32 %v6046_v11 }
0x1a99   : > { %vm4807_vm8 = vmor %vm4805_vm7, %vm4806_vm6 }
0x1a9a   : > { %v4801_v14 = vmul.f32 %v6046_v11, %v4800_v12 }
0x1a9c   : > { %v4802_v15 = vmul.f32 0.5, %v4801_v14 }
0x1a9e   : > { %v4803_v16 = vsub.f32 1.5, %v4802_v15 }
0x1aa0   : > { %v4804_v17 = vmul.f32 %v6046_v11, %v4803_v16 }
0x1aa2   : > { %v4808_v51 = vsel %vm4807_vm8, %v6046_v11, %v4804_v17 }
0x1aa3   : > { %v4809_v19 = vmul.f32 %v4808_v51, %v4792_v59  ;;  %v5970_v59 = vld [vmem:[#allocation25] ss:$0 sm:$0xff] }
0x1aa5   : > { %v4813_v20 = vmul.f32 %v5964_v31, %v4809_v19 }
0x1aa7   : > { %v4817_v23 = vadd.f32 %v5965_v33, %v4813_v20 }
0x1aa9   : > { %v4848_v41 = vpack.c.bf16 %v4817_v23, %v4817_v23 }
0x1aab   : > { %5548 = vmatmul.msk.bf16.vlgmr.msrb.gmra.mxu1 %vm1336_vm5, %v4848_v41 }
0x1b28   : > { %v4876_v44 = vpop.f32.mrf.mxu1 }
0x1b29   : > { %v4877_v27 = vadd.f32 %v5966_v25, %v4876_v44 }
0x1b2b   : > { %v4880_v30 = vmax.f32 %v4877_v27, 0.0 }
0x1b2d   : > { %v4881_v60 = vpack.c.bf16 %v4880_v30, %v4880_v30 }
0x1b2f   : > { %4941 = vmatmul.bf16.vlgmr.msra.gmra.mxu0 %v4881_v60 }
0x1b30   : > { %v4878_v6 = vpop.f32.mrf.mxu1 }
0x1bac   : > { %v4942_v22 = vpop.f32.mrf.mxu0 }
0x1bad   : > { %v4943_v48 = vadd.f32 %v5967_v1, %v4942_v22 }
0x1baf   : > { %v4946_v46 = vadd.f32 %v4943_v48, %v4817_v23 }
0x1bb1   : > { %v4947_v36 = vsel %vm1336_vm5, %v4946_v46, 0.0 }
0x1bb2   : > { %4948 = vadd.xlane.f32.xlu0 %v4947_v36 }
0x1bb4   : > { %v4944_v18 = vpop.f32.mrf.mxu0 }
0x1c25   : > { %v4949_v29 = vpop.xlane.xlu0 %4948 }
0x1c26   : > { %v4950_v32 = vmul.f32 %v4949_v29, %v7364_v57 }
0x1c28   : > { %v4951_v53 = vsub.f32 %v4946_v46, %v4950_v32 }
0x1c2a   : > { %v4952_v34 = vmul.f32 %v4951_v53, %v4951_v53 }
0x1c2c   : > { %v4953_v37 = vsel %vm1336_vm5, %v4952_v34, 0.0 }
0x1c2d   : > { %4954 = vadd.xlane.f32.xlu0 %v4953_v37 }
0x1ca0   : > { %v4955_v61 = vpop.xlane.xlu0 %4954 }
0x1ca1   : > { %v4956_v43 = vmul.f32 %v4955_v61, %v7364_v57 }
0x1ca3   : > { %v4957_v45 = vadd.f32 1e-05, %v4956_v43 }
0x1ca5   : > { %6047 = vrsqrt.f32 %v4957_v45  ;;  %vm4964_vm10 = vweird.f32 %v4957_v45 }
0x1cab   : > { %v6048_v9 = vpop.eup %6047 }
0x1cac   : > { %v4959_v49 = vmul.f32 %v6048_v9, %v4957_v45  ;;  %vm4965_vm9 = vweird.f32 %v6048_v9 }
0x1cad   : > { %vm4966_vm15 = vmor %vm4964_vm10, %vm4965_vm9 }
0x1cae   : > { %v4960_v50 = vmul.f32 %v6048_v9, %v4959_v49 }
0x1cb0   : > { %v4961_v2 = vmul.f32 0.5, %v4960_v50 }
0x1cb2   : > { %v4962_v52 = vsub.f32 1.5, %v4961_v2 }
0x1cb4   : > { %v4963_v38 = vmul.f32 %v6048_v9, %v4962_v52 }
0x1cb6   : > { %v4967_v62 = vsel %vm4966_vm15, %v6048_v9, %v4963_v38 }
0x1cb7   : > { %v4968_v54 = vmul.f32 %v4967_v62, %v4951_v53 }
0x1cb9   : > { %v4972_v55 = vmul.f32 %v5968_v21, %v4968_v54 }
0x1cbb   : > { %v4976_v57 = vadd.f32 %v5969_v42, %v4972_v55 }
0x1cbd   : > { %v4977_v56 = vpack.c.bf16 %v4976_v57, %v4976_v57 }
0x1cbf   : > { %5589 = vmatmul.msk.bf16.vlgmr.msra.gmra.mxu2 %vm1336_vm5, %v4977_v56 }
0x1d42   : > { %v5010_v8 = vpop.f32.mrf.mxu2 }
0x1d43   : > { %v5011_v28 = vadd.f32 %v5970_v59, %v5010_v8 }
0x1d45   : > { %5014 = vst.msk [vmem:[%s1202_s16] sm:$0xff] %vm1283_vm4, %v5011_v28 }
0x1d46   : > { %6528 = shalt.err (!%p6525_p4)
}
0x1d47   : > { %5704 = dma.vmem_to_hbm [thread:$0]  (%p6858_p5), %s5029_s2, 128, %s5031_s6, %s5016_s7  }
0x1d4a   : > { %v5012_v63 = vpop.f32.mrf.mxu2 }
0x1d4b PF: > { %s8289_s1 = sld [smem:[#allocation58_spill]] }
0x1d4c   : > { %s8290_s4 = sld [smem:[#allocation55_spill]] }
0x1d51   : > { %p5786_p7 = scmp.ge.s32.totalorder %s8289_s1, 2 }
0x1d52   : > { %s5042_s18 = sand.u32 1, %s8290_s4  }
0x1d53   : > { %p5753_p8 = pnand %p5786_p7, %p6862_p6  ;;  %s5043_s16 = scalar_lea.sflag [#allocation4], %s5042_s18 }
0x1d55   : > { %p5754_p11 = pneg %p5753_p8 }
0x1d57   : > { %6578 = dma.done.wait (%p5754_p11), %s5043_s16, 128  }
0x1d58   : > { %6580 = vsyncadd (%p5754_p11), %s5043_s16, 4294967168  ;;  %s8292_s22 = sld [smem:[#allocation59_spill]] }
0x1d59   : > { %s8293_s15 = sld [smem:[#allocation56_spill]] }
0x1d5a   : > { %s8294_s16 = sld [smem:[#allocation57_spill]] }
0x1d5b   : > { %s8295_s18 = sld [smem:[#allocation60_spill]] }
0x1d5e   : > { %p79_p13 = scmp.ge.s32.totalorder %s8292_s22, 4  }
0x1d60   :  { %81 = sbr.rel (!%p79_p13) target bundleno = 69 (0x45), region = 295 }
0x1d65   :  { %5049 = vsyncpa [#allocation3], 1 }
0x1d66   :  { %5051 = vsyncpa [#allocation3 + $0x1], 1 }
0x1d67   :  { %5052 = vsyncpa [#allocation6], 1 }
0x1d68   :  { %5053 = vsyncpa [#allocation9], 1 }
0x1d69   :  { %5054 = vsyncpa [#allocation12], 1 }
0x1d6a   :  { %5055 = vsyncpa [#allocation15], 1 }
0x1d6b   :  { %5056 = vsyncpa [#allocation18], 1 }
0x1d6c   :  { %5057 = vsyncpa [#allocation21], 1 }
0x1d6d   :  { %5058 = vsyncpa [#allocation24], 1 }
0x1d6e   :  { %5059 = vsyncpa [#allocation4], 1 }
0x1d6f   :  { %5061 = vsyncpa [#allocation4 + $0x1], 1 }

</bundles_post_ra>
